<compile_context>
chip_gen: v6e
topology: v6e:2x2x1
jax: 0.10.0
libtpu: 0.0.40
codegen_flags: <defaults>
</compile_context>

<pallas_src>
import functools

import jax
import jax.numpy as jnp
from jax import lax
from jax.experimental import pallas as pl
from jax.experimental.pallas import tpu as pltpu

BN_EPS = 1e-5

IN_DIM = 3
HIDDEN_DIMS = (64, 128, 1024)
REGRESSION_DIMS = (512, 256)

# Row budgets per VMEM tile: small enough for v7x's 64 MiB VMEM with wide margin,
# big enough to fill the MXU M dimension and amortize per-grid-step overhead.
_ENCODE_TILE_ROWS = 1024
_POOL_TILE_ROWS = 512


# --------------------------------------------------------------------------------------
# Kernels
# --------------------------------------------------------------------------------------
def _encode_layer_kernel(hin_ref, scale_ref, shift_ref, w_ref, b_ref,
                         hout_ref, stats_ref):
    """One encoder stage on one row tile:
       act = relu(prev-BN affine(h_in));  h_out = act @ W + b;
       accumulate [sum, sum-of-squares](h_out) into a resident (2, Cout) output."""
    t = pl.program_id(0)
    act = jnp.maximum(
        hin_ref[...].astype(jnp.float32) * scale_ref[...] + shift_ref[...], 0.0)
    h = jnp.dot(act.astype(jnp.bfloat16), w_ref[...],
                preferred_element_type=jnp.float32) + b_ref[...]          # (TR, Cout) f32
    hout_ref[...] = h.astype(jnp.bfloat16)
    upd = jnp.concatenate([jnp.sum(h, axis=0, keepdims=True),
                           jnp.sum(h * h, axis=0, keepdims=True)], axis=0)  # (2, Cout)

    @pl.when(t == 0)
    def _():
        stats_ref[...] = upd

    @pl.when(t > 0)
    def _():
        stats_ref[...] = stats_ref[...] + upd


def _feat_pool_kernel(h_ref, scale_ref, shift_ref, w_ref, b_ref, glob_ref):
    """Layer 4 + per-cloud max-pool on a (CB clouds, TN rows) block.  One fat
    (CB*TN, 128) @ (128, 1024) MXU matmul per step, unrolled per-cloud maxes, and a
    running max over the row-chunk grid axis so the f32 y temporary stays one chunk."""
    nc = pl.program_id(1)
    cb, tn, cin = h_ref.shape
    act = jnp.maximum(
        h_ref[...].astype(jnp.float32) * scale_ref[...] + shift_ref[...], 0.0)
    y = jnp.dot(act.reshape(cb * tn, cin).astype(jnp.bfloat16), w_ref[...],
                preferred_element_type=jnp.float32) + b_ref[...]          # (CB*TN, 1024)
    m = jnp.concatenate(
        [jnp.max(y[c * tn:(c + 1) * tn], axis=0, keepdims=True) for c in range(cb)],
        axis=0)                                                           # (CB, 1024)

    @pl.when(nc == 0)
    def _():
        glob_ref[...] = m

    @pl.when(nc > 0)
    def _():
        glob_ref[...] = jnp.maximum(glob_ref[...], m)


def _head_kernel(g_ref, w1_ref, b1_ref, w2_ref, b2_ref, w3_ref, b3_ref, out_ref):
    """Regression head (1024 -> 512 -> 256 -> out_pad) on the pooled features."""
    r = jnp.dot(g_ref[...].astype(jnp.bfloat16), w1_ref[...],
                preferred_element_type=jnp.float32) + b1_ref[...]
    r = jnp.maximum(r, 0.0)
    r = jnp.dot(r.astype(jnp.bfloat16), w2_ref[...],
                preferred_element_type=jnp.float32) + b2_ref[...]
    r = jnp.maximum(r, 0.0)
    out_ref[...] = jnp.dot(r.astype(jnp.bfloat16), w3_ref[...],
                           preferred_element_type=jnp.float32) + b3_ref[...]


# --------------------------------------------------------------------------------------
# Tiling helpers (pure Python on static shapes)
# --------------------------------------------------------------------------------------
def _row_tile(total, max_rows):
    """Largest divisor of `total` that is a multiple of 16 (bf16 sublane pack) and
    <= max_rows.  A full-extent block (== total) is always legal, so fall back to it."""
    if total <= max_rows:
        return total
    best = 0
    for t in range(16, max_rows + 1, 16):
        if total % t == 0:
            best = t
    return best if best else total


def _cloud_blocking(batch, n_pts, max_rows):
    """(clouds-per-block, rows-per-chunk) for the layer-4 / max-pool call."""
    if n_pts > max_rows:
        return 1, _row_tile(n_pts, max_rows)
    # Several whole clouds per grid step; keep the (CB, 1024) output block
    # sublane-friendly (CB == batch, a multiple of 8, or 1).
    budget = max(1, max_rows // n_pts)
    for c in sorted((c for c in range(1, batch + 1) if batch % c == 0), reverse=True):
        if c <= budget and (c == batch or c % 8 == 0 or c == 1):
            return c, n_pts
    return 1, n_pts


def _const_spec(shape, index_map, single_buffer):
    """BlockSpec for a parameter whose block index never changes across the grid.
    single_buffer=True drops the pointless double buffer (review item)."""
    if single_buffer:
        return pl.BlockSpec(shape, index_map,
                            pipeline_mode=pl.Buffered(buffer_count=1))
    return pl.BlockSpec(shape, index_map)


# --------------------------------------------------------------------------------------
# pallas_call wrappers
# --------------------------------------------------------------------------------------
def _encode_layer(hin, scale, shift, w, b, tile_rows, single_buffer):
    """Streamed Linear + global-BN-stat accumulation over row tiles."""
    rows, cin = hin.shape
    cout = w.shape[1]
    cmap = lambda t: (0, 0)
    hout, stats = pl.pallas_call(
        _encode_layer_kernel,
        out_shape=(jax.ShapeDtypeStruct((rows, cout), jnp.bfloat16),
                   jax.ShapeDtypeStruct((2, cout), jnp.float32)),
        grid_spec=pltpu.PrefetchScalarGridSpec(
            num_scalar_prefetch=0,
            grid=(rows // tile_rows,),
            in_specs=[
                pl.BlockSpec((tile_rows, cin), lambda t: (t, 0)),
                _const_spec((1, cin), cmap, single_buffer),
                _const_spec((1, cin), cmap, single_buffer),
                _const_spec((cin, cout), cmap, single_buffer),
                _const_spec((1, cout), cmap, single_buffer),
            ],
            out_specs=(
                pl.BlockSpec((tile_rows, cout), lambda t: (t, 0)),
                pl.BlockSpec((2, cout), cmap),        # resident sum/sumsq accumulator
            ),
        ),
        compiler_params=pltpu.CompilerParams(
            dimension_semantics=("arbitrary",)),      # accumulator across row tiles
    )(hin, scale, shift, w, b)
    return hout, stats


def _feat_pool(h3, scale, shift, w, b, batch, n_pts, clouds_per_blk, tile_rows,
               single_buffer):
    """Layer 4 + per-cloud max-pool: parallel over cloud blocks, running max over
    row chunks."""
    cin = h3.shape[-1]
    cout = w.shape[1]
    cmap = lambda cb, nc: (0, 0)
    return pl.pallas_call(
        _feat_pool_kernel,
        out_shape=jax.ShapeDtypeStruct((batch, cout), jnp.float32),
        grid_spec=pltpu.PrefetchScalarGridSpec(
            num_scalar_prefetch=0,
            grid=(batch // clouds_per_blk, n_pts // tile_rows),
            in_specs=[
                pl.BlockSpec((clouds_per_blk, tile_rows, cin),
                             lambda cb, nc: (cb, nc, 0)),
                _const_spec((1, cin), cmap, single_buffer),
                _const_spec((1, cin), cmap, single_buffer),
                _const_spec((cin, cout), cmap, single_buffer),
                _const_spec((1, cout), cmap, single_buffer),
            ],
            out_specs=pl.BlockSpec((clouds_per_blk, cout), lambda cb, nc: (cb, 0)),
        ),
        compiler_params=pltpu.CompilerParams(
            # Independent clouds -> shard across both v7x TensorCores; the row-chunk
            # axis carries the running-max accumulator.
            dimension_semantics=("parallel", "arbitrary")),
    )(h3.reshape(batch, n_pts, cin), scale, shift, w, b)


# --------------------------------------------------------------------------------------
# Parameters / forward / reference
# --------------------------------------------------------------------------------------
def init_params(key, in_dim=IN_DIM, hidden_dims=HIDDEN_DIMS,
                regression_dims=REGRESSION_DIMS):
    """Deterministic synthetic parameters matching the PyTorch module's shapes.
    Linear weights are stored already transposed: (fan_in, fan_out)."""
    dims = [in_dim, hidden_dims[0], hidden_dims[0], hidden_dims[1], hidden_dims[2]]
    rdims = [hidden_dims[2], *regression_dims, in_dim * in_dim]
    params = []
    keys = iter(jax.random.split(key, 32))

    for i in range(4):                                    # encoder Linear (+BN for i<3)
        fan_in, fan_out = dims[i], dims[i + 1]
        w = jax.random.normal(next(keys), (fan_in, fan_out), jnp.float32) / jnp.sqrt(fan_in)
        b = 0.01 * jax.random.normal(next(keys), (fan_out,), jnp.float32)
        params += [w, b]
        if i < 3:
            gamma = 1.0 + 0.1 * jax.random.normal(next(keys), (fan_out,), jnp.float32)
            beta = 0.1 * jax.random.normal(next(keys), (fan_out,), jnp.float32)
            params += [gamma, beta]

    for i in range(3):                                    # regression Linear layers
        fan_in, fan_out = rdims[i], rdims[i + 1]
        w = jax.random.normal(next(keys), (fan_in, fan_out), jnp.float32) / jnp.sqrt(fan_in)
        b = 0.01 * jax.random.normal(next(keys), (fan_out,), jnp.float32)
        params += [w, b]
    return params


@functools.partial(jax.jit, static_argnames=("single_buffer",))
def tnet_forward(x, params, single_buffer=True):
    B, N, in_dim = x.shape
    (w1, b1, g1, be1, w2, b2, g2, be2, w3, b3, g3, be3,
     w4, b4, rw1, rb1, rw2, rb2, rw3, rb3) = params

    rows = B * N
    out_dim = in_dim * in_dim
    out_pad = pl.cdiv(out_dim, 128) * 128                 # lane-dense output width

    rowv = lambda v: v.reshape(1, -1).astype(jnp.float32)
    bf = lambda w: w.astype(jnp.bfloat16)

    # ---- layer 1 (K = in_dim = 3) + its BN statistics in XLA (review item): feed the
    #      kernels a lane-dense (B*N, 64) bf16 tensor instead of a VMEM-resident
    #      (B*N, 3) -> 128-lane-padded buffer.
    h1 = x.reshape(rows, in_dim) @ w1 + b1                # (rows, 64) f32
    m1 = jnp.mean(h1, axis=0, keepdims=True)
    v1 = jnp.mean(h1 * h1, axis=0, keepdims=True) - m1 * m1
    s1 = rowv(g1) * lax.rsqrt(v1 + BN_EPS)
    t1 = rowv(be1) - m1 * s1
    h1 = h1.astype(jnp.bfloat16)

    def affine_from_stats(stats, gamma, beta):            # (2, C) sums -> BN affine
        mean = stats[0:1, :] / rows
        var = stats[1:2, :] / rows - mean * mean
        s = rowv(gamma) * lax.rsqrt(var + BN_EPS)
        return s, rowv(beta) - mean * s

    # ---- encoder layers 2-3: streamed Linear + global BN statistics.
    tr = _row_tile(rows, _ENCODE_TILE_ROWS)
    h2, st2 = _encode_layer(h1, s1, t1, bf(w2), rowv(b2), tr, single_buffer)
    s2, t2 = affine_from_stats(st2, g2, be2)
    h3, st3 = _encode_layer(h2, s2, t2, bf(w3), rowv(b3), tr, single_buffer)
    s3, t3 = affine_from_stats(st3, g3, be3)

    # ---- layer 4 + per-cloud max-pool (parallel over cloud blocks).
    cb, tn = _cloud_blocking(B, N, _POOL_TILE_ROWS)
    glob = _feat_pool(h3, s3, t3, bf(w4), rowv(b4), B, N, cb, tn, single_buffer)

    # ---- regression head: tiny (M = B), single ungridded call, 128-padded output.
    rw3_p = jnp.pad(bf(rw3), ((0, 0), (0, out_pad - out_dim)))
    rb3_p = jnp.pad(rowv(rb3), ((0, 0), (0, out_pad - out_dim)))
    flat = pl.pallas_call(
        _head_kernel,
        out_shape=jax.ShapeDtypeStruct((B, out_pad), jnp.float32),
    )(glob, bf(rw1), rowv(rb1), bf(rw2), rowv(rb2), rw3_p, rb3_p)

    flat = flat[:, :out_dim]
    eye = jnp.eye(in_dim, dtype=jnp.float32).reshape(1, out_dim)   # identity bias
    return (flat + eye).reshape(B, in_dim, in_dim)


def tnet_reference(x, params, matmul_dtype=jnp.float32):
    """Pure-JAX reference mirroring the PyTorch forward (training-mode BN).
    matmul_dtype=jnp.bfloat16 also mirrors the kernel pipeline's precision scheme
    (bf16 MXU operands and bf16-stored intermediates, f32 stats / accumulation)."""
    B, N, in_dim = x.shape
    (w1, b1, g1, be1, w2, b2, g2, be2, w3, b3, g3, be3,
     w4, b4, rw1, rb1, rw2, rb2, rw3, rb3) = params

    def dot(a, w):
        return jnp.dot(a.astype(matmul_dtype), w.astype(matmul_dtype),
                       preferred_element_type=jnp.float32)

    def stats(h):
        m = jnp.mean(h, axis=0, keepdims=True)
        s = lax.rsqrt(jnp.mean(h * h, axis=0, keepdims=True) - m * m + BN_EPS)
        return m, s

    store = lambda h: h.astype(matmul_dtype).astype(jnp.float32)

    h = x.reshape(B * N, in_dim) @ w1 + b1                 # layer 1 stays f32 (XLA path)
    m, s = stats(h)
    scale, shift = g1 * s, be1 - m * (g1 * s)
    h = store(h)
    for (w, b, g, be) in ((w2, b2, g2, be2), (w3, b3, g3, be3)):
        a = jnp.maximum(h * scale + shift, 0.0)
        h = dot(a, w) + b
        m, s = stats(h)
        scale, shift = g * s, be - m * (g * s)
        h = store(h)
    a = jnp.maximum(h * scale + shift, 0.0)
    y = dot(a, w4) + b4
    glob = jnp.max(y.reshape(B, N, -1), axis=1)
    r = jnp.maximum(dot(glob, rw1) + rb1, 0.0)
    r = jnp.maximum(dot(r, rw2) + rb2, 0.0)
    r = dot(r, rw3) + rb3
    r = r + jnp.eye(in_dim, dtype=jnp.float32).reshape(1, in_dim * in_dim)
    return r.reshape(B, in_dim, in_dim)


if __name__ == "__main__":
    key = jax.random.PRNGKey(0)
    k_x, k_p = jax.random.split(key)

    B, N = 2, 64                                           # small point clouds, in_dim=3
    x = jax.random.normal(k_x, (B, N, IN_DIM), jnp.float32)
    params = init_params(k_p)

    try:
        out = jax.block_until_ready(tnet_forward(x, params, single_buffer=True))
    except Exception:
        # Installed Pallas may predate BlockSpec pipeline_mode / pl.Buffered(1);
        # fall back to default (double-buffered) parameter specs.
        out = jax.block_until_ready(tnet_forward(x, params, single_buffer=False))
    assert out.shape == (B, IN_DIM, IN_DIM), out.shape

    # Tight check vs. a reference mirroring the kernel's precision choices.
    ref_bf16 = tnet_reference(x, params, matmul_dtype=jnp.bfloat16)
    if not bool(jnp.allclose(out, ref_bf16, rtol=1e-2, atol=1e-2)):
        raise AssertionError("Pallas TNet does not match precision-mirrored reference")

    # Loose sanity bound vs. the pure-f32 reference (covers bf16 rounding drift).
    ref_f32 = tnet_reference(x, params, matmul_dtype=jnp.float32)
    if not bool(jnp.allclose(out, ref_f32, rtol=1e-1, atol=2e-1)):
        raise AssertionError("Pallas TNet drifted too far from the f32 reference")

    print("KERNEL_OK")
</pallas_src>

<mosaic_0001>
module attributes {stable_mosaic.version = 11 : i64} {
  func.func @_encode_layer_kernel(%arg0: i32, %arg1: memref<128x64xbf16, #tpu.memory_space<vmem>>, %arg2: memref<1x64xf32, #tpu.memory_space<vmem>>, %arg3: memref<1x64xf32, #tpu.memory_space<vmem>>, %arg4: memref<64x64xbf16, #tpu.memory_space<vmem>>, %arg5: memref<1x64xf32, #tpu.memory_space<vmem>>, %arg6: memref<128x64xbf16, #tpu.memory_space<vmem>>, %arg7: memref<2x64xf32, #tpu.memory_space<vmem>>) attributes {dimension_semantics = [#tpu.dimension_semantics<arbitrary>], iteration_bounds = array<i64: 1>, scalar_prefetch = 0 : i64, scratch_operands = 0 : i64, tpu.core_type = #tpu.core_type<tc>, window_params = [{transform_indices = @transform_0, window_bounds = array<i64: 128, 64>}, {pipeline_mode = #tpu.pipeline_mode<synchronous>, transform_indices = @transform_1, window_bounds = array<i64: 1, 64>}, {pipeline_mode = #tpu.pipeline_mode<synchronous>, transform_indices = @transform_2, window_bounds = array<i64: 1, 64>}, {pipeline_mode = #tpu.pipeline_mode<synchronous>, transform_indices = @transform_3, window_bounds = array<i64: 64, 64>}, {pipeline_mode = #tpu.pipeline_mode<synchronous>, transform_indices = @transform_4, window_bounds = array<i64: 1, 64>}, {transform_indices = @transform_5, window_bounds = array<i64: 128, 64>}, {pipeline_mode = #tpu.pipeline_mode<synchronous>, transform_indices = @transform_6, window_bounds = array<i64: 2, 64>}]} {
    %c0 = arith.constant 0 : index
    %c0_0 = arith.constant 0 : index
    %0 = vector.load %arg1[%c0, %c0_0] : memref<128x64xbf16, #tpu.memory_space<vmem>>, vector<128x64xbf16>
    %1 = arith.extf %0 : vector<128x64xbf16> to vector<128x64xf32>
    %c0_1 = arith.constant 0 : index
    %c0_2 = arith.constant 0 : index
    %2 = vector.load %arg2[%c0_1, %c0_2] : memref<1x64xf32, #tpu.memory_space<vmem>>, vector<1x64xf32>
    %3 = vector.broadcast %2 : vector<1x64xf32> to vector<128x64xf32>
    %4 = arith.mulf %1, %3 : vector<128x64xf32>
    %c0_3 = arith.constant 0 : index
    %c0_4 = arith.constant 0 : index
    %5 = vector.load %arg3[%c0_3, %c0_4] : memref<1x64xf32, #tpu.memory_space<vmem>>, vector<1x64xf32>
    %6 = vector.broadcast %5 : vector<1x64xf32> to vector<128x64xf32>
    %7 = arith.addf %4, %6 : vector<128x64xf32>
    %cst = arith.constant 0.000000e+00 : f32
    %8 = vector.broadcast %cst : f32 to vector<128x64xf32>
    %9 = arith.maximumf %7, %8 : vector<128x64xf32>
    %10 = arith.truncf %9 : vector<128x64xf32> to vector<128x64xbf16>
    %c0_5 = arith.constant 0 : index
    %c0_6 = arith.constant 0 : index
    %11 = vector.load %arg4[%c0_5, %c0_6] : memref<64x64xbf16, #tpu.memory_space<vmem>>, vector<64x64xbf16>
    %cst_7 = arith.constant dense<0.000000e+00> : vector<128x64xf32>
    %12 = tpu.matmul %10, %11, %cst_7 {dimension_numbers = #tpu.dot_dimension_numbers<[1], [0], [0], [1], [0, 0, 1, 1], [], []>} : vector<128x64xbf16>, vector<64x64xbf16>, vector<128x64xf32> -> vector<128x64xf32>
    %c0_8 = arith.constant 0 : index
    %c0_9 = arith.constant 0 : index
    %13 = vector.load %arg5[%c0_8, %c0_9] : memref<1x64xf32, #tpu.memory_space<vmem>>, vector<1x64xf32>
    %14 = vector.broadcast %13 : vector<1x64xf32> to vector<128x64xf32>
    %15 = arith.addf %12, %14 : vector<128x64xf32>
    %16 = arith.truncf %15 : vector<128x64xf32> to vector<128x64xbf16>
    %c0_10 = arith.constant 0 : index
    %c0_11 = arith.constant 0 : index
    %17 = vector.load %arg6[%c0_10, %c0_11] : memref<128x64xbf16, #tpu.memory_space<vmem>>, vector<128x64xbf16>
    tpu.vector_store %arg6[%c0_10, %c0_11], %16 {strides = array<i32>} : memref<128x64xbf16, #tpu.memory_space<vmem>>, vector<128x64xbf16>,
    %cst_12 = arith.constant dense<0.000000e+00> : vector<64xf32>
    %18 = vector.multi_reduction <add>, %15, %cst_12 [0] : vector<128x64xf32> to vector<64xf32>
    %19 = vector.shape_cast %18 : vector<64xf32> to vector<1x64xf32>
    %20 = arith.mulf %15, %15 : vector<128x64xf32>
    %cst_13 = arith.constant dense<0.000000e+00> : vector<64xf32>
    %21 = vector.multi_reduction <add>, %20, %cst_13 [0] : vector<128x64xf32> to vector<64xf32>
    %22 = vector.shape_cast %21 : vector<64xf32> to vector<1x64xf32>
    %23 = tpu.concatenate %19, %22 in 0 : vector<1x64xf32>, vector<1x64xf32> -> vector<2x64xf32>
    %c0_i32 = arith.constant 0 : i32
    %24 = arith.cmpi eq, %arg0, %c0_i32 : i32
    %25 = arith.extui %24 : i1 to i32
    %c0_i32_14 = arith.constant 0 : i32
    %26 = arith.cmpi ne, %25, %c0_i32_14 : i32
    scf.if %26 {
      %c0_17 = arith.constant 0 : index
      %c0_18 = arith.constant 0 : index
      %30 = vector.load %arg7[%c0_17, %c0_18] : memref<2x64xf32, #tpu.memory_space<vmem>>, vector<2x64xf32>
      tpu.vector_store %arg7[%c0_17, %c0_18], %23 {strides = array<i32>} : memref<2x64xf32, #tpu.memory_space<vmem>>, vector<2x64xf32>,
    } else {
    }
    %c0_i32_15 = arith.constant 0 : i32
    %27 = arith.cmpi sgt, %arg0, %c0_i32_15 : i32
    %28 = arith.extui %27 : i1 to i32
    %c0_i32_16 = arith.constant 0 : i32
    %29 = arith.cmpi ne, %28, %c0_i32_16 : i32
    scf.if %29 {
      %c0_17 = arith.constant 0 : index
      %c0_18 = arith.constant 0 : index
      %30 = vector.load %arg7[%c0_17, %c0_18] : memref<2x64xf32, #tpu.memory_space<vmem>>, vector<2x64xf32>
      %31 = arith.addf %30, %23 : vector<2x64xf32>
      %c0_19 = arith.constant 0 : index
      %c0_20 = arith.constant 0 : index
      %32 = vector.load %arg7[%c0_19, %c0_20] : memref<2x64xf32, #tpu.memory_space<vmem>>, vector<2x64xf32>
      tpu.vector_store %arg7[%c0_19, %c0_20], %31 {strides = array<i32>} : memref<2x64xf32, #tpu.memory_space<vmem>>, vector<2x64xf32>,
    } else {
    }
    return
  }
  func.func @transform_0(%arg0: i32) -> (i32, i32) {
    %c0_i32 = arith.constant 0 : i32
    %c0_i32_0 = arith.constant 0 : i32
    return %arg0, %c0_i32 : i32, i32
  }
  func.func @transform_1(%arg0: i32) -> (i32, i32) {
    %c0_i32 = arith.constant 0 : i32
    %c0_i32_0 = arith.constant 0 : i32
    %c0_i32_1 = arith.constant 0 : i32
    return %c0_i32, %c0_i32_0 : i32, i32
  }
  func.func @transform_2(%arg0: i32) -> (i32, i32) {
    %c0_i32 = arith.constant 0 : i32
    %c0_i32_0 = arith.constant 0 : i32
    %c0_i32_1 = arith.constant 0 : i32
    return %c0_i32, %c0_i32_0 : i32, i32
  }
  func.func @transform_3(%arg0: i32) -> (i32, i32) {
    %c0_i32 = arith.constant 0 : i32
    %c0_i32_0 = arith.constant 0 : i32
    %c0_i32_1 = arith.constant 0 : i32
    return %c0_i32, %c0_i32_0 : i32, i32
  }
  func.func @transform_4(%arg0: i32) -> (i32, i32) {
    %c0_i32 = arith.constant 0 : i32
    %c0_i32_0 = arith.constant 0 : i32
    %c0_i32_1 = arith.constant 0 : i32
    return %c0_i32, %c0_i32_0 : i32, i32
  }
  func.func @transform_5(%arg0: i32) -> (i32, i32) {
    %c0_i32 = arith.constant 0 : i32
    %c0_i32_0 = arith.constant 0 : i32
    return %arg0, %c0_i32 : i32, i32
  }
  func.func @transform_6(%arg0: i32) -> (i32, i32) {
    %c0_i32 = arith.constant 0 : i32
    %c0_i32_0 = arith.constant 0 : i32
    %c0_i32_1 = arith.constant 0 : i32
    return %c0_i32, %c0_i32_0 : i32, i32
  }
}

module attributes {stable_mosaic.version = 11 : i64} {
  func.func @_encode_layer_kernel(%arg0: i32, %arg1: memref<128x64xbf16, #tpu.memory_space<vmem>>, %arg2: memref<1x64xf32, #tpu.memory_space<vmem>>, %arg3: memref<1x64xf32, #tpu.memory_space<vmem>>, %arg4: memref<64x128xbf16, #tpu.memory_space<vmem>>, %arg5: memref<1x128xf32, #tpu.memory_space<vmem>>, %arg6: memref<128x128xbf16, #tpu.memory_space<vmem>>, %arg7: memref<2x128xf32, #tpu.memory_space<vmem>>) attributes {dimension_semantics = [#tpu.dimension_semantics<arbitrary>], iteration_bounds = array<i64: 1>, scalar_prefetch = 0 : i64, scratch_operands = 0 : i64, tpu.core_type = #tpu.core_type<tc>, window_params = [{transform_indices = @transform_0, window_bounds = array<i64: 128, 64>}, {pipeline_mode = #tpu.pipeline_mode<synchronous>, transform_indices = @transform_1, window_bounds = array<i64: 1, 64>}, {pipeline_mode = #tpu.pipeline_mode<synchronous>, transform_indices = @transform_2, window_bounds = array<i64: 1, 64>}, {pipeline_mode = #tpu.pipeline_mode<synchronous>, transform_indices = @transform_3, window_bounds = array<i64: 64, 128>}, {pipeline_mode = #tpu.pipeline_mode<synchronous>, transform_indices = @transform_4, window_bounds = array<i64: 1, 128>}, {transform_indices = @transform_5, window_bounds = array<i64: 128, 128>}, {pipeline_mode = #tpu.pipeline_mode<synchronous>, transform_indices = @transform_6, window_bounds = array<i64: 2, 128>}]} {
    %c0 = arith.constant 0 : index
    %c0_0 = arith.constant 0 : index
    %0 = vector.load %arg1[%c0, %c0_0] : memref<128x64xbf16, #tpu.memory_space<vmem>>, vector<128x64xbf16>
    %1 = arith.extf %0 : vector<128x64xbf16> to vector<128x64xf32>
    %c0_1 = arith.constant 0 : index
    %c0_2 = arith.constant 0 : index
    %2 = vector.load %arg2[%c0_1, %c0_2] : memref<1x64xf32, #tpu.memory_space<vmem>>, vector<1x64xf32>
    %3 = vector.broadcast %2 : vector<1x64xf32> to vector<128x64xf32>
    %4 = arith.mulf %1, %3 : vector<128x64xf32>
    %c0_3 = arith.constant 0 : index
    %c0_4 = arith.constant 0 : index
    %5 = vector.load %arg3[%c0_3, %c0_4] : memref<1x64xf32, #tpu.memory_space<vmem>>, vector<1x64xf32>
    %6 = vector.broadcast %5 : vector<1x64xf32> to vector<128x64xf32>
    %7 = arith.addf %4, %6 : vector<128x64xf32>
    %cst = arith.constant 0.000000e+00 : f32
    %8 = vector.broadcast %cst : f32 to vector<128x64xf32>
    %9 = arith.maximumf %7, %8 : vector<128x64xf32>
    %10 = arith.truncf %9 : vector<128x64xf32> to vector<128x64xbf16>
    %c0_5 = arith.constant 0 : index
    %c0_6 = arith.constant 0 : index
    %11 = vector.load %arg4[%c0_5, %c0_6] : memref<64x128xbf16, #tpu.memory_space<vmem>>, vector<64x128xbf16>
    %cst_7 = arith.constant dense<0.000000e+00> : vector<128x128xf32>
    %12 = tpu.matmul %10, %11, %cst_7 {dimension_numbers = #tpu.dot_dimension_numbers<[1], [0], [0], [1], [0, 0, 1, 1], [], []>} : vector<128x64xbf16>, vector<64x128xbf16>, vector<128x128xf32> -> vector<128x128xf32>
    %c0_8 = arith.constant 0 : index
    %c0_9 = arith.constant 0 : index
    %13 = vector.load %arg5[%c0_8, %c0_9] : memref<1x128xf32, #tpu.memory_space<vmem>>, vector<1x128xf32>
    %14 = vector.broadcast %13 : vector<1x128xf32> to vector<128x128xf32>
    %15 = arith.addf %12, %14 : vector<128x128xf32>
    %16 = arith.truncf %15 : vector<128x128xf32> to vector<128x128xbf16>
    %c0_10 = arith.constant 0 : index
    %c0_11 = arith.constant 0 : index
    %17 = vector.load %arg6[%c0_10, %c0_11] : memref<128x128xbf16, #tpu.memory_space<vmem>>, vector<128x128xbf16>
    tpu.vector_store %arg6[%c0_10, %c0_11], %16 {strides = array<i32>} : memref<128x128xbf16, #tpu.memory_space<vmem>>, vector<128x128xbf16>,
    %cst_12 = arith.constant dense<0.000000e+00> : vector<128xf32>
    %18 = vector.multi_reduction <add>, %15, %cst_12 [0] : vector<128x128xf32> to vector<128xf32>
    %19 = vector.shape_cast %18 : vector<128xf32> to vector<1x128xf32>
    %20 = arith.mulf %15, %15 : vector<128x128xf32>
    %cst_13 = arith.constant dense<0.000000e+00> : vector<128xf32>
    %21 = vector.multi_reduction <add>, %20, %cst_13 [0] : vector<128x128xf32> to vector<128xf32>
    %22 = vector.shape_cast %21 : vector<128xf32> to vector<1x128xf32>
    %23 = tpu.concatenate %19, %22 in 0 : vector<1x128xf32>, vector<1x128xf32> -> vector<2x128xf32>
    %c0_i32 = arith.constant 0 : i32
    %24 = arith.cmpi eq, %arg0, %c0_i32 : i32
    %25 = arith.extui %24 : i1 to i32
    %c0_i32_14 = arith.constant 0 : i32
    %26 = arith.cmpi ne, %25, %c0_i32_14 : i32
    scf.if %26 {
      %c0_17 = arith.constant 0 : index
      %c0_18 = arith.constant 0 : index
      %30 = vector.load %arg7[%c0_17, %c0_18] : memref<2x128xf32, #tpu.memory_space<vmem>>, vector<2x128xf32>
      tpu.vector_store %arg7[%c0_17, %c0_18], %23 {strides = array<i32>} : memref<2x128xf32, #tpu.memory_space<vmem>>, vector<2x128xf32>,
    } else {
    }
    %c0_i32_15 = arith.constant 0 : i32
    %27 = arith.cmpi sgt, %arg0, %c0_i32_15 : i32
    %28 = arith.extui %27 : i1 to i32
    %c0_i32_16 = arith.constant 0 : i32
    %29 = arith.cmpi ne, %28, %c0_i32_16 : i32
    scf.if %29 {
      %c0_17 = arith.constant 0 : index
      %c0_18 = arith.constant 0 : index
      %30 = vector.load %arg7[%c0_17, %c0_18] : memref<2x128xf32, #tpu.memory_space<vmem>>, vector<2x128xf32>
      %31 = arith.addf %30, %23 : vector<2x128xf32>
      %c0_19 = arith.constant 0 : index
      %c0_20 = arith.constant 0 : index
      %32 = vector.load %arg7[%c0_19, %c0_20] : memref<2x128xf32, #tpu.memory_space<vmem>>, vector<2x128xf32>
      tpu.vector_store %arg7[%c0_19, %c0_20], %31 {strides = array<i32>} : memref<2x128xf32, #tpu.memory_space<vmem>>, vector<2x128xf32>,
    } else {
    }
    return
  }
  func.func @transform_0(%arg0: i32) -> (i32, i32) {
    %c0_i32 = arith.constant 0 : i32
    %c0_i32_0 = arith.constant 0 : i32
    return %arg0, %c0_i32 : i32, i32
  }
  func.func @transform_1(%arg0: i32) -> (i32, i32) {
    %c0_i32 = arith.constant 0 : i32
    %c0_i32_0 = arith.constant 0 : i32
    %c0_i32_1 = arith.constant 0 : i32
    return %c0_i32, %c0_i32_0 : i32, i32
  }
  func.func @transform_2(%arg0: i32) -> (i32, i32) {
    %c0_i32 = arith.constant 0 : i32
    %c0_i32_0 = arith.constant 0 : i32
    %c0_i32_1 = arith.constant 0 : i32
    return %c0_i32, %c0_i32_0 : i32, i32
  }
  func.func @transform_3(%arg0: i32) -> (i32, i32) {
    %c0_i32 = arith.constant 0 : i32
    %c0_i32_0 = arith.constant 0 : i32
    %c0_i32_1 = arith.constant 0 : i32
    return %c0_i32, %c0_i32_0 : i32, i32
  }
  func.func @transform_4(%arg0: i32) -> (i32, i32) {
    %c0_i32 = arith.constant 0 : i32
    %c0_i32_0 = arith.constant 0 : i32
    %c0_i32_1 = arith.constant 0 : i32
    return %c0_i32, %c0_i32_0 : i32, i32
  }
  func.func @transform_5(%arg0: i32) -> (i32, i32) {
    %c0_i32 = arith.constant 0 : i32
    %c0_i32_0 = arith.constant 0 : i32
    return %arg0, %c0_i32 : i32, i32
  }
  func.func @transform_6(%arg0: i32) -> (i32, i32) {
    %c0_i32 = arith.constant 0 : i32
    %c0_i32_0 = arith.constant 0 : i32
    %c0_i32_1 = arith.constant 0 : i32
    return %c0_i32, %c0_i32_0 : i32, i32
  }
}

module attributes {stable_mosaic.version = 11 : i64} {
  func.func @_feat_pool_kernel(%arg0: i32, %arg1: i32, %arg2: memref<2x64x128xbf16, #tpu.memory_space<vmem>>, %arg3: memref<1x128xf32, #tpu.memory_space<vmem>>, %arg4: memref<1x128xf32, #tpu.memory_space<vmem>>, %arg5: memref<128x1024xbf16, #tpu.memory_space<vmem>>, %arg6: memref<1x1024xf32, #tpu.memory_space<vmem>>, %arg7: memref<2x1024xf32, #tpu.memory_space<vmem>>) attributes {dimension_semantics = [#tpu.dimension_semantics<parallel>, #tpu.dimension_semantics<arbitrary>], iteration_bounds = array<i64: 1, 1>, scalar_prefetch = 0 : i64, scratch_operands = 0 : i64, tpu.core_type = #tpu.core_type<tc>, window_params = [{transform_indices = @transform_0, window_bounds = array<i64: 2, 64, 128>}, {pipeline_mode = #tpu.pipeline_mode<synchronous>, transform_indices = @transform_1, window_bounds = array<i64: 1, 128>}, {pipeline_mode = #tpu.pipeline_mode<synchronous>, transform_indices = @transform_2, window_bounds = array<i64: 1, 128>}, {pipeline_mode = #tpu.pipeline_mode<synchronous>, transform_indices = @transform_3, window_bounds = array<i64: 128, 1024>}, {pipeline_mode = #tpu.pipeline_mode<synchronous>, transform_indices = @transform_4, window_bounds = array<i64: 1, 1024>}, {transform_indices = @transform_5, window_bounds = array<i64: 2, 1024>}]} {
    %c0 = arith.constant 0 : index
    %c0_0 = arith.constant 0 : index
    %c0_1 = arith.constant 0 : index
    %0 = vector.load %arg2[%c0, %c0_0, %c0_1] : memref<2x64x128xbf16, #tpu.memory_space<vmem>>, vector<2x64x128xbf16>
    %1 = arith.extf %0 : vector<2x64x128xbf16> to vector<2x64x128xf32>
    %c0_2 = arith.constant 0 : index
    %c0_3 = arith.constant 0 : index
    %2 = vector.load %arg3[%c0_2, %c0_3] : memref<1x128xf32, #tpu.memory_space<vmem>>, vector<1x128xf32>
    %3 = vector.shape_cast %2 : vector<1x128xf32> to vector<1x1x128xf32>
    %4 = vector.broadcast %3 : vector<1x1x128xf32> to vector<2x64x128xf32>
    %5 = arith.mulf %1, %4 : vector<2x64x128xf32>
    %c0_4 = arith.constant 0 : index
    %c0_5 = arith.constant 0 : index
    %6 = vector.load %arg4[%c0_4, %c0_5] : memref<1x128xf32, #tpu.memory_space<vmem>>, vector<1x128xf32>
    %7 = vector.shape_cast %6 : vector<1x128xf32> to vector<1x1x128xf32>
    %8 = vector.broadcast %7 : vector<1x1x128xf32> to vector<2x64x128xf32>
    %9 = arith.addf %5, %8 : vector<2x64x128xf32>
    %cst = arith.constant 0.000000e+00 : f32
    %10 = vector.broadcast %cst : f32 to vector<2x64x128xf32>
    %11 = arith.maximumf %9, %10 : vector<2x64x128xf32>
    %12 = vector.shape_cast %11 : vector<2x64x128xf32> to vector<128x128xf32>
    %13 = arith.truncf %12 : vector<128x128xf32> to vector<128x128xbf16>
    %c0_6 = arith.constant 0 : index
    %c0_7 = arith.constant 0 : index
    %14 = vector.load %arg5[%c0_6, %c0_7] : memref<128x1024xbf16, #tpu.memory_space<vmem>>, vector<128x1024xbf16>
    %cst_8 = arith.constant dense<0.000000e+00> : vector<128x1024xf32>
    %15 = tpu.matmul %13, %14, %cst_8 {dimension_numbers = #tpu.dot_dimension_numbers<[1], [0], [0], [1], [0, 0, 1, 1], [], []>} : vector<128x128xbf16>, vector<128x1024xbf16>, vector<128x1024xf32> -> vector<128x1024xf32>
    %c0_9 = arith.constant 0 : index
    %c0_10 = arith.constant 0 : index
    %16 = vector.load %arg6[%c0_9, %c0_10] : memref<1x1024xf32, #tpu.memory_space<vmem>>, vector<1x1024xf32>
    %17 = vector.broadcast %16 : vector<1x1024xf32> to vector<128x1024xf32>
    %18 = arith.addf %15, %17 : vector<128x1024xf32>
    %19 = vector.extract_strided_slice %18 {offsets = [0, 0], sizes = [64, 1024], strides = [1, 1]} : vector<128x1024xf32> to vector<64x1024xf32>
    %cst_11 = arith.constant dense<0xFF800000> : vector<1024xf32>
    %20 = vector.multi_reduction <maximumf>, %19, %cst_11 [0] : vector<64x1024xf32> to vector<1024xf32>
    %21 = vector.shape_cast %20 : vector<1024xf32> to vector<1x1024xf32>
    %22 = vector.extract_strided_slice %18 {offsets = [64, 0], sizes = [64, 1024], strides = [1, 1]} : vector<128x1024xf32> to vector<64x1024xf32>
    %cst_12 = arith.constant dense<0xFF800000> : vector<1024xf32>
    %23 = vector.multi_reduction <maximumf>, %22, %cst_12 [0] : vector<64x1024xf32> to vector<1024xf32>
    %24 = vector.shape_cast %23 : vector<1024xf32> to vector<1x1024xf32>
    %25 = tpu.concatenate %21, %24 in 0 : vector<1x1024xf32>, vector<1x1024xf32> -> vector<2x1024xf32>
    %c0_i32 = arith.constant 0 : i32
    %26 = arith.cmpi eq, %arg1, %c0_i32 : i32
    %27 = arith.extui %26 : i1 to i32
    %c0_i32_13 = arith.constant 0 : i32
    %28 = arith.cmpi ne, %27, %c0_i32_13 : i32
    scf.if %28 {
      %c0_16 = arith.constant 0 : index
      %c0_17 = arith.constant 0 : index
      %32 = vector.load %arg7[%c0_16, %c0_17] : memref<2x1024xf32, #tpu.memory_space<vmem>>, vector<2x1024xf32>
      tpu.vector_store %arg7[%c0_16, %c0_17], %25 {strides = array<i32>} : memref<2x1024xf32, #tpu.memory_space<vmem>>, vector<2x1024xf32>,
    } else {
    }
    %c0_i32_14 = arith.constant 0 : i32
    %29 = arith.cmpi sgt, %arg1, %c0_i32_14 : i32
    %30 = arith.extui %29 : i1 to i32
    %c0_i32_15 = arith.constant 0 : i32
    %31 = arith.cmpi ne, %30, %c0_i32_15 : i32
    scf.if %31 {
      %c0_16 = arith.constant 0 : index
      %c0_17 = arith.constant 0 : index
      %32 = vector.load %arg7[%c0_16, %c0_17] : memref<2x1024xf32, #tpu.memory_space<vmem>>, vector<2x1024xf32>
      %33 = arith.maximumf %32, %25 : vector<2x1024xf32>
      %c0_18 = arith.constant 0 : index
      %c0_19 = arith.constant 0 : index
      %34 = vector.load %arg7[%c0_18, %c0_19] : memref<2x1024xf32, #tpu.memory_space<vmem>>, vector<2x1024xf32>
      tpu.vector_store %arg7[%c0_18, %c0_19], %33 {strides = array<i32>} : memref<2x1024xf32, #tpu.memory_space<vmem>>, vector<2x1024xf32>,
    } else {
    }
    return
  }
  func.func @transform_0(%arg0: i32, %arg1: i32) -> (i32, i32, i32) {
    %c0_i32 = arith.constant 0 : i32
    %c0_i32_0 = arith.constant 0 : i32
    return %arg0, %arg1, %c0_i32 : i32, i32, i32
  }
  func.func @transform_1(%arg0: i32, %arg1: i32) -> (i32, i32) {
    %c0_i32 = arith.constant 0 : i32
    %c0_i32_0 = arith.constant 0 : i32
    %c0_i32_1 = arith.constant 0 : i32
    return %c0_i32, %c0_i32_0 : i32, i32
  }
  func.func @transform_2(%arg0: i32, %arg1: i32) -> (i32, i32) {
    %c0_i32 = arith.constant 0 : i32
    %c0_i32_0 = arith.constant 0 : i32
    %c0_i32_1 = arith.constant 0 : i32
    return %c0_i32, %c0_i32_0 : i32, i32
  }
  func.func @transform_3(%arg0: i32, %arg1: i32) -> (i32, i32) {
    %c0_i32 = arith.constant 0 : i32
    %c0_i32_0 = arith.constant 0 : i32
    %c0_i32_1 = arith.constant 0 : i32
    return %c0_i32, %c0_i32_0 : i32, i32
  }
  func.func @transform_4(%arg0: i32, %arg1: i32) -> (i32, i32) {
    %c0_i32 = arith.constant 0 : i32
    %c0_i32_0 = arith.constant 0 : i32
    %c0_i32_1 = arith.constant 0 : i32
    return %c0_i32, %c0_i32_0 : i32, i32
  }
  func.func @transform_5(%arg0: i32, %arg1: i32) -> (i32, i32) {
    %c0_i32 = arith.constant 0 : i32
    %c0_i32_0 = arith.constant 0 : i32
    return %arg0, %c0_i32 : i32, i32
  }
}

module attributes {stable_mosaic.version = 11 : i64} {
  func.func @_head_kernel(%arg0: memref<2x1024xf32, #tpu.memory_space<vmem>>, %arg1: memref<1024x512xbf16, #tpu.memory_space<vmem>>, %arg2: memref<1x512xf32, #tpu.memory_space<vmem>>, %arg3: memref<512x256xbf16, #tpu.memory_space<vmem>>, %arg4: memref<1x256xf32, #tpu.memory_space<vmem>>, %arg5: memref<256x128xbf16, #tpu.memory_space<vmem>>, %arg6: memref<1x128xf32, #tpu.memory_space<vmem>>, %arg7: memref<2x128xf32, #tpu.memory_space<vmem>>) attributes {dimension_semantics = [], scalar_prefetch = 0 : i64, scratch_operands = 0 : i64, tpu.core_type = #tpu.core_type<tc>} {
    %c0 = arith.constant 0 : index
    %c0_0 = arith.constant 0 : index
    %0 = vector.load %arg0[%c0, %c0_0] : memref<2x1024xf32, #tpu.memory_space<vmem>>, vector<2x1024xf32>
    %1 = arith.truncf %0 : vector<2x1024xf32> to vector<2x1024xbf16>
    %c0_1 = arith.constant 0 : index
    %c0_2 = arith.constant 0 : index
    %2 = vector.load %arg1[%c0_1, %c0_2] : memref<1024x512xbf16, #tpu.memory_space<vmem>>, vector<1024x512xbf16>
    %cst = arith.constant dense<0.000000e+00> : vector<2x512xf32>
    %3 = tpu.matmul %1, %2, %cst {dimension_numbers = #tpu.dot_dimension_numbers<[1], [0], [0], [1], [0, 0, 1, 1], [], []>} : vector<2x1024xbf16>, vector<1024x512xbf16>, vector<2x512xf32> -> vector<2x512xf32>
    %c0_3 = arith.constant 0 : index
    %c0_4 = arith.constant 0 : index
    %4 = vector.load %arg2[%c0_3, %c0_4] : memref<1x512xf32, #tpu.memory_space<vmem>>, vector<1x512xf32>
    %5 = vector.broadcast %4 : vector<1x512xf32> to vector<2x512xf32>
    %6 = arith.addf %3, %5 : vector<2x512xf32>
    %cst_5 = arith.constant 0.000000e+00 : f32
    %7 = vector.broadcast %cst_5 : f32 to vector<2x512xf32>
    %8 = arith.maximumf %6, %7 : vector<2x512xf32>
    %9 = arith.truncf %8 : vector<2x512xf32> to vector<2x512xbf16>
    %c0_6 = arith.constant 0 : index
    %c0_7 = arith.constant 0 : index
    %10 = vector.load %arg3[%c0_6, %c0_7] : memref<512x256xbf16, #tpu.memory_space<vmem>>, vector<512x256xbf16>
    %cst_8 = arith.constant dense<0.000000e+00> : vector<2x256xf32>
    %11 = tpu.matmul %9, %10, %cst_8 {dimension_numbers = #tpu.dot_dimension_numbers<[1], [0], [0], [1], [0, 0, 1, 1], [], []>} : vector<2x512xbf16>, vector<512x256xbf16>, vector<2x256xf32> -> vector<2x256xf32>
    %c0_9 = arith.constant 0 : index
    %c0_10 = arith.constant 0 : index
    %12 = vector.load %arg4[%c0_9, %c0_10] : memref<1x256xf32, #tpu.memory_space<vmem>>, vector<1x256xf32>
    %13 = vector.broadcast %12 : vector<1x256xf32> to vector<2x256xf32>
    %14 = arith.addf %11, %13 : vector<2x256xf32>
    %cst_11 = arith.constant 0.000000e+00 : f32
    %15 = vector.broadcast %cst_11 : f32 to vector<2x256xf32>
    %16 = arith.maximumf %14, %15 : vector<2x256xf32>
    %17 = arith.truncf %16 : vector<2x256xf32> to vector<2x256xbf16>
    %c0_12 = arith.constant 0 : index
    %c0_13 = arith.constant 0 : index
    %18 = vector.load %arg5[%c0_12, %c0_13] : memref<256x128xbf16, #tpu.memory_space<vmem>>, vector<256x128xbf16>
    %cst_14 = arith.constant dense<0.000000e+00> : vector<2x128xf32>
    %19 = tpu.matmul %17, %18, %cst_14 {dimension_numbers = #tpu.dot_dimension_numbers<[1], [0], [0], [1], [0, 0, 1, 1], [], []>} : vector<2x256xbf16>, vector<256x128xbf16>, vector<2x128xf32> -> vector<2x128xf32>
    %c0_15 = arith.constant 0 : index
    %c0_16 = arith.constant 0 : index
    %20 = vector.load %arg6[%c0_15, %c0_16] : memref<1x128xf32, #tpu.memory_space<vmem>>, vector<1x128xf32>
    %21 = vector.broadcast %20 : vector<1x128xf32> to vector<2x128xf32>
    %22 = arith.addf %19, %21 : vector<2x128xf32>
    %c0_17 = arith.constant 0 : index
    %c0_18 = arith.constant 0 : index
    %23 = vector.load %arg7[%c0_17, %c0_18] : memref<2x128xf32, #tpu.memory_space<vmem>>, vector<2x128xf32>
    tpu.vector_store %arg7[%c0_17, %c0_18], %22 {strides = array<i32>} : memref<2x128xf32, #tpu.memory_space<vmem>>, vector<2x128xf32>,
    return
  }
}

module attributes {stable_mosaic.version = 11 : i64} {
  func.func @_encode_layer_kernel(%arg0: i32, %arg1: memref<128x64xbf16, #tpu.memory_space<vmem>>, %arg2: memref<1x64xf32, #tpu.memory_space<vmem>>, %arg3: memref<1x64xf32, #tpu.memory_space<vmem>>, %arg4: memref<64x64xbf16, #tpu.memory_space<vmem>>, %arg5: memref<1x64xf32, #tpu.memory_space<vmem>>, %arg6: memref<128x64xbf16, #tpu.memory_space<vmem>>, %arg7: memref<2x64xf32, #tpu.memory_space<vmem>>) attributes {dimension_semantics = [#tpu.dimension_semantics<arbitrary>], iteration_bounds = array<i64: 1>, scalar_prefetch = 0 : i64, scratch_operands = 0 : i64, tpu.core_type = #tpu.core_type<tc>, window_params = [{transform_indices = @transform_0, window_bounds = array<i64: 128, 64>}, {pipeline_mode = #tpu.pipeline_mode<synchronous>, transform_indices = @transform_1, window_bounds = array<i64: 1, 64>}, {pipeline_mode = #tpu.pipeline_mode<synchronous>, transform_indices = @transform_2, window_bounds = array<i64: 1, 64>}, {pipeline_mode = #tpu.pipeline_mode<synchronous>, transform_indices = @transform_3, window_bounds = array<i64: 64, 64>}, {pipeline_mode = #tpu.pipeline_mode<synchronous>, transform_indices = @transform_4, window_bounds = array<i64: 1, 64>}, {transform_indices = @transform_5, window_bounds = array<i64: 128, 64>}, {pipeline_mode = #tpu.pipeline_mode<synchronous>, transform_indices = @transform_6, window_bounds = array<i64: 2, 64>}]} {
    %c0 = arith.constant 0 : index
    %c0_0 = arith.constant 0 : index
    %0 = vector.load %arg1[%c0, %c0_0] : memref<128x64xbf16, #tpu.memory_space<vmem>>, vector<128x64xbf16>
    %1 = arith.extf %0 : vector<128x64xbf16> to vector<128x64xf32>
    %c0_1 = arith.constant 0 : index
    %c0_2 = arith.constant 0 : index
    %2 = vector.load %arg2[%c0_1, %c0_2] : memref<1x64xf32, #tpu.memory_space<vmem>>, vector<1x64xf32>
    %3 = vector.broadcast %2 : vector<1x64xf32> to vector<128x64xf32>
    %4 = arith.mulf %1, %3 : vector<128x64xf32>
    %c0_3 = arith.constant 0 : index
    %c0_4 = arith.constant 0 : index
    %5 = vector.load %arg3[%c0_3, %c0_4] : memref<1x64xf32, #tpu.memory_space<vmem>>, vector<1x64xf32>
    %6 = vector.broadcast %5 : vector<1x64xf32> to vector<128x64xf32>
    %7 = arith.addf %4, %6 : vector<128x64xf32>
    %cst = arith.constant 0.000000e+00 : f32
    %8 = vector.broadcast %cst : f32 to vector<128x64xf32>
    %9 = arith.maximumf %7, %8 : vector<128x64xf32>
    %10 = arith.truncf %9 : vector<128x64xf32> to vector<128x64xbf16>
    %c0_5 = arith.constant 0 : index
    %c0_6 = arith.constant 0 : index
    %11 = vector.load %arg4[%c0_5, %c0_6] : memref<64x64xbf16, #tpu.memory_space<vmem>>, vector<64x64xbf16>
    %cst_7 = arith.constant dense<0.000000e+00> : vector<128x64xf32>
    %12 = tpu.matmul %10, %11, %cst_7 {dimension_numbers = #tpu.dot_dimension_numbers<[1], [0], [0], [1], [0, 0, 1, 1], [], []>} : vector<128x64xbf16>, vector<64x64xbf16>, vector<128x64xf32> -> vector<128x64xf32>
    %c0_8 = arith.constant 0 : index
    %c0_9 = arith.constant 0 : index
    %13 = vector.load %arg5[%c0_8, %c0_9] : memref<1x64xf32, #tpu.memory_space<vmem>>, vector<1x64xf32>
    %14 = vector.broadcast %13 : vector<1x64xf32> to vector<128x64xf32>
    %15 = arith.addf %12, %14 : vector<128x64xf32>
    %16 = arith.truncf %15 : vector<128x64xf32> to vector<128x64xbf16>
    %c0_10 = arith.constant 0 : index
    %c0_11 = arith.constant 0 : index
    %17 = vector.load %arg6[%c0_10, %c0_11] : memref<128x64xbf16, #tpu.memory_space<vmem>>, vector<128x64xbf16>
    tpu.vector_store %arg6[%c0_10, %c0_11], %16 {strides = array<i32>} : memref<128x64xbf16, #tpu.memory_space<vmem>>, vector<128x64xbf16>,
    %cst_12 = arith.constant dense<0.000000e+00> : vector<64xf32>
    %18 = vector.multi_reduction <add>, %15, %cst_12 [0] : vector<128x64xf32> to vector<64xf32>
    %19 = vector.shape_cast %18 : vector<64xf32> to vector<1x64xf32>
    %20 = arith.mulf %15, %15 : vector<128x64xf32>
    %cst_13 = arith.constant dense<0.000000e+00> : vector<64xf32>
    %21 = vector.multi_reduction <add>, %20, %cst_13 [0] : vector<128x64xf32> to vector<64xf32>
    %22 = vector.shape_cast %21 : vector<64xf32> to vector<1x64xf32>
    %23 = tpu.concatenate %19, %22 in 0 : vector<1x64xf32>, vector<1x64xf32> -> vector<2x64xf32>
    %c0_i32 = arith.constant 0 : i32
    %24 = arith.cmpi eq, %arg0, %c0_i32 : i32
    %25 = arith.extui %24 : i1 to i32
    %c0_i32_14 = arith.constant 0 : i32
    %26 = arith.cmpi ne, %25, %c0_i32_14 : i32
    scf.if %26 {
      %c0_17 = arith.constant 0 : index
      %c0_18 = arith.constant 0 : index
      %30 = vector.load %arg7[%c0_17, %c0_18] : memref<2x64xf32, #tpu.memory_space<vmem>>, vector<2x64xf32>
      tpu.vector_store %arg7[%c0_17, %c0_18], %23 {strides = array<i32>} : memref<2x64xf32, #tpu.memory_space<vmem>>, vector<2x64xf32>,
    } else {
    }
    %c0_i32_15 = arith.constant 0 : i32
    %27 = arith.cmpi sgt, %arg0, %c0_i32_15 : i32
    %28 = arith.extui %27 : i1 to i32
    %c0_i32_16 = arith.constant 0 : i32
    %29 = arith.cmpi ne, %28, %c0_i32_16 : i32
    scf.if %29 {
      %c0_17 = arith.constant 0 : index
      %c0_18 = arith.constant 0 : index
      %30 = vector.load %arg7[%c0_17, %c0_18] : memref<2x64xf32, #tpu.memory_space<vmem>>, vector<2x64xf32>
      %31 = arith.addf %30, %23 : vector<2x64xf32>
      %c0_19 = arith.constant 0 : index
      %c0_20 = arith.constant 0 : index
      %32 = vector.load %arg7[%c0_19, %c0_20] : memref<2x64xf32, #tpu.memory_space<vmem>>, vector<2x64xf32>
      tpu.vector_store %arg7[%c0_19, %c0_20], %31 {strides = array<i32>} : memref<2x64xf32, #tpu.memory_space<vmem>>, vector<2x64xf32>,
    } else {
    }
    return
  }
  func.func @transform_0(%arg0: i32) -> (i32, i32) {
    %c0_i32 = arith.constant 0 : i32
    %c0_i32_0 = arith.constant 0 : i32
    return %arg0, %c0_i32 : i32, i32
  }
  func.func @transform_1(%arg0: i32) -> (i32, i32) {
    %c0_i32 = arith.constant 0 : i32
    %c0_i32_0 = arith.constant 0 : i32
    %c0_i32_1 = arith.constant 0 : i32
    return %c0_i32, %c0_i32_0 : i32, i32
  }
  func.func @transform_2(%arg0: i32) -> (i32, i32) {
    %c0_i32 = arith.constant 0 : i32
    %c0_i32_0 = arith.constant 0 : i32
    %c0_i32_1 = arith.constant 0 : i32
    return %c0_i32, %c0_i32_0 : i32, i32
  }
  func.func @transform_3(%arg0: i32) -> (i32, i32) {
    %c0_i32 = arith.constant 0 : i32
    %c0_i32_0 = arith.constant 0 : i32
    %c0_i32_1 = arith.constant 0 : i32
    return %c0_i32, %c0_i32_0 : i32, i32
  }
  func.func @transform_4(%arg0: i32) -> (i32, i32) {
    %c0_i32 = arith.constant 0 : i32
    %c0_i32_0 = arith.constant 0 : i32
    %c0_i32_1 = arith.constant 0 : i32
    return %c0_i32, %c0_i32_0 : i32, i32
  }
  func.func @transform_5(%arg0: i32) -> (i32, i32) {
    %c0_i32 = arith.constant 0 : i32
    %c0_i32_0 = arith.constant 0 : i32
    return %arg0, %c0_i32 : i32, i32
  }
  func.func @transform_6(%arg0: i32) -> (i32, i32) {
    %c0_i32 = arith.constant 0 : i32
    %c0_i32_0 = arith.constant 0 : i32
    %c0_i32_1 = arith.constant 0 : i32
    return %c0_i32, %c0_i32_0 : i32, i32
  }
}

module attributes {stable_mosaic.version = 11 : i64} {
  func.func @_encode_layer_kernel(%arg0: i32, %arg1: memref<128x64xbf16, #tpu.memory_space<vmem>>, %arg2: memref<1x64xf32, #tpu.memory_space<vmem>>, %arg3: memref<1x64xf32, #tpu.memory_space<vmem>>, %arg4: memref<64x128xbf16, #tpu.memory_space<vmem>>, %arg5: memref<1x128xf32, #tpu.memory_space<vmem>>, %arg6: memref<128x128xbf16, #tpu.memory_space<vmem>>, %arg7: memref<2x128xf32, #tpu.memory_space<vmem>>) attributes {dimension_semantics = [#tpu.dimension_semantics<arbitrary>], iteration_bounds = array<i64: 1>, scalar_prefetch = 0 : i64, scratch_operands = 0 : i64, tpu.core_type = #tpu.core_type<tc>, window_params = [{transform_indices = @transform_0, window_bounds = array<i64: 128, 64>}, {pipeline_mode = #tpu.pipeline_mode<synchronous>, transform_indices = @transform_1, window_bounds = array<i64: 1, 64>}, {pipeline_mode = #tpu.pipeline_mode<synchronous>, transform_indices = @transform_2, window_bounds = array<i64: 1, 64>}, {pipeline_mode = #tpu.pipeline_mode<synchronous>, transform_indices = @transform_3, window_bounds = array<i64: 64, 128>}, {pipeline_mode = #tpu.pipeline_mode<synchronous>, transform_indices = @transform_4, window_bounds = array<i64: 1, 128>}, {transform_indices = @transform_5, window_bounds = array<i64: 128, 128>}, {pipeline_mode = #tpu.pipeline_mode<synchronous>, transform_indices = @transform_6, window_bounds = array<i64: 2, 128>}]} {
    %c0 = arith.constant 0 : index
    %c0_0 = arith.constant 0 : index
    %0 = vector.load %arg1[%c0, %c0_0] : memref<128x64xbf16, #tpu.memory_space<vmem>>, vector<128x64xbf16>
    %1 = arith.extf %0 : vector<128x64xbf16> to vector<128x64xf32>
    %c0_1 = arith.constant 0 : index
    %c0_2 = arith.constant 0 : index
    %2 = vector.load %arg2[%c0_1, %c0_2] : memref<1x64xf32, #tpu.memory_space<vmem>>, vector<1x64xf32>
    %3 = vector.broadcast %2 : vector<1x64xf32> to vector<128x64xf32>
    %4 = arith.mulf %1, %3 : vector<128x64xf32>
    %c0_3 = arith.constant 0 : index
    %c0_4 = arith.constant 0 : index
    %5 = vector.load %arg3[%c0_3, %c0_4] : memref<1x64xf32, #tpu.memory_space<vmem>>, vector<1x64xf32>
    %6 = vector.broadcast %5 : vector<1x64xf32> to vector<128x64xf32>
    %7 = arith.addf %4, %6 : vector<128x64xf32>
    %cst = arith.constant 0.000000e+00 : f32
    %8 = vector.broadcast %cst : f32 to vector<128x64xf32>
    %9 = arith.maximumf %7, %8 : vector<128x64xf32>
    %10 = arith.truncf %9 : vector<128x64xf32> to vector<128x64xbf16>
    %c0_5 = arith.constant 0 : index
    %c0_6 = arith.constant 0 : index
    %11 = vector.load %arg4[%c0_5, %c0_6] : memref<64x128xbf16, #tpu.memory_space<vmem>>, vector<64x128xbf16>
    %cst_7 = arith.constant dense<0.000000e+00> : vector<128x128xf32>
    %12 = tpu.matmul %10, %11, %cst_7 {dimension_numbers = #tpu.dot_dimension_numbers<[1], [0], [0], [1], [0, 0, 1, 1], [], []>} : vector<128x64xbf16>, vector<64x128xbf16>, vector<128x128xf32> -> vector<128x128xf32>
    %c0_8 = arith.constant 0 : index
    %c0_9 = arith.constant 0 : index
    %13 = vector.load %arg5[%c0_8, %c0_9] : memref<1x128xf32, #tpu.memory_space<vmem>>, vector<1x128xf32>
    %14 = vector.broadcast %13 : vector<1x128xf32> to vector<128x128xf32>
    %15 = arith.addf %12, %14 : vector<128x128xf32>
    %16 = arith.truncf %15 : vector<128x128xf32> to vector<128x128xbf16>
    %c0_10 = arith.constant 0 : index
    %c0_11 = arith.constant 0 : index
    %17 = vector.load %arg6[%c0_10, %c0_11] : memref<128x128xbf16, #tpu.memory_space<vmem>>, vector<128x128xbf16>
    tpu.vector_store %arg6[%c0_10, %c0_11], %16 {strides = array<i32>} : memref<128x128xbf16, #tpu.memory_space<vmem>>, vector<128x128xbf16>,
    %cst_12 = arith.constant dense<0.000000e+00> : vector<128xf32>
    %18 = vector.multi_reduction <add>, %15, %cst_12 [0] : vector<128x128xf32> to vector<128xf32>
    %19 = vector.shape_cast %18 : vector<128xf32> to vector<1x128xf32>
    %20 = arith.mulf %15, %15 : vector<128x128xf32>
    %cst_13 = arith.constant dense<0.000000e+00> : vector<128xf32>
    %21 = vector.multi_reduction <add>, %20, %cst_13 [0] : vector<128x128xf32> to vector<128xf32>
    %22 = vector.shape_cast %21 : vector<128xf32> to vector<1x128xf32>
    %23 = tpu.concatenate %19, %22 in 0 : vector<1x128xf32>, vector<1x128xf32> -> vector<2x128xf32>
    %c0_i32 = arith.constant 0 : i32
    %24 = arith.cmpi eq, %arg0, %c0_i32 : i32
    %25 = arith.extui %24 : i1 to i32
    %c0_i32_14 = arith.constant 0 : i32
    %26 = arith.cmpi ne, %25, %c0_i32_14 : i32
    scf.if %26 {
      %c0_17 = arith.constant 0 : index
      %c0_18 = arith.constant 0 : index
      %30 = vector.load %arg7[%c0_17, %c0_18] : memref<2x128xf32, #tpu.memory_space<vmem>>, vector<2x128xf32>
      tpu.vector_store %arg7[%c0_17, %c0_18], %23 {strides = array<i32>} : memref<2x128xf32, #tpu.memory_space<vmem>>, vector<2x128xf32>,
    } else {
    }
    %c0_i32_15 = arith.constant 0 : i32
    %27 = arith.cmpi sgt, %arg0, %c0_i32_15 : i32
    %28 = arith.extui %27 : i1 to i32
    %c0_i32_16 = arith.constant 0 : i32
    %29 = arith.cmpi ne, %28, %c0_i32_16 : i32
    scf.if %29 {
      %c0_17 = arith.constant 0 : index
      %c0_18 = arith.constant 0 : index
      %30 = vector.load %arg7[%c0_17, %c0_18] : memref<2x128xf32, #tpu.memory_space<vmem>>, vector<2x128xf32>
      %31 = arith.addf %30, %23 : vector<2x128xf32>
      %c0_19 = arith.constant 0 : index
      %c0_20 = arith.constant 0 : index
      %32 = vector.load %arg7[%c0_19, %c0_20] : memref<2x128xf32, #tpu.memory_space<vmem>>, vector<2x128xf32>
      tpu.vector_store %arg7[%c0_19, %c0_20], %31 {strides = array<i32>} : memref<2x128xf32, #tpu.memory_space<vmem>>, vector<2x128xf32>,
    } else {
    }
    return
  }
  func.func @transform_0(%arg0: i32) -> (i32, i32) {
    %c0_i32 = arith.constant 0 : i32
    %c0_i32_0 = arith.constant 0 : i32
    return %arg0, %c0_i32 : i32, i32
  }
  func.func @transform_1(%arg0: i32) -> (i32, i32) {
    %c0_i32 = arith.constant 0 : i32
    %c0_i32_0 = arith.constant 0 : i32
    %c0_i32_1 = arith.constant 0 : i32
    return %c0_i32, %c0_i32_0 : i32, i32
  }
  func.func @transform_2(%arg0: i32) -> (i32, i32) {
    %c0_i32 = arith.constant 0 : i32
    %c0_i32_0 = arith.constant 0 : i32
    %c0_i32_1 = arith.constant 0 : i32
    return %c0_i32, %c0_i32_0 : i32, i32
  }
  func.func @transform_3(%arg0: i32) -> (i32, i32) {
    %c0_i32 = arith.constant 0 : i32
    %c0_i32_0 = arith.constant 0 : i32
    %c0_i32_1 = arith.constant 0 : i32
    return %c0_i32, %c0_i32_0 : i32, i32
  }
  func.func @transform_4(%arg0: i32) -> (i32, i32) {
    %c0_i32 = arith.constant 0 : i32
    %c0_i32_0 = arith.constant 0 : i32
    %c0_i32_1 = arith.constant 0 : i32
    return %c0_i32, %c0_i32_0 : i32, i32
  }
  func.func @transform_5(%arg0: i32) -> (i32, i32) {
    %c0_i32 = arith.constant 0 : i32
    %c0_i32_0 = arith.constant 0 : i32
    return %arg0, %c0_i32 : i32, i32
  }
  func.func @transform_6(%arg0: i32) -> (i32, i32) {
    %c0_i32 = arith.constant 0 : i32
    %c0_i32_0 = arith.constant 0 : i32
    %c0_i32_1 = arith.constant 0 : i32
    return %c0_i32, %c0_i32_0 : i32, i32
  }
}

module attributes {stable_mosaic.version = 11 : i64} {
  func.func @_head_kernel(%arg0: memref<2x1024xf32, #tpu.memory_space<vmem>>, %arg1: memref<1024x512xbf16, #tpu.memory_space<vmem>>, %arg2: memref<1x512xf32, #tpu.memory_space<vmem>>, %arg3: memref<512x256xbf16, #tpu.memory_space<vmem>>, %arg4: memref<1x256xf32, #tpu.memory_space<vmem>>, %arg5: memref<256x128xbf16, #tpu.memory_space<vmem>>, %arg6: memref<1x128xf32, #tpu.memory_space<vmem>>, %arg7: memref<2x128xf32, #tpu.memory_space<vmem>>) attributes {dimension_semantics = [], scalar_prefetch = 0 : i64, scratch_operands = 0 : i64, tpu.core_type = #tpu.core_type<tc>} {
    %c0 = arith.constant 0 : index
    %c0_0 = arith.constant 0 : index
    %0 = vector.load %arg0[%c0, %c0_0] : memref<2x1024xf32, #tpu.memory_space<vmem>>, vector<2x1024xf32>
    %1 = arith.truncf %0 : vector<2x1024xf32> to vector<2x1024xbf16>
    %c0_1 = arith.constant 0 : index
    %c0_2 = arith.constant 0 : index
    %2 = vector.load %arg1[%c0_1, %c0_2] : memref<1024x512xbf16, #tpu.memory_space<vmem>>, vector<1024x512xbf16>
    %cst = arith.constant dense<0.000000e+00> : vector<2x512xf32>
    %3 = tpu.matmul %1, %2, %cst {dimension_numbers = #tpu.dot_dimension_numbers<[1], [0], [0], [1], [0, 0, 1, 1], [], []>} : vector<2x1024xbf16>, vector<1024x512xbf16>, vector<2x512xf32> -> vector<2x512xf32>
    %c0_3 = arith.constant 0 : index
    %c0_4 = arith.constant 0 : index
    %4 = vector.load %arg2[%c0_3, %c0_4] : memref<1x512xf32, #tpu.memory_space<vmem>>, vector<1x512xf32>
    %5 = vector.broadcast %4 : vector<1x512xf32> to vector<2x512xf32>
    %6 = arith.addf %3, %5 : vector<2x512xf32>
    %cst_5 = arith.constant 0.000000e+00 : f32
    %7 = vector.broadcast %cst_5 : f32 to vector<2x512xf32>
    %8 = arith.maximumf %6, %7 : vector<2x512xf32>
    %9 = arith.truncf %8 : vector<2x512xf32> to vector<2x512xbf16>
    %c0_6 = arith.constant 0 : index
    %c0_7 = arith.constant 0 : index
    %10 = vector.load %arg3[%c0_6, %c0_7] : memref<512x256xbf16, #tpu.memory_space<vmem>>, vector<512x256xbf16>
    %cst_8 = arith.constant dense<0.000000e+00> : vector<2x256xf32>
    %11 = tpu.matmul %9, %10, %cst_8 {dimension_numbers = #tpu.dot_dimension_numbers<[1], [0], [0], [1], [0, 0, 1, 1], [], []>} : vector<2x512xbf16>, vector<512x256xbf16>, vector<2x256xf32> -> vector<2x256xf32>
    %c0_9 = arith.constant 0 : index
    %c0_10 = arith.constant 0 : index
    %12 = vector.load %arg4[%c0_9, %c0_10] : memref<1x256xf32, #tpu.memory_space<vmem>>, vector<1x256xf32>
    %13 = vector.broadcast %12 : vector<1x256xf32> to vector<2x256xf32>
    %14 = arith.addf %11, %13 : vector<2x256xf32>
    %cst_11 = arith.constant 0.000000e+00 : f32
    %15 = vector.broadcast %cst_11 : f32 to vector<2x256xf32>
    %16 = arith.maximumf %14, %15 : vector<2x256xf32>
    %17 = arith.truncf %16 : vector<2x256xf32> to vector<2x256xbf16>
    %c0_12 = arith.constant 0 : index
    %c0_13 = arith.constant 0 : index
    %18 = vector.load %arg5[%c0_12, %c0_13] : memref<256x128xbf16, #tpu.memory_space<vmem>>, vector<256x128xbf16>
    %cst_14 = arith.constant dense<0.000000e+00> : vector<2x128xf32>
    %19 = tpu.matmul %17, %18, %cst_14 {dimension_numbers = #tpu.dot_dimension_numbers<[1], [0], [0], [1], [0, 0, 1, 1], [], []>} : vector<2x256xbf16>, vector<256x128xbf16>, vector<2x128xf32> -> vector<2x128xf32>
    %c0_15 = arith.constant 0 : index
    %c0_16 = arith.constant 0 : index
    %20 = vector.load %arg6[%c0_15, %c0_16] : memref<1x128xf32, #tpu.memory_space<vmem>>, vector<1x128xf32>
    %21 = vector.broadcast %20 : vector<1x128xf32> to vector<2x128xf32>
    %22 = arith.addf %19, %21 : vector<2x128xf32>
    %c0_17 = arith.constant 0 : index
    %c0_18 = arith.constant 0 : index
    %23 = vector.load %arg7[%c0_17, %c0_18] : memref<2x128xf32, #tpu.memory_space<vmem>>, vector<2x128xf32>
    tpu.vector_store %arg7[%c0_17, %c0_18], %22 {strides = array<i32>} : memref<2x128xf32, #tpu.memory_space<vmem>>, vector<2x128xf32>,
    return
  }
}

module attributes {stable_mosaic.version = 11 : i64} {
  func.func @_feat_pool_kernel(%arg0: i32, %arg1: i32, %arg2: memref<2x64x128xbf16, #tpu.memory_space<vmem>>, %arg3: memref<1x128xf32, #tpu.memory_space<vmem>>, %arg4: memref<1x128xf32, #tpu.memory_space<vmem>>, %arg5: memref<128x1024xbf16, #tpu.memory_space<vmem>>, %arg6: memref<1x1024xf32, #tpu.memory_space<vmem>>, %arg7: memref<2x1024xf32, #tpu.memory_space<vmem>>) attributes {dimension_semantics = [#tpu.dimension_semantics<parallel>, #tpu.dimension_semantics<arbitrary>], iteration_bounds = array<i64: 1, 1>, scalar_prefetch = 0 : i64, scratch_operands = 0 : i64, tpu.core_type = #tpu.core_type<tc>, window_params = [{transform_indices = @transform_0, window_bounds = array<i64: 2, 64, 128>}, {pipeline_mode = #tpu.pipeline_mode<synchronous>, transform_indices = @transform_1, window_bounds = array<i64: 1, 128>}, {pipeline_mode = #tpu.pipeline_mode<synchronous>, transform_indices = @transform_2, window_bounds = array<i64: 1, 128>}, {pipeline_mode = #tpu.pipeline_mode<synchronous>, transform_indices = @transform_3, window_bounds = array<i64: 128, 1024>}, {pipeline_mode = #tpu.pipeline_mode<synchronous>, transform_indices = @transform_4, window_bounds = array<i64: 1, 1024>}, {transform_indices = @transform_5, window_bounds = array<i64: 2, 1024>}]} {
    %c0 = arith.constant 0 : index
    %c0_0 = arith.constant 0 : index
    %c0_1 = arith.constant 0 : index
    %0 = vector.load %arg2[%c0, %c0_0, %c0_1] : memref<2x64x128xbf16, #tpu.memory_space<vmem>>, vector<2x64x128xbf16>
    %1 = arith.extf %0 : vector<2x64x128xbf16> to vector<2x64x128xf32>
    %c0_2 = arith.constant 0 : index
    %c0_3 = arith.constant 0 : index
    %2 = vector.load %arg3[%c0_2, %c0_3] : memref<1x128xf32, #tpu.memory_space<vmem>>, vector<1x128xf32>
    %3 = vector.shape_cast %2 : vector<1x128xf32> to vector<1x1x128xf32>
    %4 = vector.broadcast %3 : vector<1x1x128xf32> to vector<2x64x128xf32>
    %5 = arith.mulf %1, %4 : vector<2x64x128xf32>
    %c0_4 = arith.constant 0 : index
    %c0_5 = arith.constant 0 : index
    %6 = vector.load %arg4[%c0_4, %c0_5] : memref<1x128xf32, #tpu.memory_space<vmem>>, vector<1x128xf32>
    %7 = vector.shape_cast %6 : vector<1x128xf32> to vector<1x1x128xf32>
    %8 = vector.broadcast %7 : vector<1x1x128xf32> to vector<2x64x128xf32>
    %9 = arith.addf %5, %8 : vector<2x64x128xf32>
    %cst = arith.constant 0.000000e+00 : f32
    %10 = vector.broadcast %cst : f32 to vector<2x64x128xf32>
    %11 = arith.maximumf %9, %10 : vector<2x64x128xf32>
    %12 = vector.shape_cast %11 : vector<2x64x128xf32> to vector<128x128xf32>
    %13 = arith.truncf %12 : vector<128x128xf32> to vector<128x128xbf16>
    %c0_6 = arith.constant 0 : index
    %c0_7 = arith.constant 0 : index
    %14 = vector.load %arg5[%c0_6, %c0_7] : memref<128x1024xbf16, #tpu.memory_space<vmem>>, vector<128x1024xbf16>
    %cst_8 = arith.constant dense<0.000000e+00> : vector<128x1024xf32>
    %15 = tpu.matmul %13, %14, %cst_8 {dimension_numbers = #tpu.dot_dimension_numbers<[1], [0], [0], [1], [0, 0, 1, 1], [], []>} : vector<128x128xbf16>, vector<128x1024xbf16>, vector<128x1024xf32> -> vector<128x1024xf32>
    %c0_9 = arith.constant 0 : index
    %c0_10 = arith.constant 0 : index
    %16 = vector.load %arg6[%c0_9, %c0_10] : memref<1x1024xf32, #tpu.memory_space<vmem>>, vector<1x1024xf32>
    %17 = vector.broadcast %16 : vector<1x1024xf32> to vector<128x1024xf32>
    %18 = arith.addf %15, %17 : vector<128x1024xf32>
    %19 = vector.extract_strided_slice %18 {offsets = [0, 0], sizes = [64, 1024], strides = [1, 1]} : vector<128x1024xf32> to vector<64x1024xf32>
    %cst_11 = arith.constant dense<0xFF800000> : vector<1024xf32>
    %20 = vector.multi_reduction <maximumf>, %19, %cst_11 [0] : vector<64x1024xf32> to vector<1024xf32>
    %21 = vector.shape_cast %20 : vector<1024xf32> to vector<1x1024xf32>
    %22 = vector.extract_strided_slice %18 {offsets = [64, 0], sizes = [64, 1024], strides = [1, 1]} : vector<128x1024xf32> to vector<64x1024xf32>
    %cst_12 = arith.constant dense<0xFF800000> : vector<1024xf32>
    %23 = vector.multi_reduction <maximumf>, %22, %cst_12 [0] : vector<64x1024xf32> to vector<1024xf32>
    %24 = vector.shape_cast %23 : vector<1024xf32> to vector<1x1024xf32>
    %25 = tpu.concatenate %21, %24 in 0 : vector<1x1024xf32>, vector<1x1024xf32> -> vector<2x1024xf32>
    %c0_i32 = arith.constant 0 : i32
    %26 = arith.cmpi eq, %arg1, %c0_i32 : i32
    %27 = arith.extui %26 : i1 to i32
    %c0_i32_13 = arith.constant 0 : i32
    %28 = arith.cmpi ne, %27, %c0_i32_13 : i32
    scf.if %28 {
      %c0_16 = arith.constant 0 : index
      %c0_17 = arith.constant 0 : index
      %32 = vector.load %arg7[%c0_16, %c0_17] : memref<2x1024xf32, #tpu.memory_space<vmem>>, vector<2x1024xf32>
      tpu.vector_store %arg7[%c0_16, %c0_17], %25 {strides = array<i32>} : memref<2x1024xf32, #tpu.memory_space<vmem>>, vector<2x1024xf32>,
    } else {
    }
    %c0_i32_14 = arith.constant 0 : i32
    %29 = arith.cmpi sgt, %arg1, %c0_i32_14 : i32
    %30 = arith.extui %29 : i1 to i32
    %c0_i32_15 = arith.constant 0 : i32
    %31 = arith.cmpi ne, %30, %c0_i32_15 : i32
    scf.if %31 {
      %c0_16 = arith.constant 0 : index
      %c0_17 = arith.constant 0 : index
      %32 = vector.load %arg7[%c0_16, %c0_17] : memref<2x1024xf32, #tpu.memory_space<vmem>>, vector<2x1024xf32>
      %33 = arith.maximumf %32, %25 : vector<2x1024xf32>
      %c0_18 = arith.constant 0 : index
      %c0_19 = arith.constant 0 : index
      %34 = vector.load %arg7[%c0_18, %c0_19] : memref<2x1024xf32, #tpu.memory_space<vmem>>, vector<2x1024xf32>
      tpu.vector_store %arg7[%c0_18, %c0_19], %33 {strides = array<i32>} : memref<2x1024xf32, #tpu.memory_space<vmem>>, vector<2x1024xf32>,
    } else {
    }
    return
  }
  func.func @transform_0(%arg0: i32, %arg1: i32) -> (i32, i32, i32) {
    %c0_i32 = arith.constant 0 : i32
    %c0_i32_0 = arith.constant 0 : i32
    return %arg0, %arg1, %c0_i32 : i32, i32, i32
  }
  func.func @transform_1(%arg0: i32, %arg1: i32) -> (i32, i32) {
    %c0_i32 = arith.constant 0 : i32
    %c0_i32_0 = arith.constant 0 : i32
    %c0_i32_1 = arith.constant 0 : i32
    return %c0_i32, %c0_i32_0 : i32, i32
  }
  func.func @transform_2(%arg0: i32, %arg1: i32) -> (i32, i32) {
    %c0_i32 = arith.constant 0 : i32
    %c0_i32_0 = arith.constant 0 : i32
    %c0_i32_1 = arith.constant 0 : i32
    return %c0_i32, %c0_i32_0 : i32, i32
  }
  func.func @transform_3(%arg0: i32, %arg1: i32) -> (i32, i32) {
    %c0_i32 = arith.constant 0 : i32
    %c0_i32_0 = arith.constant 0 : i32
    %c0_i32_1 = arith.constant 0 : i32
    return %c0_i32, %c0_i32_0 : i32, i32
  }
  func.func @transform_4(%arg0: i32, %arg1: i32) -> (i32, i32) {
    %c0_i32 = arith.constant 0 : i32
    %c0_i32_0 = arith.constant 0 : i32
    %c0_i32_1 = arith.constant 0 : i32
    return %c0_i32, %c0_i32_0 : i32, i32
  }
  func.func @transform_5(%arg0: i32, %arg1: i32) -> (i32, i32) {
    %c0_i32 = arith.constant 0 : i32
    %c0_i32_0 = arith.constant 0 : i32
    return %arg0, %c0_i32 : i32, i32
  }
}

</mosaic_0001>

<bundles_post_ra>
// kernel: tnet_forward.4
= control target key start
LH: loop header
LB: loop body
LE: loop exit
PB: predicated region body
PF: predicated region fallthrough
CT: control target
= control target key end

     0   :  { %12 = vsyncpa [#allocation3], 0  ;;  %s651_s21 = smov [#allocation2]   ;;  %s907_s0 = inlined_call_operand.vmem [shape: bf16[128,64], index: 0, kind: input, shape index: {}]   ;;  %s908_s1 = inlined_call_operand.vmem [shape: f32[1,64], index: 1, kind: input, shape index: {}]   ;;  %s909_s2 = inlined_call_operand.vmem [shape: f32[1,64], index: 2, kind: input, shape index: {}]   ;;  %s910_s3 = inlined_call_operand.vmem [shape: bf16[64,64], index: 3, kind: input, shape index: {}]   ;;  %s911_s4 = inlined_call_operand.hbm [shape: f32[1,64], index: 4, kind: input, shape index: {}]   ;;  %s912_s5 = inlined_call_operand.vmem [shape: bf16[128,64], index: 5, kind: output, shape index: {0}]   ;;  %s913_s6 = inlined_call_operand.vmem [shape: f32[2,64], index: 6, kind: output, shape index: {1}]  }
   0x1   :  { %s27_s22 = sshll.u32 %s651_s21, 4  ;;  %s28_s22 = int_to_ptr.vmem [resolvable:$true] %s27_s22 }
   0x2   :  { %s637_s23 = scalar_lea.vmem %s28_s22, 16  ;;  %s641_s24 = scalar_lea.vmem %s28_s22, 32 }
   0x3   :  { %p638_p0 = scmp.ne.s32.totalorder %s28_s22, %s637_s23  ;;  %p642_p1 = scmp.lt.s32.totalorder %s28_s22, %s28_s22 }
   0x4   :  { %p643_p2 = scmp.lt.s32.totalorder %s641_s24, %s637_s23 }
   0x6   :  { %p644_p3 = por %p643_p2, %p642_p1 }
   0x8   :  { %p645_p4 = pnand %p644_p3, %p638_p0 }
   0xa   :  { %648 = shalt.err (!%p645_p4)
}
   0xb   :  { %30 = dma.hbm_to_vmem [thread:$0]  %s911_s4, 16, %s28_s22, [#allocation3]  }
   0xc   :  { %649 = dma.done.wait [#allocation3], 16  }
   0xd   :  { %650 = vsyncadd [#allocation3], 4294967280  ;;  %v625_v0 = vld [vmem:[%s910_s3 + $0x18] sm:$0xff]   ;;  %v626_v1 = vld [vmem:[%s910_s3 + $0x10] sm:$0xff]   ;;  %vm176_vm0 = vcmask 523264   ;;  %vm362_vm1 = vcmask 519168  }
   0xe   :  { %592 = vmatprep.subr.bf16.mxu0 %v625_v0  ;;  %616 = vmatprep.subr.bf16.mxu1 %v625_v0  ;;  %v627_v2 = vld [vmem:[%s910_s3 + $0x8] sm:$0xff]   ;;  %v542_v3 = vld [vmem:[%s907_s0] sm:$0xff]   ;;  %v574_v8 = vld [vmem:[%s907_s0 + $0x10] sm:$0xff]   ;;  %vm469_vm2 = vcmask 1040384   ;;  %vm475_vm3 = vcmask 517120  }
   0xf   :  { %593 = vmatpush3.bf16.msra.mxu0 %v625_v0  ;;  %620 = vmatpush3.bf16.msra.mxu1 %v625_v0  ;;  %v705_v4 = vld [vmem:[%s908_s1] ss:$0 sm:$0xff]  ;;  %v543_v5 = vunpack.c.l.bf16 %v542_v3  ;;  %v544_v6 = vunpack.c.h.bf16 %v542_v3  ;;  %v573_v7 = vld [vmem:[%s907_s0 + $0x8] sm:$0xff]   ;;  %v575_v9 = vld [vmem:[%s907_s0 + $0x18] sm:$0xff]   ;;  %v551_v13 = vunpack.c.l.bf16 %v574_v8  ;;  %v552_v14 = vunpack.c.h.bf16 %v574_v8 }
  0x10   :  { %594 = vmatprep.subr.bf16.mxu0 %v626_v1  ;;  %617 = vmatprep.subr.bf16.mxu1 %v626_v1  ;;  %v719_v10 = vld [vmem:[%s909_s2] ss:$0 sm:$0xff]  ;;  %v547_v11 = vunpack.c.l.bf16 %v573_v7  ;;  %v548_v12 = vunpack.c.h.bf16 %v573_v7  ;;  %v555_v18 = vunpack.c.l.bf16 %v575_v9  ;;  %v556_v19 = vunpack.c.h.bf16 %v575_v9  ;;  %v577_v37 = vld [vmem:[%s907_s0 + $0x28] sm:$0xff]   ;;  %v578_v42 = vld [vmem:[%s907_s0 + $0x30] sm:$0xff]  }
  0x11   :  { %v576_v15 = vld [vmem:[%s907_s0 + $0x20] sm:$0xff]   ;;  %v74_v16 = vmul.f32 %v543_v5, %v705_v4  ;;  %v75_v17 = vmul.f32 %v544_v6, %v705_v4  ;;  %v78_v23 = vmul.f32 %v551_v13, %v705_v4  ;;  %v79_v27 = vmul.f32 %v552_v14, %v705_v4  ;;  %v579_v50 = vld [vmem:[%s907_s0 + $0x38] sm:$0xff]  }
  0x12   :  { %v628_v20 = vld [vmem:[%s910_s3] sm:$0xff]   ;;  %v76_v21 = vmul.f32 %v547_v11, %v705_v4  ;;  %v77_v22 = vmul.f32 %v548_v12, %v705_v4  ;;  %v559_v24 = vunpack.c.l.bf16 %v576_v15  ;;  %v80_v28 = vmul.f32 %v555_v18, %v705_v4 }
  0x13   :  { %595 = vmatpush3.bf16.msra.mxu0 %v626_v1  ;;  %621 = vmatpush3.bf16.msra.mxu1 %v626_v1  ;;  %v97_v25 = vadd.f32 %v719_v10, %v74_v16  ;;  %v98_v26 = vadd.f32 %v719_v10, %v75_v17  ;;  %v101_v31 = vadd.f32 %v719_v10, %v78_v23  ;;  %v560_v45 = vunpack.c.h.bf16 %v576_v15  ;;  %v776_v23 = vld [vmem:[#allocation2] ss:$0 sm:$0xff] }
  0x14   :  { %596 = vmatprep.subr.bf16.mxu0 %v627_v2  ;;  %618 = vmatprep.subr.bf16.mxu1 %v627_v2  ;;  %v99_v29 = vadd.f32 %v719_v10, %v76_v21  ;;  %v100_v30 = vadd.f32 %v719_v10, %v77_v22  ;;  %v81_v32 = vmul.f32 %v556_v19, %v705_v4  ;;  %v563_v49 = vunpack.c.l.bf16 %v577_v37 }
  0x15   :  { %v113_v33 = vmax.f32 %v97_v25, 0.0  ;;  %v114_v34 = vmax.f32 %v98_v26, 0.0  ;;  %v102_v35 = vadd.f32 %v719_v10, %v79_v27  ;;  %v103_v36 = vadd.f32 %v719_v10, %v80_v28 }
  0x16   :  { %v115_v38 = vmax.f32 %v99_v29, 0.0  ;;  %v116_v39 = vmax.f32 %v100_v30, 0.0  ;;  %v117_v40 = vmax.f32 %v101_v31, 0.0  ;;  %v104_v41 = vadd.f32 %v719_v10, %v81_v32 }
  0x17   :  { %597 = vmatpush3.bf16.msra.mxu0 %v627_v2  ;;  %622 = vmatpush3.bf16.msra.mxu1 %v627_v2  ;;  %v129_v43 = vpack.c.bf16 %v114_v34, %v113_v33  ;;  %v118_v44 = vmax.f32 %v102_v35, 0.0  ;;  %v119_v47 = vmax.f32 %v103_v36, 0.0  ;;  %v82_v48 = vmul.f32 %v559_v24, %v705_v4 }
  0x18   :  { %598 = vmatprep.subr.bf16.mxu0 %v628_v20  ;;  %619 = vmatprep.subr.bf16.mxu1 %v628_v20  ;;  %v130_v46 = vpack.c.bf16 %v116_v39, %v115_v38  ;;  %v83_v52 = vmul.f32 %v560_v45, %v705_v4  ;;  %v564_v53 = vunpack.c.h.bf16 %v577_v37  ;;  %v567_v54 = vunpack.c.l.bf16 %v578_v42 }
  0x19   :  { %600 = vmatprep.mubr.msk.bf16.mxu0 %vm176_vm0, %v129_v43  ;;  %v131_v51 = vpack.c.bf16 %v118_v44, %v117_v40  ;;  %v120_v55 = vmax.f32 %v104_v41, 0.0  ;;  %v105_v56 = vadd.f32 %v719_v10, %v82_v48  ;;  %v84_v57 = vmul.f32 %v563_v49, %v705_v4 }
  0x1a   :  { %v568_v58 = vunpack.c.h.bf16 %v578_v42  ;;  %v106_v59 = vadd.f32 %v719_v10, %v83_v52  ;;  %v85_v60 = vmul.f32 %v564_v53, %v705_v4  ;;  %v86_v61 = vmul.f32 %v567_v54, %v705_v4 }
  0x1b   :  { %599 = vmatpush3.bf16.msra.mxu0 %v628_v20  ;;  %623 = vmatpush3.bf16.msra.mxu1 %v628_v20  ;;  %v571_v62 = vunpack.c.l.bf16 %v579_v50  ;;  %v121_v63 = vmax.f32 %v105_v56, 0.0  ;;  %v107_v0 = vadd.f32 %v719_v10, %v84_v57  ;;  %v572_v2 = vunpack.c.h.bf16 %v579_v50 }
  0x1c   :  { %v87_v1 = vmul.f32 %v568_v58, %v705_v4  ;;  %v122_v3 = vmax.f32 %v106_v59, 0.0  ;;  %v108_v5 = vadd.f32 %v719_v10, %v85_v60  ;;  %v109_v6 = vadd.f32 %v719_v10, %v86_v61 }
  0x1d   :  { %v88_v7 = vmul.f32 %v571_v62, %v705_v4  ;;  %v123_v8 = vmax.f32 %v107_v0, 0.0  ;;  %v89_v11 = vmul.f32 %v572_v2, %v705_v4  ;;  %v132_v16 = vpack.c.bf16 %v120_v55, %v119_v47 }
  0x1e   :  { %601 = vmatmul.mubr.msk.bf16.vlgmr.msra.gmra.mxu0 %vm176_vm0, %v130_v46  ;;  %v110_v9 = vadd.f32 %v719_v10, %v87_v1  ;;  %v133_v12 = vpack.c.bf16 %v122_v3, %v121_v63  ;;  %v124_v13 = vmax.f32 %v108_v5, 0.0  ;;  %v125_v14 = vmax.f32 %v109_v6, 0.0 }
  0x1f   :  { %604 = vmatprep.mubr.msk.bf16.mxu0 %vm176_vm0, %v131_v51  ;;  %v111_v15 = vadd.f32 %v719_v10, %v88_v7  ;;  %v112_v18 = vadd.f32 %v719_v10, %v89_v11 }
  0x20   :  { %v126_v17 = vmax.f32 %v110_v9, 0.0  ;;  %608 = vmatprep.mubr.msk.bf16.mxu1 %vm176_vm0, %v133_v12  ;;  %v134_v19 = vpack.c.bf16 %v124_v13, %v123_v8 }
  0x21   :  { %v127_v21 = vmax.f32 %v111_v15, 0.0  ;;  %v128_v22 = vmax.f32 %v112_v18, 0.0 }
  0x22   :  { %v135_v20 = vpack.c.bf16 %v126_v17, %v125_v14  ;;  %609 = vmatmul.mubr.msk.bf16.vlgmr.msra.gmra.mxu1 %vm176_vm0, %v134_v19 }
  0x23   :  { %v136_v4 = vpack.c.bf16 %v128_v22, %v127_v21 }
  0x24   :  { %612 = vmatprep.mubr.msk.bf16.mxu1 %vm176_vm0, %v135_v20 }
  0x26   :  { %605 = vmatmul.mubr.msk.bf16.gmra.mxu0 %vm176_vm0, %v132_v16 }
  0x2a   :  { %613 = vmatmul.mubr.msk.bf16.gmra.mxu1 %vm176_vm0, %v136_v4 }
  0xde   :  { %v602_v24 = vpop.f32.mrf.mxu0 }
  0xdf   :  { %v244_v10 = vadd.f32 %v602_v24, %v776_v23 }
  0xe0   :  { %v235_v25 = vpop.f32.mrf.mxu0 }
  0xe1   :  { %v527_v26 = vpack.c.bf16 %v244_v10, %v244_v10  ;;  %v236_v27 = vadd.f32 %v776_v23, %v235_v25  ;;  %v418_v35 = vmul.f32 %v244_v10, %v244_v10  ;;  %v382_v45 = vsel %vm176_vm0, %v244_v10, 0.0 }
  0xe2   :  { %v603_v28 = vpop.f32.mrf.mxu0  ;;  %v610_v34 = vpop.f32.mrf.mxu1 }
  0xe3   :  { %365 = vst.msk [vmem:[%s912_s5 + $0x8] sm:$0xf] %vm362_vm1, %v527_v26  ;;  %v525_v29 = vpack.c.bf16 %v236_v27, %v236_v27  ;;  %v247_v30 = vadd.f32 %v603_v28, %v776_v23  ;;  %v416_v32 = vmul.f32 %v236_v27, %v236_v27  ;;  %v379_v36 = vsel %vm176_vm0, %v236_v27, 0.0 }
  0xe4   :  { %v238_v31 = vpop.f32.mrf.mxu0  ;;  %v792_v39 = vadd.f32 %v610_v34, %v776_v23  ;;  %v267_v44 = vpop.f32.mrf.mxu1  ;;  %v435_v58 = vsel %vm176_vm0, %v418_v35, 0.0 }
  0xe5   :  { %363 = vst.msk [vmem:[%s912_s5] sm:$0xf] %vm362_vm1, %v525_v29  ;;  %v239_v33 = vadd.f32 %v776_v23, %v238_v31  ;;  %v528_v37 = vpack.c.bf16 %v247_v30, %v247_v30  ;;  %v432_v49 = vsel %vm176_vm0, %v416_v32, 0.0  ;;  %v419_v50 = vmul.f32 %v247_v30, %v247_v30 }
  0xe6   :  { %v606_v38 = vpop.f32.mrf.mxu0  ;;  %v535_v48 = vpack.c.bf16 %v792_v39, %v792_v39  ;;  %v611_v53 = vpop.f32.mrf.mxu1  ;;  %v384_v59 = vsel %vm176_vm0, %v247_v30, 0.0  ;;  %v268_v61 = vadd.f32 %v776_v23, %v267_v44 }
  0xe7   :  { %v526_v40 = vpack.c.bf16 %v239_v33, %v239_v33  ;;  %v380_v41 = vsel %vm176_vm0, %v239_v33, 0.0  ;;  %v417_v42 = vmul.f32 %v239_v33, %v239_v33  ;;  %v260_v43 = vadd.f32 %v606_v38, %v776_v23  ;;  %366 = vst.msk [vmem:[%s912_s5 + $0xc] sm:$0xf] %vm362_vm1, %v528_v37 }
  0xe8   :  { %v381_v46 = vadd.f32 %v380_v41, %v379_v36  ;;  %v251_v47 = vpop.f32.mrf.mxu0  ;;  %373 = vst.msk [vmem:[%s912_s5 + $0x28] sm:$0xf] %vm362_vm1, %v535_v48  ;;  %v270_v62 = vpop.f32.mrf.mxu1  ;;  %v823_v3 = vadd.f32 %v611_v53, %v776_v23  ;;  %v437_v5 = vsel %vm176_vm0, %v419_v50, 0.0  ;;  %v533_v13 = vpack.c.bf16 %v268_v61, %v268_v61 }
  0xe9   :  { %364 = vst.msk [vmem:[%s912_s5 + $0x4] sm:$0xf] %vm362_vm1, %v526_v40  ;;  %v433_v51 = vsel %vm176_vm0, %v417_v42, 0.0  ;;  %v531_v52 = vpack.c.bf16 %v260_v43, %v260_v43  ;;  %v252_v56 = vadd.f32 %v776_v23, %v251_v47  ;;  %v422_v19 = vmul.f32 %v260_v43, %v260_v43 }
  0xea   :  { %v383_v54 = vadd.f32 %v382_v45, %v381_v46  ;;  %v434_v55 = vadd.f32 %v433_v51, %v432_v49  ;;  %v607_v57 = vpop.f32.mrf.mxu0  ;;  %v614_v9 = vpop.f32.mrf.mxu1  ;;  %371 = vst.msk [vmem:[%s912_s5 + $0x20] sm:$0xf] %vm362_vm1, %v533_v13  ;;  %v536_v18 = vpack.c.bf16 %v823_v3, %v823_v3  ;;  %v390_v4 = vsel %vm176_vm0, %v260_v43, 0.0 }
  0xeb   :  { %369 = vst.msk [vmem:[%s912_s5 + $0x18] sm:$0xf] %vm362_vm1, %v531_v52  ;;  %v263_v60 = vadd.f32 %v607_v57, %v776_v23  ;;  %v529_v0 = vpack.c.bf16 %v252_v56, %v252_v56  ;;  %v386_v6 = vsel %vm176_vm0, %v252_v56, 0.0  ;;  %v420_v7 = vmul.f32 %v252_v56, %v252_v56 }
  0xec   :  { %v436_v63 = vadd.f32 %v435_v58, %v434_v55  ;;  %v385_v1 = vadd.f32 %v384_v59, %v383_v54  ;;  %v254_v2 = vpop.f32.mrf.mxu0  ;;  %v283_v16 = vpop.f32.mrf.mxu1  ;;  %374 = vst.msk [vmem:[%s912_s5 + $0x2c] sm:$0xf] %vm362_vm1, %v536_v18  ;;  %v271_v10 = vadd.f32 %v776_v23, %v270_v62  ;;  %v292_v25 = vadd.f32 %v614_v9, %v776_v23 }
  0xed   :  { %v532_v8 = vpack.c.bf16 %v263_v60, %v263_v60  ;;  %367 = vst.msk [vmem:[%s912_s5 + $0x10] sm:$0xf] %vm362_vm1, %v529_v0  ;;  %v439_v14 = vsel %vm176_vm0, %v420_v7, 0.0  ;;  %v255_v15 = vadd.f32 %v776_v23, %v254_v2  ;;  %v423_v27 = vmul.f32 %v263_v60, %v263_v60 }
  0xee   :  { %v387_v11 = vadd.f32 %v386_v6, %v385_v1  ;;  %v438_v12 = vadd.f32 %v437_v5, %v436_v63  ;;  %v615_v26 = vpop.f32.mrf.mxu1  ;;  %v284_v29 = vadd.f32 %v776_v23, %v283_v16  ;;  %v534_v33 = vpack.c.bf16 %v271_v10, %v271_v10 }
  0xef   :  { %370 = vst.msk [vmem:[%s912_s5 + $0x1c] sm:$0xf] %vm362_vm1, %v532_v8  ;;  %v530_v20 = vpack.c.bf16 %v255_v15, %v255_v15  ;;  %v388_v21 = vsel %vm176_vm0, %v255_v15, 0.0  ;;  %v421_v22 = vmul.f32 %v255_v15, %v255_v15  ;;  %v295_v30 = vadd.f32 %v615_v26, %v776_v23 }
  0xf0   :  { %v440_v17 = vadd.f32 %v439_v14, %v438_v12  ;;  %v389_v24 = vadd.f32 %v388_v21, %v387_v11  ;;  %v443_v34 = vsel %vm176_vm0, %v422_v19, 0.0  ;;  %v392_v35 = vsel %vm176_vm0, %v263_v60, 0.0  ;;  %372 = vst.msk [vmem:[%s912_s5 + $0x24] sm:$0xf] %vm362_vm1, %v534_v33  ;;  %v286_v42 = vpop.f32.mrf.mxu1 }
  0xf1   :  { %368 = vst.msk [vmem:[%s912_s5 + $0x14] sm:$0xf] %vm362_vm1, %v530_v20  ;;  %v441_v28 = vsel %vm176_vm0, %v421_v22, 0.0  ;;  %v424_v36 = vmul.f32 %v268_v61, %v268_v61  ;;  %v539_v37 = vpack.c.bf16 %v292_v25, %v292_v25  ;;  %v537_v41 = vpack.c.bf16 %v284_v29, %v284_v29 }
  0xf2   :  { %v391_v31 = vadd.f32 %v390_v4, %v389_v24  ;;  %v442_v32 = vadd.f32 %v441_v28, %v440_v17  ;;  %v445_v43 = vsel %vm176_vm0, %v423_v27, 0.0  ;;  %v394_v44 = vsel %vm176_vm0, %v268_v61, 0.0 }
  0xf3   :  { %v425_v45 = vmul.f32 %v271_v10, %v271_v10  ;;  %377 = vst.msk [vmem:[%s912_s5 + $0x38] sm:$0xf] %vm362_vm1, %v539_v37  ;;  %v540_v46 = vpack.c.bf16 %v295_v30, %v295_v30  ;;  %375 = vst.msk [vmem:[%s912_s5 + $0x30] sm:$0xf] %vm362_vm1, %v537_v41  ;;  %v426_v49 = vmul.f32 %v792_v39, %v792_v39  ;;  %v447_v50 = vsel %vm176_vm0, %v424_v36, 0.0 }
  0xf4   :  { %v444_v38 = vadd.f32 %v443_v34, %v442_v32  ;;  %v393_v40 = vadd.f32 %v392_v35, %v391_v31  ;;  %v396_v51 = vsel %vm176_vm0, %v271_v10, 0.0  ;;  %v287_v52 = vadd.f32 %v776_v23, %v286_v42 }
  0xf5   :  { %378 = vst.msk [vmem:[%s912_s5 + $0x3c] sm:$0xf] %vm362_vm1, %v540_v46  ;;  %v398_v55 = vsel %vm176_vm0, %v792_v39, 0.0  ;;  %v427_v56 = vmul.f32 %v823_v3, %v823_v3  ;;  %v449_v57 = vsel %vm176_vm0, %v425_v45, 0.0  ;;  %v451_v61 = vsel %vm176_vm0, %v426_v49, 0.0 }
  0xf6   :  { %v395_v47 = vadd.f32 %v394_v44, %v393_v40  ;;  %v446_v48 = vadd.f32 %v445_v43, %v444_v38  ;;  %v538_v58 = vpack.c.bf16 %v287_v52, %v287_v52  ;;  %v400_v62 = vsel %vm176_vm0, %v823_v3, 0.0 }
  0xf7   :  { %v428_v63 = vmul.f32 %v284_v29, %v284_v29  ;;  %v453_v0 = vsel %vm176_vm0, %v427_v56, 0.0  ;;  %v402_v1 = vsel %vm176_vm0, %v284_v29, 0.0  ;;  %v429_v2 = vmul.f32 %v287_v52, %v287_v52 }
  0xf8   :  { %v397_v53 = vadd.f32 %v396_v51, %v395_v47  ;;  %v448_v54 = vadd.f32 %v447_v50, %v446_v48  ;;  %376 = vst.msk [vmem:[%s912_s5 + $0x34] sm:$0xf] %vm362_vm1, %v538_v58  ;;  %v430_v7 = vmul.f32 %v292_v25, %v292_v25  ;;  %v404_v3 = vsel %vm176_vm0, %v287_v52, 0.0 }
  0xf9   :  { %v455_v8 = vsel %vm176_vm0, %v428_v63, 0.0  ;;  %v406_v12 = vsel %vm176_vm0, %v292_v25, 0.0  ;;  %v431_v13 = vmul.f32 %v295_v30, %v295_v30  ;;  %v457_v14 = vsel %vm176_vm0, %v429_v2, 0.0 }
  0xfa   :  { %v399_v59 = vadd.f32 %v398_v55, %v397_v53  ;;  %v450_v60 = vadd.f32 %v449_v57, %v448_v54  ;;  %v459_v17 = vsel %vm176_vm0, %v430_v7, 0.0  ;;  %v408_v18 = vsel %vm176_vm0, %v295_v30, 0.0 }
  0xfb   :  { %v461_v21 = vsel %vm176_vm0, %v431_v13, 0.0 }
  0xfc   :  { %v452_v23 = vadd.f32 %v451_v61, %v450_v60  ;;  %v401_v39 = vadd.f32 %v400_v62, %v399_v59 }
  0xfe   :  { %v403_v5 = vadd.f32 %v402_v1, %v401_v39  ;;  %v454_v6 = vadd.f32 %v453_v0, %v452_v23 }
 0x100   :  { %v456_v9 = vadd.f32 %v455_v8, %v454_v6  ;;  %v405_v11 = vadd.f32 %v404_v3, %v403_v5 }
 0x102   :  { %v407_v15 = vadd.f32 %v406_v12, %v405_v11  ;;  %v458_v16 = vadd.f32 %v457_v14, %v456_v9 }
 0x104   :  { %v409_v19 = vadd.f32 %v408_v18, %v407_v15  ;;  %v460_v20 = vadd.f32 %v459_v17, %v458_v16 }
 0x106   :  { %v410_v22 = vrot.slane %v409_v19, 4  ;;  %v462_v4 = vadd.f32 %v461_v21, %v460_v20 }
 0x108   :  { %v411_v24 = vadd.f32 %v410_v22, %v409_v19  ;;  %v463_v10 = vrot.slane %v462_v4, 4 }
 0x10a   :  { %v412_v26 = vrot.slane %v411_v24, 2  ;;  %v464_v27 = vadd.f32 %v463_v10, %v462_v4 }
 0x10c   :  { %v413_v25 = vadd.f32 %v412_v26, %v411_v24  ;;  %v465_v28 = vrot.slane %v464_v27, 2 }
 0x10e   :  { %v414_v29 = vrot.slane %v413_v25, 1  ;;  %v466_v31 = vadd.f32 %v465_v28, %v464_v27 }
 0x110   :  { %v467_v32 = vrot.slane %v466_v31, 1  ;;  %v415_v33 = vadd.f32 %v414_v29, %v413_v25 }
 0x112   :  { %v468_v34 = vadd.f32 %v467_v32, %v466_v31 }
 0x114   :  { %v470_v30 = vsel %vm469_vm2, %v415_v33, %v468_v34 }
 0x115   :  { %476 = vst.msk [vmem:[%s913_s6] sm:$0x3] %vm475_vm3, %v470_v30 }
 0x116   :  { %493 = vsyncpa [#allocation3], 1 }

// kernel: tnet_forward.5
= control target key start
LH: loop header
LB: loop body
LE: loop exit
PB: predicated region body
PF: predicated region fallthrough
CT: control target
= control target key end

     0   :  { %12 = vsyncpa [#allocation3], 0  ;;  %s663_s21 = smov [#allocation2]   ;;  %s833_s0 = inlined_call_operand.vmem [shape: bf16[128,64], index: 0, kind: input, shape index: {}]   ;;  %s834_s1 = inlined_call_operand.vmem [shape: f32[1,64], index: 1, kind: input, shape index: {}]   ;;  %s835_s2 = inlined_call_operand.vmem [shape: f32[1,64], index: 2, kind: input, shape index: {}]   ;;  %s836_s3 = inlined_call_operand.vmem [shape: bf16[64,128], index: 3, kind: input, shape index: {}]   ;;  %s837_s4 = inlined_call_operand.hbm [shape: f32[1,128], index: 4, kind: input, shape index: {}]   ;;  %s838_s5 = inlined_call_operand.vmem [shape: bf16[128,128], index: 5, kind: output, shape index: {0}]   ;;  %s839_s6 = inlined_call_operand.vmem [shape: f32[2,128], index: 6, kind: output, shape index: {1}]  }
   0x1   :  { %s27_s22 = sshll.u32 %s663_s21, 4  ;;  %s28_s22 = int_to_ptr.vmem [resolvable:$true] %s27_s22 }
   0x2   :  { %s649_s23 = scalar_lea.vmem %s28_s22, 16  ;;  %s653_s24 = scalar_lea.vmem %s28_s22, 32 }
   0x3   :  { %p650_p0 = scmp.ne.s32.totalorder %s28_s22, %s649_s23  ;;  %p654_p1 = scmp.lt.s32.totalorder %s28_s22, %s28_s22 }
   0x4   :  { %p655_p2 = scmp.lt.s32.totalorder %s653_s24, %s649_s23 }
   0x6   :  { %p656_p3 = por %p655_p2, %p654_p1 }
   0x8   :  { %p657_p4 = pnand %p656_p3, %p650_p0 }
   0xa   :  { %660 = shalt.err (!%p657_p4)
}
   0xb   :  { %30 = dma.hbm_to_vmem [thread:$0]  %s837_s4, 16, %s28_s22, [#allocation3]  }
   0xc   :  { %661 = dma.done.wait [#allocation3], 16  }
   0xd   :  { %662 = vsyncadd [#allocation3], 4294967280  ;;  %v637_v0 = vld [vmem:[%s836_s3 + $0x18] sm:$0xff]   ;;  %v638_v1 = vld [vmem:[%s836_s3 + $0x10] sm:$0xff]   ;;  %vm176_vm0 = vcmask 523264   ;;  %vm436_vm1 = vcmask 1040384  }
   0xe   :  { %604 = vmatprep.subr.bf16.mxu0 %v637_v0  ;;  %628 = vmatprep.subr.bf16.mxu1 %v637_v0  ;;  %v639_v2 = vld [vmem:[%s836_s3 + $0x8] sm:$0xff]   ;;  %v507_v3 = vld [vmem:[%s833_s0] sm:$0xff]   ;;  %v579_v8 = vld [vmem:[%s833_s0 + $0x10] sm:$0xff]  }
   0xf   :  { %605 = vmatpush3.bf16.msra.mxu0 %v637_v0  ;;  %632 = vmatpush3.bf16.msra.mxu1 %v637_v0  ;;  %v717_v4 = vld [vmem:[%s834_s1] ss:$0 sm:$0xff]  ;;  %v508_v5 = vunpack.c.l.bf16 %v507_v3  ;;  %v509_v6 = vunpack.c.h.bf16 %v507_v3  ;;  %v578_v7 = vld [vmem:[%s833_s0 + $0x8] sm:$0xff]   ;;  %v580_v9 = vld [vmem:[%s833_s0 + $0x18] sm:$0xff]   ;;  %v516_v13 = vunpack.c.l.bf16 %v579_v8  ;;  %v517_v14 = vunpack.c.h.bf16 %v579_v8 }
  0x10   :  { %606 = vmatprep.subr.bf16.mxu0 %v638_v1  ;;  %629 = vmatprep.subr.bf16.mxu1 %v638_v1  ;;  %v731_v10 = vld [vmem:[%s835_s2] ss:$0 sm:$0xff]  ;;  %v512_v11 = vunpack.c.l.bf16 %v578_v7  ;;  %v513_v12 = vunpack.c.h.bf16 %v578_v7  ;;  %v520_v18 = vunpack.c.l.bf16 %v580_v9  ;;  %v521_v19 = vunpack.c.h.bf16 %v580_v9  ;;  %v582_v37 = vld [vmem:[%s833_s0 + $0x28] sm:$0xff]   ;;  %v583_v42 = vld [vmem:[%s833_s0 + $0x30] sm:$0xff]  }
  0x11   :  { %v581_v15 = vld [vmem:[%s833_s0 + $0x20] sm:$0xff]   ;;  %v74_v16 = vmul.f32 %v508_v5, %v717_v4  ;;  %v75_v17 = vmul.f32 %v509_v6, %v717_v4  ;;  %v78_v23 = vmul.f32 %v516_v13, %v717_v4  ;;  %v79_v27 = vmul.f32 %v517_v14, %v717_v4  ;;  %v584_v50 = vld [vmem:[%s833_s0 + $0x38] sm:$0xff]  }
  0x12   :  { %v640_v20 = vld [vmem:[%s836_s3] sm:$0xff]   ;;  %v76_v21 = vmul.f32 %v512_v11, %v717_v4  ;;  %v77_v22 = vmul.f32 %v513_v12, %v717_v4  ;;  %v524_v24 = vunpack.c.l.bf16 %v581_v15  ;;  %v80_v28 = vmul.f32 %v520_v18, %v717_v4 }
  0x13   :  { %607 = vmatpush3.bf16.msra.mxu0 %v638_v1  ;;  %633 = vmatpush3.bf16.msra.mxu1 %v638_v1  ;;  %v97_v25 = vadd.f32 %v731_v10, %v74_v16  ;;  %v98_v26 = vadd.f32 %v731_v10, %v75_v17  ;;  %v101_v31 = vadd.f32 %v731_v10, %v78_v23  ;;  %v525_v45 = vunpack.c.h.bf16 %v581_v15 }
  0x14   :  { %608 = vmatprep.subr.bf16.mxu0 %v639_v2  ;;  %630 = vmatprep.subr.bf16.mxu1 %v639_v2  ;;  %v99_v29 = vadd.f32 %v731_v10, %v76_v21  ;;  %v100_v30 = vadd.f32 %v731_v10, %v77_v22  ;;  %v81_v32 = vmul.f32 %v521_v19, %v717_v4  ;;  %v528_v49 = vunpack.c.l.bf16 %v582_v37 }
  0x15   :  { %v113_v33 = vmax.f32 %v97_v25, 0.0  ;;  %v114_v34 = vmax.f32 %v98_v26, 0.0  ;;  %v102_v35 = vadd.f32 %v731_v10, %v79_v27  ;;  %v103_v36 = vadd.f32 %v731_v10, %v80_v28 }
  0x16   :  { %v115_v38 = vmax.f32 %v99_v29, 0.0  ;;  %v116_v39 = vmax.f32 %v100_v30, 0.0  ;;  %v117_v40 = vmax.f32 %v101_v31, 0.0  ;;  %v104_v41 = vadd.f32 %v731_v10, %v81_v32 }
  0x17   :  { %609 = vmatpush3.bf16.msra.mxu0 %v639_v2  ;;  %634 = vmatpush3.bf16.msra.mxu1 %v639_v2  ;;  %v129_v43 = vpack.c.bf16 %v114_v34, %v113_v33  ;;  %v118_v44 = vmax.f32 %v102_v35, 0.0  ;;  %v119_v47 = vmax.f32 %v103_v36, 0.0  ;;  %v82_v48 = vmul.f32 %v524_v24, %v717_v4  ;;  %v788_v24 = vld [vmem:[#allocation2] ss:$0 sm:$0xff] }
  0x18   :  { %610 = vmatprep.subr.bf16.mxu0 %v640_v20  ;;  %631 = vmatprep.subr.bf16.mxu1 %v640_v20  ;;  %v130_v46 = vpack.c.bf16 %v116_v39, %v115_v38  ;;  %v83_v52 = vmul.f32 %v525_v45, %v717_v4  ;;  %v529_v53 = vunpack.c.h.bf16 %v582_v37  ;;  %v532_v54 = vunpack.c.l.bf16 %v583_v42 }
  0x19   :  { %612 = vmatprep.mubr.msk.bf16.mxu0 %vm176_vm0, %v129_v43  ;;  %v131_v51 = vpack.c.bf16 %v118_v44, %v117_v40  ;;  %v120_v55 = vmax.f32 %v104_v41, 0.0  ;;  %v105_v56 = vadd.f32 %v731_v10, %v82_v48  ;;  %v84_v57 = vmul.f32 %v528_v49, %v717_v4 }
  0x1a   :  { %v533_v58 = vunpack.c.h.bf16 %v583_v42  ;;  %v106_v59 = vadd.f32 %v731_v10, %v83_v52  ;;  %v85_v60 = vmul.f32 %v529_v53, %v717_v4  ;;  %v86_v61 = vmul.f32 %v532_v54, %v717_v4 }
  0x1b   :  { %611 = vmatpush3.bf16.msra.mxu0 %v640_v20  ;;  %635 = vmatpush3.bf16.msra.mxu1 %v640_v20  ;;  %v536_v62 = vunpack.c.l.bf16 %v584_v50  ;;  %v121_v63 = vmax.f32 %v105_v56, 0.0  ;;  %v107_v0 = vadd.f32 %v731_v10, %v84_v57  ;;  %v537_v2 = vunpack.c.h.bf16 %v584_v50 }
  0x1c   :  { %v87_v1 = vmul.f32 %v533_v58, %v717_v4  ;;  %v122_v3 = vmax.f32 %v106_v59, 0.0  ;;  %v108_v5 = vadd.f32 %v731_v10, %v85_v60  ;;  %v109_v6 = vadd.f32 %v731_v10, %v86_v61 }
  0x1d   :  { %v88_v7 = vmul.f32 %v536_v62, %v717_v4  ;;  %v123_v8 = vmax.f32 %v107_v0, 0.0  ;;  %v89_v11 = vmul.f32 %v537_v2, %v717_v4  ;;  %v132_v16 = vpack.c.bf16 %v120_v55, %v119_v47 }
  0x1e   :  { %613 = vmatmul.mubr.msk.bf16.vlgmr.msra.gmra.mxu0 %vm176_vm0, %v130_v46  ;;  %v110_v9 = vadd.f32 %v731_v10, %v87_v1  ;;  %v133_v12 = vpack.c.bf16 %v122_v3, %v121_v63  ;;  %v124_v13 = vmax.f32 %v108_v5, 0.0  ;;  %v125_v14 = vmax.f32 %v109_v6, 0.0 }
  0x1f   :  { %616 = vmatprep.mubr.msk.bf16.mxu0 %vm176_vm0, %v131_v51  ;;  %v111_v15 = vadd.f32 %v731_v10, %v88_v7  ;;  %v112_v18 = vadd.f32 %v731_v10, %v89_v11 }
  0x20   :  { %v126_v17 = vmax.f32 %v110_v9, 0.0  ;;  %620 = vmatprep.mubr.msk.bf16.mxu1 %vm176_vm0, %v133_v12  ;;  %v134_v19 = vpack.c.bf16 %v124_v13, %v123_v8 }
  0x21   :  { %v127_v21 = vmax.f32 %v111_v15, 0.0  ;;  %v128_v22 = vmax.f32 %v112_v18, 0.0 }
  0x22   :  { %v135_v20 = vpack.c.bf16 %v126_v17, %v125_v14  ;;  %621 = vmatmul.mubr.msk.bf16.vlgmr.msra.gmra.mxu1 %vm176_vm0, %v134_v19 }
  0x23   :  { %v136_v4 = vpack.c.bf16 %v128_v22, %v127_v21 }
  0x24   :  { %624 = vmatprep.mubr.msk.bf16.mxu1 %vm176_vm0, %v135_v20 }
  0x26   :  { %617 = vmatmul.mubr.msk.bf16.gmra.mxu0 %vm176_vm0, %v132_v16 }
  0x2a   :  { %625 = vmatmul.mubr.msk.bf16.gmra.mxu1 %vm176_vm0, %v136_v4 }
  0xde   :  { %v614_v23 = vpop.f32.mrf.mxu0 }
  0xdf   :  { %v244_v26 = vadd.f32 %v614_v23, %v788_v24 }
  0xe0   :  { %v235_v25 = vpop.f32.mrf.mxu0 }
  0xe1   :  { %v236_v27 = vadd.f32 %v788_v24, %v235_v25  ;;  %v401_v41 = vmul.f32 %v244_v26, %v244_v26 }
  0xe2   :  { %v615_v10 = vpop.f32.mrf.mxu0  ;;  %v622_v32 = vpop.f32.mrf.mxu1 }
  0xe3   :  { %v247_v28 = vadd.f32 %v615_v10, %v788_v24  ;;  %v399_v34 = vmul.f32 %v236_v27, %v236_v27  ;;  %v276_v40 = vadd.f32 %v622_v32, %v788_v24 }
  0xe4   :  { %v238_v29 = vpop.f32.mrf.mxu0  ;;  %v267_v38 = vpop.f32.mrf.mxu1 }
  0xe5   :  { %v546_v30 = vpack.c.bf16 %v247_v28, %v244_v26  ;;  %v239_v31 = vadd.f32 %v788_v24, %v238_v29  ;;  %v402_v46 = vmul.f32 %v247_v28, %v247_v28  ;;  %v268_v48 = vadd.f32 %v788_v24, %v267_v38 }
  0xe6   :  { %v618_v33 = vpop.f32.mrf.mxu0  ;;  %v623_v45 = vpop.f32.mrf.mxu1 }
  0xe7   :  { %585 = vst [vmem:[%s838_s5 + $0x8] sm:$0xff] %v546_v30   ;;  %v541_v35 = vpack.c.bf16 %v239_v31, %v236_v27  ;;  %v378_v36 = vadd.f32 %v239_v31, %v236_v27  ;;  %v400_v37 = vmul.f32 %v239_v31, %v239_v31  ;;  %v279_v49 = vadd.f32 %v623_v45, %v788_v24 }
  0xe8   :  { %v251_v39 = vpop.f32.mrf.mxu0  ;;  %v260_v51 = vadd.f32 %v618_v33, %v788_v24  ;;  %v270_v54 = vpop.f32.mrf.mxu1  ;;  %v407_v21 = vmul.f32 %v268_v48, %v268_v48  ;;  %v409_v27 = vmul.f32 %v276_v40, %v276_v40 }
  0xe9   :  { %542 = vst [vmem:[%s838_s5] sm:$0xff] %v541_v35   ;;  %v379_v42 = vadd.f32 %v378_v36, %v244_v26  ;;  %v415_v43 = vadd.f32 %v400_v37, %v399_v34  ;;  %v252_v44 = vadd.f32 %v788_v24, %v251_v39  ;;  %v566_v56 = vpack.c.bf16 %v279_v49, %v276_v40 }
  0xea   :  { %v619_v47 = vpop.f32.mrf.mxu0  ;;  %v271_v57 = vadd.f32 %v788_v24, %v270_v54  ;;  %v626_v62 = vpop.f32.mrf.mxu1  ;;  %v405_v9 = vmul.f32 %v260_v51, %v260_v51  ;;  %v410_v30 = vmul.f32 %v279_v49, %v279_v49 }
  0xeb   :  { %v416_v50 = vadd.f32 %v415_v43, %v401_v41  ;;  %v380_v52 = vadd.f32 %v379_v42, %v247_v28  ;;  %v263_v53 = vadd.f32 %v619_v47, %v788_v24  ;;  %v403_v59 = vmul.f32 %v252_v44, %v252_v44  ;;  %589 = vst [vmem:[%s838_s5 + $0x28] sm:$0xff] %v566_v56  }
  0xec   :  { %v254_v55 = vpop.f32.mrf.mxu0  ;;  %v561_v0 = vpack.c.bf16 %v271_v57, %v268_v48  ;;  %v283_v2 = vpop.f32.mrf.mxu1  ;;  %v292_v7 = vadd.f32 %v626_v62, %v788_v24  ;;  %v408_v10 = vmul.f32 %v271_v57, %v271_v57 }
  0xed   :  { %v381_v58 = vadd.f32 %v380_v52, %v252_v44  ;;  %v417_v60 = vadd.f32 %v416_v50, %v402_v46  ;;  %v556_v61 = vpack.c.bf16 %v263_v53, %v260_v51  ;;  %v255_v63 = vadd.f32 %v788_v24, %v254_v55 }
  0xee   :  { %588 = vst [vmem:[%s838_s5 + $0x20] sm:$0xff] %v561_v0   ;;  %v627_v8 = vpop.f32.mrf.mxu1  ;;  %v284_v14 = vadd.f32 %v788_v24, %v283_v2  ;;  %v406_v16 = vmul.f32 %v263_v53, %v263_v53  ;;  %v413_v38 = vmul.f32 %v292_v7, %v292_v7 }
  0xef   :  { %v418_v1 = vadd.f32 %v417_v60, %v403_v59  ;;  %587 = vst [vmem:[%s838_s5 + $0x18] sm:$0xff] %v556_v61   ;;  %v551_v3 = vpack.c.bf16 %v255_v63, %v252_v44  ;;  %v382_v5 = vadd.f32 %v381_v58, %v255_v63  ;;  %v404_v6 = vmul.f32 %v255_v63, %v255_v63 }
  0xf0   :  { %v295_v13 = vadd.f32 %v627_v8, %v788_v24  ;;  %v286_v15 = vpop.f32.mrf.mxu1  ;;  %v411_v33 = vmul.f32 %v284_v14, %v284_v14 }
  0xf1   :  { %586 = vst [vmem:[%s838_s5 + $0x10] sm:$0xff] %v551_v3   ;;  %v383_v11 = vadd.f32 %v382_v5, %v260_v51  ;;  %v419_v12 = vadd.f32 %v418_v1, %v404_v6  ;;  %v287_v20 = vadd.f32 %v788_v24, %v286_v15 }
  0xf2   :  { %v576_v19 = vpack.c.bf16 %v295_v13, %v292_v7  ;;  %v414_v42 = vmul.f32 %v295_v13, %v295_v13 }
  0xf3   :  { %v420_v17 = vadd.f32 %v419_v12, %v405_v9  ;;  %v384_v18 = vadd.f32 %v383_v11, %v263_v53  ;;  %v571_v23 = vpack.c.bf16 %v287_v20, %v284_v14  ;;  %v412_v37 = vmul.f32 %v287_v20, %v287_v20 }
  0xf4   :  { %591 = vst [vmem:[%s838_s5 + $0x38] sm:$0xff] %v576_v19  }
  0xf5   :  { %v385_v22 = vadd.f32 %v384_v18, %v268_v48  ;;  %v421_v4 = vadd.f32 %v420_v17, %v406_v16  ;;  %590 = vst [vmem:[%s838_s5 + $0x30] sm:$0xff] %v571_v23  }
  0xf7   :  { %v386_v25 = vadd.f32 %v385_v22, %v271_v57  ;;  %v422_v26 = vadd.f32 %v421_v4, %v407_v21 }
  0xf9   :  { %v387_v28 = vadd.f32 %v386_v25, %v276_v40  ;;  %v423_v29 = vadd.f32 %v422_v26, %v408_v10 }
  0xfb   :  { %v424_v24 = vadd.f32 %v423_v29, %v409_v27  ;;  %v388_v31 = vadd.f32 %v387_v28, %v279_v49 }
  0xfd   :  { %v389_v32 = vadd.f32 %v388_v31, %v284_v14  ;;  %v425_v34 = vadd.f32 %v424_v24, %v410_v30 }
  0xff   :  { %v426_v35 = vadd.f32 %v425_v34, %v411_v33  ;;  %v390_v36 = vadd.f32 %v389_v32, %v287_v20 }
 0x101   :  { %v391_v39 = vadd.f32 %v390_v36, %v292_v7  ;;  %v427_v41 = vadd.f32 %v426_v35, %v412_v37 }
 0x103   :  { %v392_v43 = vadd.f32 %v391_v39, %v295_v13  ;;  %v428_v44 = vadd.f32 %v427_v41, %v413_v38 }
 0x105   :  { %v393_v45 = vrot.slane %v392_v43, 4  ;;  %v429_v46 = vadd.f32 %v428_v44, %v414_v42 }
 0x107   :  { %v394_v47 = vadd.f32 %v393_v45, %v392_v43  ;;  %v430_v40 = vrot.slane %v429_v46, 4 }
 0x109   :  { %v395_v48 = vrot.slane %v394_v47, 2  ;;  %v431_v50 = vadd.f32 %v430_v40, %v429_v46 }
 0x10b   :  { %v396_v51 = vadd.f32 %v395_v48, %v394_v47  ;;  %v432_v49 = vrot.slane %v431_v50, 2 }
 0x10d   :  { %v397_v52 = vrot.slane %v396_v51, 1  ;;  %v433_v53 = vadd.f32 %v432_v49, %v431_v50 }
 0x10f   :  { %v434_v54 = vrot.slane %v433_v53, 1  ;;  %v398_v55 = vadd.f32 %v397_v52, %v396_v51 }
 0x111   :  { %v435_v56 = vadd.f32 %v434_v54, %v433_v53 }
 0x113   :  { %v437_v57 = vsel %vm436_vm1, %v398_v55, %v435_v56 }
 0x114   :  { %442 = vst [vmem:[%s839_s6] sm:$0x3] %v437_v57 }
 0x115   :  { %458 = vsyncpa [#allocation3], 1 }

// kernel: tnet_forward.6
= control target key start
LH: loop header
LB: loop body
LE: loop exit
PB: predicated region body
PF: predicated region fallthrough
CT: control target
= control target key end

     0   :  { %10 = vsyncpa [#allocation3], 0  ;;  %s1469_s18 = smov [#allocation2]   ;;  %s2071_s0 = inlined_call_operand.vmem [shape: bf16[2,64,128], index: 0, kind: input, shape index: {}]   ;;  %s2072_s1 = inlined_call_operand.vmem [shape: f32[1,128], index: 1, kind: input, shape index: {}]   ;;  %s2073_s2 = inlined_call_operand.vmem [shape: f32[1,128], index: 2, kind: input, shape index: {}]   ;;  %s2074_s3 = inlined_call_operand.vmem [shape: bf16[128,1024], index: 3, kind: input, shape index: {}]   ;;  %s2075_s4 = inlined_call_operand.hbm [shape: f32[1,1024], index: 4, kind: input, shape index: {}]   ;;  %s2076_s5 = inlined_call_operand.vmem [shape: f32[2,1024], index: 5, kind: output, shape index: {}]  }
   0x1   :  { %s25_s19 = sshll.u32 %s1469_s18, 4  ;;  %s26_s19 = int_to_ptr.vmem [resolvable:$true] %s25_s19 }
   0x2   :  { %s1455_s20 = scalar_lea.vmem %s26_s19, 128  ;;  %p1460_p1 = scmp.lt.s32.totalorder %s26_s19, %s26_s19 }
   0x3   :  { %p1456_p0 = scmp.ne.s32.totalorder %s26_s19, %s1455_s20  ;;  %p1461_p2 = scmp.lt.s32.totalorder %s1455_s20, %s1455_s20 }
   0x5   :  { %p1462_p3 = por %p1461_p2, %p1460_p1 }
   0x7   :  { %p1463_p4 = pnand %p1462_p3, %p1456_p0 }
   0x9   :  { %1466 = shalt.err (!%p1463_p4)
}
   0xa   :  { %28 = dma.hbm_to_vmem [thread:$0]  %s2075_s4, 128, %s26_s19, [#allocation3]  }
   0xb   :  { %1467 = dma.done.wait [#allocation3], 128  }
   0xc   :  { %1468 = vsyncadd [#allocation3], 4294967168  ;;  %v1470_v0 = vmov 0   ;;  %v191_v1 = vld [vmem:[%s2074_s3 + $0x1c0] sm:$0xff]  ;;  %v192_v3 = vld [vmem:[%s2074_s3 + $0x1c8] sm:$0xff]  ;;  %vm1221_vm0 = vcmask 1040384  }
   0xd   :  { %593 = vmatprep.mubr.bf16.mxu0 %v1470_v0  ;;  %706 = vmatprep.mubr.bf16.mxu1 %v1470_v0  ;;  %v195_v2 = vld [vmem:[%s2074_s3 + $0x1e0] sm:$0xff]  ;;  %v196_v5 = vld [vmem:[%s2074_s3 + $0x1e8] sm:$0xff] }
   0xe   :  { %v1398_v4 = vcombine.high %v191_v1, %v195_v2  ;;  %v1397_v6 = vcombine.low %v191_v1, %v195_v2  ;;  %v183_v7 = vld [vmem:[%s2074_s3 + $0x180] sm:$0xff]  ;;  %v1400_v9 = vcombine.high %v192_v3, %v196_v5  ;;  %v1399_v10 = vcombine.low %v192_v3, %v196_v5  ;;  %v184_v12 = vld [vmem:[%s2074_s3 + $0x188] sm:$0xff] }
   0xf   :  { %v187_v8 = vld [vmem:[%s2074_s3 + $0x1a0] sm:$0xff]  ;;  %v188_v13 = vld [vmem:[%s2074_s3 + $0x1a8] sm:$0xff] }
  0x10   :  { %v1390_v11 = vcombine.high %v183_v7, %v187_v8  ;;  %v175_v14 = vld [vmem:[%s2074_s3 + $0x140] sm:$0xff]  ;;  %561 = vmatprep.subr.bf16.mxu0 %v1398_v4  ;;  %v1392_v15 = vcombine.high %v184_v12, %v188_v13  ;;  %v176_v17 = vld [vmem:[%s2074_s3 + $0x148] sm:$0xff]  ;;  %674 = vmatprep.subr.bf16.mxu1 %v1400_v9  ;;  %v1389_v19 = vcombine.low %v183_v7, %v187_v8 }
  0x11   :  { %v179_v16 = vld [vmem:[%s2074_s3 + $0x160] sm:$0xff]  ;;  %v180_v18 = vld [vmem:[%s2074_s3 + $0x168] sm:$0xff]  ;;  %562 = vmatpush1.bf16.msra.mxu0 %v1397_v6  ;;  %675 = vmatpush1.bf16.msra.mxu1 %v1399_v10  ;;  %v1391_v20 = vcombine.low %v184_v12, %v188_v13  ;;  %v193_v12 = vld [vmem:[%s2074_s3 + $0x1d0] sm:$0xff] }
  0x12   :  { %563 = vmatprep.subr.bf16.mxu0 %v1390_v11  ;;  %v1382_v21 = vcombine.high %v175_v14, %v179_v16  ;;  %676 = vmatprep.subr.bf16.mxu1 %v1392_v15  ;;  %v1384_v22 = vcombine.high %v176_v17, %v180_v18  ;;  %v167_v23 = vld [vmem:[%s2074_s3 + $0x100] sm:$0xff]  ;;  %v168_v25 = vld [vmem:[%s2074_s3 + $0x108] sm:$0xff]  ;;  %v1381_v27 = vcombine.low %v175_v14, %v179_v16  ;;  %v197_v13 = vld [vmem:[%s2074_s3 + $0x1f0] sm:$0xff] }
  0x13   :  { %v171_v24 = vld [vmem:[%s2074_s3 + $0x120] sm:$0xff]  ;;  %v172_v26 = vld [vmem:[%s2074_s3 + $0x128] sm:$0xff]  ;;  %v1383_v28 = vcombine.low %v176_v17, %v180_v18  ;;  %v194_v16 = vld [vmem:[%s2074_s3 + $0x1d8] sm:$0xff] }
  0x14   :  { %v1374_v29 = vcombine.high %v167_v23, %v171_v24  ;;  %v1376_v30 = vcombine.high %v168_v25, %v172_v26  ;;  %v159_v31 = vld [vmem:[%s2074_s3 + $0xc0] sm:$0xff]  ;;  %v160_v33 = vld [vmem:[%s2074_s3 + $0xc8] sm:$0xff]  ;;  %v1373_v35 = vcombine.low %v167_v23, %v171_v24  ;;  %v1375_v37 = vcombine.low %v168_v25, %v172_v26  ;;  %v198_v17 = vld [vmem:[%s2074_s3 + $0x1f8] sm:$0xff] }
  0x15   :  { %564 = vmatpush1.bf16.msra.mxu0 %v1389_v19  ;;  %677 = vmatpush1.bf16.msra.mxu1 %v1391_v20  ;;  %v163_v32 = vld [vmem:[%s2074_s3 + $0xe0] sm:$0xff]  ;;  %v164_v34 = vld [vmem:[%s2074_s3 + $0xe8] sm:$0xff]  ;;  %v1438_v20 = vld [vmem:[%s2071_s0 + $0x10] sm:$0xff]   ;;  %v1402_v23 = vcombine.high %v193_v12, %v197_v13  ;;  %v1404_v24 = vcombine.high %v194_v16, %v198_v17 }
  0x16   :  { %565 = vmatprep.subr.bf16.mxu0 %v1382_v21  ;;  %678 = vmatprep.subr.bf16.mxu1 %v1384_v22  ;;  %v1406_v36 = vld [vmem:[%s2071_s0] sm:$0xff]   ;;  %v1366_v38 = vcombine.high %v159_v31, %v163_v32  ;;  %v1368_v39 = vcombine.high %v160_v33, %v164_v34  ;;  %v152_v42 = vld [vmem:[%s2074_s3 + $0x88] sm:$0xff]  ;;  %v1365_v46 = vcombine.low %v159_v31, %v163_v32  ;;  %v185_v25 = vld [vmem:[%s2074_s3 + $0x190] sm:$0xff]  ;;  %v1415_v26 = vunpack.c.l.bf16 %v1438_v20 }
  0x17   :  { %v151_v40 = vld [vmem:[%s2074_s3 + $0x80] sm:$0xff]  ;;  %v156_v43 = vld [vmem:[%s2074_s3 + $0xa8] sm:$0xff]  ;;  %v1407_v44 = vunpack.c.l.bf16 %v1406_v36  ;;  %v1408_v45 = vunpack.c.h.bf16 %v1406_v36  ;;  %v1367_v48 = vcombine.low %v160_v33, %v164_v34  ;;  %v186_v31 = vld [vmem:[%s2074_s3 + $0x198] sm:$0xff]  ;;  %v1416_v33 = vunpack.c.h.bf16 %v1438_v20 }
  0x18   :  { %v155_v41 = vld [vmem:[%s2074_s3 + $0xa0] sm:$0xff]  ;;  %v1360_v50 = vcombine.high %v152_v42, %v156_v43  ;;  %v144_v53 = vld [vmem:[%s2074_s3 + $0x48] sm:$0xff]  ;;  %v1359_v60 = vcombine.low %v152_v42, %v156_v43  ;;  %v190_v32 = vld [vmem:[%s2074_s3 + $0x1b8] sm:$0xff]  ;;  %v1401_v34 = vcombine.low %v193_v12, %v197_v13 }
  0x19   :  { %566 = vmatpush1.bf16.msra.mxu0 %v1381_v27  ;;  %679 = vmatpush1.bf16.msra.mxu1 %v1383_v28  ;;  %v1585_v47 = vld [vmem:[%s2072_s1] ss:$0 sm:$0xff]  ;;  %v1358_v49 = vcombine.high %v151_v40, %v155_v41  ;;  %v148_v54 = vld [vmem:[%s2074_s3 + $0x68] sm:$0xff]  ;;  %v1357_v57 = vcombine.low %v151_v40, %v155_v41 }
  0x1a   :  { %567 = vmatprep.subr.bf16.mxu0 %v1374_v29  ;;  %680 = vmatprep.subr.bf16.mxu1 %v1376_v30  ;;  %v143_v51 = vld [vmem:[%s2074_s3 + $0x40] sm:$0xff]  ;;  %v72_v55 = vmul.f32 %v1407_v44, %v1585_v47  ;;  %v73_v56 = vmul.f32 %v1408_v45, %v1585_v47  ;;  %v1437_v59 = vld [vmem:[%s2071_s0 + $0x8] sm:$0xff]   ;;  %v1352_v62 = vcombine.high %v144_v53, %v148_v54  ;;  %v189_v30 = vld [vmem:[%s2074_s3 + $0x1b0] sm:$0xff] }
  0x1b   :  { %v147_v52 = vld [vmem:[%s2074_s3 + $0x60] sm:$0xff]  ;;  %v136_v2 = vld [vmem:[%s2074_s3 + $0x8] sm:$0xff]  ;;  %v1411_v6 = vunpack.c.l.bf16 %v1437_v59  ;;  %v1412_v7 = vunpack.c.h.bf16 %v1437_v59  ;;  %v1351_v9 = vcombine.low %v144_v53, %v148_v54  ;;  %v1394_v36 = vcombine.high %v185_v25, %v189_v30  ;;  %v178_v44 = vld [vmem:[%s2074_s3 + $0x158] sm:$0xff] }
  0x1c   :  { %v1604_v58 = vld [vmem:[%s2073_s2] ss:$0 sm:$0xff]  ;;  %v1350_v61 = vcombine.high %v143_v51, %v147_v52  ;;  %v140_v3 = vld [vmem:[%s2074_s3 + $0x28] sm:$0xff]  ;;  %v1349_v8 = vcombine.low %v143_v51, %v147_v52  ;;  %v76_v42 = vmul.f32 %v1415_v26, %v1585_v47  ;;  %v77_v43 = vmul.f32 %v1416_v33, %v1585_v47  ;;  %v182_v45 = vld [vmem:[%s2074_s3 + $0x178] sm:$0xff] }
  0x1d   :  { %568 = vmatpush1.bf16.msra.mxu0 %v1373_v35  ;;  %681 = vmatpush1.bf16.msra.mxu1 %v1375_v37  ;;  %v135_v63 = vld [vmem:[%s2074_s3] sm:$0xff]  ;;  %v95_v4 = vadd.f32 %v1604_v58, %v72_v55  ;;  %v96_v5 = vadd.f32 %v1604_v58, %v73_v56  ;;  %v1344_v11 = vcombine.high %v136_v2, %v140_v3  ;;  %v173_v59 = vld [vmem:[%s2074_s3 + $0x130] sm:$0xff]  ;;  %v1441_v33 = vld [vmem:[%s2071_s0 + $0x28] sm:$0xff]  }
  0x1e   :  { %569 = vmatprep.subr.bf16.mxu0 %v1366_v38  ;;  %682 = vmatprep.subr.bf16.mxu1 %v1368_v39  ;;  %v139_v1 = vld [vmem:[%s2074_s3 + $0x20] sm:$0xff]  ;;  %v74_v18 = vmul.f32 %v1411_v6, %v1585_v47  ;;  %v75_v19 = vmul.f32 %v1412_v7, %v1585_v47  ;;  %v1343_v22 = vcombine.low %v136_v2, %v140_v3  ;;  %v177_v38 = vld [vmem:[%s2074_s3 + $0x150] sm:$0xff] }
  0x1f   :  { %v1342_v10 = vcombine.high %v135_v63, %v139_v1  ;;  %v111_v14 = vmax.f32 %v95_v4, 0.0  ;;  %v112_v15 = vmax.f32 %v96_v5, 0.0  ;;  %v1341_v21 = vcombine.low %v135_v63, %v139_v1  ;;  %v181_v39 = vld [vmem:[%s2074_s3 + $0x170] sm:$0xff]  ;;  %v1440_v7 = vld [vmem:[%s2071_s0 + $0x20] sm:$0xff]  }
  0x20   :  { %v97_v28 = vadd.f32 %v1604_v58, %v74_v18  ;;  %v98_v29 = vadd.f32 %v1604_v58, %v75_v19  ;;  %v1403_v35 = vcombine.low %v194_v16, %v198_v17  ;;  %v1396_v37 = vcombine.high %v186_v31, %v190_v32 }
  0x21   :  { %570 = vmatpush1.bf16.msra.mxu0 %v1365_v46  ;;  %683 = vmatpush1.bf16.msra.mxu1 %v1367_v48  ;;  %v1643_v27 = vpack.c.bf16 %v112_v15, %v111_v14  ;;  %v1439_v46 = vld [vmem:[%s2071_s0 + $0x18] sm:$0xff]   ;;  %v1393_v48 = vcombine.low %v185_v25, %v189_v30  ;;  %v1388_v51 = vcombine.high %v178_v44, %v182_v45  ;;  %v1423_v15 = vunpack.c.l.bf16 %v1440_v7 }
  0x22   :  { %571 = vmatprep.subr.bf16.mxu0 %v1358_v49  ;;  %684 = vmatprep.subr.bf16.mxu1 %v1360_v50  ;;  %v113_v40 = vmax.f32 %v97_v28, 0.0  ;;  %v114_v41 = vmax.f32 %v98_v29, 0.0  ;;  %v1395_v49 = vcombine.low %v186_v31, %v190_v32  ;;  %v1386_v50 = vcombine.high %v177_v38, %v181_v39 }
  0x23   :  { %v1419_v52 = vunpack.c.l.bf16 %v1439_v46  ;;  %v99_v54 = vadd.f32 %v1604_v58, %v76_v42  ;;  %v100_v55 = vadd.f32 %v1604_v58, %v77_v43  ;;  %v1420_v56 = vunpack.c.h.bf16 %v1439_v46 }
  0x24   :  { %v1677_v53 = vpack.c.bf16 %v114_v41, %v113_v40  ;;  %v1387_v63 = vcombine.low %v178_v44, %v182_v45  ;;  %v1424_v19 = vunpack.c.h.bf16 %v1440_v7  ;;  %v80_v31 = vmul.f32 %v1423_v15, %v1585_v47 }
  0x25   :  { %572 = vmatpush1.bf16.msra.mxu0 %v1357_v57  ;;  %685 = vmatpush1.bf16.msra.mxu1 %v1359_v60  ;;  %v169_v57 = vld [vmem:[%s2074_s3 + $0x110] sm:$0xff]  ;;  %v170_v60 = vld [vmem:[%s2074_s3 + $0x118] sm:$0xff]  ;;  %v78_v1 = vmul.f32 %v1419_v52, %v1585_v47  ;;  %v115_v3 = vmax.f32 %v99_v54, 0.0  ;;  %v116_v4 = vmax.f32 %v100_v55, 0.0  ;;  %v79_v5 = vmul.f32 %v1420_v56, %v1585_v47 }
  0x26   :  { %573 = vmatprep.subr.bf16.mxu0 %v1350_v61  ;;  %686 = vmatprep.subr.bf16.mxu1 %v1352_v62  ;;  %v174_v61 = vld [vmem:[%s2074_s3 + $0x138] sm:$0xff]  ;;  %v1385_v62 = vcombine.low %v177_v38, %v181_v39  ;;  %v1378_v2 = vcombine.high %v169_v57, %v173_v59  ;;  %v1377_v12 = vcombine.low %v169_v57, %v173_v59  ;;  %v1427_v40 = vunpack.c.l.bf16 %v1441_v33 }
  0x27   :  { %v1380_v6 = vcombine.high %v170_v60, %v174_v61  ;;  %v101_v13 = vadd.f32 %v1604_v58, %v78_v1  ;;  %v1379_v14 = vcombine.low %v170_v60, %v174_v61  ;;  %v1715_v17 = vpack.c.bf16 %v116_v4, %v115_v3  ;;  %v150_v38 = vld [vmem:[%s2074_s3 + $0x78] sm:$0xff] }
  0x28   :  { %v102_v18 = vadd.f32 %v1604_v58, %v79_v5  ;;  %v81_v32 = vmul.f32 %v1424_v19, %v1585_v47  ;;  %v1428_v41 = vunpack.c.h.bf16 %v1441_v33  ;;  %v103_v45 = vadd.f32 %v1604_v58, %v80_v31  ;;  %v142_v52 = vld [vmem:[%s2074_s3 + $0x38] sm:$0xff] }
  0x29   :  { %574 = vmatpush1.bf16.msra.mxu0 %v1349_v8  ;;  %687 = vmatpush1.bf16.msra.mxu1 %v1351_v9  ;;  %v161_v8 = vld [vmem:[%s2074_s3 + $0xd0] sm:$0xff]  ;;  %v117_v26 = vmax.f32 %v101_v13, 0.0  ;;  %v82_v55 = vmul.f32 %v1427_v40, %v1585_v47 }
  0x2a   :  { %575 = vmatprep.subr.bf16.mxu0 %v1342_v10  ;;  %688 = vmatprep.subr.bf16.mxu1 %v1344_v11  ;;  %v165_v9 = vld [vmem:[%s2074_s3 + $0xf0] sm:$0xff]  ;;  %v162_v10 = vld [vmem:[%s2074_s3 + $0xd8] sm:$0xff]  ;;  %v118_v30 = vmax.f32 %v102_v18, 0.0  ;;  %v104_v46 = vadd.f32 %v1604_v58, %v81_v32  ;;  %v119_v59 = vmax.f32 %v103_v45, 0.0  ;;  %v83_v61 = vmul.f32 %v1428_v41, %v1585_v47 }
  0x2b   :  { %v166_v11 = vld [vmem:[%s2074_s3 + $0xf8] sm:$0xff]  ;;  %v1370_v16 = vcombine.high %v161_v8, %v165_v9  ;;  %v1369_v25 = vcombine.low %v161_v8, %v165_v9  ;;  %v105_v5 = vadd.f32 %v1604_v58, %v82_v55 }
  0x2c   :  { %v1372_v20 = vcombine.high %v162_v10, %v166_v11  ;;  %v1371_v28 = vcombine.low %v162_v10, %v166_v11  ;;  %v1751_v44 = vpack.c.bf16 %v118_v30, %v117_v26  ;;  %v120_v60 = vmax.f32 %v104_v46, 0.0 }
  0x2d   :  { %576 = vmatpush1.bf16.msra.mxu0 %v1341_v21  ;;  %689 = vmatpush1.bf16.msra.mxu1 %v1343_v22  ;;  %v153_v21 = vld [vmem:[%s2074_s3 + $0x90] sm:$0xff]  ;;  %v121_v9 = vmax.f32 %v105_v5, 0.0 }
  0x2e   :  { %787 = vmatprep.subr.bf16.mxu0 %v1402_v23  ;;  %900 = vmatprep.subr.bf16.mxu1 %v1404_v24  ;;  %v157_v22 = vld [vmem:[%s2074_s3 + $0xb0] sm:$0xff]  ;;  %v154_v23 = vld [vmem:[%s2074_s3 + $0x98] sm:$0xff]  ;;  %v131_v4 = vpack.c.bf16 %v120_v60, %v119_v59 }
  0x2f   :  { %v158_v24 = vld [vmem:[%s2074_s3 + $0xb8] sm:$0xff]  ;;  %v1362_v29 = vcombine.high %v153_v21, %v157_v22  ;;  %v1361_v39 = vcombine.low %v153_v21, %v157_v22 }
  0x30   :  { %594 = vmatmul.mubr.bf16.vlgmr.msra.gmra.mxu0 %v1643_v27  ;;  %707 = vmatmul.mubr.bf16.vlgmr.msra.gmra.mxu1 %v1643_v27  ;;  %v1363_v42 = vcombine.low %v154_v23, %v158_v24 }
  0x31   :  { %788 = vmatpush1.bf16.msra.mxu0 %v1401_v34  ;;  %901 = vmatpush1.bf16.msra.mxu1 %v1403_v35  ;;  %v1364_v34 = vcombine.high %v154_v23, %v158_v24  ;;  %v145_v35 = vld [vmem:[%s2074_s3 + $0x50] sm:$0xff] }
  0x32   :  { %603 = vmatprep.mubr.bf16.mxu0 %v1470_v0  ;;  %716 = vmatprep.mubr.bf16.mxu1 %v1470_v0 }
  0x33   :  { %789 = vmatprep.subr.bf16.mxu0 %v1394_v36  ;;  %902 = vmatprep.subr.bf16.mxu1 %v1396_v37  ;;  %v149_v36 = vld [vmem:[%s2074_s3 + $0x70] sm:$0xff]  ;;  %v146_v37 = vld [vmem:[%s2074_s3 + $0x58] sm:$0xff] }
  0x34   :  { %v1354_v43 = vcombine.high %v145_v35, %v149_v36  ;;  %v1353_v54 = vcombine.low %v145_v35, %v149_v36  ;;  %v1355_v56 = vcombine.low %v146_v37, %v150_v38 }
  0x35   :  { %790 = vmatpush1.bf16.msra.mxu0 %v1393_v48  ;;  %903 = vmatpush1.bf16.msra.mxu1 %v1395_v49  ;;  %v1356_v48 = vcombine.high %v146_v37, %v150_v38  ;;  %v137_v49 = vld [vmem:[%s2074_s3 + $0x10] sm:$0xff] }
  0x36   :  { %791 = vmatprep.subr.bf16.mxu0 %v1386_v50  ;;  %904 = vmatprep.subr.bf16.mxu1 %v1388_v51  ;;  %v141_v50 = vld [vmem:[%s2074_s3 + $0x30] sm:$0xff]  ;;  %v138_v51 = vld [vmem:[%s2074_s3 + $0x18] sm:$0xff] }
  0x37   :  { %v1346_v57 = vcombine.high %v137_v49, %v141_v50  ;;  %v1345_v1 = vcombine.low %v137_v49, %v141_v50  ;;  %v1347_v3 = vcombine.low %v138_v51, %v142_v52 }
  0x38   :  { %604 = vmatmul.mubr.bf16.gmra.mxu0 %v1677_v53  ;;  %717 = vmatmul.mubr.bf16.gmra.mxu1 %v1677_v53 }
  0x39   :  { %613 = vmatprep.mubr.bf16.mxu0 %v1470_v0  ;;  %726 = vmatprep.mubr.bf16.mxu1 %v1470_v0 }
  0x3a   :  { %792 = vmatpush1.bf16.msra.mxu0 %v1385_v62  ;;  %905 = vmatpush1.bf16.msra.mxu1 %v1387_v63  ;;  %v1442_v62 = vld [vmem:[%s2071_s0 + $0x30] sm:$0xff]   ;;  %v1348_v63 = vcombine.high %v138_v51, %v142_v52 }
  0x3b   :  { %793 = vmatprep.subr.bf16.mxu0 %v1378_v2  ;;  %906 = vmatprep.subr.bf16.mxu1 %v1380_v6  ;;  %v1431_v2 = vunpack.c.l.bf16 %v1442_v62  ;;  %v106_v6 = vadd.f32 %v1604_v58, %v83_v61  ;;  %v1432_v7 = vunpack.c.h.bf16 %v1442_v62 }
  0x3d   :  { %v84_v8 = vmul.f32 %v1431_v2, %v1585_v47  ;;  %v122_v10 = vmax.f32 %v106_v6, 0.0  ;;  %v85_v11 = vmul.f32 %v1432_v7, %v1585_v47 }
  0x3e   :  { %794 = vmatpush1.bf16.msra.mxu0 %v1377_v12  ;;  %907 = vmatpush1.bf16.msra.mxu1 %v1379_v14  ;;  %v1443_v12 = vld [vmem:[%s2071_s0 + $0x38] sm:$0xff]  }
  0x3f   :  { %795 = vmatprep.subr.bf16.mxu0 %v1370_v16  ;;  %908 = vmatprep.subr.bf16.mxu1 %v1372_v20  ;;  %v107_v13 = vadd.f32 %v1604_v58, %v84_v8  ;;  %v132_v14 = vpack.c.bf16 %v122_v10, %v121_v9  ;;  %v108_v15 = vadd.f32 %v1604_v58, %v85_v11  ;;  %v1435_v16 = vunpack.c.l.bf16 %v1443_v12 }
  0x40   :  { %614 = vmatmul.mubr.bf16.gmra.mxu0 %v1715_v17  ;;  %727 = vmatmul.mubr.bf16.gmra.mxu1 %v1715_v17  ;;  %v1436_v18 = vunpack.c.h.bf16 %v1443_v12 }
  0x41   :  { %623 = vmatprep.mubr.bf16.mxu0 %v1470_v0  ;;  %736 = vmatprep.mubr.bf16.mxu1 %v1470_v0  ;;  %v123_v19 = vmax.f32 %v107_v13, 0.0  ;;  %v124_v20 = vmax.f32 %v108_v15, 0.0  ;;  %v86_v21 = vmul.f32 %v1435_v16, %v1585_v47 }
  0x42   :  { %796 = vmatpush1.bf16.msra.mxu0 %v1369_v25  ;;  %909 = vmatpush1.bf16.msra.mxu1 %v1371_v28  ;;  %v87_v22 = vmul.f32 %v1436_v18, %v1585_v47  ;;  %v201_v47 = vlaneseq }
  0x43   :  { %797 = vmatprep.subr.bf16.mxu0 %v1362_v29  ;;  %910 = vmatprep.subr.bf16.mxu1 %v1364_v34  ;;  %v133_v23 = vpack.c.bf16 %v124_v20, %v123_v19  ;;  %v109_v24 = vadd.f32 %v1604_v58, %v86_v21 }
  0x44   :  { %v110_v25 = vadd.f32 %v1604_v58, %v87_v22  ;;  %v1819_v58 = vshrl.u32 %v201_v47, 7 }
  0x45   :  { %v125_v26 = vmax.f32 %v109_v24, 0.0 }
  0x46   :  { %798 = vmatpush1.bf16.msra.mxu0 %v1361_v39  ;;  %911 = vmatpush1.bf16.msra.mxu1 %v1363_v42  ;;  %v126_v28 = vmax.f32 %v110_v25, 0.0  ;;  %v223_v32 = vsub.s32 5, %v1819_v58  ;;  %v231_v33 = vsub.s32 7, %v1819_v58  ;;  %v203_v60 = vsub.s32 0, %v1819_v58 }
  0x47   :  { %799 = vmatprep.subr.bf16.mxu0 %v1354_v43  ;;  %912 = vmatprep.subr.bf16.mxu1 %v1356_v48  ;;  %v211_v62 = vsub.s32 2, %v1819_v58 }
  0x48   :  { %624 = vmatmul.mubr.bf16.gmra.mxu0 %v1751_v44  ;;  %737 = vmatmul.mubr.bf16.gmra.mxu1 %v1751_v44  ;;  %v134_v29 = vpack.c.bf16 %v126_v28, %v125_v26 }
  0x49   :  { %633 = vmatprep.mubr.bf16.mxu0 %v1470_v0  ;;  %746 = vmatprep.mubr.bf16.mxu1 %v1470_v0 }
  0x4a   :  { %800 = vmatpush1.bf16.msra.mxu0 %v1353_v54  ;;  %913 = vmatpush1.bf16.msra.mxu1 %v1355_v56 }
  0x4b   :  { %801 = vmatprep.subr.bf16.mxu0 %v1346_v57  ;;  %914 = vmatprep.subr.bf16.mxu1 %v1348_v63 }
  0x4e   :  { %802 = vmatpush1.bf16.msra.mxu0 %v1345_v1  ;;  %915 = vmatpush1.bf16.msra.mxu1 %v1347_v3  ;;  %v207_v1 = vsub.s32 1, %v1819_v58  ;;  %v215_v3 = vsub.s32 3, %v1819_v58 }
  0x50   :  { %634 = vmatmul.mubr.bf16.gmra.mxu0 %v131_v4  ;;  %747 = vmatmul.mubr.bf16.gmra.mxu1 %v131_v4 }
  0x51   :  { %643 = vmatprep.mubr.bf16.mxu0 %v1470_v0  ;;  %756 = vmatprep.mubr.bf16.mxu1 %v1470_v0 }
  0x58   :  { %644 = vmatmul.mubr.bf16.gmra.mxu0 %v132_v14  ;;  %757 = vmatmul.mubr.bf16.gmra.mxu1 %v132_v14 }
  0x59   :  { %653 = vmatprep.mubr.bf16.mxu0 %v1470_v0  ;;  %766 = vmatprep.mubr.bf16.mxu1 %v1470_v0 }
  0x60   :  { %654 = vmatmul.mubr.bf16.gmra.mxu0 %v133_v23  ;;  %767 = vmatmul.mubr.bf16.gmra.mxu1 %v133_v23 }
  0x61   :  { %663 = vmatprep.mubr.bf16.mxu0 %v1470_v0  ;;  %776 = vmatprep.mubr.bf16.mxu1 %v1470_v0 }
  0x68   :  { %664 = vmatmul.mubr.bf16.gmra.mxu0 %v134_v29  ;;  %777 = vmatmul.mubr.bf16.gmra.mxu1 %v134_v29 }
  0x69   :  { %819 = vmatprep.mubr.bf16.mxu0 %v1470_v0  ;;  %932 = vmatprep.mubr.bf16.mxu1 %v1470_v0 }
  0x70   :  { %820 = vmatmul.mubr.bf16.vlgmr.msra.gmra.mxu0 %v1643_v27  ;;  %933 = vmatmul.mubr.bf16.vlgmr.msra.gmra.mxu1 %v1643_v27  ;;  %v219_v27 = vsub.s32 4, %v1819_v58 }
  0x71   :  { %829 = vmatprep.mubr.bf16.mxu0 %v1470_v0  ;;  %942 = vmatprep.mubr.bf16.mxu1 %v1470_v0 }
  0x78   :  { %830 = vmatmul.mubr.bf16.gmra.mxu0 %v1677_v53  ;;  %943 = vmatmul.mubr.bf16.gmra.mxu1 %v1677_v53  ;;  %v227_v53 = vsub.s32 6, %v1819_v58 }
  0x79   :  { %839 = vmatprep.mubr.bf16.mxu0 %v1470_v0  ;;  %952 = vmatprep.mubr.bf16.mxu1 %v1470_v0 }
  0x80   :  { %840 = vmatmul.mubr.bf16.gmra.mxu0 %v1715_v17  ;;  %953 = vmatmul.mubr.bf16.gmra.mxu1 %v1715_v17  ;;  %v199_v17 = vld [vmem:[#allocation2] sm:$0xff] }
  0x81   :  { %849 = vmatprep.mubr.bf16.mxu0 %v1470_v0  ;;  %962 = vmatprep.mubr.bf16.mxu1 %v1470_v0  ;;  %v1823_v30 = vrot.slane %v199_v17, %v219_v27  ;;  %v1825_v31 = vrot.slane %v199_v17, %v227_v53  ;;  %v1829_v34 = vrot.slane %v199_v17, %v223_v32 }
  0x82   :  { %v1837_v5 = vrot.slane %v199_v17, %v203_v60  ;;  %v1839_v7 = vrot.slane %v199_v17, %v211_v62  ;;  %v1841_v9 = vrot.slane %v199_v17, %v207_v1  ;;  %v1844_v12 = vrot.slane %v199_v17, %v215_v3 }
  0x88   :  { %850 = vmatmul.mubr.bf16.gmra.mxu0 %v1751_v44  ;;  %963 = vmatmul.mubr.bf16.gmra.mxu1 %v1751_v44 }
  0x89   :  { %859 = vmatprep.mubr.bf16.mxu0 %v1470_v0  ;;  %972 = vmatprep.mubr.bf16.mxu1 %v1470_v0 }
  0x90   :  { %860 = vmatmul.mubr.bf16.gmra.mxu0 %v131_v4  ;;  %973 = vmatmul.mubr.bf16.gmra.mxu1 %v131_v4 }
  0x91   :  { %869 = vmatprep.mubr.bf16.mxu0 %v1470_v0  ;;  %982 = vmatprep.mubr.bf16.mxu1 %v1470_v0 }
  0x98   :  { %870 = vmatmul.mubr.bf16.gmra.mxu0 %v132_v14  ;;  %983 = vmatmul.mubr.bf16.gmra.mxu1 %v132_v14 }
  0x99   :  { %879 = vmatprep.mubr.bf16.mxu0 %v1470_v0  ;;  %992 = vmatprep.mubr.bf16.mxu1 %v1470_v0 }
  0xa0   :  { %880 = vmatmul.mubr.bf16.gmra.mxu0 %v133_v23  ;;  %993 = vmatmul.mubr.bf16.gmra.mxu1 %v133_v23 }
  0xa1   :  { %889 = vmatprep.mubr.bf16.mxu0 %v1470_v0  ;;  %1002 = vmatprep.mubr.bf16.mxu1 %v1470_v0  ;;  %v1831_v0 = vrot.slane %v199_v17, %v231_v33 }
  0xa8   :  { %890 = vmatmul.mubr.bf16.gmra.mxu0 %v134_v29  ;;  %1003 = vmatmul.mubr.bf16.gmra.mxu1 %v134_v29 }
  0xf0   :  { %v595_v35 = vpop.f32.mrf.mxu0  ;;  %v708_v36 = vpop.f32.mrf.mxu1 }
  0xf1   :  { %v596_v15 = vadd.f32 %v595_v35, %v1837_v5  ;;  %v709_v20 = vadd.f32 %v708_v36, %v1839_v7 }
  0xf2   :  { %v597_v37 = vpop.f32.mrf.mxu0  ;;  %v710_v38 = vpop.f32.mrf.mxu1 }
  0xf3   :  { %v598_v24 = vadd.f32 %v597_v37, %v1841_v9  ;;  %v711_v47 = vadd.f32 %v710_v38, %v1844_v12 }
  0xf4   :  { %v599_v39 = vpop.f32.mrf.mxu0  ;;  %v712_v40 = vpop.f32.mrf.mxu1 }
  0xf5   :  { %v600_v10 = vadd.f32 %v599_v39, %v1837_v5  ;;  %v713_v13 = vadd.f32 %v712_v40, %v1839_v7 }
  0xf6   :  { %v601_v41 = vpop.f32.mrf.mxu0  ;;  %v714_v42 = vpop.f32.mrf.mxu1 }
  0xf7   :  { %v602_v16 = vadd.f32 %v601_v41, %v1841_v9  ;;  %v715_v21 = vadd.f32 %v714_v42, %v1844_v12  ;;  %v1013_v25 = vmax.f32 %v596_v15, %v600_v10  ;;  %v1039_v27 = vmax.f32 %v709_v20, %v713_v13 }
  0xf8   :  { %v605_v43 = vpop.f32.mrf.mxu0  ;;  %v718_v44 = vpop.f32.mrf.mxu1 }
  0xf9   :  { %v606_v18 = vadd.f32 %v605_v43, %v1837_v5  ;;  %v719_v22 = vadd.f32 %v718_v44, %v1839_v7  ;;  %v1026_v33 = vmax.f32 %v598_v24, %v602_v16  ;;  %v1052_v40 = vmax.f32 %v711_v47, %v715_v21 }
  0xfa   :  { %v607_v45 = vpop.f32.mrf.mxu0  ;;  %v720_v46 = vpop.f32.mrf.mxu1 }
  0xfb   :  { %v608_v26 = vadd.f32 %v607_v45, %v1841_v9  ;;  %v721_v53 = vadd.f32 %v720_v46, %v1844_v12  ;;  %v1014_v35 = vmax.f32 %v1013_v25, %v606_v18  ;;  %v1040_v41 = vmax.f32 %v1039_v27, %v719_v22 }
  0xfc   :  { %v609_v48 = vpop.f32.mrf.mxu0  ;;  %v722_v49 = vpop.f32.mrf.mxu1 }
  0xfd   :  { %v610_v28 = vadd.f32 %v609_v48, %v1837_v5  ;;  %v723_v17 = vadd.f32 %v722_v49, %v1839_v7  ;;  %v1027_v44 = vmax.f32 %v1026_v33, %v608_v26 }
  0xfe   :  { %v611_v50 = vpop.f32.mrf.mxu0  ;;  %v724_v51 = vpop.f32.mrf.mxu1 }
  0xff   :  { %v612_v36 = vadd.f32 %v611_v50, %v1841_v9  ;;  %v725_v42 = vadd.f32 %v724_v51, %v1844_v12  ;;  %v1015_v45 = vmax.f32 %v1014_v35, %v610_v28  ;;  %v1053_v50 = vmax.f32 %v1052_v40, %v721_v53 }
 0x100   :  { %v615_v52 = vpop.f32.mrf.mxu0  ;;  %v728_v54 = vpop.f32.mrf.mxu1  ;;  %v1041_v60 = vmax.f32 %v1040_v41, %v723_v17 }
 0x101   :  { %v616_v37 = vadd.f32 %v615_v52, %v1837_v5  ;;  %v729_v38 = vadd.f32 %v728_v54, %v1839_v7  ;;  %v1028_v3 = vmax.f32 %v1027_v44, %v612_v36  ;;  %v1054_v15 = vmax.f32 %v1053_v50, %v725_v42 }
 0x102   :  { %v617_v55 = vpop.f32.mrf.mxu0  ;;  %v730_v56 = vpop.f32.mrf.mxu1 }
 0x103   :  { %v618_v46 = vadd.f32 %v617_v55, %v1841_v9  ;;  %v731_v52 = vadd.f32 %v730_v56, %v1844_v12  ;;  %v1016_v51 = vmax.f32 %v1015_v45, %v616_v37  ;;  %v1042_v16 = vmax.f32 %v1041_v60, %v729_v38 }
 0x104   :  { %v619_v57 = vpop.f32.mrf.mxu0  ;;  %v732_v59 = vpop.f32.mrf.mxu1 }
 0x105   :  { %v620_v48 = vadd.f32 %v619_v57, %v1837_v5  ;;  %v733_v62 = vadd.f32 %v732_v59, %v1839_v7  ;;  %v1029_v20 = vmax.f32 %v1028_v3, %v618_v46  ;;  %v1055_v24 = vmax.f32 %v1054_v15, %v731_v52 }
 0x106   :  { %v621_v61 = vpop.f32.mrf.mxu0  ;;  %v734_v63 = vpop.f32.mrf.mxu1 }
 0x107   :  { %v622_v54 = vadd.f32 %v621_v61, %v1841_v9  ;;  %v735_v55 = vadd.f32 %v734_v63, %v1844_v12  ;;  %v1017_v21 = vmax.f32 %v1016_v51, %v620_v48  ;;  %v1043_v25 = vmax.f32 %v1042_v16, %v733_v62 }
 0x108   :  { %v625_v2 = vpop.f32.mrf.mxu0  ;;  %v738_v4 = vpop.f32.mrf.mxu1 }
 0x109   :  { %v626_v10 = vadd.f32 %v625_v2, %v1837_v5  ;;  %v739_v57 = vadd.f32 %v738_v4, %v1839_v7  ;;  %v1030_v28 = vmax.f32 %v1029_v20, %v622_v54  ;;  %v1056_v27 = vmax.f32 %v1055_v24, %v735_v55 }
 0x10a   :  { %v627_v6 = vpop.f32.mrf.mxu0  ;;  %v740_v8 = vpop.f32.mrf.mxu1 }
 0x10b   :  { %v628_v56 = vadd.f32 %v627_v6, %v1841_v9  ;;  %v741_v61 = vadd.f32 %v740_v8, %v1844_v12  ;;  %v1018_v47 = vmax.f32 %v1017_v21, %v626_v10  ;;  %v1044_v53 = vmax.f32 %v1043_v25, %v739_v57 }
 0x10c   :  { %v629_v11 = vpop.f32.mrf.mxu0  ;;  %v742_v14 = vpop.f32.mrf.mxu1 }
 0x10d   :  { %v630_v59 = vadd.f32 %v629_v11, %v1837_v5  ;;  %v743_v2 = vadd.f32 %v742_v14, %v1839_v7  ;;  %v1031_v33 = vmax.f32 %v1030_v28, %v628_v56  ;;  %v1057_v36 = vmax.f32 %v1056_v27, %v741_v61 }
 0x10e   :  { %v631_v19 = vpop.f32.mrf.mxu0  ;;  %v744_v23 = vpop.f32.mrf.mxu1 }
 0x10f   :  { %v632_v63 = vadd.f32 %v631_v19, %v1841_v9  ;;  %v745_v17 = vadd.f32 %v744_v23, %v1844_v12  ;;  %v1885_v11 = vmax.f32 %v1018_v47, %v630_v59  ;;  %v1887_v37 = vmax.f32 %v1044_v53, %v743_v2 }
 0x110   :  { %v1856_v29 = vpop.f32.mrf.mxu0  ;;  %v1861_v32 = vpop.f32.mrf.mxu1 }
 0x111   :  { %v1889_v14 = vmax.f32 %v1031_v33, %v632_v63  ;;  %v1891_v41 = vmax.f32 %v1057_v36, %v745_v17  ;;  %v1020_v38 = vrot.slane %v1885_v11, 4  ;;  %v636_v23 = vadd.f32 %v1856_v29, %v1837_v5 }
 0x112   :  { %v1865_v39 = vpop.f32.mrf.mxu0  ;;  %v1869_v43 = vpop.f32.mrf.mxu1  ;;  %v1046_v46 = vrot.slane %v1887_v37, 4  ;;  %v749_v48 = vadd.f32 %v1861_v32, %v1839_v7 }
 0x113   :  { %v638_v62 = vadd.f32 %v1865_v39, %v1841_v9  ;;  %v1059_v51 = vrot.slane %v1891_v41, 4  ;;  %v751_v15 = vadd.f32 %v1869_v43, %v1844_v12 }
 0x114   :  { %v639_v49 = vpop.f32.mrf.mxu0  ;;  %v752_v1 = vpop.f32.mrf.mxu1 }
 0x115   :  { %v640_v19 = vadd.f32 %v639_v49, %v1837_v5  ;;  %v753_v44 = vadd.f32 %v752_v1, %v1839_v7  ;;  %v1033_v49 = vrot.slane %v1889_v14, 4 }
 0x116   :  { %v641_v13 = vpop.f32.mrf.mxu0  ;;  %v754_v18 = vpop.f32.mrf.mxu1 }
 0x117   :  { %v642_v50 = vadd.f32 %v641_v13, %v1841_v9  ;;  %v755_v29 = vadd.f32 %v754_v18, %v1844_v12  ;;  %v1117_v54 = vmax.f32 %v636_v23, %v640_v19  ;;  %v1143_v16 = vmax.f32 %v749_v48, %v753_v44 }
 0x118   :  { %v645_v22 = vpop.f32.mrf.mxu0  ;;  %v758_v26 = vpop.f32.mrf.mxu1  ;;  %v1021_v48 = vmax.f32 %v1885_v11, %v1020_v38  ;;  %v1060_v11 = vmax.f32 %v1891_v41, %v1059_v51 }
 0x119   :  { %v646_v60 = vadd.f32 %v645_v22, %v1837_v5  ;;  %v759_v1 = vadd.f32 %v758_v26, %v1839_v7  ;;  %v1130_v18 = vmax.f32 %v638_v62, %v642_v50  ;;  %v1156_v22 = vmax.f32 %v751_v15, %v755_v29 }
 0x11a   :  { %v647_v4 = vpop.f32.mrf.mxu0  ;;  %v760_v6 = vpop.f32.mrf.mxu1  ;;  %v1047_v29 = vmax.f32 %v1887_v37, %v1046_v46 }
 0x11b   :  { %v648_v32 = vadd.f32 %v647_v4, %v1841_v9  ;;  %v761_v55 = vadd.f32 %v760_v6, %v1844_v12  ;;  %v1118_v20 = vmax.f32 %v1117_v54, %v646_v60  ;;  %v1144_v24 = vmax.f32 %v1143_v16, %v759_v1 }
 0x11c   :  { %v649_v35 = vpop.f32.mrf.mxu0  ;;  %v762_v8 = vpop.f32.mrf.mxu1 }
 0x11d   :  { %v650_v10 = vadd.f32 %v649_v35, %v1837_v5  ;;  %v763_v39 = vadd.f32 %v762_v8, %v1839_v7  ;;  %v1131_v2 = vmax.f32 %v1130_v18, %v648_v32  ;;  %v1157_v4 = vmax.f32 %v1156_v22, %v761_v55 }
 0x11e   :  { %v651_v40 = vpop.f32.mrf.mxu0  ;;  %v764_v42 = vpop.f32.mrf.mxu1 }
 0x11f   :  { %v652_v21 = vadd.f32 %v651_v40, %v1841_v9  ;;  %v765_v25 = vadd.f32 %v764_v42, %v1844_v12  ;;  %v1119_v26 = vmax.f32 %v1118_v20, %v650_v10  ;;  %v1145_v27 = vmax.f32 %v1144_v24, %v763_v39 }
 0x120   :  { %v655_v45 = vpop.f32.mrf.mxu0  ;;  %v768_v52 = vpop.f32.mrf.mxu1  ;;  %v1034_v10 = vmax.f32 %v1889_v14, %v1033_v49 }
 0x121   :  { %v656_v56 = vadd.f32 %v655_v45, %v1837_v5  ;;  %v769_v61 = vadd.f32 %v768_v52, %v1839_v7  ;;  %v1132_v33 = vmax.f32 %v1131_v2, %v652_v21  ;;  %v1158_v19 = vmax.f32 %v1157_v4, %v765_v25 }
 0x122   :  { %v657_v3 = vpop.f32.mrf.mxu0  ;;  %v770_v13 = vpop.f32.mrf.mxu1  ;;  %v1035_v22 = vrot.slane %v1034_v10, 2  ;;  %v1048_v25 = vrot.slane %v1047_v29, 2 }
 0x123   :  { %v658_v28 = vadd.f32 %v657_v3, %v1841_v9  ;;  %v771_v53 = vadd.f32 %v770_v13, %v1844_v12  ;;  %v1120_v35 = vmax.f32 %v1119_v26, %v656_v56  ;;  %v1146_v42 = vmax.f32 %v1145_v27, %v769_v61 }
 0x124   :  { %v659_v57 = vpop.f32.mrf.mxu0  ;;  %v772_v59 = vpop.f32.mrf.mxu1 }
 0x125   :  { %v660_v47 = vadd.f32 %v659_v57, %v1837_v5  ;;  %v773_v17 = vadd.f32 %v772_v59, %v1839_v7  ;;  %v1133_v50 = vmax.f32 %v1132_v33, %v658_v28  ;;  %v1159_v1 = vmax.f32 %v1158_v19, %v771_v53 }
 0x126   :  { %v661_v43 = vpop.f32.mrf.mxu0  ;;  %v774_v63 = vpop.f32.mrf.mxu1 }
 0x127   :  { %v662_v36 = vadd.f32 %v661_v43, %v1841_v9  ;;  %v775_v23 = vadd.f32 %v774_v63, %v1844_v12  ;;  %v1121_v60 = vmax.f32 %v1120_v35, %v660_v47  ;;  %v1147_v3 = vmax.f32 %v1146_v42, %v773_v17 }
 0x128   :  { %v665_v6 = vpop.f32.mrf.mxu0  ;;  %v778_v40 = vpop.f32.mrf.mxu1  ;;  %v1036_v17 = vmax.f32 %v1034_v10, %v1035_v22 }
 0x129   :  { %v666_v8 = vadd.f32 %v665_v6, %v1837_v5  ;;  %v779_v44 = vadd.f32 %v778_v40, %v1839_v7  ;;  %v1134_v13 = vmax.f32 %v1133_v50, %v662_v36  ;;  %v1160_v38 = vmax.f32 %v1159_v1, %v775_v23 }
 0x12a   :  { %v667_v45 = vpop.f32.mrf.mxu0  ;;  %v780_v62 = vpop.f32.mrf.mxu1  ;;  %v1049_v36 = vmax.f32 %v1047_v29, %v1048_v25 }
 0x12b   :  { %v668_v52 = vadd.f32 %v667_v45, %v1841_v9  ;;  %v781_v54 = vadd.f32 %v780_v62, %v1844_v12  ;;  %v1122_v15 = vmax.f32 %v1121_v60, %v666_v8  ;;  %v1148_v39 = vmax.f32 %v1147_v3, %v779_v44 }
 0x12c   :  { %v669_v32 = vpop.f32.mrf.mxu0  ;;  %v782_v55 = vpop.f32.mrf.mxu1  ;;  %v1050_v10 = vrot.slane %v1049_v36, 1 }
 0x12d   :  { %v670_v16 = vadd.f32 %v669_v32, %v1837_v5  ;;  %v783_v57 = vadd.f32 %v782_v55, %v1839_v7  ;;  %v1135_v37 = vmax.f32 %v1134_v13, %v668_v52  ;;  %v1161_v56 = vmax.f32 %v1160_v38, %v781_v54 }
 0x12e   :  { %v671_v18 = vpop.f32.mrf.mxu0  ;;  %v784_v21 = vpop.f32.mrf.mxu1  ;;  %v1022_v5 = vrot.slane %v1021_v48, 2  ;;  %v1061_v7 = vrot.slane %v1060_v11, 2 }
 0x12f   :  { %v1123_v46 = vmax.f32 %v1122_v15, %v670_v16  ;;  %v672_v20 = vadd.f32 %v671_v18, %v1841_v9  ;;  %v1149_v59 = vmax.f32 %v1148_v39, %v783_v57  ;;  %v785_v14 = vadd.f32 %v784_v21, %v1844_v12 }
 0x130   :  { %v1937_v49 = vpop.f32.mrf.mxu0  ;;  %v1939_v51 = vpop.f32.mrf.mxu1  ;;  %v1471_v12 = vmov 1983009808   ;;  %v1023_v53 = vmax.f32 %v1021_v48, %v1022_v5  ;;  %v1062_v8 = vmax.f32 %v1060_v11, %v1061_v7  ;;  %v1037_v48 = vrot.slane %v1036_v17, 1 }
 0x131   :  { %v1124_v24 = vrot.slane %v1123_v46, 4  ;;  %v1136_v41 = vmax.f32 %v1135_v37, %v672_v20  ;;  %v1150_v61 = vrot.slane %v1149_v59, 4  ;;  %v1162_v43 = vmax.f32 %v1161_v56, %v785_v14 }
 0x132   :  { %v1941_v2 = vpop.f32.mrf.mxu0  ;;  %v1943_v28 = vpop.f32.mrf.mxu1  ;;  %v1245_v63 = vunpack.c.l.s4 %v1471_v12  ;;  %v1024_v1 = vrot.slane %v1023_v53, 1  ;;  %v1063_v13 = vrot.slane %v1062_v8, 1  ;;  %v1051_v56 = vmax.f32 %v1049_v36, %v1050_v10 }
 0x133   :  { %v1125_v9 = vmax.f32 %v1123_v46, %v1124_v24  ;;  %v1137_v26 = vrot.slane %v1136_v41, 4  ;;  %v1151_v47 = vmax.f32 %v1149_v59, %v1150_v61  ;;  %v1163_v4 = vrot.slane %v1162_v43, 4 }
 0x134   :  { %v1945_v27 = vpop.f32.mrf.mxu0  ;;  %v1947_v35 = vpop.f32.mrf.mxu1  ;;  %v1246_v60 = vunpack.c.0.s8 %v1245_v63  ;;  %v1025_v37 = vmax.f32 %v1023_v53, %v1024_v1  ;;  %v1038_v46 = vmax.f32 %v1036_v17, %v1037_v48  ;;  %v1064_v59 = vmax.f32 %v1062_v8, %v1063_v13 }
 0x135   :  { %v1126_v6 = vrot.slane %v1125_v9, 2  ;;  %v1138_v33 = vmax.f32 %v1136_v41, %v1137_v26  ;;  %v1152_v40 = vrot.slane %v1151_v47, 2  ;;  %v1164_v19 = vmax.f32 %v1162_v43, %v1163_v4 }
 0x136   :  { %v827_v42 = vpop.f32.mrf.mxu0  ;;  %v1949_v45 = vpop.f32.mrf.mxu1  ;;  %v1952_v14 = vsub.s32 %v1246_v60, %v1819_v58  ;;  %v939_v60 = vadd.f32 %v1947_v35, %v1825_v31  ;;  %v822_v1 = vadd.f32 %v1937_v49, %v1823_v30  ;;  %v935_v10 = vadd.f32 %v1939_v51, %v1825_v31 }
 0x137   :  { %v1127_v23 = vmax.f32 %v1125_v9, %v1126_v6  ;;  %v1139_v44 = vrot.slane %v1138_v33, 2  ;;  %v1153_v50 = vmax.f32 %v1151_v47, %v1152_v40  ;;  %v1165_v52 = vrot.slane %v1164_v19, 2 }
 0x138   :  { %v831_v62 = vpop.f32.mrf.mxu0  ;;  %v944_v32 = vpop.f32.mrf.mxu1  ;;  %v828_v48 = vadd.f32 %v827_v42, %v1829_v34  ;;  %v941_v13 = vadd.f32 %v1949_v45, %v1831_v0  ;;  %v824_v35 = vadd.f32 %v1941_v2, %v1829_v34  ;;  %v1091_v51 = vmax.f32 %v935_v10, %v939_v60 }
 0x139   :  { %v1128_v3 = vrot.slane %v1127_v23, 1  ;;  %v1140_v54 = vmax.f32 %v1138_v33, %v1139_v44  ;;  %v1154_v29 = vrot.slane %v1153_v50, 1  ;;  %v1166_v15 = vmax.f32 %v1164_v19, %v1165_v52 }
 0x13a   :  { %v833_v16 = vpop.f32.mrf.mxu0  ;;  %v946_v38 = vpop.f32.mrf.mxu1  ;;  %v826_v44 = vadd.f32 %v1945_v27, %v1823_v30  ;;  %v945_v27 = vadd.f32 %v944_v32, %v1825_v31 }
 0x13b   :  { %v1129_v55 = vmax.f32 %v1127_v23, %v1128_v3  ;;  %v1141_v11 = vrot.slane %v1140_v54, 1  ;;  %v1155_v39 = vmax.f32 %v1153_v50, %v1154_v29  ;;  %v1167_v57 = vrot.slane %v1166_v15, 1 }
 0x13c   :  { %v835_v18 = vpop.f32.mrf.mxu0  ;;  %v948_v21 = vpop.f32.mrf.mxu1  ;;  %v832_v3 = vadd.f32 %v831_v62, %v1823_v30  ;;  %v834_v49 = vadd.f32 %v833_v16, %v1829_v34  ;;  %v937_v62 = vadd.f32 %v1943_v28, %v1831_v0 }
 0x13d   :  { %v1142_v20 = vmax.f32 %v1140_v54, %v1141_v11  ;;  %v1168_v5 = vmax.f32 %v1166_v15, %v1167_v57  ;;  %v1222_v24 = vsel %vm1221_vm0, %v1025_v37, %v1129_v55  ;;  %v1224_v7 = vsel %vm1221_vm0, %v1051_v56, %v1155_v39 }
 0x13e   :  { %v837_v22 = vpop.f32.mrf.mxu0  ;;  %v950_v25 = vpop.f32.mrf.mxu1  ;;  %v1065_v15 = vmax.f32 %v822_v1, %v826_v44  ;;  %v836_v42 = vadd.f32 %v835_v18, %v1823_v30  ;;  %v947_v11 = vadd.f32 %v946_v38, %v1831_v0  ;;  %v949_v45 = vadd.f32 %v948_v21, %v1825_v31 }
 0x13f   :  { %v1223_v41 = vsel %vm1221_vm0, %v1038_v46, %v1142_v20  ;;  %v1225_v43 = vsel %vm1221_vm0, %v1064_v59, %v1168_v5  ;;  %v1078_v39 = vmax.f32 %v824_v35, %v828_v48  ;;  %v838_v2 = vadd.f32 %v837_v22, %v1829_v34 }
 0x140   :  { %v1242_v61 = vcombine.low %v1222_v24, %v1223_v41  ;;  %v841_v9 = vpop.f32.mrf.mxu0  ;;  %v1243_v26 = vcombine.low %v1224_v7, %v1225_v43  ;;  %v954_v47 = vpop.f32.mrf.mxu1  ;;  %v1066_v57 = vmax.f32 %v1065_v15, %v832_v3  ;;  %v1104_v18 = vmax.f32 %v937_v62, %v941_v13 }
 0x141   :  { %v842_v16 = vadd.f32 %v841_v9, %v1823_v30  ;;  %v1092_v46 = vmax.f32 %v1091_v51, %v945_v27  ;;  %v951_v20 = vadd.f32 %v950_v25, %v1831_v0  ;;  %v955_v28 = vadd.f32 %v954_v47, %v1825_v31 }
 0x142   :  { %v1250_v12 = vrot.slane %v1242_v61, %v1952_v14  ;;  %v843_v63 = vpop.f32.mrf.mxu0  ;;  %v1257_v58 = vrot.slane %v1243_v26, %v1952_v14  ;;  %v956_v4 = vpop.f32.mrf.mxu1  ;;  %v1079_v38 = vmax.f32 %v1078_v39, %v834_v49  ;;  %v1067_v21 = vmax.f32 %v1066_v57, %v836_v42 }
 0x143   :  { %v844_v59 = vadd.f32 %v843_v63, %v1829_v34  ;;  %v1105_v22 = vmax.f32 %v1104_v18, %v947_v11  ;;  %v1093_v41 = vmax.f32 %v1092_v46, %v949_v45  ;;  %v957_v7 = vadd.f32 %v956_v4, %v1831_v0 }
 0x144   :  { %v845_v53 = vpop.f32.mrf.mxu0  ;;  %v1258_v17 = vcombine.low %v1250_v12, %v1257_v58  ;;  %v958_v6 = vpop.f32.mrf.mxu1  ;;  %v1080_v9 = vmax.f32 %v1079_v38, %v838_v2  ;;  %v1068_v25 = vmax.f32 %v1067_v21, %v842_v16 }
 0x145   :  { %v846_v5 = vadd.f32 %v845_v53, %v1823_v30  ;;  %v959_v61 = vadd.f32 %v958_v6, %v1825_v31  ;;  %v1106_v58 = vmax.f32 %v1105_v22, %v951_v20 }
 0x146   :  { %v847_v33 = vpop.f32.mrf.mxu0  ;;  %1278 = vst [vmem:[%s2076_s5] sm:$0xff] %v1258_v17  ;;  %v960_v36 = vpop.f32.mrf.mxu1  ;;  %v1094_v17 = vmax.f32 %v1093_v41, %v955_v28  ;;  %v1081_v60 = vmax.f32 %v1080_v9, %v844_v59 }
 0x147   :  { %v848_v26 = vadd.f32 %v847_v33, %v1829_v34  ;;  %v961_v63 = vadd.f32 %v960_v36, %v1831_v0  ;;  %v1069_v1 = vmax.f32 %v1068_v25, %v846_v5  ;;  %v1107_v3 = vmax.f32 %v1106_v58, %v957_v7 }
 0x148   :  { %v851_v8 = vpop.f32.mrf.mxu0  ;;  %v964_v40 = vpop.f32.mrf.mxu1  ;;  %v1095_v10 = vmax.f32 %v1094_v17, %v959_v61 }
 0x149   :  { %v852_v47 = vadd.f32 %v851_v8, %v1823_v30  ;;  %v965_v53 = vadd.f32 %v964_v40, %v1825_v31  ;;  %v1082_v27 = vmax.f32 %v1081_v60, %v848_v26  ;;  %v1108_v15 = vmax.f32 %v1107_v3, %v961_v63 }
 0x14a   :  { %v853_v19 = vpop.f32.mrf.mxu0  ;;  %v966_v23 = vpop.f32.mrf.mxu1 }
 0x14b   :  { %v854_v4 = vadd.f32 %v853_v19, %v1829_v34  ;;  %v967_v33 = vadd.f32 %v966_v23, %v1831_v0  ;;  %v1070_v35 = vmax.f32 %v1069_v1, %v852_v47  ;;  %v1096_v49 = vmax.f32 %v1095_v10, %v965_v53 }
 0x14c   :  { %v855_v50 = vpop.f32.mrf.mxu0  ;;  %v968_v52 = vpop.f32.mrf.mxu1 }
 0x14d   :  { %v856_v6 = vadd.f32 %v855_v50, %v1823_v30  ;;  %v969_v8 = vadd.f32 %v968_v52, %v1825_v31  ;;  %v1083_v62 = vmax.f32 %v1082_v27, %v854_v4  ;;  %v1109_v11 = vmax.f32 %v1108_v15, %v967_v33 }
 0x14e   :  { %v857_v54 = vpop.f32.mrf.mxu0  ;;  %v970_v29 = vpop.f32.mrf.mxu1 }
 0x14f   :  { %v858_v36 = vadd.f32 %v857_v54, %v1829_v34  ;;  %v971_v42 = vadd.f32 %v970_v29, %v1831_v0  ;;  %v2010_v50 = vmax.f32 %v1070_v35, %v856_v6  ;;  %v2012_v45 = vmax.f32 %v1096_v49, %v969_v8 }
 0x150   :  { %v1980_v55 = vpop.f32.mrf.mxu0  ;;  %v1986_v32 = vpop.f32.mrf.mxu1 }
 0x151   :  { %v2014_v52 = vmax.f32 %v1083_v62, %v858_v36  ;;  %v2016_v57 = vmax.f32 %v1109_v11, %v971_v42  ;;  %v1072_v16 = vrot.slane %v2010_v50, 4  ;;  %v862_v29 = vadd.f32 %v1980_v55, %v1823_v30 }
 0x152   :  { %v1990_v37 = vpop.f32.mrf.mxu0  ;;  %v1994_v56 = vpop.f32.mrf.mxu1  ;;  %v1098_v20 = vrot.slane %v2012_v45, 4  ;;  %v975_v28 = vadd.f32 %v1986_v32, %v1825_v31 }
 0x153   :  { %v1085_v5 = vrot.slane %v2014_v52, 4  ;;  %v1111_v7 = vrot.slane %v2016_v57, 4  ;;  %v977_v25 = vadd.f32 %v1994_v56, %v1831_v0 }
 0x154   :  { %v865_v24 = vpop.f32.mrf.mxu0  ;;  %v978_v43 = vpop.f32.mrf.mxu1 }
 0x155   :  { %v866_v54 = vadd.f32 %v865_v24, %v1823_v30  ;;  %v979_v18 = vadd.f32 %v978_v43, %v1825_v31  ;;  %v864_v24 = vadd.f32 %v1990_v37, %v1829_v34 }
 0x156   :  { %v867_v12 = vpop.f32.mrf.mxu0  ;;  %v980_v44 = vpop.f32.mrf.mxu1 }
 0x157   :  { %v868_v38 = vadd.f32 %v867_v12, %v1829_v34  ;;  %v981_v55 = vadd.f32 %v980_v44, %v1831_v0  ;;  %v1169_v61 = vmax.f32 %v862_v29, %v866_v54  ;;  %v1195_v26 = vmax.f32 %v975_v28, %v979_v18 }
 0x158   :  { %v871_v48 = vpop.f32.mrf.mxu0  ;;  %v984_v13 = vpop.f32.mrf.mxu1 }
 0x159   :  { %v872_v21 = vadd.f32 %v871_v48, %v1823_v30  ;;  %v985_v22 = vadd.f32 %v984_v13, %v1825_v31  ;;  %v1182_v58 = vmax.f32 %v864_v24, %v868_v38  ;;  %v1208_v60 = vmax.f32 %v977_v25, %v981_v55 }
 0x15a   :  { %v873_v40 = vpop.f32.mrf.mxu0  ;;  %v986_v19 = vpop.f32.mrf.mxu1  ;;  %v1099_v38 = vmax.f32 %v2012_v45, %v1098_v20 }
 0x15b   :  { %v874_v32 = vadd.f32 %v873_v40, %v1829_v34  ;;  %v987_v47 = vadd.f32 %v986_v19, %v1831_v0  ;;  %v1170_v17 = vmax.f32 %v1169_v61, %v872_v21  ;;  %v1196_v1 = vmax.f32 %v1195_v26, %v985_v22 }
 0x15c   :  { %v875_v51 = vpop.f32.mrf.mxu0  ;;  %v988_v23 = vpop.f32.mrf.mxu1  ;;  %v1086_v22 = vmax.f32 %v2014_v52, %v1085_v5 }
 0x15d   :  { %v876_v43 = vadd.f32 %v875_v51, %v1823_v30  ;;  %v989_v37 = vadd.f32 %v988_v23, %v1825_v31  ;;  %v1183_v48 = vmax.f32 %v1182_v58, %v874_v32  ;;  %v1209_v13 = vmax.f32 %v1208_v60, %v987_v47 }
 0x15e   :  { %v877_v39 = vpop.f32.mrf.mxu0  ;;  %v990_v2 = vpop.f32.mrf.mxu1  ;;  %v1100_v58 = vrot.slane %v1099_v38, 2 }
 0x15f   :  { %v878_v63 = vadd.f32 %v877_v39, %v1829_v34  ;;  %v991_v4 = vadd.f32 %v990_v2, %v1831_v0  ;;  %v1171_v3 = vmax.f32 %v1170_v17, %v876_v43  ;;  %v1197_v27 = vmax.f32 %v1196_v1, %v989_v37 }
 0x160   :  { %v881_v46 = vpop.f32.mrf.mxu0  ;;  %v994_v59 = vpop.f32.mrf.mxu1  ;;  %v1073_v2 = vmax.f32 %v2010_v50, %v1072_v16  ;;  %v1112_v50 = vmax.f32 %v2016_v57, %v1111_v7 }
 0x161   :  { %v882_v53 = vadd.f32 %v881_v46, %v1823_v30  ;;  %v995_v6 = vadd.f32 %v994_v59, %v1825_v31  ;;  %v1184_v15 = vmax.f32 %v1183_v48, %v878_v63  ;;  %v1210_v51 = vmax.f32 %v1209_v13, %v991_v4 }
 0x162   :  { %v883_v41 = vpop.f32.mrf.mxu0  ;;  %v996_v9 = vpop.f32.mrf.mxu1  ;;  %v1074_v45 = vrot.slane %v1073_v2, 2  ;;  %v1113_v57 = vrot.slane %v1112_v50, 2  ;;  %v1101_v4 = vmax.f32 %v1099_v38, %v1100_v58 }
 0x163   :  { %v884_v10 = vadd.f32 %v883_v41, %v1829_v34  ;;  %v997_v35 = vadd.f32 %v996_v9, %v1831_v0  ;;  %v1172_v49 = vmax.f32 %v1171_v3, %v882_v53  ;;  %v1198_v11 = vmax.f32 %v1197_v27, %v995_v6 }
 0x164   :  { %v885_v12 = vpop.f32.mrf.mxu0  ;;  %v998_v44 = vpop.f32.mrf.mxu1  ;;  %v1075_v60 = vmax.f32 %v1073_v2, %v1074_v45 }
 0x165   :  { %v886_v33 = vadd.f32 %v885_v12, %v1823_v30  ;;  %v999_v36 = vadd.f32 %v998_v44, %v1825_v31  ;;  %v1185_v29 = vmax.f32 %v1184_v15, %v884_v10  ;;  %v1211_v21 = vmax.f32 %v1210_v51, %v997_v35 }
 0x166   :  { %v887_v56 = vpop.f32.mrf.mxu0  ;;  %v1000_v8 = vpop.f32.mrf.mxu1  ;;  %v1114_v10 = vmax.f32 %v1112_v50, %v1113_v57  ;;  %v1076_v13 = vrot.slane %v1075_v60, 1  ;;  %v1102_v35 = vrot.slane %v1101_v4, 1 }
 0x167   :  { %v888_v42 = vadd.f32 %v887_v56, %v1829_v34  ;;  %v1001_v23 = vadd.f32 %v1000_v8, %v1831_v0  ;;  %v1173_v18 = vmax.f32 %v1172_v49, %v886_v33  ;;  %v1199_v59 = vmax.f32 %v1198_v11, %v999_v36 }
 0x168   :  { %v891_v40 = vpop.f32.mrf.mxu0  ;;  %v1004_v62 = vpop.f32.mrf.mxu1  ;;  %v1077_v11 = vmax.f32 %v1075_v60, %v1076_v13 }
 0x169   :  { %v892_v19 = vadd.f32 %v891_v40, %v1823_v30  ;;  %v1005_v39 = vadd.f32 %v1004_v62, %v1825_v31  ;;  %v1186_v41 = vmax.f32 %v1185_v29, %v888_v42  ;;  %v1212_v16 = vmax.f32 %v1211_v21, %v1001_v23 }
 0x16a   :  { %v893_v54 = vpop.f32.mrf.mxu0  ;;  %v1006_v28 = vpop.f32.mrf.mxu1 }
 0x16b   :  { %v894_v46 = vadd.f32 %v893_v54, %v1829_v34  ;;  %v1007_v24 = vadd.f32 %v1006_v28, %v1831_v0  ;;  %v1174_v61 = vmax.f32 %v1173_v18, %v892_v19  ;;  %v1200_v9 = vmax.f32 %v1199_v59, %v1005_v39 }
 0x16c   :  { %v895_v55 = vpop.f32.mrf.mxu0  ;;  %v1008_v43 = vpop.f32.mrf.mxu1  ;;  %v1115_v19 = vrot.slane %v1114_v10, 1  ;;  %v1103_v54 = vmax.f32 %v1101_v4, %v1102_v35 }
 0x16d   :  { %v896_v32 = vadd.f32 %v895_v55, %v1823_v30  ;;  %v1009_v25 = vadd.f32 %v1008_v43, %v1825_v31  ;;  %v1187_v20 = vmax.f32 %v1186_v41, %v894_v46  ;;  %v1213_v52 = vmax.f32 %v1212_v16, %v1007_v24 }
 0x16e   :  { %v897_v26 = vpop.f32.mrf.mxu0  ;;  %v1010_v12 = vpop.f32.mrf.mxu1  ;;  %v1087_v30 = vrot.slane %v1086_v22, 2  ;;  %v1116_v38 = vmax.f32 %v1114_v10, %v1115_v19 }
 0x16f   :  { %v1175_v47 = vmax.f32 %v1174_v61, %v896_v32  ;;  %v898_v37 = vadd.f32 %v897_v26, %v1829_v34  ;;  %v1201_v5 = vmax.f32 %v1200_v9, %v1009_v25  ;;  %v1011_v17 = vadd.f32 %v1010_v12, %v1831_v0 }
 0x170   :  { %v1088_v48 = vmax.f32 %v1086_v22, %v1087_v30 }
 0x171   :  { %v1176_v63 = vrot.slane %v1175_v47, 4  ;;  %v1188_v53 = vmax.f32 %v1187_v20, %v898_v37  ;;  %v1202_v7 = vrot.slane %v1201_v5, 4  ;;  %v1214_v44 = vmax.f32 %v1213_v52, %v1011_v17 }
 0x172   :  { %v1089_v15 = vrot.slane %v1088_v48, 1 }
 0x173   :  { %v1177_v31 = vmax.f32 %v1175_v47, %v1176_v63  ;;  %v1189_v1 = vrot.slane %v1188_v53, 4  ;;  %v1203_v6 = vmax.f32 %v1201_v5, %v1202_v7  ;;  %v1215_v56 = vrot.slane %v1214_v44, 4 }
 0x174   :  { %v1090_v18 = vmax.f32 %v1088_v48, %v1089_v15 }
 0x175   :  { %v1178_v34 = vrot.slane %v1177_v31, 2  ;;  %v1190_v3 = vmax.f32 %v1188_v53, %v1189_v1  ;;  %v1204_v33 = vrot.slane %v1203_v6, 2  ;;  %v1216_v8 = vmax.f32 %v1214_v44, %v1215_v56 }
 0x177   :  { %v1179_v0 = vmax.f32 %v1177_v31, %v1178_v34  ;;  %v1191_v27 = vrot.slane %v1190_v3, 2  ;;  %v1205_v36 = vmax.f32 %v1203_v6, %v1204_v33  ;;  %v1217_v40 = vrot.slane %v1216_v8, 2 }
 0x179   :  { %v1180_v49 = vrot.slane %v1179_v0, 1  ;;  %v1192_v42 = vmax.f32 %v1190_v3, %v1191_v27  ;;  %v1206_v62 = vrot.slane %v1205_v36, 1  ;;  %v1218_v51 = vmax.f32 %v1216_v8, %v1217_v40 }
 0x17b   :  { %v1181_v23 = vmax.f32 %v1179_v0, %v1180_v49  ;;  %v1193_v39 = vrot.slane %v1192_v42, 1  ;;  %v1207_v2 = vmax.f32 %v1205_v36, %v1206_v62  ;;  %v1219_v29 = vrot.slane %v1218_v51, 1 }
 0x17d   :  { %v1226_v46 = vsel %vm1221_vm0, %v1077_v11, %v1181_v23  ;;  %v1194_v28 = vmax.f32 %v1192_v42, %v1193_v39  ;;  %v1228_v21 = vsel %vm1221_vm0, %v1103_v54, %v1207_v2  ;;  %v1220_v59 = vmax.f32 %v1218_v51, %v1219_v29 }
 0x17f   :  { %v1227_v24 = vsel %vm1221_vm0, %v1090_v18, %v1194_v28  ;;  %v1229_v22 = vsel %vm1221_vm0, %v1116_v38, %v1220_v59 }
 0x180   :  { %v1259_v55 = vcombine.low %v1226_v46, %v1227_v24  ;;  %v1260_v41 = vcombine.low %v1228_v21, %v1229_v22 }
 0x182   :  { %v1267_v61 = vrot.slane %v1259_v55, %v1952_v14  ;;  %v1274_v32 = vrot.slane %v1260_v41, %v1952_v14 }
 0x184   :  { %v1275_v43 = vcombine.low %v1267_v61, %v1274_v32 }
 0x186   :  { %1279 = vst [vmem:[%s2076_s5 + $0x8] sm:$0xff] %v1275_v43 }
 0x187   :  { %1338 = vsyncpa [#allocation3], 1 }

// kernel: tnet_forward.7
= control target key start
LH: loop header
LB: loop body
LE: loop exit
PB: predicated region body
PF: predicated region fallthrough
CT: control target
= control target key end

     0   :  { %v3495_v36 = vmov 1983009808   ;;  %v35_v38 = vlaneseq  ;;  %s4639_s1 = inlined_call_operand.vmem [shape: bf16[1024,512], index: 1, kind: input, shape index: {}]   ;;  %s4640_s0 = inlined_call_operand.vmem [shape: f32[2,1024], index: 0, kind: input, shape index: {}]   ;;  %s4641_s3 = inlined_call_operand.vmem [shape: bf16[512,256], index: 3, kind: input, shape index: {}]   ;;  %s4642_s2 = inlined_call_operand.vmem [shape: f32[1,512], index: 2, kind: input, shape index: {}]   ;;  %s4643_s5 = inlined_call_operand.vmem [shape: bf16[256,128], index: 5, kind: input, shape index: {}]   ;;  %s4644_s4 = inlined_call_operand.vmem [shape: f32[1,256], index: 4, kind: input, shape index: {}]   ;;  %s4645_s6 = inlined_call_operand.vmem [shape: f32[1,128], index: 6, kind: input, shape index: {}]   ;;  %s4646_s7 = inlined_call_operand.vmem [shape: f32[2,128], index: 7, kind: output, shape index: {}]  }
   0x1   :  { %v2997_v0 = vld [vmem:[%s4639_s1 + $0xe4] ss:$16 sps:$4 sm:$0xff]   ;;  %v3001_v2 = vld [vmem:[%s4639_s1 + $0xe0] ss:$16 sps:$4 sm:$0xff]   ;;  %v33_v37 = vunpack.c.l.s4 %v3495_v36 }
   0x2   :  { %v2999_v1 = vld [vmem:[%s4639_s1 + $0x2e4] ss:$16 sps:$4 sm:$0xff]   ;;  %1639 = vmatprep.subr.bf16.mxu0 %v2997_v0  ;;  %v3002_v3 = vld [vmem:[%s4639_s1 + $0x2e0] ss:$16 sps:$4 sm:$0xff]   ;;  %v3653_v43 = vshrl.u32 %v35_v38, 7 }
   0x3   :  { %1680 = vmatprep.subr.bf16.mxu1 %v2999_v1  ;;  %v3003_v4 = vld [vmem:[%s4639_s1 + $0xc4] ss:$16 sps:$4 sm:$0xff]   ;;  %1640 = vmatpush1.bf16.msra.mxu0 %v3001_v2  ;;  %v3007_v6 = vld [vmem:[%s4639_s1 + $0xc0] ss:$16 sps:$4 sm:$0xff]   ;;  %v34_v42 = vunpack.c.0.s8 %v33_v37 }
   0x4   :  { %1681 = vmatpush1.bf16.msra.mxu1 %v3002_v3  ;;  %v3005_v5 = vld [vmem:[%s4639_s1 + $0x2c4] ss:$16 sps:$4 sm:$0xff]   ;;  %1641 = vmatprep.subr.bf16.mxu0 %v3003_v4  ;;  %v3008_v7 = vld [vmem:[%s4639_s1 + $0x2c0] ss:$16 sps:$4 sm:$0xff]   ;;  %v28_v4 = vld [vmem:[%s4640_s0 + $0x8] sm:$0xff] }
   0x5   :  { %1682 = vmatprep.subr.bf16.mxu1 %v3005_v5  ;;  %v3009_v8 = vld [vmem:[%s4639_s1 + $0xa4] ss:$16 sps:$4 sm:$0xff]   ;;  %v3013_v10 = vld [vmem:[%s4639_s1 + $0xa0] ss:$16 sps:$4 sm:$0xff]   ;;  %v37_v49 = vsub.s32 %v34_v42, %v3653_v43 }
   0x6   :  { %v3011_v9 = vld [vmem:[%s4639_s1 + $0x2a4] ss:$16 sps:$4 sm:$0xff]   ;;  %v3014_v11 = vld [vmem:[%s4639_s1 + $0x2a0] ss:$16 sps:$4 sm:$0xff]  }
   0x7   :  { %1642 = vmatpush1.bf16.msra.mxu0 %v3007_v6  ;;  %v3015_v12 = vld [vmem:[%s4639_s1 + $0x84] ss:$16 sps:$4 sm:$0xff]   ;;  %v3019_v14 = vld [vmem:[%s4639_s1 + $0x80] ss:$16 sps:$4 sm:$0xff]  }
   0x8   :  { %1683 = vmatpush1.bf16.msra.mxu1 %v3008_v7  ;;  %1643 = vmatprep.subr.bf16.mxu0 %v3009_v8  ;;  %v3017_v13 = vld [vmem:[%s4639_s1 + $0x284] ss:$16 sps:$4 sm:$0xff]   ;;  %v3020_v15 = vld [vmem:[%s4639_s1 + $0x280] ss:$16 sps:$4 sm:$0xff]  }
   0x9   :  { %1684 = vmatprep.subr.bf16.mxu1 %v3011_v9  ;;  %v3021_v16 = vld [vmem:[%s4639_s1 + $0x64] ss:$16 sps:$4 sm:$0xff]   ;;  %v3025_v18 = vld [vmem:[%s4639_s1 + $0x60] ss:$16 sps:$4 sm:$0xff]   ;;  %v48_v9 = vcombine.high %v28_v4, %v28_v4 }
   0xa   :  { %v3023_v17 = vld [vmem:[%s4639_s1 + $0x264] ss:$16 sps:$4 sm:$0xff]   ;;  %v3026_v19 = vld [vmem:[%s4639_s1 + $0x260] ss:$16 sps:$4 sm:$0xff]  }
   0xb   :  { %1644 = vmatpush1.bf16.msra.mxu0 %v3013_v10  ;;  %v3027_v20 = vld [vmem:[%s4639_s1 + $0x44] ss:$16 sps:$4 sm:$0xff]   ;;  %v3031_v22 = vld [vmem:[%s4639_s1 + $0x40] ss:$16 sps:$4 sm:$0xff]  }
   0xc   :  { %1685 = vmatpush1.bf16.msra.mxu1 %v3014_v11  ;;  %1645 = vmatprep.subr.bf16.mxu0 %v3015_v12  ;;  %v3029_v21 = vld [vmem:[%s4639_s1 + $0x244] ss:$16 sps:$4 sm:$0xff]   ;;  %v3032_v23 = vld [vmem:[%s4639_s1 + $0x240] ss:$16 sps:$4 sm:$0xff]  }
   0xd   :  { %1686 = vmatprep.subr.bf16.mxu1 %v3017_v13  ;;  %v3033_v24 = vld [vmem:[%s4639_s1 + $0x24] ss:$16 sps:$4 sm:$0xff]   ;;  %v3037_v26 = vld [vmem:[%s4639_s1 + $0x20] ss:$16 sps:$4 sm:$0xff]  }
   0xe   :  { %v3035_v25 = vld [vmem:[%s4639_s1 + $0x224] ss:$16 sps:$4 sm:$0xff]   ;;  %v3038_v27 = vld [vmem:[%s4639_s1 + $0x220] ss:$16 sps:$4 sm:$0xff]  }
   0xf   :  { %1646 = vmatpush1.bf16.msra.mxu0 %v3019_v14  ;;  %v3039_v28 = vld [vmem:[%s4639_s1 + $0x4] ss:$16 sps:$4 sm:$0xff]   ;;  %v3043_v30 = vld [vmem:[%s4639_s1] ss:$16 sps:$4 sm:$0xff]   ;;  %v3737_v14 = vrot.slane %v28_v4, %v37_v49 }
  0x10   :  { %1687 = vmatpush1.bf16.msra.mxu1 %v3020_v15  ;;  %1647 = vmatprep.subr.bf16.mxu0 %v3021_v16  ;;  %v3041_v29 = vld [vmem:[%s4639_s1 + $0x204] ss:$16 sps:$4 sm:$0xff]   ;;  %v3044_v31 = vld [vmem:[%s4639_s1 + $0x200] ss:$16 sps:$4 sm:$0xff]   ;;  %v3739_v15 = vrot.slane %v48_v9, %v37_v49 }
  0x11   :  { %1688 = vmatprep.subr.bf16.mxu1 %v3023_v17  ;;  %v3045_v32 = vld [vmem:[%s4639_s1 + $0x1e4] ss:$16 sps:$4 sm:$0xff]   ;;  %v3049_v34 = vld [vmem:[%s4639_s1 + $0x1e0] ss:$16 sps:$4 sm:$0xff]  }
  0x12   :  { %v3047_v33 = vld [vmem:[%s4639_s1 + $0x3e4] ss:$16 sps:$4 sm:$0xff]   ;;  %v3050_v35 = vld [vmem:[%s4639_s1 + $0x3e0] ss:$16 sps:$4 sm:$0xff]  }
  0x13   :  { %1648 = vmatpush1.bf16.msra.mxu0 %v3025_v18  ;;  %v3051_v39 = vld [vmem:[%s4639_s1 + $0x1c4] ss:$16 sps:$4 sm:$0xff]   ;;  %v3055_v41 = vld [vmem:[%s4639_s1 + $0x1c0] ss:$16 sps:$4 sm:$0xff]  }
  0x14   :  { %1689 = vmatpush1.bf16.msra.mxu1 %v3026_v19  ;;  %1649 = vmatprep.subr.bf16.mxu0 %v3027_v20  ;;  %v3053_v40 = vld [vmem:[%s4639_s1 + $0x3c4] ss:$16 sps:$4 sm:$0xff]   ;;  %v3056_v44 = vld [vmem:[%s4639_s1 + $0x3c0] ss:$16 sps:$4 sm:$0xff]   ;;  %v63_v20 = vcombine.high %v3737_v14, %v3737_v14 }
  0x15   :  { %1690 = vmatprep.subr.bf16.mxu1 %v3029_v21  ;;  %v3057_v45 = vld [vmem:[%s4639_s1 + $0x1a4] ss:$16 sps:$4 sm:$0xff]   ;;  %v3061_v47 = vld [vmem:[%s4639_s1 + $0x1a0] ss:$16 sps:$4 sm:$0xff]   ;;  %v64_v21 = vcombine.high %v3739_v15, %v3739_v15 }
  0x16   :  { %v3059_v46 = vld [vmem:[%s4639_s1 + $0x3a4] ss:$16 sps:$4 sm:$0xff]   ;;  %v3062_v48 = vld [vmem:[%s4639_s1 + $0x3a0] ss:$16 sps:$4 sm:$0xff]  }
  0x17   :  { %1650 = vmatpush1.bf16.msra.mxu0 %v3031_v22  ;;  %v3063_v50 = vld [vmem:[%s4639_s1 + $0x184] ss:$16 sps:$4 sm:$0xff]   ;;  %v3067_v55 = vld [vmem:[%s4639_s1 + $0x180] ss:$16 sps:$4 sm:$0xff]  }
  0x18   :  { %1691 = vmatpush1.bf16.msra.mxu1 %v3032_v23  ;;  %1651 = vmatprep.subr.bf16.mxu0 %v3033_v24  ;;  %v3065_v51 = vld [vmem:[%s4639_s1 + $0x384] ss:$16 sps:$4 sm:$0xff]   ;;  %v3068_v56 = vld [vmem:[%s4639_s1 + $0x380] ss:$16 sps:$4 sm:$0xff]  }
  0x19   :  { %1692 = vmatprep.subr.bf16.mxu1 %v3035_v25  ;;  %v27_v52 = vld [vmem:[%s4640_s0] sm:$0xff] }
  0x1a   :  { %v38_v53 = vrot.slane %v27_v52, %v37_v49  ;;  %v31_v54 = vcombine.high %v27_v52, %v27_v52  ;;  %v3069_v57 = vld [vmem:[%s4639_s1 + $0x164] ss:$16 sps:$4 sm:$0xff]   ;;  %v3073_v63 = vld [vmem:[%s4639_s1 + $0x160] ss:$16 sps:$4 sm:$0xff]  }
  0x1b   :  { %1652 = vmatpush1.bf16.msra.mxu0 %v3037_v26  ;;  %v3071_v58 = vld [vmem:[%s4639_s1 + $0x364] ss:$16 sps:$4 sm:$0xff]   ;;  %v3074_v0 = vld [vmem:[%s4639_s1 + $0x360] ss:$16 sps:$4 sm:$0xff]  }
  0x1c   :  { %1693 = vmatpush1.bf16.msra.mxu1 %v3038_v27  ;;  %1653 = vmatprep.subr.bf16.mxu0 %v3039_v28  ;;  %v46_v59 = vcombine.high %v38_v53, %v38_v53  ;;  %v45_v60 = vrot.slane %v31_v54, %v37_v49  ;;  %v3075_v1 = vld [vmem:[%s4639_s1 + $0x144] ss:$16 sps:$4 sm:$0xff]   ;;  %v3079_v5 = vld [vmem:[%s4639_s1 + $0x140] ss:$16 sps:$4 sm:$0xff]   ;;  %v3757_v22 = vpack.c.bf16 %v38_v53, %v38_v53 }
  0x1d   :  { %1694 = vmatprep.subr.bf16.mxu1 %v3041_v29  ;;  %v3077_v2 = vld [vmem:[%s4639_s1 + $0x344] ss:$16 sps:$4 sm:$0xff]   ;;  %v3080_v6 = vld [vmem:[%s4639_s1 + $0x340] ss:$16 sps:$4 sm:$0xff]   ;;  %v3773_v28 = vpack.c.bf16 %v63_v20, %v63_v20  ;;  %v3775_v29 = vpack.c.bf16 %v64_v21, %v64_v21 }
  0x1e   :  { %v3692_v61 = vpack.c.bf16 %v46_v59, %v46_v59  ;;  %v47_v62 = vcombine.high %v45_v60, %v45_v60  ;;  %v3081_v7 = vld [vmem:[%s4639_s1 + $0x124] ss:$16 sps:$4 sm:$0xff]   ;;  %v3085_v10 = vld [vmem:[%s4639_s1 + $0x120] ss:$16 sps:$4 sm:$0xff]   ;;  %v3759_v23 = vpack.c.bf16 %v45_v60, %v45_v60 }
  0x1f   :  { %1654 = vmatpush1.bf16.msra.mxu0 %v3043_v30  ;;  %v3083_v8 = vld [vmem:[%s4639_s1 + $0x324] ss:$16 sps:$4 sm:$0xff]   ;;  %v3086_v11 = vld [vmem:[%s4639_s1 + $0x320] ss:$16 sps:$4 sm:$0xff]  }
  0x20   :  { %1695 = vmatpush1.bf16.msra.mxu1 %v3044_v31  ;;  %1655 = vmatprep.subr.bf16.mxu0 %v3045_v32  ;;  %v3706_v3 = vpack.c.bf16 %v47_v62, %v47_v62  ;;  %v3087_v12 = vld [vmem:[%s4639_s1 + $0x104] ss:$16 sps:$4 sm:$0xff]   ;;  %v3091_v16 = vld [vmem:[%s4639_s1 + $0x100] ss:$16 sps:$4 sm:$0xff]  }
  0x21   :  { %1696 = vmatprep.subr.bf16.mxu1 %v3047_v33  ;;  %1671 = vmatprep.mubr.bf16.mxu0 %v3692_v61  ;;  %v3089_v13 = vld [vmem:[%s4639_s1 + $0x304] ss:$16 sps:$4 sm:$0xff]   ;;  %v3092_v17 = vld [vmem:[%s4639_s1 + $0x300] ss:$16 sps:$4 sm:$0xff]  }
  0x22   :  { %1712 = vmatprep.mubr.bf16.mxu1 %v3706_v3  ;;  %v3097_v18 = vld [vmem:[%s4639_s1 + $0x4e4] ss:$16 sps:$4 sm:$0xff]   ;;  %v3095_v24 = vld [vmem:[%s4639_s1 + $0x4e0] ss:$16 sps:$4 sm:$0xff]  }
  0x23   :  { %1656 = vmatpush2.bf16.msra.mxu0 %v3049_v34  ;;  %v3100_v19 = vld [vmem:[%s4639_s1 + $0x6e4] ss:$16 sps:$4 sm:$0xff]   ;;  %v3098_v25 = vld [vmem:[%s4639_s1 + $0x6e0] ss:$16 sps:$4 sm:$0xff]  }
  0x24   :  { %1697 = vmatpush2.bf16.msra.mxu1 %v3050_v35  ;;  %1657 = vmatprep.subr.bf16.mxu0 %v3051_v39  ;;  %v3103_v26 = vld [vmem:[%s4639_s1 + $0x4c4] ss:$16 sps:$4 sm:$0xff]   ;;  %v3101_v30 = vld [vmem:[%s4639_s1 + $0x4c0] ss:$16 sps:$4 sm:$0xff]  }
  0x25   :  { %1698 = vmatprep.subr.bf16.mxu1 %v3053_v40  ;;  %v3106_v27 = vld [vmem:[%s4639_s1 + $0x6c4] ss:$16 sps:$4 sm:$0xff]   ;;  %v3104_v31 = vld [vmem:[%s4639_s1 + $0x6c0] ss:$16 sps:$4 sm:$0xff]  }
  0x26   :  { %v3109_v32 = vld [vmem:[%s4639_s1 + $0x4a4] ss:$16 sps:$4 sm:$0xff]   ;;  %v3107_v34 = vld [vmem:[%s4639_s1 + $0x4a0] ss:$16 sps:$4 sm:$0xff]  }
  0x27   :  { %1658 = vmatpush2.bf16.msra.mxu0 %v3055_v41  ;;  %v3112_v33 = vld [vmem:[%s4639_s1 + $0x6a4] ss:$16 sps:$4 sm:$0xff]   ;;  %v3110_v35 = vld [vmem:[%s4639_s1 + $0x6a0] ss:$16 sps:$4 sm:$0xff]  }
  0x28   :  { %1699 = vmatpush2.bf16.msra.mxu1 %v3056_v44  ;;  %1659 = vmatprep.subr.bf16.mxu0 %v3057_v45  ;;  %v3115_v36 = vld [vmem:[%s4639_s1 + $0x484] ss:$16 sps:$4 sm:$0xff]   ;;  %v3113_v38 = vld [vmem:[%s4639_s1 + $0x480] ss:$16 sps:$4 sm:$0xff]  }
  0x29   :  { %1700 = vmatprep.subr.bf16.mxu1 %v3059_v46  ;;  %v3118_v37 = vld [vmem:[%s4639_s1 + $0x684] ss:$16 sps:$4 sm:$0xff]   ;;  %v3116_v39 = vld [vmem:[%s4639_s1 + $0x680] ss:$16 sps:$4 sm:$0xff]  }
  0x2a   :  { %v3121_v40 = vld [vmem:[%s4639_s1 + $0x464] ss:$16 sps:$4 sm:$0xff]   ;;  %v3119_v42 = vld [vmem:[%s4639_s1 + $0x460] ss:$16 sps:$4 sm:$0xff]  }
  0x2b   :  { %1660 = vmatpush2.bf16.msra.mxu0 %v3061_v47  ;;  %v3124_v41 = vld [vmem:[%s4639_s1 + $0x664] ss:$16 sps:$4 sm:$0xff]   ;;  %v3122_v44 = vld [vmem:[%s4639_s1 + $0x660] ss:$16 sps:$4 sm:$0xff]  }
  0x2c   :  { %1701 = vmatpush2.bf16.msra.mxu1 %v3062_v48  ;;  %1661 = vmatprep.subr.bf16.mxu0 %v3063_v50  ;;  %v3127_v45 = vld [vmem:[%s4639_s1 + $0x444] ss:$16 sps:$4 sm:$0xff]   ;;  %v3125_v47 = vld [vmem:[%s4639_s1 + $0x440] ss:$16 sps:$4 sm:$0xff]  }
  0x2d   :  { %1702 = vmatprep.subr.bf16.mxu1 %v3065_v51  ;;  %v3130_v46 = vld [vmem:[%s4639_s1 + $0x644] ss:$16 sps:$4 sm:$0xff]   ;;  %v3128_v48 = vld [vmem:[%s4639_s1 + $0x640] ss:$16 sps:$4 sm:$0xff]  }
  0x2e   :  { %v3133_v49 = vld [vmem:[%s4639_s1 + $0x424] ss:$16 sps:$4 sm:$0xff]   ;;  %v3131_v51 = vld [vmem:[%s4639_s1 + $0x420] ss:$16 sps:$4 sm:$0xff]  }
  0x2f   :  { %1662 = vmatpush2.bf16.msra.mxu0 %v3067_v55  ;;  %v3136_v50 = vld [vmem:[%s4639_s1 + $0x624] ss:$16 sps:$4 sm:$0xff]   ;;  %v3134_v52 = vld [vmem:[%s4639_s1 + $0x620] ss:$16 sps:$4 sm:$0xff]  }
  0x30   :  { %1703 = vmatpush2.bf16.msra.mxu1 %v3068_v56  ;;  %1663 = vmatprep.subr.bf16.mxu0 %v3069_v57  ;;  %v3139_v53 = vld [vmem:[%s4639_s1 + $0x404] ss:$16 sps:$4 sm:$0xff]   ;;  %v3137_v55 = vld [vmem:[%s4639_s1 + $0x400] ss:$16 sps:$4 sm:$0xff]  }
  0x31   :  { %1704 = vmatprep.subr.bf16.mxu1 %v3071_v58  ;;  %v3142_v54 = vld [vmem:[%s4639_s1 + $0x604] ss:$16 sps:$4 sm:$0xff]   ;;  %v3140_v56 = vld [vmem:[%s4639_s1 + $0x600] ss:$16 sps:$4 sm:$0xff]  }
  0x32   :  { %v3145_v57 = vld [vmem:[%s4639_s1 + $0x5e4] ss:$16 sps:$4 sm:$0xff]   ;;  %v3143_v59 = vld [vmem:[%s4639_s1 + $0x5e0] ss:$16 sps:$4 sm:$0xff]  }
  0x33   :  { %1664 = vmatpush2.bf16.msra.mxu0 %v3073_v63  ;;  %v3148_v58 = vld [vmem:[%s4639_s1 + $0x7e4] ss:$16 sps:$4 sm:$0xff]   ;;  %v3146_v60 = vld [vmem:[%s4639_s1 + $0x7e0] ss:$16 sps:$4 sm:$0xff]  }
  0x34   :  { %1705 = vmatpush2.bf16.msra.mxu1 %v3074_v0  ;;  %1665 = vmatprep.subr.bf16.mxu0 %v3075_v1  ;;  %v3151_v62 = vld [vmem:[%s4639_s1 + $0x5c4] ss:$16 sps:$4 sm:$0xff]   ;;  %v3149_v0 = vld [vmem:[%s4639_s1 + $0x5c0] ss:$16 sps:$4 sm:$0xff]  }
  0x35   :  { %1706 = vmatprep.subr.bf16.mxu1 %v3077_v2  ;;  %v3154_v63 = vld [vmem:[%s4639_s1 + $0x7c4] ss:$16 sps:$4 sm:$0xff]   ;;  %v3152_v1 = vld [vmem:[%s4639_s1 + $0x7c0] ss:$16 sps:$4 sm:$0xff]  }
  0x36   :  { %v3157_v2 = vld [vmem:[%s4639_s1 + $0x5a4] ss:$16 sps:$4 sm:$0xff]   ;;  %v3161_v9 = vld [vmem:[%s4639_s1 + $0x580] ss:$16 sps:$4 sm:$0xff]  }
  0x37   :  { %1666 = vmatpush2.bf16.msra.mxu0 %v3079_v5  ;;  %v3160_v4 = vld [vmem:[%s4639_s1 + $0x7a4] ss:$16 sps:$4 sm:$0xff]   ;;  %v3155_v5 = vld [vmem:[%s4639_s1 + $0x5a0] ss:$16 sps:$4 sm:$0xff]  }
  0x38   :  { %1707 = vmatpush2.bf16.msra.mxu1 %v3080_v6  ;;  %1667 = vmatprep.subr.bf16.mxu0 %v3081_v7  ;;  %v3158_v6 = vld [vmem:[%s4639_s1 + $0x7a0] ss:$16 sps:$4 sm:$0xff]   ;;  %v3163_v7 = vld [vmem:[%s4639_s1 + $0x584] ss:$16 sps:$4 sm:$0xff]  }
  0x39   :  { %1708 = vmatprep.subr.bf16.mxu1 %v3083_v8  ;;  %v3166_v8 = vld [vmem:[%s4639_s1 + $0x784] ss:$16 sps:$4 sm:$0xff]   ;;  %v3176_v20 = vld [vmem:[%s4639_s1 + $0x740] ss:$16 sps:$4 sm:$0xff]  }
  0x3a   :  { %v3181_v21 = vld [vmem:[%s4639_s1 + $0x524] ss:$16 sps:$4 sm:$0xff]  }
  0x3b   :  { %1668 = vmatpush2.bf16.msra.mxu0 %v3085_v10  ;;  %v3164_v10 = vld [vmem:[%s4639_s1 + $0x780] ss:$16 sps:$4 sm:$0xff]  }
  0x3c   :  { %1709 = vmatpush2.bf16.msra.mxu1 %v3086_v11  ;;  %1669 = vmatprep.subr.bf16.mxu0 %v3087_v12  ;;  %v3169_v11 = vld [vmem:[%s4639_s1 + $0x564] ss:$16 sps:$4 sm:$0xff]  }
  0x3d   :  { %1710 = vmatprep.subr.bf16.mxu1 %v3089_v13  ;;  %v3172_v12 = vld [vmem:[%s4639_s1 + $0x764] ss:$16 sps:$4 sm:$0xff]   ;;  %v3167_v13 = vld [vmem:[%s4639_s1 + $0x560] ss:$16 sps:$4 sm:$0xff]  }
  0x3f   :  { %1670 = vmatpush2.bf16.msra.mxu0 %v3091_v16  ;;  %v3170_v16 = vld [vmem:[%s4639_s1 + $0x760] ss:$16 sps:$4 sm:$0xff]  }
  0x40   :  { %1711 = vmatpush2.bf16.msra.mxu1 %v3092_v17  ;;  %1721 = vmatprep.subr.bf16.mxu0 %v3097_v18  ;;  %v3175_v17 = vld [vmem:[%s4639_s1 + $0x544] ss:$16 sps:$4 sm:$0xff]  }
  0x41   :  { %1762 = vmatprep.subr.bf16.mxu1 %v3100_v19  ;;  %v3178_v18 = vld [vmem:[%s4639_s1 + $0x744] ss:$16 sps:$4 sm:$0xff]   ;;  %v3173_v19 = vld [vmem:[%s4639_s1 + $0x540] ss:$16 sps:$4 sm:$0xff]  }
  0x42   :  { %1672 = vmatmul.mubr.bf16.vlgmr.msra.gmra.mxu0 %v3757_v22 }
  0x43   :  { %1713 = vmatmul.mubr.bf16.vlgmr.msra.gmra.mxu1 %v3759_v23  ;;  %1722 = vmatpush1.bf16.msra.mxu0 %v3095_v24  ;;  %v3184_v24 = vld [vmem:[%s4639_s1 + $0x724] ss:$16 sps:$4 sm:$0xff]  }
  0x44   :  { %1763 = vmatpush1.bf16.msra.mxu1 %v3098_v25  ;;  %1723 = vmatprep.subr.bf16.mxu0 %v3103_v26  ;;  %v3179_v25 = vld [vmem:[%s4639_s1 + $0x520] ss:$16 sps:$4 sm:$0xff]  }
  0x45   :  { %1764 = vmatprep.subr.bf16.mxu1 %v3106_v27  ;;  %1753 = vmatprep.mubr.bf16.mxu0 %v3773_v28  ;;  %v3182_v26 = vld [vmem:[%s4639_s1 + $0x720] ss:$16 sps:$4 sm:$0xff]   ;;  %v3187_v27 = vld [vmem:[%s4639_s1 + $0x504] ss:$16 sps:$4 sm:$0xff]  }
  0x46   :  { %1794 = vmatprep.mubr.bf16.mxu1 %v3775_v29 }
  0x47   :  { %1724 = vmatpush1.bf16.msra.mxu0 %v3101_v30  ;;  %v3190_v30 = vld [vmem:[%s4639_s1 + $0x704] ss:$16 sps:$4 sm:$0xff]  }
  0x48   :  { %1765 = vmatpush1.bf16.msra.mxu1 %v3104_v31  ;;  %1725 = vmatprep.subr.bf16.mxu0 %v3109_v32  ;;  %v3185_v31 = vld [vmem:[%s4639_s1 + $0x500] ss:$16 sps:$4 sm:$0xff]  }
  0x49   :  { %1766 = vmatprep.subr.bf16.mxu1 %v3112_v33  ;;  %v3188_v32 = vld [vmem:[%s4639_s1 + $0x700] ss:$16 sps:$4 sm:$0xff]   ;;  %v3193_v33 = vld [vmem:[%s4639_s1 + $0xec] ss:$16 sps:$4 sm:$0xff]  }
  0x4b   :  { %1726 = vmatpush1.bf16.msra.mxu0 %v3107_v34  ;;  %v3196_v34 = vld [vmem:[%s4639_s1 + $0x2ec] ss:$16 sps:$4 sm:$0xff]  }
  0x4c   :  { %1767 = vmatpush1.bf16.msra.mxu1 %v3110_v35  ;;  %1727 = vmatprep.subr.bf16.mxu0 %v3115_v36  ;;  %v3963_v35 = vpack.c.bf16 %v3737_v14, %v3737_v14  ;;  %v3967_v36 = vpack.c.bf16 %v3739_v15, %v3739_v15  ;;  %v3199_v14 = vld [vmem:[%s4639_s1 + $0xcc] ss:$16 sps:$4 sm:$0xff]  }
  0x4d   :  { %1768 = vmatprep.subr.bf16.mxu1 %v3118_v37  ;;  %v3191_v37 = vld [vmem:[%s4639_s1 + $0xe8] ss:$16 sps:$4 sm:$0xff]   ;;  %v3202_v15 = vld [vmem:[%s4639_s1 + $0x2cc] ss:$16 sps:$4 sm:$0xff]  }
  0x4f   :  { %1728 = vmatpush1.bf16.msra.mxu0 %v3113_v38  ;;  %v3194_v38 = vld [vmem:[%s4639_s1 + $0x2e8] ss:$16 sps:$4 sm:$0xff]  }
  0x50   :  { %1769 = vmatpush1.bf16.msra.mxu1 %v3116_v39  ;;  %1729 = vmatprep.subr.bf16.mxu0 %v3121_v40  ;;  %v3197_v39 = vld [vmem:[%s4639_s1 + $0xc8] ss:$16 sps:$4 sm:$0xff]  }
  0x51   :  { %1770 = vmatprep.subr.bf16.mxu1 %v3124_v41  ;;  %v3200_v40 = vld [vmem:[%s4639_s1 + $0x2c8] ss:$16 sps:$4 sm:$0xff]   ;;  %v3205_v41 = vld [vmem:[%s4639_s1 + $0xac] ss:$16 sps:$4 sm:$0xff]  }
  0x53   :  { %1730 = vmatpush1.bf16.msra.mxu0 %v3119_v42  ;;  %v3208_v42 = vld [vmem:[%s4639_s1 + $0x2ac] ss:$16 sps:$4 sm:$0xff]  }
  0x54   :  { %1771 = vmatpush1.bf16.msra.mxu1 %v3122_v44  ;;  %1731 = vmatprep.subr.bf16.mxu0 %v3127_v45  ;;  %v3203_v44 = vld [vmem:[%s4639_s1 + $0xa8] ss:$16 sps:$4 sm:$0xff]  }
  0x55   :  { %1772 = vmatprep.subr.bf16.mxu1 %v3130_v46  ;;  %v3206_v45 = vld [vmem:[%s4639_s1 + $0x2a8] ss:$16 sps:$4 sm:$0xff]   ;;  %v3211_v46 = vld [vmem:[%s4639_s1 + $0x8c] ss:$16 sps:$4 sm:$0xff]  }
  0x57   :  { %1732 = vmatpush1.bf16.msra.mxu0 %v3125_v47  ;;  %v3212_v47 = vld [vmem:[%s4639_s1 + $0x288] ss:$16 sps:$4 sm:$0xff]  }
  0x58   :  { %1773 = vmatpush1.bf16.msra.mxu1 %v3128_v48  ;;  %1733 = vmatprep.subr.bf16.mxu0 %v3133_v49  ;;  %v3217_v48 = vld [vmem:[%s4639_s1 + $0x6c] ss:$16 sps:$4 sm:$0xff]  }
  0x59   :  { %1774 = vmatprep.subr.bf16.mxu1 %v3136_v50  ;;  %v3220_v49 = vld [vmem:[%s4639_s1 + $0x26c] ss:$16 sps:$4 sm:$0xff]   ;;  %v3215_v50 = vld [vmem:[%s4639_s1 + $0x68] ss:$16 sps:$4 sm:$0xff]  }
  0x5b   :  { %1734 = vmatpush1.bf16.msra.mxu0 %v3131_v51  ;;  %v3218_v51 = vld [vmem:[%s4639_s1 + $0x268] ss:$16 sps:$4 sm:$0xff]  }
  0x5c   :  { %1775 = vmatpush1.bf16.msra.mxu1 %v3134_v52  ;;  %1735 = vmatprep.subr.bf16.mxu0 %v3139_v53  ;;  %v3223_v52 = vld [vmem:[%s4639_s1 + $0x4c] ss:$16 sps:$4 sm:$0xff]  }
  0x5d   :  { %1776 = vmatprep.subr.bf16.mxu1 %v3142_v54  ;;  %v3226_v53 = vld [vmem:[%s4639_s1 + $0x24c] ss:$16 sps:$4 sm:$0xff]   ;;  %v3221_v54 = vld [vmem:[%s4639_s1 + $0x48] ss:$16 sps:$4 sm:$0xff]  }
  0x5f   :  { %1736 = vmatpush1.bf16.msra.mxu0 %v3137_v55  ;;  %v3224_v55 = vld [vmem:[%s4639_s1 + $0x248] ss:$16 sps:$4 sm:$0xff]  }
  0x60   :  { %1777 = vmatpush1.bf16.msra.mxu1 %v3140_v56  ;;  %1737 = vmatprep.subr.bf16.mxu0 %v3145_v57  ;;  %v3229_v56 = vld [vmem:[%s4639_s1 + $0x2c] ss:$16 sps:$4 sm:$0xff]  }
  0x61   :  { %1778 = vmatprep.subr.bf16.mxu1 %v3148_v58  ;;  %v3232_v57 = vld [vmem:[%s4639_s1 + $0x22c] ss:$16 sps:$4 sm:$0xff]   ;;  %v3227_v58 = vld [vmem:[%s4639_s1 + $0x28] ss:$16 sps:$4 sm:$0xff]  }
  0x63   :  { %1738 = vmatpush2.bf16.msra.mxu0 %v3143_v59  ;;  %v3230_v59 = vld [vmem:[%s4639_s1 + $0x228] ss:$16 sps:$4 sm:$0xff]  }
  0x64   :  { %1779 = vmatpush2.bf16.msra.mxu1 %v3146_v60  ;;  %1739 = vmatprep.subr.bf16.mxu0 %v3151_v62  ;;  %v3235_v60 = vld [vmem:[%s4639_s1 + $0xc] ss:$16 sps:$4 sm:$0xff]  }
  0x65   :  { %1780 = vmatprep.subr.bf16.mxu1 %v3154_v63  ;;  %v3238_v62 = vld [vmem:[%s4639_s1 + $0x20c] ss:$16 sps:$4 sm:$0xff]   ;;  %v3233_v63 = vld [vmem:[%s4639_s1 + $0x8] ss:$16 sps:$4 sm:$0xff]  }
  0x67   :  { %1740 = vmatpush2.bf16.msra.mxu0 %v3149_v0  ;;  %v3236_v0 = vld [vmem:[%s4639_s1 + $0x208] ss:$16 sps:$4 sm:$0xff]  }
  0x68   :  { %1781 = vmatpush2.bf16.msra.mxu1 %v3152_v1  ;;  %1741 = vmatprep.subr.bf16.mxu0 %v3157_v2  ;;  %v3241_v1 = vld [vmem:[%s4639_s1 + $0x1ec] ss:$16 sps:$4 sm:$0xff]  }
  0x69   :  { %1782 = vmatprep.subr.bf16.mxu1 %v3160_v4  ;;  %v3244_v2 = vld [vmem:[%s4639_s1 + $0x3ec] ss:$16 sps:$4 sm:$0xff]   ;;  %v3239_v4 = vld [vmem:[%s4639_s1 + $0x1e8] ss:$16 sps:$4 sm:$0xff]  }
  0x6b   :  { %1742 = vmatpush2.bf16.msra.mxu0 %v3155_v5  ;;  %v3242_v5 = vld [vmem:[%s4639_s1 + $0x3e8] ss:$16 sps:$4 sm:$0xff]  }
  0x6c   :  { %1783 = vmatpush2.bf16.msra.mxu1 %v3158_v6  ;;  %1743 = vmatprep.subr.bf16.mxu0 %v3163_v7  ;;  %v3247_v6 = vld [vmem:[%s4639_s1 + $0x1cc] ss:$16 sps:$4 sm:$0xff]  }
  0x6d   :  { %1784 = vmatprep.subr.bf16.mxu1 %v3166_v8  ;;  %v3250_v7 = vld [vmem:[%s4639_s1 + $0x3cc] ss:$16 sps:$4 sm:$0xff]   ;;  %v3245_v8 = vld [vmem:[%s4639_s1 + $0x1c8] ss:$16 sps:$4 sm:$0xff]  }
  0x6f   :  { %1744 = vmatpush2.bf16.msra.mxu0 %v3161_v9  ;;  %v3248_v9 = vld [vmem:[%s4639_s1 + $0x3c8] ss:$16 sps:$4 sm:$0xff]  }
  0x70   :  { %1785 = vmatpush2.bf16.msra.mxu1 %v3164_v10  ;;  %1745 = vmatprep.subr.bf16.mxu0 %v3169_v11  ;;  %v3253_v10 = vld [vmem:[%s4639_s1 + $0x1ac] ss:$16 sps:$4 sm:$0xff]  }
  0x71   :  { %1786 = vmatprep.subr.bf16.mxu1 %v3172_v12  ;;  %v3256_v11 = vld [vmem:[%s4639_s1 + $0x3ac] ss:$16 sps:$4 sm:$0xff]   ;;  %v3251_v12 = vld [vmem:[%s4639_s1 + $0x1a8] ss:$16 sps:$4 sm:$0xff]  }
  0x73   :  { %1746 = vmatpush2.bf16.msra.mxu0 %v3167_v13  ;;  %v3254_v13 = vld [vmem:[%s4639_s1 + $0x3a8] ss:$16 sps:$4 sm:$0xff]  }
  0x74   :  { %1787 = vmatpush2.bf16.msra.mxu1 %v3170_v16  ;;  %1747 = vmatprep.subr.bf16.mxu0 %v3175_v17  ;;  %v3259_v16 = vld [vmem:[%s4639_s1 + $0x18c] ss:$16 sps:$4 sm:$0xff]  }
  0x75   :  { %1788 = vmatprep.subr.bf16.mxu1 %v3178_v18  ;;  %v3262_v17 = vld [vmem:[%s4639_s1 + $0x38c] ss:$16 sps:$4 sm:$0xff]   ;;  %v3257_v18 = vld [vmem:[%s4639_s1 + $0x188] ss:$16 sps:$4 sm:$0xff]  }
  0x77   :  { %1748 = vmatpush2.bf16.msra.mxu0 %v3173_v19  ;;  %v3260_v19 = vld [vmem:[%s4639_s1 + $0x388] ss:$16 sps:$4 sm:$0xff]  }
  0x78   :  { %1789 = vmatpush2.bf16.msra.mxu1 %v3176_v20  ;;  %1749 = vmatprep.subr.bf16.mxu0 %v3181_v21  ;;  %v3265_v20 = vld [vmem:[%s4639_s1 + $0x16c] ss:$16 sps:$4 sm:$0xff]  }
  0x79   :  { %1790 = vmatprep.subr.bf16.mxu1 %v3184_v24  ;;  %v3268_v21 = vld [vmem:[%s4639_s1 + $0x36c] ss:$16 sps:$4 sm:$0xff]   ;;  %v3263_v24 = vld [vmem:[%s4639_s1 + $0x168] ss:$16 sps:$4 sm:$0xff]  }
  0x7b   :  { %1750 = vmatpush2.bf16.msra.mxu0 %v3179_v25  ;;  %v3266_v25 = vld [vmem:[%s4639_s1 + $0x368] ss:$16 sps:$4 sm:$0xff]  }
  0x7c   :  { %1791 = vmatpush2.bf16.msra.mxu1 %v3182_v26  ;;  %1751 = vmatprep.subr.bf16.mxu0 %v3187_v27  ;;  %v3271_v26 = vld [vmem:[%s4639_s1 + $0x14c] ss:$16 sps:$4 sm:$0xff]  }
  0x7d   :  { %1792 = vmatprep.subr.bf16.mxu1 %v3190_v30  ;;  %v3274_v27 = vld [vmem:[%s4639_s1 + $0x34c] ss:$16 sps:$4 sm:$0xff]   ;;  %v3269_v30 = vld [vmem:[%s4639_s1 + $0x148] ss:$16 sps:$4 sm:$0xff]  }
  0x7f   :  { %1752 = vmatpush2.bf16.msra.mxu0 %v3185_v31  ;;  %v3272_v31 = vld [vmem:[%s4639_s1 + $0x348] ss:$16 sps:$4 sm:$0xff]  }
  0x80   :  { %1793 = vmatpush2.bf16.msra.mxu1 %v3188_v32  ;;  %1803 = vmatprep.subr.bf16.mxu0 %v3193_v33  ;;  %v3277_v32 = vld [vmem:[%s4639_s1 + $0x12c] ss:$16 sps:$4 sm:$0xff]  }
  0x81   :  { %1844 = vmatprep.subr.bf16.mxu1 %v3196_v34  ;;  %v3280_v33 = vld [vmem:[%s4639_s1 + $0x32c] ss:$16 sps:$4 sm:$0xff]   ;;  %v3275_v34 = vld [vmem:[%s4639_s1 + $0x128] ss:$16 sps:$4 sm:$0xff]  }
  0x82   :  { %1754 = vmatmul.mubr.bf16.vlgmr.msra.gmra.mxu0 %v3963_v35 }
  0x83   :  { %1795 = vmatmul.mubr.bf16.vlgmr.msra.gmra.mxu1 %v3967_v36  ;;  %1804 = vmatpush1.bf16.msra.mxu0 %v3191_v37  ;;  %v3278_v37 = vld [vmem:[%s4639_s1 + $0x328] ss:$16 sps:$4 sm:$0xff]  }
  0x84   :  { %1845 = vmatpush1.bf16.msra.mxu1 %v3194_v38  ;;  %1805 = vmatprep.subr.bf16.mxu0 %v3199_v14  ;;  %v3283_v38 = vld [vmem:[%s4639_s1 + $0x10c] ss:$16 sps:$4 sm:$0xff]  }
  0x85   :  { %1846 = vmatprep.subr.bf16.mxu1 %v3202_v15  ;;  %1835 = vmatprep.mubr.bf16.mxu0 %v3692_v61  ;;  %v3214_v61 = vld [vmem:[%s4639_s1 + $0x28c] ss:$16 sps:$4 sm:$0xff]   ;;  %v3281_v15 = vld [vmem:[%s4639_s1 + $0x108] ss:$16 sps:$4 sm:$0xff]  }
  0x86   :  { %1876 = vmatprep.mubr.bf16.mxu1 %v3706_v3  ;;  %v3209_v3 = vld [vmem:[%s4639_s1 + $0x88] ss:$16 sps:$4 sm:$0xff]   ;;  %v3286_v14 = vld [vmem:[%s4639_s1 + $0x30c] ss:$16 sps:$4 sm:$0xff]  }
  0x87   :  { %1806 = vmatpush1.bf16.msra.mxu0 %v3197_v39  ;;  %v3284_v39 = vld [vmem:[%s4639_s1 + $0x308] ss:$16 sps:$4 sm:$0xff]  }
  0x88   :  { %1847 = vmatpush1.bf16.msra.mxu1 %v3200_v40  ;;  %1807 = vmatprep.subr.bf16.mxu0 %v3205_v41  ;;  %v3289_v40 = vld [vmem:[%s4639_s1 + $0x4ec] ss:$16 sps:$4 sm:$0xff]  }
  0x89   :  { %1848 = vmatprep.subr.bf16.mxu1 %v3208_v42  ;;  %v3292_v41 = vld [vmem:[%s4639_s1 + $0x6ec] ss:$16 sps:$4 sm:$0xff]   ;;  %v3287_v42 = vld [vmem:[%s4639_s1 + $0x4e8] ss:$16 sps:$4 sm:$0xff]  }
  0x8b   :  { %1808 = vmatpush1.bf16.msra.mxu0 %v3203_v44  ;;  %v3290_v44 = vld [vmem:[%s4639_s1 + $0x6e8] ss:$16 sps:$4 sm:$0xff]  }
  0x8c   :  { %1849 = vmatpush1.bf16.msra.mxu1 %v3206_v45  ;;  %1809 = vmatprep.subr.bf16.mxu0 %v3211_v46  ;;  %v3295_v45 = vld [vmem:[%s4639_s1 + $0x4cc] ss:$16 sps:$4 sm:$0xff]  }
  0x8d   :  { %1850 = vmatprep.subr.bf16.mxu1 %v3214_v61  ;;  %v3298_v46 = vld [vmem:[%s4639_s1 + $0x6cc] ss:$16 sps:$4 sm:$0xff]   ;;  %v3293_v61 = vld [vmem:[%s4639_s1 + $0x4c8] ss:$16 sps:$4 sm:$0xff]  }
  0x8f   :  { %1810 = vmatpush1.bf16.msra.mxu0 %v3209_v3  ;;  %v3296_v3 = vld [vmem:[%s4639_s1 + $0x6c8] ss:$16 sps:$4 sm:$0xff]  }
  0x90   :  { %1851 = vmatpush1.bf16.msra.mxu1 %v3212_v47  ;;  %1811 = vmatprep.subr.bf16.mxu0 %v3217_v48  ;;  %v3301_v47 = vld [vmem:[%s4639_s1 + $0x4ac] ss:$16 sps:$4 sm:$0xff]  }
  0x91   :  { %1852 = vmatprep.subr.bf16.mxu1 %v3220_v49  ;;  %v3304_v48 = vld [vmem:[%s4639_s1 + $0x6ac] ss:$16 sps:$4 sm:$0xff]   ;;  %v3299_v49 = vld [vmem:[%s4639_s1 + $0x4a8] ss:$16 sps:$4 sm:$0xff]  }
  0x93   :  { %1812 = vmatpush1.bf16.msra.mxu0 %v3215_v50  ;;  %v3310_v50 = vld [vmem:[%s4639_s1 + $0x68c] ss:$16 sps:$4 sm:$0xff]  }
  0x94   :  { %1853 = vmatpush1.bf16.msra.mxu1 %v3218_v51  ;;  %1813 = vmatprep.subr.bf16.mxu0 %v3223_v52  ;;  %v3313_v51 = vld [vmem:[%s4639_s1 + $0x46c] ss:$16 sps:$4 sm:$0xff]  }
  0x95   :  { %1854 = vmatprep.subr.bf16.mxu1 %v3226_v53  ;;  %v3316_v52 = vld [vmem:[%s4639_s1 + $0x66c] ss:$16 sps:$4 sm:$0xff]   ;;  %v3311_v53 = vld [vmem:[%s4639_s1 + $0x468] ss:$16 sps:$4 sm:$0xff]  }
  0x97   :  { %1814 = vmatpush1.bf16.msra.mxu0 %v3221_v54  ;;  %v3314_v54 = vld [vmem:[%s4639_s1 + $0x668] ss:$16 sps:$4 sm:$0xff]  }
  0x98   :  { %1855 = vmatpush1.bf16.msra.mxu1 %v3224_v55  ;;  %1815 = vmatprep.subr.bf16.mxu0 %v3229_v56  ;;  %v3319_v55 = vld [vmem:[%s4639_s1 + $0x44c] ss:$16 sps:$4 sm:$0xff]  }
  0x99   :  { %1856 = vmatprep.subr.bf16.mxu1 %v3232_v57  ;;  %v3322_v56 = vld [vmem:[%s4639_s1 + $0x64c] ss:$16 sps:$4 sm:$0xff]   ;;  %v3317_v57 = vld [vmem:[%s4639_s1 + $0x448] ss:$16 sps:$4 sm:$0xff]  }
  0x9b   :  { %1816 = vmatpush1.bf16.msra.mxu0 %v3227_v58  ;;  %v3320_v58 = vld [vmem:[%s4639_s1 + $0x648] ss:$16 sps:$4 sm:$0xff]  }
  0x9c   :  { %1857 = vmatpush1.bf16.msra.mxu1 %v3230_v59  ;;  %1817 = vmatprep.subr.bf16.mxu0 %v3235_v60  ;;  %v3325_v59 = vld [vmem:[%s4639_s1 + $0x42c] ss:$16 sps:$4 sm:$0xff]  }
  0x9d   :  { %1858 = vmatprep.subr.bf16.mxu1 %v3238_v62  ;;  %v3328_v60 = vld [vmem:[%s4639_s1 + $0x62c] ss:$16 sps:$4 sm:$0xff]   ;;  %v3323_v62 = vld [vmem:[%s4639_s1 + $0x428] ss:$16 sps:$4 sm:$0xff]  }
  0x9f   :  { %1818 = vmatpush1.bf16.msra.mxu0 %v3233_v63  ;;  %v3326_v63 = vld [vmem:[%s4639_s1 + $0x628] ss:$16 sps:$4 sm:$0xff]  }
  0xa0   :  { %1859 = vmatpush1.bf16.msra.mxu1 %v3236_v0  ;;  %1819 = vmatprep.subr.bf16.mxu0 %v3241_v1  ;;  %v3331_v0 = vld [vmem:[%s4639_s1 + $0x40c] ss:$16 sps:$4 sm:$0xff]  }
  0xa1   :  { %1860 = vmatprep.subr.bf16.mxu1 %v3244_v2  ;;  %v3334_v1 = vld [vmem:[%s4639_s1 + $0x60c] ss:$16 sps:$4 sm:$0xff]   ;;  %v3329_v2 = vld [vmem:[%s4639_s1 + $0x408] ss:$16 sps:$4 sm:$0xff]  }
  0xa3   :  { %1820 = vmatpush2.bf16.msra.mxu0 %v3239_v4  ;;  %v3332_v4 = vld [vmem:[%s4639_s1 + $0x608] ss:$16 sps:$4 sm:$0xff]  }
  0xa4   :  { %1861 = vmatpush2.bf16.msra.mxu1 %v3242_v5  ;;  %1821 = vmatprep.subr.bf16.mxu0 %v3247_v6  ;;  %v3337_v5 = vld [vmem:[%s4639_s1 + $0x5ec] ss:$16 sps:$4 sm:$0xff]  }
  0xa5   :  { %1862 = vmatprep.subr.bf16.mxu1 %v3250_v7  ;;  %v3340_v6 = vld [vmem:[%s4639_s1 + $0x7ec] ss:$16 sps:$4 sm:$0xff]   ;;  %v3335_v7 = vld [vmem:[%s4639_s1 + $0x5e8] ss:$16 sps:$4 sm:$0xff]  }
  0xa7   :  { %1822 = vmatpush2.bf16.msra.mxu0 %v3245_v8  ;;  %v3338_v8 = vld [vmem:[%s4639_s1 + $0x7e8] ss:$16 sps:$4 sm:$0xff]  }
  0xa8   :  { %1863 = vmatpush2.bf16.msra.mxu1 %v3248_v9  ;;  %1823 = vmatprep.subr.bf16.mxu0 %v3253_v10  ;;  %v3343_v9 = vld [vmem:[%s4639_s1 + $0x5cc] ss:$16 sps:$4 sm:$0xff]  }
  0xa9   :  { %1864 = vmatprep.subr.bf16.mxu1 %v3256_v11  ;;  %v3346_v10 = vld [vmem:[%s4639_s1 + $0x7cc] ss:$16 sps:$4 sm:$0xff]   ;;  %v3341_v11 = vld [vmem:[%s4639_s1 + $0x5c8] ss:$16 sps:$4 sm:$0xff]  }
  0xab   :  { %1824 = vmatpush2.bf16.msra.mxu0 %v3251_v12  ;;  %v3344_v12 = vld [vmem:[%s4639_s1 + $0x7c8] ss:$16 sps:$4 sm:$0xff]  }
  0xac   :  { %1865 = vmatpush2.bf16.msra.mxu1 %v3254_v13  ;;  %1825 = vmatprep.subr.bf16.mxu0 %v3259_v16  ;;  %v3349_v13 = vld [vmem:[%s4639_s1 + $0x5ac] ss:$16 sps:$4 sm:$0xff]  }
  0xad   :  { %1866 = vmatprep.subr.bf16.mxu1 %v3262_v17  ;;  %v3352_v16 = vld [vmem:[%s4639_s1 + $0x7ac] ss:$16 sps:$4 sm:$0xff]   ;;  %v3347_v17 = vld [vmem:[%s4639_s1 + $0x5a8] ss:$16 sps:$4 sm:$0xff]  }
  0xaf   :  { %1826 = vmatpush2.bf16.msra.mxu0 %v3257_v18  ;;  %v3350_v18 = vld [vmem:[%s4639_s1 + $0x7a8] ss:$16 sps:$4 sm:$0xff]  }
  0xb0   :  { %1867 = vmatpush2.bf16.msra.mxu1 %v3260_v19  ;;  %1827 = vmatprep.subr.bf16.mxu0 %v3265_v20  ;;  %v3355_v19 = vld [vmem:[%s4639_s1 + $0x58c] ss:$16 sps:$4 sm:$0xff]  }
  0xb1   :  { %1868 = vmatprep.subr.bf16.mxu1 %v3268_v21  ;;  %v3358_v20 = vld [vmem:[%s4639_s1 + $0x78c] ss:$16 sps:$4 sm:$0xff]   ;;  %v3353_v21 = vld [vmem:[%s4639_s1 + $0x588] ss:$16 sps:$4 sm:$0xff]  }
  0xb3   :  { %1828 = vmatpush2.bf16.msra.mxu0 %v3263_v24  ;;  %v3356_v24 = vld [vmem:[%s4639_s1 + $0x788] ss:$16 sps:$4 sm:$0xff]  }
  0xb4   :  { %1869 = vmatpush2.bf16.msra.mxu1 %v3266_v25  ;;  %1829 = vmatprep.subr.bf16.mxu0 %v3271_v26  ;;  %v3361_v25 = vld [vmem:[%s4639_s1 + $0x56c] ss:$16 sps:$4 sm:$0xff]  }
  0xb5   :  { %1870 = vmatprep.subr.bf16.mxu1 %v3274_v27  ;;  %v3364_v26 = vld [vmem:[%s4639_s1 + $0x76c] ss:$16 sps:$4 sm:$0xff]   ;;  %v3359_v27 = vld [vmem:[%s4639_s1 + $0x568] ss:$16 sps:$4 sm:$0xff]  }
  0xb7   :  { %1830 = vmatpush2.bf16.msra.mxu0 %v3269_v30  ;;  %v3362_v30 = vld [vmem:[%s4639_s1 + $0x768] ss:$16 sps:$4 sm:$0xff]  }
  0xb8   :  { %1871 = vmatpush2.bf16.msra.mxu1 %v3272_v31  ;;  %1831 = vmatprep.subr.bf16.mxu0 %v3277_v32  ;;  %v3367_v31 = vld [vmem:[%s4639_s1 + $0x54c] ss:$16 sps:$4 sm:$0xff]  }
  0xb9   :  { %1872 = vmatprep.subr.bf16.mxu1 %v3280_v33  ;;  %v3370_v32 = vld [vmem:[%s4639_s1 + $0x74c] ss:$16 sps:$4 sm:$0xff]   ;;  %v3365_v33 = vld [vmem:[%s4639_s1 + $0x548] ss:$16 sps:$4 sm:$0xff]  }
  0xbb   :  { %1832 = vmatpush2.bf16.msra.mxu0 %v3275_v34  ;;  %v3368_v34 = vld [vmem:[%s4639_s1 + $0x748] ss:$16 sps:$4 sm:$0xff]  }
  0xbc   :  { %1873 = vmatpush2.bf16.msra.mxu1 %v3278_v37  ;;  %1833 = vmatprep.subr.bf16.mxu0 %v3283_v38  ;;  %v3373_v37 = vld [vmem:[%s4639_s1 + $0x52c] ss:$16 sps:$4 sm:$0xff]  }
  0xbd   :  { %1874 = vmatprep.subr.bf16.mxu1 %v3286_v14  ;;  %v3376_v38 = vld [vmem:[%s4639_s1 + $0x72c] ss:$16 sps:$4 sm:$0xff]   ;;  %v3371_v14 = vld [vmem:[%s4639_s1 + $0x528] ss:$16 sps:$4 sm:$0xff]  }
  0xbf   :  { %1834 = vmatpush2.bf16.msra.mxu0 %v3281_v15  ;;  %v3374_v15 = vld [vmem:[%s4639_s1 + $0x728] ss:$16 sps:$4 sm:$0xff]  }
  0xc0   :  { %1875 = vmatpush2.bf16.msra.mxu1 %v3284_v39  ;;  %1885 = vmatprep.subr.bf16.mxu0 %v3289_v40  ;;  %v3379_v39 = vld [vmem:[%s4639_s1 + $0x50c] ss:$16 sps:$4 sm:$0xff]  }
  0xc1   :  { %1926 = vmatprep.subr.bf16.mxu1 %v3292_v41  ;;  %v3382_v40 = vld [vmem:[%s4639_s1 + $0x70c] ss:$16 sps:$4 sm:$0xff]   ;;  %v3377_v41 = vld [vmem:[%s4639_s1 + $0x508] ss:$16 sps:$4 sm:$0xff]  }
  0xc2   :  { %1836 = vmatmul.mubr.bf16.vlgmr.msra.gmra.mxu0 %v3757_v22  ;;  %v3302_v22 = vld [vmem:[%s4639_s1 + $0x6a8] ss:$16 sps:$4 sm:$0xff]  }
  0xc3   :  { %1877 = vmatmul.mubr.bf16.vlgmr.msra.gmra.mxu1 %v3759_v23  ;;  %1886 = vmatpush1.bf16.msra.mxu0 %v3287_v42  ;;  %v3307_v23 = vld [vmem:[%s4639_s1 + $0x48c] ss:$16 sps:$4 sm:$0xff]   ;;  %v3380_v42 = vld [vmem:[%s4639_s1 + $0x708] ss:$16 sps:$4 sm:$0xff]  }
  0xc4   :  { %1927 = vmatpush1.bf16.msra.mxu1 %v3290_v44  ;;  %1887 = vmatprep.subr.bf16.mxu0 %v3295_v45  ;;  %v3385_v44 = vld [vmem:[%s4641_s3 + $0x74] ss:$8 sps:$4 sm:$0xff]   ;;  %v3383_v45 = vld [vmem:[%s4641_s3 + $0x70] ss:$8 sps:$4 sm:$0xff]  }
  0xc5   :  { %1928 = vmatprep.subr.bf16.mxu1 %v3298_v46  ;;  %1917 = vmatprep.mubr.bf16.mxu0 %v3773_v28  ;;  %v3305_v28 = vld [vmem:[%s4639_s1 + $0x488] ss:$16 sps:$4 sm:$0xff]   ;;  %v3388_v46 = vld [vmem:[%s4641_s3 + $0x64] ss:$8 sps:$4 sm:$0xff]  }
  0xc6   :  { %1958 = vmatprep.mubr.bf16.mxu1 %v3775_v29  ;;  %v3308_v29 = vld [vmem:[%s4639_s1 + $0x688] ss:$16 sps:$4 sm:$0xff]  }
  0xc7   :  { %1888 = vmatpush1.bf16.msra.mxu0 %v3293_v61 }
  0xc8   :  { %1929 = vmatpush1.bf16.msra.mxu1 %v3296_v3  ;;  %1889 = vmatprep.subr.bf16.mxu0 %v3301_v47  ;;  %v3386_v47 = vld [vmem:[%s4641_s3 + $0x60] ss:$8 sps:$4 sm:$0xff]  }
  0xc9   :  { %1930 = vmatprep.subr.bf16.mxu1 %v3304_v48 }
  0xcb   :  { %1890 = vmatpush1.bf16.msra.mxu0 %v3299_v49 }
  0xcc   :  { %1931 = vmatpush1.bf16.msra.mxu1 %v3302_v22  ;;  %1891 = vmatprep.subr.bf16.mxu0 %v3307_v23  ;;  %v3391_v22 = vld [vmem:[%s4641_s3 + $0x54] ss:$8 sps:$4 sm:$0xff]  }
  0xcd   :  { %1932 = vmatprep.subr.bf16.mxu1 %v3310_v50 }
  0xcf   :  { %1892 = vmatpush1.bf16.msra.mxu0 %v3305_v28 }
  0xd0   :  { %1933 = vmatpush1.bf16.msra.mxu1 %v3308_v29  ;;  %1893 = vmatprep.subr.bf16.mxu0 %v3313_v51  ;;  %v3394_v29 = vld [vmem:[%s4641_s3 + $0x44] ss:$8 sps:$4 sm:$0xff]   ;;  %v3431_v51 = vld [vmem:[%s4641_s3 + $0x170] ss:$8 sps:$4 sm:$0xff]  }
  0xd1   :  { %1934 = vmatprep.subr.bf16.mxu1 %v3316_v52  ;;  %v3433_v52 = vld [vmem:[%s4641_s3 + $0x174] ss:$8 sps:$4 sm:$0xff]  }
  0xd3   :  { %1894 = vmatpush1.bf16.msra.mxu0 %v3311_v53  ;;  %v3436_v53 = vld [vmem:[%s4641_s3 + $0x164] ss:$8 sps:$4 sm:$0xff]  }
  0xd4   :  { %1935 = vmatpush1.bf16.msra.mxu1 %v3314_v54  ;;  %1895 = vmatprep.subr.bf16.mxu0 %v3319_v55  ;;  %v3392_v54 = vld [vmem:[%s4641_s3 + $0x40] ss:$8 sps:$4 sm:$0xff]  }
  0xd5   :  { %1936 = vmatprep.subr.bf16.mxu1 %v3322_v56  ;;  %v3434_v55 = vld [vmem:[%s4641_s3 + $0x160] ss:$8 sps:$4 sm:$0xff]   ;;  %v3397_v56 = vld [vmem:[%s4641_s3 + $0x34] ss:$8 sps:$4 sm:$0xff]  }
  0xd7   :  { %1896 = vmatpush1.bf16.msra.mxu0 %v3317_v57  ;;  %v3439_v57 = vld [vmem:[%s4641_s3 + $0x154] ss:$8 sps:$4 sm:$0xff]  }
  0xd8   :  { %1937 = vmatpush1.bf16.msra.mxu1 %v3320_v58  ;;  %1897 = vmatprep.subr.bf16.mxu0 %v3325_v59  ;;  %v3395_v58 = vld [vmem:[%s4641_s3 + $0x30] ss:$8 sps:$4 sm:$0xff]  }
  0xd9   :  { %1938 = vmatprep.subr.bf16.mxu1 %v3328_v60  ;;  %v3437_v59 = vld [vmem:[%s4641_s3 + $0x150] ss:$8 sps:$4 sm:$0xff]   ;;  %v3400_v60 = vld [vmem:[%s4641_s3 + $0x24] ss:$8 sps:$4 sm:$0xff]  }
  0xdb   :  { %1898 = vmatpush1.bf16.msra.mxu0 %v3323_v62  ;;  %v3442_v62 = vld [vmem:[%s4641_s3 + $0x144] ss:$8 sps:$4 sm:$0xff]  }
  0xdc   :  { %1939 = vmatpush1.bf16.msra.mxu1 %v3326_v63  ;;  %1899 = vmatprep.subr.bf16.mxu0 %v3331_v0  ;;  %v3398_v63 = vld [vmem:[%s4641_s3 + $0x20] ss:$8 sps:$4 sm:$0xff]  }
  0xdd   :  { %1940 = vmatprep.subr.bf16.mxu1 %v3334_v1  ;;  %v3440_v0 = vld [vmem:[%s4641_s3 + $0x140] ss:$8 sps:$4 sm:$0xff]   ;;  %v3403_v1 = vld [vmem:[%s4641_s3 + $0x14] ss:$8 sps:$4 sm:$0xff]  }
  0xdf   :  { %1900 = vmatpush1.bf16.msra.mxu0 %v3329_v2  ;;  %v3445_v2 = vld [vmem:[%s4641_s3 + $0x134] ss:$8 sps:$4 sm:$0xff]  }
  0xe0   :  { %1941 = vmatpush1.bf16.msra.mxu1 %v3332_v4  ;;  %1901 = vmatprep.subr.bf16.mxu0 %v3337_v5  ;;  %v3401_v4 = vld [vmem:[%s4641_s3 + $0x10] ss:$8 sps:$4 sm:$0xff]  }
  0xe1   :  { %1942 = vmatprep.subr.bf16.mxu1 %v3340_v6  ;;  %v3443_v5 = vld [vmem:[%s4641_s3 + $0x130] ss:$8 sps:$4 sm:$0xff]   ;;  %v3406_v6 = vld [vmem:[%s4641_s3 + $0x4] ss:$8 sps:$4 sm:$0xff]  }
  0xe3   :  { %1902 = vmatpush2.bf16.msra.mxu0 %v3335_v7  ;;  %v3448_v7 = vld [vmem:[%s4641_s3 + $0x124] ss:$8 sps:$4 sm:$0xff]  }
  0xe4   :  { %1943 = vmatpush2.bf16.msra.mxu1 %v3338_v8  ;;  %1903 = vmatprep.subr.bf16.mxu0 %v3343_v9  ;;  %v3404_v8 = vld [vmem:[%s4641_s3] ss:$8 sps:$4 sm:$0xff]  }
  0xe5   :  { %1944 = vmatprep.subr.bf16.mxu1 %v3346_v10  ;;  %v3446_v9 = vld [vmem:[%s4641_s3 + $0x120] ss:$8 sps:$4 sm:$0xff]   ;;  %v3409_v10 = vld [vmem:[%s4641_s3 + $0xf4] ss:$8 sps:$4 sm:$0xff]  }
  0xe7   :  { %1904 = vmatpush2.bf16.msra.mxu0 %v3341_v11  ;;  %v3451_v11 = vld [vmem:[%s4641_s3 + $0x114] ss:$8 sps:$4 sm:$0xff]  }
  0xe8   :  { %1945 = vmatpush2.bf16.msra.mxu1 %v3344_v12  ;;  %1905 = vmatprep.subr.bf16.mxu0 %v3349_v13  ;;  %v3407_v12 = vld [vmem:[%s4641_s3 + $0xf0] ss:$8 sps:$4 sm:$0xff]  }
  0xe9   :  { %1946 = vmatprep.subr.bf16.mxu1 %v3352_v16  ;;  %v3449_v13 = vld [vmem:[%s4641_s3 + $0x110] ss:$8 sps:$4 sm:$0xff]   ;;  %v3412_v16 = vld [vmem:[%s4641_s3 + $0xe4] ss:$8 sps:$4 sm:$0xff]  }
  0xeb   :  { %1906 = vmatpush2.bf16.msra.mxu0 %v3347_v17  ;;  %v3454_v17 = vld [vmem:[%s4641_s3 + $0x104] ss:$8 sps:$4 sm:$0xff]  }
  0xec   :  { %1947 = vmatpush2.bf16.msra.mxu1 %v3350_v18  ;;  %1907 = vmatprep.subr.bf16.mxu0 %v3355_v19  ;;  %v3410_v18 = vld [vmem:[%s4641_s3 + $0xe0] ss:$8 sps:$4 sm:$0xff]  }
  0xed   :  { %1948 = vmatprep.subr.bf16.mxu1 %v3358_v20  ;;  %v3452_v19 = vld [vmem:[%s4641_s3 + $0x100] ss:$8 sps:$4 sm:$0xff]   ;;  %v3415_v20 = vld [vmem:[%s4641_s3 + $0xd4] ss:$8 sps:$4 sm:$0xff]  }
  0xef   :  { %1908 = vmatpush2.bf16.msra.mxu0 %v3353_v21  ;;  %v3457_v21 = vld [vmem:[%s4641_s3 + $0x1f4] ss:$8 sps:$4 sm:$0xff]  }
  0xf0   :  { %1949 = vmatpush2.bf16.msra.mxu1 %v3356_v24  ;;  %1909 = vmatprep.subr.bf16.mxu0 %v3361_v25  ;;  %v3413_v24 = vld [vmem:[%s4641_s3 + $0xd0] ss:$8 sps:$4 sm:$0xff]  }
  0xf1   :  { %1950 = vmatprep.subr.bf16.mxu1 %v3364_v26  ;;  %v3455_v25 = vld [vmem:[%s4641_s3 + $0x1f0] ss:$8 sps:$4 sm:$0xff]   ;;  %v3418_v26 = vld [vmem:[%s4641_s3 + $0xc4] ss:$8 sps:$4 sm:$0xff]  }
  0xf3   :  { %1910 = vmatpush2.bf16.msra.mxu0 %v3359_v27  ;;  %v3460_v27 = vld [vmem:[%s4641_s3 + $0x1e4] ss:$8 sps:$4 sm:$0xff]  }
  0xf4   :  { %1951 = vmatpush2.bf16.msra.mxu1 %v3362_v30  ;;  %1911 = vmatprep.subr.bf16.mxu0 %v3367_v31  ;;  %v3416_v30 = vld [vmem:[%s4641_s3 + $0xc0] ss:$8 sps:$4 sm:$0xff]  }
  0xf5   :  { %1952 = vmatprep.subr.bf16.mxu1 %v3370_v32  ;;  %v3458_v31 = vld [vmem:[%s4641_s3 + $0x1e0] ss:$8 sps:$4 sm:$0xff]   ;;  %v3421_v32 = vld [vmem:[%s4641_s3 + $0xb4] ss:$8 sps:$4 sm:$0xff]  }
  0xf7   :  { %1912 = vmatpush2.bf16.msra.mxu0 %v3365_v33  ;;  %v3463_v33 = vld [vmem:[%s4641_s3 + $0x1d4] ss:$8 sps:$4 sm:$0xff]  }
  0xf8   :  { %1953 = vmatpush2.bf16.msra.mxu1 %v3368_v34  ;;  %1913 = vmatprep.subr.bf16.mxu0 %v3373_v37  ;;  %v3419_v34 = vld [vmem:[%s4641_s3 + $0xb0] ss:$8 sps:$4 sm:$0xff]  }
  0xf9   :  { %1954 = vmatprep.subr.bf16.mxu1 %v3376_v38  ;;  %v3461_v37 = vld [vmem:[%s4641_s3 + $0x1d0] ss:$8 sps:$4 sm:$0xff]   ;;  %v3424_v38 = vld [vmem:[%s4641_s3 + $0xa4] ss:$8 sps:$4 sm:$0xff]  }
  0xfb   :  { %1914 = vmatpush2.bf16.msra.mxu0 %v3371_v14  ;;  %v3466_v14 = vld [vmem:[%s4641_s3 + $0x1c4] ss:$8 sps:$4 sm:$0xff]  }
  0xfc   :  { %1955 = vmatpush2.bf16.msra.mxu1 %v3374_v15  ;;  %1915 = vmatprep.subr.bf16.mxu0 %v3379_v39  ;;  %v3422_v15 = vld [vmem:[%s4641_s3 + $0xa0] ss:$8 sps:$4 sm:$0xff]  }
  0xfd   :  { %1956 = vmatprep.subr.bf16.mxu1 %v3382_v40  ;;  %v3464_v39 = vld [vmem:[%s4641_s3 + $0x1c0] ss:$8 sps:$4 sm:$0xff]   ;;  %v3427_v40 = vld [vmem:[%s4641_s3 + $0x94] ss:$8 sps:$4 sm:$0xff]  }
  0xff   :  { %1916 = vmatpush2.bf16.msra.mxu0 %v3377_v41  ;;  %v3469_v41 = vld [vmem:[%s4641_s3 + $0x1b4] ss:$8 sps:$4 sm:$0xff]  }
 0x100   :  { %1957 = vmatpush2.bf16.msra.mxu1 %v3380_v42  ;;  %2371 = vmatprep.subr.bf16.mxu0 %v3385_v44  ;;  %v341_v42 = vsub.s32 0, %v3653_v43  ;;  %v4531_v44 = vld [vmem:[%s4642_s2] sm:$0xf] }
 0x101   :  { %2412 = vmatprep.subr.bf16.mxu1 %v3433_v52  ;;  %v3470_v52 = vld [vmem:[%s4641_s3 + $0x1a0] ss:$8 sps:$4 sm:$0xff]  }
 0x102   :  { %v4364_v61 = vpop.f32.mrf.mxu0  ;;  %1918 = vmatmul.mubr.bf16.vlgmr.msra.gmra.mxu0 %v3963_v35  ;;  %v3389_v35 = vld [vmem:[%s4641_s3 + $0x50] ss:$8 sps:$4 sm:$0xff]  }
 0x103   :  { %v4366_v3 = vpop.f32.mrf.mxu1  ;;  %1959 = vmatmul.mubr.bf16.vlgmr.msra.gmra.mxu1 %v3967_v36  ;;  %2372 = vmatpush1.bf16.msra.mxu0 %v3383_v45  ;;  %v345_v45 = vsub.s32 1, %v3653_v43 }
 0x104   :  { %v4373_v48 = vpop.f32.mrf.mxu0  ;;  %2373 = vmatprep.subr.bf16.mxu0 %v3388_v46  ;;  %2413 = vmatpush1.bf16.msra.mxu1 %v3431_v51  ;;  %v3425_v46 = vld [vmem:[%s4641_s3 + $0x90] ss:$8 sps:$4 sm:$0xff]  }
 0x105   :  { %v4375_v49 = vpop.f32.mrf.mxu1  ;;  %2414 = vmatprep.subr.bf16.mxu1 %v3436_v53 }
 0x106   :  { %v1677_v23 = vpop.f32.mrf.mxu0 }
 0x107   :  { %v1718_v50 = vpop.f32.mrf.mxu1  ;;  %2374 = vmatpush1.bf16.msra.mxu0 %v3386_v47  ;;  %v3467_v47 = vld [vmem:[%s4641_s3 + $0x1b0] ss:$8 sps:$4 sm:$0xff]   ;;  %v342_v23 = vrot.slane %v4531_v44, %v341_v42 }
 0x108   :  { %v1678_v36 = vpop.f32.mrf.mxu0  ;;  %2375 = vmatprep.subr.bf16.mxu0 %v3391_v22  ;;  %2415 = vmatpush1.bf16.msra.mxu1 %v3434_v55  ;;  %v3430_v22 = vld [vmem:[%s4641_s3 + $0x84] ss:$8 sps:$4 sm:$0xff]   ;;  %v346_v50 = vrot.slane %v4531_v44, %v345_v45 }
 0x109   :  { %v1719_v28 = vpop.f32.mrf.mxu1  ;;  %2416 = vmatprep.subr.bf16.mxu1 %v3439_v57  ;;  %v1674_v36 = vadd.f32 %v4364_v61, %v342_v23  ;;  %v3475_v57 = vld [vmem:[%s4641_s3 + $0x194] ss:$8 sps:$4 sm:$0xff]  }
 0x10a   :  { %v1676_v28 = vadd.f32 %v4373_v48, %v346_v50 }
 0x10b   :  { %2376 = vmatpush1.bf16.msra.mxu0 %v3389_v35  ;;  %v3428_v35 = vld [vmem:[%s4641_s3 + $0x80] ss:$8 sps:$4 sm:$0xff]   ;;  %v1715_v51 = vadd.f32 %v4366_v3, %v1674_v36  ;;  %v3473_v3 = vld [vmem:[%s4641_s3 + $0x190] ss:$8 sps:$4 sm:$0xff]  }
 0x10c   :  { %2377 = vmatprep.subr.bf16.mxu0 %v3394_v29  ;;  %2417 = vmatpush1.bf16.msra.mxu1 %v3437_v59  ;;  %v3472_v29 = vld [vmem:[%s4641_s3 + $0x1a4] ss:$8 sps:$4 sm:$0xff]   ;;  %v1717_v55 = vadd.f32 %v4375_v49, %v1676_v28 }
 0x10d   :  { %2418 = vmatprep.subr.bf16.mxu1 %v3442_v62 }
 0x10f   :  { %2378 = vmatpush1.bf16.msra.mxu0 %v3392_v54 }
 0x110   :  { %2379 = vmatprep.subr.bf16.mxu0 %v3397_v56  ;;  %2419 = vmatpush1.bf16.msra.mxu1 %v3440_v0 }
 0x111   :  { %2420 = vmatprep.subr.bf16.mxu1 %v3445_v2  ;;  %v3478_v2 = vld [vmem:[%s4641_s3 + $0x184] ss:$8 sps:$4 sm:$0xff]  }
 0x113   :  { %2380 = vmatpush1.bf16.msra.mxu0 %v3395_v58 }
 0x114   :  { %2381 = vmatprep.subr.bf16.mxu0 %v3400_v60  ;;  %2421 = vmatpush1.bf16.msra.mxu1 %v3443_v5  ;;  %v3476_v5 = vld [vmem:[%s4641_s3 + $0x180] ss:$8 sps:$4 sm:$0xff]  }
 0x115   :  { %2422 = vmatprep.subr.bf16.mxu1 %v3448_v7 }
 0x117   :  { %2382 = vmatpush1.bf16.msra.mxu0 %v3398_v63 }
 0x118   :  { %2383 = vmatprep.subr.bf16.mxu0 %v3403_v1  ;;  %2423 = vmatpush1.bf16.msra.mxu1 %v3446_v9 }
 0x119   :  { %2424 = vmatprep.subr.bf16.mxu1 %v3451_v11 }
 0x11b   :  { %2384 = vmatpush1.bf16.msra.mxu0 %v3401_v4 }
 0x11c   :  { %2385 = vmatprep.subr.bf16.mxu0 %v3406_v6  ;;  %2425 = vmatpush1.bf16.msra.mxu1 %v3449_v13 }
 0x11d   :  { %2426 = vmatprep.subr.bf16.mxu1 %v3454_v17 }
 0x11f   :  { %2386 = vmatpush1.bf16.msra.mxu0 %v3404_v8 }
 0x120   :  { %2387 = vmatprep.subr.bf16.mxu0 %v3409_v10  ;;  %2427 = vmatpush1.bf16.msra.mxu1 %v3452_v19  ;;  %v3480_v19 = vld [vmem:[%s4643_s5 + $0x38] sm:$0xff]  }
 0x121   :  { %2428 = vmatprep.subr.bf16.mxu1 %v3457_v21  ;;  %v3482_v21 = vld [vmem:[%s4643_s5 + $0x30] sm:$0xff]  }
 0x123   :  { %2388 = vmatpush2.bf16.msra.mxu0 %v3407_v12 }
 0x124   :  { %2389 = vmatprep.subr.bf16.mxu0 %v3412_v16  ;;  %2429 = vmatpush2.bf16.msra.mxu1 %v3455_v25  ;;  %v3484_v25 = vld [vmem:[%s4643_s5 + $0x28] sm:$0xff]  }
 0x125   :  { %2430 = vmatprep.subr.bf16.mxu1 %v3460_v27  ;;  %v3486_v27 = vld [vmem:[%s4643_s5 + $0x20] sm:$0xff]  }
 0x127   :  { %2390 = vmatpush2.bf16.msra.mxu0 %v3410_v18  ;;  %v3479_v18 = vld [vmem:[%s4643_s5 + $0x78] sm:$0xff]  }
 0x128   :  { %2391 = vmatprep.subr.bf16.mxu0 %v3415_v20  ;;  %2431 = vmatpush2.bf16.msra.mxu1 %v3458_v31  ;;  %v3481_v20 = vld [vmem:[%s4643_s5 + $0x70] sm:$0xff]   ;;  %v3488_v31 = vld [vmem:[%s4643_s5 + $0x18] sm:$0xff]  }
 0x129   :  { %2432 = vmatprep.subr.bf16.mxu1 %v3463_v33  ;;  %v3490_v33 = vld [vmem:[%s4643_s5 + $0x10] sm:$0xff]  }
 0x12b   :  { %2392 = vmatpush2.bf16.msra.mxu0 %v3413_v24  ;;  %v3483_v24 = vld [vmem:[%s4643_s5 + $0x68] sm:$0xff]  }
 0x12c   :  { %2393 = vmatprep.subr.bf16.mxu0 %v3418_v26  ;;  %2433 = vmatpush2.bf16.msra.mxu1 %v3461_v37  ;;  %v3485_v26 = vld [vmem:[%s4643_s5 + $0x60] sm:$0xff]   ;;  %v353_v37 = vsub.s32 3, %v3653_v43 }
 0x12d   :  { %2434 = vmatprep.subr.bf16.mxu1 %v3466_v14 }
 0x12e   :  { %v354_v14 = vrot.slane %v4531_v44, %v353_v37 }
 0x12f   :  { %2394 = vmatpush2.bf16.msra.mxu0 %v3416_v30  ;;  %v3487_v30 = vld [vmem:[%s4643_s5 + $0x58] sm:$0xff]  }
 0x130   :  { %2395 = vmatprep.subr.bf16.mxu0 %v3421_v32  ;;  %2435 = vmatpush2.bf16.msra.mxu1 %v3464_v39  ;;  %v3489_v32 = vld [vmem:[%s4643_s5 + $0x50] sm:$0xff]  }
 0x131   :  { %2436 = vmatprep.subr.bf16.mxu1 %v3469_v41 }
 0x133   :  { %2396 = vmatpush2.bf16.msra.mxu0 %v3419_v34  ;;  %v349_v34 = vsub.s32 2, %v3653_v43  ;;  %v2957_v43 = vld [vmem:[%s4645_s6] ss:$0 sm:$0xff] }
 0x134   :  { %2397 = vmatprep.subr.bf16.mxu0 %v3424_v38  ;;  %2437 = vmatpush2.bf16.msra.mxu1 %v3467_v47 }
 0x135   :  { %2438 = vmatprep.subr.bf16.mxu1 %v3472_v29  ;;  %v350_v38 = vrot.slane %v4531_v44, %v349_v34 }
 0x137   :  { %2398 = vmatpush2.bf16.msra.mxu0 %v3422_v15 }
 0x138   :  { %2399 = vmatprep.subr.bf16.mxu0 %v3427_v40  ;;  %2439 = vmatpush2.bf16.msra.mxu1 %v3470_v52 }
 0x139   :  { %2440 = vmatprep.subr.bf16.mxu1 %v3475_v57  ;;  %v3492_v57 = vld [vmem:[%s4643_s5 + $0x8] sm:$0xff]  }
 0x13b   :  { %2400 = vmatpush2.bf16.msra.mxu0 %v3425_v46 }
 0x13c   :  { %2401 = vmatprep.subr.bf16.mxu0 %v3430_v22  ;;  %2441 = vmatpush2.bf16.msra.mxu1 %v3473_v3  ;;  %v3493_v3 = vld [vmem:[%s4643_s5 + $0x40] sm:$0xff]  }
 0x13d   :  { %2442 = vmatprep.subr.bf16.mxu1 %v3478_v2 }
 0x13f   :  { %2402 = vmatpush2.bf16.msra.mxu0 %v3428_v35 }
 0x140   :  { %2443 = vmatpush2.bf16.msra.mxu1 %v3476_v5  ;;  %2974 = vmatprep.subr.bf16.mxu0 %v3479_v18 }
 0x142   :  { %v1755_v53 = vpop.f32.mrf.mxu0 }
 0x143   :  { %v1796_v54 = vpop.f32.mrf.mxu1  ;;  %v1756_v56 = vadd.f32 %v1755_v53, %v1715_v51 }
 0x144   :  { %v1757_v61 = vpop.f32.mrf.mxu0 }
 0x145   :  { %v1798_v48 = vpop.f32.mrf.mxu1  ;;  %v1797_v58 = vadd.f32 %v1796_v54, %v1756_v56  ;;  %v1758_v59 = vadd.f32 %v1757_v61, %v1717_v55 }
 0x146   :  { %v1759_v60 = vpop.f32.mrf.mxu0 }
 0x147   :  { %v1800_v62 = vpop.f32.mrf.mxu1  ;;  %v1799_v63 = vadd.f32 %v1798_v48, %v1758_v59  ;;  %v1967_v49 = vmax.f32 %v1797_v58, 0.0  ;;  %v3491_v48 = vld [vmem:[%s4643_s5 + $0x48] sm:$0xff]   ;;  %v3494_v60 = vld [vmem:[%s4643_s5] sm:$0xff]  }
 0x148   :  { %v1760_v0 = vpop.f32.mrf.mxu0 }
 0x149   :  { %v1801_v1 = vpop.f32.mrf.mxu1  ;;  %v1968_v4 = vmax.f32 %v1799_v63, 0.0  ;;  %v1971_v7 = vpack.c.bf16 %v1967_v49, %v1967_v49  ;;  %v2039_v63 = vld [vmem:[%s4644_s4] sm:$0x3] }
 0x14a   :  { %v2044_v49 = vrot.slane %v2039_v63, %v341_v42  ;;  %v2048_v0 = vrot.slane %v2039_v63, %v345_v45 }
 0x14b   :  { %v1972_v6 = vpack.c.bf16 %v1968_v4, %v1968_v4 }
 0x14d   :  { %2403 = vmatprep.mubr.bf16.mxu0 %v1972_v6 }
 0x14e   :  { %2404 = vmatmul.mubr.bf16.vlgmr.msra.gmra.mxu0 %v1971_v7 }
 0x14f   :  { %2975 = vmatpush3.bf16.msra.mxu0 %v3480_v19 }
 0x150   :  { %2976 = vmatprep.subr.bf16.mxu0 %v3481_v20 }
 0x153   :  { %2977 = vmatpush3.bf16.msra.mxu0 %v3482_v21 }
 0x154   :  { %2978 = vmatprep.subr.bf16.mxu0 %v3483_v24 }
 0x157   :  { %2979 = vmatpush3.bf16.msra.mxu0 %v3484_v25 }
 0x158   :  { %2980 = vmatprep.subr.bf16.mxu0 %v3485_v26 }
 0x15b   :  { %2981 = vmatpush3.bf16.msra.mxu0 %v3486_v27 }
 0x15c   :  { %2982 = vmatprep.subr.bf16.mxu0 %v3487_v30 }
 0x15f   :  { %2983 = vmatpush3.bf16.msra.mxu0 %v3488_v31 }
 0x160   :  { %2984 = vmatprep.subr.bf16.mxu0 %v3489_v32 }
 0x163   :  { %2985 = vmatpush3.bf16.msra.mxu0 %v3490_v33 }
 0x164   :  { %2986 = vmatprep.subr.bf16.mxu0 %v3491_v48 }
 0x167   :  { %2987 = vmatpush3.bf16.msra.mxu0 %v3492_v57 }
 0x168   :  { %2988 = vmatprep.subr.bf16.mxu0 %v3493_v3 }
 0x16b   :  { %2989 = vmatpush3.bf16.msra.mxu0 %v3494_v60 }
 0x182   :  { %v1837_v8 = vpop.f32.mrf.mxu0 }
 0x183   :  { %v1878_v9 = vpop.f32.mrf.mxu1  ;;  %v1838_v15 = vadd.f32 %v1837_v8, %v350_v38 }
 0x184   :  { %v1839_v10 = vpop.f32.mrf.mxu0 }
 0x185   :  { %v1880_v11 = vpop.f32.mrf.mxu1  ;;  %v1840_v39 = vadd.f32 %v1839_v10, %v354_v14  ;;  %v1879_v40 = vadd.f32 %v1878_v9, %v1838_v15 }
 0x186   :  { %v1841_v12 = vpop.f32.mrf.mxu0 }
 0x187   :  { %v1882_v13 = vpop.f32.mrf.mxu1  ;;  %v1881_v47 = vadd.f32 %v1880_v11, %v1840_v39 }
 0x188   :  { %v1842_v16 = vpop.f32.mrf.mxu0 }
 0x189   :  { %v1883_v17 = vpop.f32.mrf.mxu1 }
 0x1c2   :  { %v1919_v41 = vpop.f32.mrf.mxu0 }
 0x1c3   :  { %v1960_v46 = vpop.f32.mrf.mxu1  ;;  %v1920_v22 = vadd.f32 %v1919_v41, %v1879_v40 }
 0x1c4   :  { %v1921_v23 = vpop.f32.mrf.mxu0 }
 0x1c5   :  { %v1962_v50 = vpop.f32.mrf.mxu1  ;;  %v1961_v35 = vadd.f32 %v1960_v46, %v1920_v22  ;;  %v1922_v36 = vadd.f32 %v1921_v23, %v1881_v47 }
 0x1c6   :  { %v1923_v28 = vpop.f32.mrf.mxu0 }
 0x1c7   :  { %v1964_v29 = vpop.f32.mrf.mxu1  ;;  %v1963_v51 = vadd.f32 %v1962_v50, %v1922_v36  ;;  %v1969_v52 = vmax.f32 %v1961_v35, 0.0 }
 0x1c8   :  { %v1924_v53 = vpop.f32.mrf.mxu0 }
 0x1c9   :  { %v1965_v54 = vpop.f32.mrf.mxu1  ;;  %v1970_v55 = vmax.f32 %v1963_v51, 0.0  ;;  %v1973_v44 = vpack.c.bf16 %v1969_v52, %v1969_v52 }
 0x1cb   :  { %v1974_v56 = vpack.c.bf16 %v1970_v55, %v1970_v55 }
 0x1cd   :  { %2444 = vmatprep.mubr.bf16.mxu1 %v1974_v56 }
 0x1ce   :  { %2445 = vmatmul.mubr.bf16.vlgmr.msra.gmra.mxu1 %v1973_v44 }
 0x20e   :  { %v2405_v61 = vpop.f32.mrf.mxu0 }
 0x20f   :  { %v2406_v1 = vadd.f32 %v2405_v61, %v2044_v49 }
 0x210   :  { %v2407_v58 = vpop.f32.mrf.mxu0 }
 0x211   :  { %v2408_v4 = vadd.f32 %v2407_v58, %v2048_v0 }
 0x212   :  { %v2409_v59 = vpop.f32.mrf.mxu0 }
 0x214   :  { %v2410_v62 = vpop.f32.mrf.mxu0 }
 0x28e   :  { %v2446_v2 = vpop.f32.mrf.mxu1 }
 0x28f   :  { %v2447_v5 = vadd.f32 %v2446_v2, %v2406_v1 }
 0x290   :  { %v2448_v6 = vpop.f32.mrf.mxu1 }
 0x291   :  { %v2449_v7 = vadd.f32 %v2448_v6, %v2408_v4  ;;  %v2453_v8 = vmax.f32 %v2447_v5, 0.0 }
 0x292   :  { %v2450_v9 = vpop.f32.mrf.mxu1 }
 0x293   :  { %v2454_v10 = vmax.f32 %v2449_v7, 0.0  ;;  %v2455_v13 = vpack.c.bf16 %v2453_v8, %v2453_v8 }
 0x294   :  { %v2451_v11 = vpop.f32.mrf.mxu1 }
 0x295   :  { %v2456_v12 = vpack.c.bf16 %v2454_v10, %v2454_v10 }
 0x297   :  { %2624 = vmatprep.mubr.bf16.mxu0 %v2456_v12 }
 0x298   :  { %2625 = vmatmul.mubr.bf16.vlgmr.msra.gmra.mxu0 %v2455_v13 }
 0x358   :  { %v2990_v16 = vpop.f32.mrf.mxu0 }
 0x35a   :  { %v2991_v42 = vpop.f32.mrf.mxu0 }
 0x35b   :  { %v2992_v45 = vadd.f32 %v2991_v42, %v2990_v16 }
 0x35c   :  { %v2993_v17 = vpop.f32.mrf.mxu0 }
 0x35d   :  { %v2627_v18 = vadd.f32 %v2992_v45, %v2957_v43 }
 0x35e   :  { %v2994_v19 = vpop.f32.mrf.mxu0 }
 0x35f   :  { %2632 = vst [vmem:[%s4646_s7] sm:$0x3] %v2627_v18 }

// kernel: tnet_forward.4
= control target key start
LH: loop header
LB: loop body
LE: loop exit
PB: predicated region body
PF: predicated region fallthrough
CT: control target
= control target key end

     0   :  { %12 = vsyncpa [#allocation3], 0  ;;  %s651_s21 = smov [#allocation2]   ;;  %s907_s0 = inlined_call_operand.vmem [shape: bf16[128,64], index: 0, kind: input, shape index: {}]   ;;  %s908_s1 = inlined_call_operand.vmem [shape: f32[1,64], index: 1, kind: input, shape index: {}]   ;;  %s909_s2 = inlined_call_operand.vmem [shape: f32[1,64], index: 2, kind: input, shape index: {}]   ;;  %s910_s3 = inlined_call_operand.vmem [shape: bf16[64,64], index: 3, kind: input, shape index: {}]   ;;  %s911_s4 = inlined_call_operand.hbm [shape: f32[1,64], index: 4, kind: input, shape index: {}]   ;;  %s912_s5 = inlined_call_operand.vmem [shape: bf16[128,64], index: 5, kind: output, shape index: {0}]   ;;  %s913_s6 = inlined_call_operand.vmem [shape: f32[2,64], index: 6, kind: output, shape index: {1}]  }
   0x1   :  { %s27_s22 = sshll.u32 %s651_s21, 4  ;;  %s28_s22 = int_to_ptr.vmem [resolvable:$true] %s27_s22 }
   0x2   :  { %s637_s23 = scalar_lea.vmem %s28_s22, 16  ;;  %s641_s24 = scalar_lea.vmem %s28_s22, 32 }
   0x3   :  { %p638_p0 = scmp.ne.s32.totalorder %s28_s22, %s637_s23  ;;  %p642_p1 = scmp.lt.s32.totalorder %s28_s22, %s28_s22 }
   0x4   :  { %p643_p2 = scmp.lt.s32.totalorder %s641_s24, %s637_s23 }
   0x6   :  { %p644_p3 = por %p643_p2, %p642_p1 }
   0x8   :  { %p645_p4 = pnand %p644_p3, %p638_p0 }
   0xa   :  { %648 = shalt.err (!%p645_p4)
}
   0xb   :  { %30 = dma.hbm_to_vmem [thread:$0]  %s911_s4, 16, %s28_s22, [#allocation3]  }
   0xc   :  { %649 = dma.done.wait [#allocation3], 16  }
   0xd   :  { %650 = vsyncadd [#allocation3], 4294967280  ;;  %v625_v0 = vld [vmem:[%s910_s3 + $0x18] sm:$0xff]   ;;  %v626_v1 = vld [vmem:[%s910_s3 + $0x10] sm:$0xff]   ;;  %vm176_vm0 = vcmask 523264   ;;  %vm362_vm1 = vcmask 519168  }
   0xe   :  { %592 = vmatprep.subr.bf16.mxu0 %v625_v0  ;;  %616 = vmatprep.subr.bf16.mxu1 %v625_v0  ;;  %v627_v2 = vld [vmem:[%s910_s3 + $0x8] sm:$0xff]   ;;  %v542_v3 = vld [vmem:[%s907_s0] sm:$0xff]   ;;  %v574_v8 = vld [vmem:[%s907_s0 + $0x10] sm:$0xff]   ;;  %vm469_vm2 = vcmask 1040384   ;;  %vm475_vm3 = vcmask 517120  }
   0xf   :  { %593 = vmatpush3.bf16.msra.mxu0 %v625_v0  ;;  %620 = vmatpush3.bf16.msra.mxu1 %v625_v0  ;;  %v705_v4 = vld [vmem:[%s908_s1] ss:$0 sm:$0xff]  ;;  %v543_v5 = vunpack.c.l.bf16 %v542_v3  ;;  %v544_v6 = vunpack.c.h.bf16 %v542_v3  ;;  %v573_v7 = vld [vmem:[%s907_s0 + $0x8] sm:$0xff]   ;;  %v575_v9 = vld [vmem:[%s907_s0 + $0x18] sm:$0xff]   ;;  %v551_v13 = vunpack.c.l.bf16 %v574_v8  ;;  %v552_v14 = vunpack.c.h.bf16 %v574_v8 }
  0x10   :  { %594 = vmatprep.subr.bf16.mxu0 %v626_v1  ;;  %617 = vmatprep.subr.bf16.mxu1 %v626_v1  ;;  %v719_v10 = vld [vmem:[%s909_s2] ss:$0 sm:$0xff]  ;;  %v547_v11 = vunpack.c.l.bf16 %v573_v7  ;;  %v548_v12 = vunpack.c.h.bf16 %v573_v7  ;;  %v555_v18 = vunpack.c.l.bf16 %v575_v9  ;;  %v556_v19 = vunpack.c.h.bf16 %v575_v9  ;;  %v577_v37 = vld [vmem:[%s907_s0 + $0x28] sm:$0xff]   ;;  %v578_v42 = vld [vmem:[%s907_s0 + $0x30] sm:$0xff]  }
  0x11   :  { %v576_v15 = vld [vmem:[%s907_s0 + $0x20] sm:$0xff]   ;;  %v74_v16 = vmul.f32 %v543_v5, %v705_v4  ;;  %v75_v17 = vmul.f32 %v544_v6, %v705_v4  ;;  %v78_v23 = vmul.f32 %v551_v13, %v705_v4  ;;  %v79_v27 = vmul.f32 %v552_v14, %v705_v4  ;;  %v579_v50 = vld [vmem:[%s907_s0 + $0x38] sm:$0xff]  }
  0x12   :  { %v628_v20 = vld [vmem:[%s910_s3] sm:$0xff]   ;;  %v76_v21 = vmul.f32 %v547_v11, %v705_v4  ;;  %v77_v22 = vmul.f32 %v548_v12, %v705_v4  ;;  %v559_v24 = vunpack.c.l.bf16 %v576_v15  ;;  %v80_v28 = vmul.f32 %v555_v18, %v705_v4 }
  0x13   :  { %595 = vmatpush3.bf16.msra.mxu0 %v626_v1  ;;  %621 = vmatpush3.bf16.msra.mxu1 %v626_v1  ;;  %v97_v25 = vadd.f32 %v719_v10, %v74_v16  ;;  %v98_v26 = vadd.f32 %v719_v10, %v75_v17  ;;  %v101_v31 = vadd.f32 %v719_v10, %v78_v23  ;;  %v560_v45 = vunpack.c.h.bf16 %v576_v15  ;;  %v776_v23 = vld [vmem:[#allocation2] ss:$0 sm:$0xff] }
  0x14   :  { %596 = vmatprep.subr.bf16.mxu0 %v627_v2  ;;  %618 = vmatprep.subr.bf16.mxu1 %v627_v2  ;;  %v99_v29 = vadd.f32 %v719_v10, %v76_v21  ;;  %v100_v30 = vadd.f32 %v719_v10, %v77_v22  ;;  %v81_v32 = vmul.f32 %v556_v19, %v705_v4  ;;  %v563_v49 = vunpack.c.l.bf16 %v577_v37 }
  0x15   :  { %v113_v33 = vmax.f32 %v97_v25, 0.0  ;;  %v114_v34 = vmax.f32 %v98_v26, 0.0  ;;  %v102_v35 = vadd.f32 %v719_v10, %v79_v27  ;;  %v103_v36 = vadd.f32 %v719_v10, %v80_v28 }
  0x16   :  { %v115_v38 = vmax.f32 %v99_v29, 0.0  ;;  %v116_v39 = vmax.f32 %v100_v30, 0.0  ;;  %v117_v40 = vmax.f32 %v101_v31, 0.0  ;;  %v104_v41 = vadd.f32 %v719_v10, %v81_v32 }
  0x17   :  { %597 = vmatpush3.bf16.msra.mxu0 %v627_v2  ;;  %622 = vmatpush3.bf16.msra.mxu1 %v627_v2  ;;  %v129_v43 = vpack.c.bf16 %v114_v34, %v113_v33  ;;  %v118_v44 = vmax.f32 %v102_v35, 0.0  ;;  %v119_v47 = vmax.f32 %v103_v36, 0.0  ;;  %v82_v48 = vmul.f32 %v559_v24, %v705_v4 }
  0x18   :  { %598 = vmatprep.subr.bf16.mxu0 %v628_v20  ;;  %619 = vmatprep.subr.bf16.mxu1 %v628_v20  ;;  %v130_v46 = vpack.c.bf16 %v116_v39, %v115_v38  ;;  %v83_v52 = vmul.f32 %v560_v45, %v705_v4  ;;  %v564_v53 = vunpack.c.h.bf16 %v577_v37  ;;  %v567_v54 = vunpack.c.l.bf16 %v578_v42 }
  0x19   :  { %600 = vmatprep.mubr.msk.bf16.mxu0 %vm176_vm0, %v129_v43  ;;  %v131_v51 = vpack.c.bf16 %v118_v44, %v117_v40  ;;  %v120_v55 = vmax.f32 %v104_v41, 0.0  ;;  %v105_v56 = vadd.f32 %v719_v10, %v82_v48  ;;  %v84_v57 = vmul.f32 %v563_v49, %v705_v4 }
  0x1a   :  { %v568_v58 = vunpack.c.h.bf16 %v578_v42  ;;  %v106_v59 = vadd.f32 %v719_v10, %v83_v52  ;;  %v85_v60 = vmul.f32 %v564_v53, %v705_v4  ;;  %v86_v61 = vmul.f32 %v567_v54, %v705_v4 }
  0x1b   :  { %599 = vmatpush3.bf16.msra.mxu0 %v628_v20  ;;  %623 = vmatpush3.bf16.msra.mxu1 %v628_v20  ;;  %v571_v62 = vunpack.c.l.bf16 %v579_v50  ;;  %v121_v63 = vmax.f32 %v105_v56, 0.0  ;;  %v107_v0 = vadd.f32 %v719_v10, %v84_v57  ;;  %v572_v2 = vunpack.c.h.bf16 %v579_v50 }
  0x1c   :  { %v87_v1 = vmul.f32 %v568_v58, %v705_v4  ;;  %v122_v3 = vmax.f32 %v106_v59, 0.0  ;;  %v108_v5 = vadd.f32 %v719_v10, %v85_v60  ;;  %v109_v6 = vadd.f32 %v719_v10, %v86_v61 }
  0x1d   :  { %v88_v7 = vmul.f32 %v571_v62, %v705_v4  ;;  %v123_v8 = vmax.f32 %v107_v0, 0.0  ;;  %v89_v11 = vmul.f32 %v572_v2, %v705_v4  ;;  %v132_v16 = vpack.c.bf16 %v120_v55, %v119_v47 }
  0x1e   :  { %601 = vmatmul.mubr.msk.bf16.vlgmr.msra.gmra.mxu0 %vm176_vm0, %v130_v46  ;;  %v110_v9 = vadd.f32 %v719_v10, %v87_v1  ;;  %v133_v12 = vpack.c.bf16 %v122_v3, %v121_v63  ;;  %v124_v13 = vmax.f32 %v108_v5, 0.0  ;;  %v125_v14 = vmax.f32 %v109_v6, 0.0 }
  0x1f   :  { %604 = vmatprep.mubr.msk.bf16.mxu0 %vm176_vm0, %v131_v51  ;;  %v111_v15 = vadd.f32 %v719_v10, %v88_v7  ;;  %v112_v18 = vadd.f32 %v719_v10, %v89_v11 }
  0x20   :  { %v126_v17 = vmax.f32 %v110_v9, 0.0  ;;  %608 = vmatprep.mubr.msk.bf16.mxu1 %vm176_vm0, %v133_v12  ;;  %v134_v19 = vpack.c.bf16 %v124_v13, %v123_v8 }
  0x21   :  { %v127_v21 = vmax.f32 %v111_v15, 0.0  ;;  %v128_v22 = vmax.f32 %v112_v18, 0.0 }
  0x22   :  { %v135_v20 = vpack.c.bf16 %v126_v17, %v125_v14  ;;  %609 = vmatmul.mubr.msk.bf16.vlgmr.msra.gmra.mxu1 %vm176_vm0, %v134_v19 }
  0x23   :  { %v136_v4 = vpack.c.bf16 %v128_v22, %v127_v21 }
  0x24   :  { %612 = vmatprep.mubr.msk.bf16.mxu1 %vm176_vm0, %v135_v20 }
  0x26   :  { %605 = vmatmul.mubr.msk.bf16.gmra.mxu0 %vm176_vm0, %v132_v16 }
  0x2a   :  { %613 = vmatmul.mubr.msk.bf16.gmra.mxu1 %vm176_vm0, %v136_v4 }
  0xde   :  { %v602_v24 = vpop.f32.mrf.mxu0 }
  0xdf   :  { %v244_v10 = vadd.f32 %v602_v24, %v776_v23 }
  0xe0   :  { %v235_v25 = vpop.f32.mrf.mxu0 }
  0xe1   :  { %v527_v26 = vpack.c.bf16 %v244_v10, %v244_v10  ;;  %v236_v27 = vadd.f32 %v776_v23, %v235_v25  ;;  %v418_v35 = vmul.f32 %v244_v10, %v244_v10  ;;  %v382_v45 = vsel %vm176_vm0, %v244_v10, 0.0 }
  0xe2   :  { %v603_v28 = vpop.f32.mrf.mxu0  ;;  %v610_v34 = vpop.f32.mrf.mxu1 }
  0xe3   :  { %365 = vst.msk [vmem:[%s912_s5 + $0x8] sm:$0xf] %vm362_vm1, %v527_v26  ;;  %v525_v29 = vpack.c.bf16 %v236_v27, %v236_v27  ;;  %v247_v30 = vadd.f32 %v603_v28, %v776_v23  ;;  %v416_v32 = vmul.f32 %v236_v27, %v236_v27  ;;  %v379_v36 = vsel %vm176_vm0, %v236_v27, 0.0 }
  0xe4   :  { %v238_v31 = vpop.f32.mrf.mxu0  ;;  %v792_v39 = vadd.f32 %v610_v34, %v776_v23  ;;  %v267_v44 = vpop.f32.mrf.mxu1  ;;  %v435_v58 = vsel %vm176_vm0, %v418_v35, 0.0 }
  0xe5   :  { %363 = vst.msk [vmem:[%s912_s5] sm:$0xf] %vm362_vm1, %v525_v29  ;;  %v239_v33 = vadd.f32 %v776_v23, %v238_v31  ;;  %v528_v37 = vpack.c.bf16 %v247_v30, %v247_v30  ;;  %v432_v49 = vsel %vm176_vm0, %v416_v32, 0.0  ;;  %v419_v50 = vmul.f32 %v247_v30, %v247_v30 }
  0xe6   :  { %v606_v38 = vpop.f32.mrf.mxu0  ;;  %v535_v48 = vpack.c.bf16 %v792_v39, %v792_v39  ;;  %v611_v53 = vpop.f32.mrf.mxu1  ;;  %v384_v59 = vsel %vm176_vm0, %v247_v30, 0.0  ;;  %v268_v61 = vadd.f32 %v776_v23, %v267_v44 }
  0xe7   :  { %v526_v40 = vpack.c.bf16 %v239_v33, %v239_v33  ;;  %v380_v41 = vsel %vm176_vm0, %v239_v33, 0.0  ;;  %v417_v42 = vmul.f32 %v239_v33, %v239_v33  ;;  %v260_v43 = vadd.f32 %v606_v38, %v776_v23  ;;  %366 = vst.msk [vmem:[%s912_s5 + $0xc] sm:$0xf] %vm362_vm1, %v528_v37 }
  0xe8   :  { %v381_v46 = vadd.f32 %v380_v41, %v379_v36  ;;  %v251_v47 = vpop.f32.mrf.mxu0  ;;  %373 = vst.msk [vmem:[%s912_s5 + $0x28] sm:$0xf] %vm362_vm1, %v535_v48  ;;  %v270_v62 = vpop.f32.mrf.mxu1  ;;  %v823_v3 = vadd.f32 %v611_v53, %v776_v23  ;;  %v437_v5 = vsel %vm176_vm0, %v419_v50, 0.0  ;;  %v533_v13 = vpack.c.bf16 %v268_v61, %v268_v61 }
  0xe9   :  { %364 = vst.msk [vmem:[%s912_s5 + $0x4] sm:$0xf] %vm362_vm1, %v526_v40  ;;  %v433_v51 = vsel %vm176_vm0, %v417_v42, 0.0  ;;  %v531_v52 = vpack.c.bf16 %v260_v43, %v260_v43  ;;  %v252_v56 = vadd.f32 %v776_v23, %v251_v47  ;;  %v422_v19 = vmul.f32 %v260_v43, %v260_v43 }
  0xea   :  { %v383_v54 = vadd.f32 %v382_v45, %v381_v46  ;;  %v434_v55 = vadd.f32 %v433_v51, %v432_v49  ;;  %v607_v57 = vpop.f32.mrf.mxu0  ;;  %v614_v9 = vpop.f32.mrf.mxu1  ;;  %371 = vst.msk [vmem:[%s912_s5 + $0x20] sm:$0xf] %vm362_vm1, %v533_v13  ;;  %v536_v18 = vpack.c.bf16 %v823_v3, %v823_v3  ;;  %v390_v4 = vsel %vm176_vm0, %v260_v43, 0.0 }
  0xeb   :  { %369 = vst.msk [vmem:[%s912_s5 + $0x18] sm:$0xf] %vm362_vm1, %v531_v52  ;;  %v263_v60 = vadd.f32 %v607_v57, %v776_v23  ;;  %v529_v0 = vpack.c.bf16 %v252_v56, %v252_v56  ;;  %v386_v6 = vsel %vm176_vm0, %v252_v56, 0.0  ;;  %v420_v7 = vmul.f32 %v252_v56, %v252_v56 }
  0xec   :  { %v436_v63 = vadd.f32 %v435_v58, %v434_v55  ;;  %v385_v1 = vadd.f32 %v384_v59, %v383_v54  ;;  %v254_v2 = vpop.f32.mrf.mxu0  ;;  %v283_v16 = vpop.f32.mrf.mxu1  ;;  %374 = vst.msk [vmem:[%s912_s5 + $0x2c] sm:$0xf] %vm362_vm1, %v536_v18  ;;  %v271_v10 = vadd.f32 %v776_v23, %v270_v62  ;;  %v292_v25 = vadd.f32 %v614_v9, %v776_v23 }
  0xed   :  { %v532_v8 = vpack.c.bf16 %v263_v60, %v263_v60  ;;  %367 = vst.msk [vmem:[%s912_s5 + $0x10] sm:$0xf] %vm362_vm1, %v529_v0  ;;  %v439_v14 = vsel %vm176_vm0, %v420_v7, 0.0  ;;  %v255_v15 = vadd.f32 %v776_v23, %v254_v2  ;;  %v423_v27 = vmul.f32 %v263_v60, %v263_v60 }
  0xee   :  { %v387_v11 = vadd.f32 %v386_v6, %v385_v1  ;;  %v438_v12 = vadd.f32 %v437_v5, %v436_v63  ;;  %v615_v26 = vpop.f32.mrf.mxu1  ;;  %v284_v29 = vadd.f32 %v776_v23, %v283_v16  ;;  %v534_v33 = vpack.c.bf16 %v271_v10, %v271_v10 }
  0xef   :  { %370 = vst.msk [vmem:[%s912_s5 + $0x1c] sm:$0xf] %vm362_vm1, %v532_v8  ;;  %v530_v20 = vpack.c.bf16 %v255_v15, %v255_v15  ;;  %v388_v21 = vsel %vm176_vm0, %v255_v15, 0.0  ;;  %v421_v22 = vmul.f32 %v255_v15, %v255_v15  ;;  %v295_v30 = vadd.f32 %v615_v26, %v776_v23 }
  0xf0   :  { %v440_v17 = vadd.f32 %v439_v14, %v438_v12  ;;  %v389_v24 = vadd.f32 %v388_v21, %v387_v11  ;;  %v443_v34 = vsel %vm176_vm0, %v422_v19, 0.0  ;;  %v392_v35 = vsel %vm176_vm0, %v263_v60, 0.0  ;;  %372 = vst.msk [vmem:[%s912_s5 + $0x24] sm:$0xf] %vm362_vm1, %v534_v33  ;;  %v286_v42 = vpop.f32.mrf.mxu1 }
  0xf1   :  { %368 = vst.msk [vmem:[%s912_s5 + $0x14] sm:$0xf] %vm362_vm1, %v530_v20  ;;  %v441_v28 = vsel %vm176_vm0, %v421_v22, 0.0  ;;  %v424_v36 = vmul.f32 %v268_v61, %v268_v61  ;;  %v539_v37 = vpack.c.bf16 %v292_v25, %v292_v25  ;;  %v537_v41 = vpack.c.bf16 %v284_v29, %v284_v29 }
  0xf2   :  { %v391_v31 = vadd.f32 %v390_v4, %v389_v24  ;;  %v442_v32 = vadd.f32 %v441_v28, %v440_v17  ;;  %v445_v43 = vsel %vm176_vm0, %v423_v27, 0.0  ;;  %v394_v44 = vsel %vm176_vm0, %v268_v61, 0.0 }
  0xf3   :  { %v425_v45 = vmul.f32 %v271_v10, %v271_v10  ;;  %377 = vst.msk [vmem:[%s912_s5 + $0x38] sm:$0xf] %vm362_vm1, %v539_v37  ;;  %v540_v46 = vpack.c.bf16 %v295_v30, %v295_v30  ;;  %375 = vst.msk [vmem:[%s912_s5 + $0x30] sm:$0xf] %vm362_vm1, %v537_v41  ;;  %v426_v49 = vmul.f32 %v792_v39, %v792_v39  ;;  %v447_v50 = vsel %vm176_vm0, %v424_v36, 0.0 }
  0xf4   :  { %v444_v38 = vadd.f32 %v443_v34, %v442_v32  ;;  %v393_v40 = vadd.f32 %v392_v35, %v391_v31  ;;  %v396_v51 = vsel %vm176_vm0, %v271_v10, 0.0  ;;  %v287_v52 = vadd.f32 %v776_v23, %v286_v42 }
  0xf5   :  { %378 = vst.msk [vmem:[%s912_s5 + $0x3c] sm:$0xf] %vm362_vm1, %v540_v46  ;;  %v398_v55 = vsel %vm176_vm0, %v792_v39, 0.0  ;;  %v427_v56 = vmul.f32 %v823_v3, %v823_v3  ;;  %v449_v57 = vsel %vm176_vm0, %v425_v45, 0.0  ;;  %v451_v61 = vsel %vm176_vm0, %v426_v49, 0.0 }
  0xf6   :  { %v395_v47 = vadd.f32 %v394_v44, %v393_v40  ;;  %v446_v48 = vadd.f32 %v445_v43, %v444_v38  ;;  %v538_v58 = vpack.c.bf16 %v287_v52, %v287_v52  ;;  %v400_v62 = vsel %vm176_vm0, %v823_v3, 0.0 }
  0xf7   :  { %v428_v63 = vmul.f32 %v284_v29, %v284_v29  ;;  %v453_v0 = vsel %vm176_vm0, %v427_v56, 0.0  ;;  %v402_v1 = vsel %vm176_vm0, %v284_v29, 0.0  ;;  %v429_v2 = vmul.f32 %v287_v52, %v287_v52 }
  0xf8   :  { %v397_v53 = vadd.f32 %v396_v51, %v395_v47  ;;  %v448_v54 = vadd.f32 %v447_v50, %v446_v48  ;;  %376 = vst.msk [vmem:[%s912_s5 + $0x34] sm:$0xf] %vm362_vm1, %v538_v58  ;;  %v430_v7 = vmul.f32 %v292_v25, %v292_v25  ;;  %v404_v3 = vsel %vm176_vm0, %v287_v52, 0.0 }
  0xf9   :  { %v455_v8 = vsel %vm176_vm0, %v428_v63, 0.0  ;;  %v406_v12 = vsel %vm176_vm0, %v292_v25, 0.0  ;;  %v431_v13 = vmul.f32 %v295_v30, %v295_v30  ;;  %v457_v14 = vsel %vm176_vm0, %v429_v2, 0.0 }
  0xfa   :  { %v399_v59 = vadd.f32 %v398_v55, %v397_v53  ;;  %v450_v60 = vadd.f32 %v449_v57, %v448_v54  ;;  %v459_v17 = vsel %vm176_vm0, %v430_v7, 0.0  ;;  %v408_v18 = vsel %vm176_vm0, %v295_v30, 0.0 }
  0xfb   :  { %v461_v21 = vsel %vm176_vm0, %v431_v13, 0.0 }
  0xfc   :  { %v452_v23 = vadd.f32 %v451_v61, %v450_v60  ;;  %v401_v39 = vadd.f32 %v400_v62, %v399_v59 }
  0xfe   :  { %v403_v5 = vadd.f32 %v402_v1, %v401_v39  ;;  %v454_v6 = vadd.f32 %v453_v0, %v452_v23 }
 0x100   :  { %v456_v9 = vadd.f32 %v455_v8, %v454_v6  ;;  %v405_v11 = vadd.f32 %v404_v3, %v403_v5 }
 0x102   :  { %v407_v15 = vadd.f32 %v406_v12, %v405_v11  ;;  %v458_v16 = vadd.f32 %v457_v14, %v456_v9 }
 0x104   :  { %v409_v19 = vadd.f32 %v408_v18, %v407_v15  ;;  %v460_v20 = vadd.f32 %v459_v17, %v458_v16 }
 0x106   :  { %v410_v22 = vrot.slane %v409_v19, 4  ;;  %v462_v4 = vadd.f32 %v461_v21, %v460_v20 }
 0x108   :  { %v411_v24 = vadd.f32 %v410_v22, %v409_v19  ;;  %v463_v10 = vrot.slane %v462_v4, 4 }
 0x10a   :  { %v412_v26 = vrot.slane %v411_v24, 2  ;;  %v464_v27 = vadd.f32 %v463_v10, %v462_v4 }
 0x10c   :  { %v413_v25 = vadd.f32 %v412_v26, %v411_v24  ;;  %v465_v28 = vrot.slane %v464_v27, 2 }
 0x10e   :  { %v414_v29 = vrot.slane %v413_v25, 1  ;;  %v466_v31 = vadd.f32 %v465_v28, %v464_v27 }
 0x110   :  { %v467_v32 = vrot.slane %v466_v31, 1  ;;  %v415_v33 = vadd.f32 %v414_v29, %v413_v25 }
 0x112   :  { %v468_v34 = vadd.f32 %v467_v32, %v466_v31 }
 0x114   :  { %v470_v30 = vsel %vm469_vm2, %v415_v33, %v468_v34 }
 0x115   :  { %476 = vst.msk [vmem:[%s913_s6] sm:$0x3] %vm475_vm3, %v470_v30 }
 0x116   :  { %493 = vsyncpa [#allocation3], 1 }

// kernel: tnet_forward.5
= control target key start
LH: loop header
LB: loop body
LE: loop exit
PB: predicated region body
PF: predicated region fallthrough
CT: control target
= control target key end

     0   :  { %12 = vsyncpa [#allocation3], 0  ;;  %s663_s21 = smov [#allocation2]   ;;  %s833_s0 = inlined_call_operand.vmem [shape: bf16[128,64], index: 0, kind: input, shape index: {}]   ;;  %s834_s1 = inlined_call_operand.vmem [shape: f32[1,64], index: 1, kind: input, shape index: {}]   ;;  %s835_s2 = inlined_call_operand.vmem [shape: f32[1,64], index: 2, kind: input, shape index: {}]   ;;  %s836_s3 = inlined_call_operand.vmem [shape: bf16[64,128], index: 3, kind: input, shape index: {}]   ;;  %s837_s4 = inlined_call_operand.hbm [shape: f32[1,128], index: 4, kind: input, shape index: {}]   ;;  %s838_s5 = inlined_call_operand.vmem [shape: bf16[128,128], index: 5, kind: output, shape index: {0}]   ;;  %s839_s6 = inlined_call_operand.vmem [shape: f32[2,128], index: 6, kind: output, shape index: {1}]  }
   0x1   :  { %s27_s22 = sshll.u32 %s663_s21, 4  ;;  %s28_s22 = int_to_ptr.vmem [resolvable:$true] %s27_s22 }
   0x2   :  { %s649_s23 = scalar_lea.vmem %s28_s22, 16  ;;  %s653_s24 = scalar_lea.vmem %s28_s22, 32 }
   0x3   :  { %p650_p0 = scmp.ne.s32.totalorder %s28_s22, %s649_s23  ;;  %p654_p1 = scmp.lt.s32.totalorder %s28_s22, %s28_s22 }
   0x4   :  { %p655_p2 = scmp.lt.s32.totalorder %s653_s24, %s649_s23 }
   0x6   :  { %p656_p3 = por %p655_p2, %p654_p1 }
   0x8   :  { %p657_p4 = pnand %p656_p3, %p650_p0 }
   0xa   :  { %660 = shalt.err (!%p657_p4)
}
   0xb   :  { %30 = dma.hbm_to_vmem [thread:$0]  %s837_s4, 16, %s28_s22, [#allocation3]  }
   0xc   :  { %661 = dma.done.wait [#allocation3], 16  }
   0xd   :  { %662 = vsyncadd [#allocation3], 4294967280  ;;  %v637_v0 = vld [vmem:[%s836_s3 + $0x18] sm:$0xff]   ;;  %v638_v1 = vld [vmem:[%s836_s3 + $0x10] sm:$0xff]   ;;  %vm176_vm0 = vcmask 523264   ;;  %vm436_vm1 = vcmask 1040384  }
   0xe   :  { %604 = vmatprep.subr.bf16.mxu0 %v637_v0  ;;  %628 = vmatprep.subr.bf16.mxu1 %v637_v0  ;;  %v639_v2 = vld [vmem:[%s836_s3 + $0x8] sm:$0xff]   ;;  %v507_v3 = vld [vmem:[%s833_s0] sm:$0xff]   ;;  %v579_v8 = vld [vmem:[%s833_s0 + $0x10] sm:$0xff]  }
   0xf   :  { %605 = vmatpush3.bf16.msra.mxu0 %v637_v0  ;;  %632 = vmatpush3.bf16.msra.mxu1 %v637_v0  ;;  %v717_v4 = vld [vmem:[%s834_s1] ss:$0 sm:$0xff]  ;;  %v508_v5 = vunpack.c.l.bf16 %v507_v3  ;;  %v509_v6 = vunpack.c.h.bf16 %v507_v3  ;;  %v578_v7 = vld [vmem:[%s833_s0 + $0x8] sm:$0xff]   ;;  %v580_v9 = vld [vmem:[%s833_s0 + $0x18] sm:$0xff]   ;;  %v516_v13 = vunpack.c.l.bf16 %v579_v8  ;;  %v517_v14 = vunpack.c.h.bf16 %v579_v8 }
  0x10   :  { %606 = vmatprep.subr.bf16.mxu0 %v638_v1  ;;  %629 = vmatprep.subr.bf16.mxu1 %v638_v1  ;;  %v731_v10 = vld [vmem:[%s835_s2] ss:$0 sm:$0xff]  ;;  %v512_v11 = vunpack.c.l.bf16 %v578_v7  ;;  %v513_v12 = vunpack.c.h.bf16 %v578_v7  ;;  %v520_v18 = vunpack.c.l.bf16 %v580_v9  ;;  %v521_v19 = vunpack.c.h.bf16 %v580_v9  ;;  %v582_v37 = vld [vmem:[%s833_s0 + $0x28] sm:$0xff]   ;;  %v583_v42 = vld [vmem:[%s833_s0 + $0x30] sm:$0xff]  }
  0x11   :  { %v581_v15 = vld [vmem:[%s833_s0 + $0x20] sm:$0xff]   ;;  %v74_v16 = vmul.f32 %v508_v5, %v717_v4  ;;  %v75_v17 = vmul.f32 %v509_v6, %v717_v4  ;;  %v78_v23 = vmul.f32 %v516_v13, %v717_v4  ;;  %v79_v27 = vmul.f32 %v517_v14, %v717_v4  ;;  %v584_v50 = vld [vmem:[%s833_s0 + $0x38] sm:$0xff]  }
  0x12   :  { %v640_v20 = vld [vmem:[%s836_s3] sm:$0xff]   ;;  %v76_v21 = vmul.f32 %v512_v11, %v717_v4  ;;  %v77_v22 = vmul.f32 %v513_v12, %v717_v4  ;;  %v524_v24 = vunpack.c.l.bf16 %v581_v15  ;;  %v80_v28 = vmul.f32 %v520_v18, %v717_v4 }
  0x13   :  { %607 = vmatpush3.bf16.msra.mxu0 %v638_v1  ;;  %633 = vmatpush3.bf16.msra.mxu1 %v638_v1  ;;  %v97_v25 = vadd.f32 %v731_v10, %v74_v16  ;;  %v98_v26 = vadd.f32 %v731_v10, %v75_v17  ;;  %v101_v31 = vadd.f32 %v731_v10, %v78_v23  ;;  %v525_v45 = vunpack.c.h.bf16 %v581_v15 }
  0x14   :  { %608 = vmatprep.subr.bf16.mxu0 %v639_v2  ;;  %630 = vmatprep.subr.bf16.mxu1 %v639_v2  ;;  %v99_v29 = vadd.f32 %v731_v10, %v76_v21  ;;  %v100_v30 = vadd.f32 %v731_v10, %v77_v22  ;;  %v81_v32 = vmul.f32 %v521_v19, %v717_v4  ;;  %v528_v49 = vunpack.c.l.bf16 %v582_v37 }
  0x15   :  { %v113_v33 = vmax.f32 %v97_v25, 0.0  ;;  %v114_v34 = vmax.f32 %v98_v26, 0.0  ;;  %v102_v35 = vadd.f32 %v731_v10, %v79_v27  ;;  %v103_v36 = vadd.f32 %v731_v10, %v80_v28 }
  0x16   :  { %v115_v38 = vmax.f32 %v99_v29, 0.0  ;;  %v116_v39 = vmax.f32 %v100_v30, 0.0  ;;  %v117_v40 = vmax.f32 %v101_v31, 0.0  ;;  %v104_v41 = vadd.f32 %v731_v10, %v81_v32 }
  0x17   :  { %609 = vmatpush3.bf16.msra.mxu0 %v639_v2  ;;  %634 = vmatpush3.bf16.msra.mxu1 %v639_v2  ;;  %v129_v43 = vpack.c.bf16 %v114_v34, %v113_v33  ;;  %v118_v44 = vmax.f32 %v102_v35, 0.0  ;;  %v119_v47 = vmax.f32 %v103_v36, 0.0  ;;  %v82_v48 = vmul.f32 %v524_v24, %v717_v4  ;;  %v788_v24 = vld [vmem:[#allocation2] ss:$0 sm:$0xff] }
  0x18   :  { %610 = vmatprep.subr.bf16.mxu0 %v640_v20  ;;  %631 = vmatprep.subr.bf16.mxu1 %v640_v20  ;;  %v130_v46 = vpack.c.bf16 %v116_v39, %v115_v38  ;;  %v83_v52 = vmul.f32 %v525_v45, %v717_v4  ;;  %v529_v53 = vunpack.c.h.bf16 %v582_v37  ;;  %v532_v54 = vunpack.c.l.bf16 %v583_v42 }
  0x19   :  { %612 = vmatprep.mubr.msk.bf16.mxu0 %vm176_vm0, %v129_v43  ;;  %v131_v51 = vpack.c.bf16 %v118_v44, %v117_v40  ;;  %v120_v55 = vmax.f32 %v104_v41, 0.0  ;;  %v105_v56 = vadd.f32 %v731_v10, %v82_v48  ;;  %v84_v57 = vmul.f32 %v528_v49, %v717_v4 }
  0x1a   :  { %v533_v58 = vunpack.c.h.bf16 %v583_v42  ;;  %v106_v59 = vadd.f32 %v731_v10, %v83_v52  ;;  %v85_v60 = vmul.f32 %v529_v53, %v717_v4  ;;  %v86_v61 = vmul.f32 %v532_v54, %v717_v4 }
  0x1b   :  { %611 = vmatpush3.bf16.msra.mxu0 %v640_v20  ;;  %635 = vmatpush3.bf16.msra.mxu1 %v640_v20  ;;  %v536_v62 = vunpack.c.l.bf16 %v584_v50  ;;  %v121_v63 = vmax.f32 %v105_v56, 0.0  ;;  %v107_v0 = vadd.f32 %v731_v10, %v84_v57  ;;  %v537_v2 = vunpack.c.h.bf16 %v584_v50 }
  0x1c   :  { %v87_v1 = vmul.f32 %v533_v58, %v717_v4  ;;  %v122_v3 = vmax.f32 %v106_v59, 0.0  ;;  %v108_v5 = vadd.f32 %v731_v10, %v85_v60  ;;  %v109_v6 = vadd.f32 %v731_v10, %v86_v61 }
  0x1d   :  { %v88_v7 = vmul.f32 %v536_v62, %v717_v4  ;;  %v123_v8 = vmax.f32 %v107_v0, 0.0  ;;  %v89_v11 = vmul.f32 %v537_v2, %v717_v4  ;;  %v132_v16 = vpack.c.bf16 %v120_v55, %v119_v47 }
  0x1e   :  { %613 = vmatmul.mubr.msk.bf16.vlgmr.msra.gmra.mxu0 %vm176_vm0, %v130_v46  ;;  %v110_v9 = vadd.f32 %v731_v10, %v87_v1  ;;  %v133_v12 = vpack.c.bf16 %v122_v3, %v121_v63  ;;  %v124_v13 = vmax.f32 %v108_v5, 0.0  ;;  %v125_v14 = vmax.f32 %v109_v6, 0.0 }
  0x1f   :  { %616 = vmatprep.mubr.msk.bf16.mxu0 %vm176_vm0, %v131_v51  ;;  %v111_v15 = vadd.f32 %v731_v10, %v88_v7  ;;  %v112_v18 = vadd.f32 %v731_v10, %v89_v11 }
  0x20   :  { %v126_v17 = vmax.f32 %v110_v9, 0.0  ;;  %620 = vmatprep.mubr.msk.bf16.mxu1 %vm176_vm0, %v133_v12  ;;  %v134_v19 = vpack.c.bf16 %v124_v13, %v123_v8 }
  0x21   :  { %v127_v21 = vmax.f32 %v111_v15, 0.0  ;;  %v128_v22 = vmax.f32 %v112_v18, 0.0 }
  0x22   :  { %v135_v20 = vpack.c.bf16 %v126_v17, %v125_v14  ;;  %621 = vmatmul.mubr.msk.bf16.vlgmr.msra.gmra.mxu1 %vm176_vm0, %v134_v19 }
  0x23   :  { %v136_v4 = vpack.c.bf16 %v128_v22, %v127_v21 }
  0x24   :  { %624 = vmatprep.mubr.msk.bf16.mxu1 %vm176_vm0, %v135_v20 }
  0x26   :  { %617 = vmatmul.mubr.msk.bf16.gmra.mxu0 %vm176_vm0, %v132_v16 }
  0x2a   :  { %625 = vmatmul.mubr.msk.bf16.gmra.mxu1 %vm176_vm0, %v136_v4 }
  0xde   :  { %v614_v23 = vpop.f32.mrf.mxu0 }
  0xdf   :  { %v244_v26 = vadd.f32 %v614_v23, %v788_v24 }
  0xe0   :  { %v235_v25 = vpop.f32.mrf.mxu0 }
  0xe1   :  { %v236_v27 = vadd.f32 %v788_v24, %v235_v25  ;;  %v401_v41 = vmul.f32 %v244_v26, %v244_v26 }
  0xe2   :  { %v615_v10 = vpop.f32.mrf.mxu0  ;;  %v622_v32 = vpop.f32.mrf.mxu1 }
  0xe3   :  { %v247_v28 = vadd.f32 %v615_v10, %v788_v24  ;;  %v399_v34 = vmul.f32 %v236_v27, %v236_v27  ;;  %v276_v40 = vadd.f32 %v622_v32, %v788_v24 }
  0xe4   :  { %v238_v29 = vpop.f32.mrf.mxu0  ;;  %v267_v38 = vpop.f32.mrf.mxu1 }
  0xe5   :  { %v546_v30 = vpack.c.bf16 %v247_v28, %v244_v26  ;;  %v239_v31 = vadd.f32 %v788_v24, %v238_v29  ;;  %v402_v46 = vmul.f32 %v247_v28, %v247_v28  ;;  %v268_v48 = vadd.f32 %v788_v24, %v267_v38 }
  0xe6   :  { %v618_v33 = vpop.f32.mrf.mxu0  ;;  %v623_v45 = vpop.f32.mrf.mxu1 }
  0xe7   :  { %585 = vst [vmem:[%s838_s5 + $0x8] sm:$0xff] %v546_v30   ;;  %v541_v35 = vpack.c.bf16 %v239_v31, %v236_v27  ;;  %v378_v36 = vadd.f32 %v239_v31, %v236_v27  ;;  %v400_v37 = vmul.f32 %v239_v31, %v239_v31  ;;  %v279_v49 = vadd.f32 %v623_v45, %v788_v24 }
  0xe8   :  { %v251_v39 = vpop.f32.mrf.mxu0  ;;  %v260_v51 = vadd.f32 %v618_v33, %v788_v24  ;;  %v270_v54 = vpop.f32.mrf.mxu1  ;;  %v407_v21 = vmul.f32 %v268_v48, %v268_v48  ;;  %v409_v27 = vmul.f32 %v276_v40, %v276_v40 }
  0xe9   :  { %542 = vst [vmem:[%s838_s5] sm:$0xff] %v541_v35   ;;  %v379_v42 = vadd.f32 %v378_v36, %v244_v26  ;;  %v415_v43 = vadd.f32 %v400_v37, %v399_v34  ;;  %v252_v44 = vadd.f32 %v788_v24, %v251_v39  ;;  %v566_v56 = vpack.c.bf16 %v279_v49, %v276_v40 }
  0xea   :  { %v619_v47 = vpop.f32.mrf.mxu0  ;;  %v271_v57 = vadd.f32 %v788_v24, %v270_v54  ;;  %v626_v62 = vpop.f32.mrf.mxu1  ;;  %v405_v9 = vmul.f32 %v260_v51, %v260_v51  ;;  %v410_v30 = vmul.f32 %v279_v49, %v279_v49 }
  0xeb   :  { %v416_v50 = vadd.f32 %v415_v43, %v401_v41  ;;  %v380_v52 = vadd.f32 %v379_v42, %v247_v28  ;;  %v263_v53 = vadd.f32 %v619_v47, %v788_v24  ;;  %v403_v59 = vmul.f32 %v252_v44, %v252_v44  ;;  %589 = vst [vmem:[%s838_s5 + $0x28] sm:$0xff] %v566_v56  }
  0xec   :  { %v254_v55 = vpop.f32.mrf.mxu0  ;;  %v561_v0 = vpack.c.bf16 %v271_v57, %v268_v48  ;;  %v283_v2 = vpop.f32.mrf.mxu1  ;;  %v292_v7 = vadd.f32 %v626_v62, %v788_v24  ;;  %v408_v10 = vmul.f32 %v271_v57, %v271_v57 }
  0xed   :  { %v381_v58 = vadd.f32 %v380_v52, %v252_v44  ;;  %v417_v60 = vadd.f32 %v416_v50, %v402_v46  ;;  %v556_v61 = vpack.c.bf16 %v263_v53, %v260_v51  ;;  %v255_v63 = vadd.f32 %v788_v24, %v254_v55 }
  0xee   :  { %588 = vst [vmem:[%s838_s5 + $0x20] sm:$0xff] %v561_v0   ;;  %v627_v8 = vpop.f32.mrf.mxu1  ;;  %v284_v14 = vadd.f32 %v788_v24, %v283_v2  ;;  %v406_v16 = vmul.f32 %v263_v53, %v263_v53  ;;  %v413_v38 = vmul.f32 %v292_v7, %v292_v7 }
  0xef   :  { %v418_v1 = vadd.f32 %v417_v60, %v403_v59  ;;  %587 = vst [vmem:[%s838_s5 + $0x18] sm:$0xff] %v556_v61   ;;  %v551_v3 = vpack.c.bf16 %v255_v63, %v252_v44  ;;  %v382_v5 = vadd.f32 %v381_v58, %v255_v63  ;;  %v404_v6 = vmul.f32 %v255_v63, %v255_v63 }
  0xf0   :  { %v295_v13 = vadd.f32 %v627_v8, %v788_v24  ;;  %v286_v15 = vpop.f32.mrf.mxu1  ;;  %v411_v33 = vmul.f32 %v284_v14, %v284_v14 }
  0xf1   :  { %586 = vst [vmem:[%s838_s5 + $0x10] sm:$0xff] %v551_v3   ;;  %v383_v11 = vadd.f32 %v382_v5, %v260_v51  ;;  %v419_v12 = vadd.f32 %v418_v1, %v404_v6  ;;  %v287_v20 = vadd.f32 %v788_v24, %v286_v15 }
  0xf2   :  { %v576_v19 = vpack.c.bf16 %v295_v13, %v292_v7  ;;  %v414_v42 = vmul.f32 %v295_v13, %v295_v13 }
  0xf3   :  { %v420_v17 = vadd.f32 %v419_v12, %v405_v9  ;;  %v384_v18 = vadd.f32 %v383_v11, %v263_v53  ;;  %v571_v23 = vpack.c.bf16 %v287_v20, %v284_v14  ;;  %v412_v37 = vmul.f32 %v287_v20, %v287_v20 }
  0xf4   :  { %591 = vst [vmem:[%s838_s5 + $0x38] sm:$0xff] %v576_v19  }
  0xf5   :  { %v385_v22 = vadd.f32 %v384_v18, %v268_v48  ;;  %v421_v4 = vadd.f32 %v420_v17, %v406_v16  ;;  %590 = vst [vmem:[%s838_s5 + $0x30] sm:$0xff] %v571_v23  }
  0xf7   :  { %v386_v25 = vadd.f32 %v385_v22, %v271_v57  ;;  %v422_v26 = vadd.f32 %v421_v4, %v407_v21 }
  0xf9   :  { %v387_v28 = vadd.f32 %v386_v25, %v276_v40  ;;  %v423_v29 = vadd.f32 %v422_v26, %v408_v10 }
  0xfb   :  { %v424_v24 = vadd.f32 %v423_v29, %v409_v27  ;;  %v388_v31 = vadd.f32 %v387_v28, %v279_v49 }
  0xfd   :  { %v389_v32 = vadd.f32 %v388_v31, %v284_v14  ;;  %v425_v34 = vadd.f32 %v424_v24, %v410_v30 }
  0xff   :  { %v426_v35 = vadd.f32 %v425_v34, %v411_v33  ;;  %v390_v36 = vadd.f32 %v389_v32, %v287_v20 }
 0x101   :  { %v391_v39 = vadd.f32 %v390_v36, %v292_v7  ;;  %v427_v41 = vadd.f32 %v426_v35, %v412_v37 }
 0x103   :  { %v392_v43 = vadd.f32 %v391_v39, %v295_v13  ;;  %v428_v44 = vadd.f32 %v427_v41, %v413_v38 }
 0x105   :  { %v393_v45 = vrot.slane %v392_v43, 4  ;;  %v429_v46 = vadd.f32 %v428_v44, %v414_v42 }
 0x107   :  { %v394_v47 = vadd.f32 %v393_v45, %v392_v43  ;;  %v430_v40 = vrot.slane %v429_v46, 4 }
 0x109   :  { %v395_v48 = vrot.slane %v394_v47, 2  ;;  %v431_v50 = vadd.f32 %v430_v40, %v429_v46 }
 0x10b   :  { %v396_v51 = vadd.f32 %v395_v48, %v394_v47  ;;  %v432_v49 = vrot.slane %v431_v50, 2 }
 0x10d   :  { %v397_v52 = vrot.slane %v396_v51, 1  ;;  %v433_v53 = vadd.f32 %v432_v49, %v431_v50 }
 0x10f   :  { %v434_v54 = vrot.slane %v433_v53, 1  ;;  %v398_v55 = vadd.f32 %v397_v52, %v396_v51 }
 0x111   :  { %v435_v56 = vadd.f32 %v434_v54, %v433_v53 }
 0x113   :  { %v437_v57 = vsel %vm436_vm1, %v398_v55, %v435_v56 }
 0x114   :  { %442 = vst [vmem:[%s839_s6] sm:$0x3] %v437_v57 }
 0x115   :  { %458 = vsyncpa [#allocation3], 1 }

// kernel: tnet_forward.6
= control target key start
LH: loop header
LB: loop body
LE: loop exit
PB: predicated region body
PF: predicated region fallthrough
CT: control target
= control target key end

     0   :  { %10 = vsyncpa [#allocation3], 0  ;;  %s1469_s18 = smov [#allocation2]   ;;  %s2071_s0 = inlined_call_operand.vmem [shape: bf16[2,64,128], index: 0, kind: input, shape index: {}]   ;;  %s2072_s1 = inlined_call_operand.vmem [shape: f32[1,128], index: 1, kind: input, shape index: {}]   ;;  %s2073_s2 = inlined_call_operand.vmem [shape: f32[1,128], index: 2, kind: input, shape index: {}]   ;;  %s2074_s3 = inlined_call_operand.vmem [shape: bf16[128,1024], index: 3, kind: input, shape index: {}]   ;;  %s2075_s4 = inlined_call_operand.hbm [shape: f32[1,1024], index: 4, kind: input, shape index: {}]   ;;  %s2076_s5 = inlined_call_operand.vmem [shape: f32[2,1024], index: 5, kind: output, shape index: {}]  }
   0x1   :  { %s25_s19 = sshll.u32 %s1469_s18, 4  ;;  %s26_s19 = int_to_ptr.vmem [resolvable:$true] %s25_s19 }
   0x2   :  { %s1455_s20 = scalar_lea.vmem %s26_s19, 128  ;;  %p1460_p1 = scmp.lt.s32.totalorder %s26_s19, %s26_s19 }
   0x3   :  { %p1456_p0 = scmp.ne.s32.totalorder %s26_s19, %s1455_s20  ;;  %p1461_p2 = scmp.lt.s32.totalorder %s1455_s20, %s1455_s20 }
   0x5   :  { %p1462_p3 = por %p1461_p2, %p1460_p1 }
   0x7   :  { %p1463_p4 = pnand %p1462_p3, %p1456_p0 }
   0x9   :  { %1466 = shalt.err (!%p1463_p4)
}
   0xa   :  { %28 = dma.hbm_to_vmem [thread:$0]  %s2075_s4, 128, %s26_s19, [#allocation3]  }
   0xb   :  { %1467 = dma.done.wait [#allocation3], 128  }
   0xc   :  { %1468 = vsyncadd [#allocation3], 4294967168  ;;  %v1470_v0 = vmov 0   ;;  %v191_v1 = vld [vmem:[%s2074_s3 + $0x1c0] sm:$0xff]  ;;  %v192_v3 = vld [vmem:[%s2074_s3 + $0x1c8] sm:$0xff]  ;;  %vm1221_vm0 = vcmask 1040384  }
   0xd   :  { %593 = vmatprep.mubr.bf16.mxu0 %v1470_v0  ;;  %706 = vmatprep.mubr.bf16.mxu1 %v1470_v0  ;;  %v195_v2 = vld [vmem:[%s2074_s3 + $0x1e0] sm:$0xff]  ;;  %v196_v5 = vld [vmem:[%s2074_s3 + $0x1e8] sm:$0xff] }
   0xe   :  { %v1398_v4 = vcombine.high %v191_v1, %v195_v2  ;;  %v1397_v6 = vcombine.low %v191_v1, %v195_v2  ;;  %v183_v7 = vld [vmem:[%s2074_s3 + $0x180] sm:$0xff]  ;;  %v1400_v9 = vcombine.high %v192_v3, %v196_v5  ;;  %v1399_v10 = vcombine.low %v192_v3, %v196_v5  ;;  %v184_v12 = vld [vmem:[%s2074_s3 + $0x188] sm:$0xff] }
   0xf   :  { %v187_v8 = vld [vmem:[%s2074_s3 + $0x1a0] sm:$0xff]  ;;  %v188_v13 = vld [vmem:[%s2074_s3 + $0x1a8] sm:$0xff] }
  0x10   :  { %v1390_v11 = vcombine.high %v183_v7, %v187_v8  ;;  %v175_v14 = vld [vmem:[%s2074_s3 + $0x140] sm:$0xff]  ;;  %561 = vmatprep.subr.bf16.mxu0 %v1398_v4  ;;  %v1392_v15 = vcombine.high %v184_v12, %v188_v13  ;;  %v176_v17 = vld [vmem:[%s2074_s3 + $0x148] sm:$0xff]  ;;  %674 = vmatprep.subr.bf16.mxu1 %v1400_v9  ;;  %v1389_v19 = vcombine.low %v183_v7, %v187_v8 }
  0x11   :  { %v179_v16 = vld [vmem:[%s2074_s3 + $0x160] sm:$0xff]  ;;  %v180_v18 = vld [vmem:[%s2074_s3 + $0x168] sm:$0xff]  ;;  %562 = vmatpush1.bf16.msra.mxu0 %v1397_v6  ;;  %675 = vmatpush1.bf16.msra.mxu1 %v1399_v10  ;;  %v1391_v20 = vcombine.low %v184_v12, %v188_v13  ;;  %v193_v12 = vld [vmem:[%s2074_s3 + $0x1d0] sm:$0xff] }
  0x12   :  { %563 = vmatprep.subr.bf16.mxu0 %v1390_v11  ;;  %v1382_v21 = vcombine.high %v175_v14, %v179_v16  ;;  %676 = vmatprep.subr.bf16.mxu1 %v1392_v15  ;;  %v1384_v22 = vcombine.high %v176_v17, %v180_v18  ;;  %v167_v23 = vld [vmem:[%s2074_s3 + $0x100] sm:$0xff]  ;;  %v168_v25 = vld [vmem:[%s2074_s3 + $0x108] sm:$0xff]  ;;  %v1381_v27 = vcombine.low %v175_v14, %v179_v16  ;;  %v197_v13 = vld [vmem:[%s2074_s3 + $0x1f0] sm:$0xff] }
  0x13   :  { %v171_v24 = vld [vmem:[%s2074_s3 + $0x120] sm:$0xff]  ;;  %v172_v26 = vld [vmem:[%s2074_s3 + $0x128] sm:$0xff]  ;;  %v1383_v28 = vcombine.low %v176_v17, %v180_v18  ;;  %v194_v16 = vld [vmem:[%s2074_s3 + $0x1d8] sm:$0xff] }
  0x14   :  { %v1374_v29 = vcombine.high %v167_v23, %v171_v24  ;;  %v1376_v30 = vcombine.high %v168_v25, %v172_v26  ;;  %v159_v31 = vld [vmem:[%s2074_s3 + $0xc0] sm:$0xff]  ;;  %v160_v33 = vld [vmem:[%s2074_s3 + $0xc8] sm:$0xff]  ;;  %v1373_v35 = vcombine.low %v167_v23, %v171_v24  ;;  %v1375_v37 = vcombine.low %v168_v25, %v172_v26  ;;  %v198_v17 = vld [vmem:[%s2074_s3 + $0x1f8] sm:$0xff] }
  0x15   :  { %564 = vmatpush1.bf16.msra.mxu0 %v1389_v19  ;;  %677 = vmatpush1.bf16.msra.mxu1 %v1391_v20  ;;  %v163_v32 = vld [vmem:[%s2074_s3 + $0xe0] sm:$0xff]  ;;  %v164_v34 = vld [vmem:[%s2074_s3 + $0xe8] sm:$0xff]  ;;  %v1438_v20 = vld [vmem:[%s2071_s0 + $0x10] sm:$0xff]   ;;  %v1402_v23 = vcombine.high %v193_v12, %v197_v13  ;;  %v1404_v24 = vcombine.high %v194_v16, %v198_v17 }
  0x16   :  { %565 = vmatprep.subr.bf16.mxu0 %v1382_v21  ;;  %678 = vmatprep.subr.bf16.mxu1 %v1384_v22  ;;  %v1406_v36 = vld [vmem:[%s2071_s0] sm:$0xff]   ;;  %v1366_v38 = vcombine.high %v159_v31, %v163_v32  ;;  %v1368_v39 = vcombine.high %v160_v33, %v164_v34  ;;  %v152_v42 = vld [vmem:[%s2074_s3 + $0x88] sm:$0xff]  ;;  %v1365_v46 = vcombine.low %v159_v31, %v163_v32  ;;  %v185_v25 = vld [vmem:[%s2074_s3 + $0x190] sm:$0xff]  ;;  %v1415_v26 = vunpack.c.l.bf16 %v1438_v20 }
  0x17   :  { %v151_v40 = vld [vmem:[%s2074_s3 + $0x80] sm:$0xff]  ;;  %v156_v43 = vld [vmem:[%s2074_s3 + $0xa8] sm:$0xff]  ;;  %v1407_v44 = vunpack.c.l.bf16 %v1406_v36  ;;  %v1408_v45 = vunpack.c.h.bf16 %v1406_v36  ;;  %v1367_v48 = vcombine.low %v160_v33, %v164_v34  ;;  %v186_v31 = vld [vmem:[%s2074_s3 + $0x198] sm:$0xff]  ;;  %v1416_v33 = vunpack.c.h.bf16 %v1438_v20 }
  0x18   :  { %v155_v41 = vld [vmem:[%s2074_s3 + $0xa0] sm:$0xff]  ;;  %v1360_v50 = vcombine.high %v152_v42, %v156_v43  ;;  %v144_v53 = vld [vmem:[%s2074_s3 + $0x48] sm:$0xff]  ;;  %v1359_v60 = vcombine.low %v152_v42, %v156_v43  ;;  %v190_v32 = vld [vmem:[%s2074_s3 + $0x1b8] sm:$0xff]  ;;  %v1401_v34 = vcombine.low %v193_v12, %v197_v13 }
  0x19   :  { %566 = vmatpush1.bf16.msra.mxu0 %v1381_v27  ;;  %679 = vmatpush1.bf16.msra.mxu1 %v1383_v28  ;;  %v1585_v47 = vld [vmem:[%s2072_s1] ss:$0 sm:$0xff]  ;;  %v1358_v49 = vcombine.high %v151_v40, %v155_v41  ;;  %v148_v54 = vld [vmem:[%s2074_s3 + $0x68] sm:$0xff]  ;;  %v1357_v57 = vcombine.low %v151_v40, %v155_v41 }
  0x1a   :  { %567 = vmatprep.subr.bf16.mxu0 %v1374_v29  ;;  %680 = vmatprep.subr.bf16.mxu1 %v1376_v30  ;;  %v143_v51 = vld [vmem:[%s2074_s3 + $0x40] sm:$0xff]  ;;  %v72_v55 = vmul.f32 %v1407_v44, %v1585_v47  ;;  %v73_v56 = vmul.f32 %v1408_v45, %v1585_v47  ;;  %v1437_v59 = vld [vmem:[%s2071_s0 + $0x8] sm:$0xff]   ;;  %v1352_v62 = vcombine.high %v144_v53, %v148_v54  ;;  %v189_v30 = vld [vmem:[%s2074_s3 + $0x1b0] sm:$0xff] }
  0x1b   :  { %v147_v52 = vld [vmem:[%s2074_s3 + $0x60] sm:$0xff]  ;;  %v136_v2 = vld [vmem:[%s2074_s3 + $0x8] sm:$0xff]  ;;  %v1411_v6 = vunpack.c.l.bf16 %v1437_v59  ;;  %v1412_v7 = vunpack.c.h.bf16 %v1437_v59  ;;  %v1351_v9 = vcombine.low %v144_v53, %v148_v54  ;;  %v1394_v36 = vcombine.high %v185_v25, %v189_v30  ;;  %v178_v44 = vld [vmem:[%s2074_s3 + $0x158] sm:$0xff] }
  0x1c   :  { %v1604_v58 = vld [vmem:[%s2073_s2] ss:$0 sm:$0xff]  ;;  %v1350_v61 = vcombine.high %v143_v51, %v147_v52  ;;  %v140_v3 = vld [vmem:[%s2074_s3 + $0x28] sm:$0xff]  ;;  %v1349_v8 = vcombine.low %v143_v51, %v147_v52  ;;  %v76_v42 = vmul.f32 %v1415_v26, %v1585_v47  ;;  %v77_v43 = vmul.f32 %v1416_v33, %v1585_v47  ;;  %v182_v45 = vld [vmem:[%s2074_s3 + $0x178] sm:$0xff] }
  0x1d   :  { %568 = vmatpush1.bf16.msra.mxu0 %v1373_v35  ;;  %681 = vmatpush1.bf16.msra.mxu1 %v1375_v37  ;;  %v135_v63 = vld [vmem:[%s2074_s3] sm:$0xff]  ;;  %v95_v4 = vadd.f32 %v1604_v58, %v72_v55  ;;  %v96_v5 = vadd.f32 %v1604_v58, %v73_v56  ;;  %v1344_v11 = vcombine.high %v136_v2, %v140_v3  ;;  %v173_v59 = vld [vmem:[%s2074_s3 + $0x130] sm:$0xff]  ;;  %v1441_v33 = vld [vmem:[%s2071_s0 + $0x28] sm:$0xff]  }
  0x1e   :  { %569 = vmatprep.subr.bf16.mxu0 %v1366_v38  ;;  %682 = vmatprep.subr.bf16.mxu1 %v1368_v39  ;;  %v139_v1 = vld [vmem:[%s2074_s3 + $0x20] sm:$0xff]  ;;  %v74_v18 = vmul.f32 %v1411_v6, %v1585_v47  ;;  %v75_v19 = vmul.f32 %v1412_v7, %v1585_v47  ;;  %v1343_v22 = vcombine.low %v136_v2, %v140_v3  ;;  %v177_v38 = vld [vmem:[%s2074_s3 + $0x150] sm:$0xff] }
  0x1f   :  { %v1342_v10 = vcombine.high %v135_v63, %v139_v1  ;;  %v111_v14 = vmax.f32 %v95_v4, 0.0  ;;  %v112_v15 = vmax.f32 %v96_v5, 0.0  ;;  %v1341_v21 = vcombine.low %v135_v63, %v139_v1  ;;  %v181_v39 = vld [vmem:[%s2074_s3 + $0x170] sm:$0xff]  ;;  %v1440_v7 = vld [vmem:[%s2071_s0 + $0x20] sm:$0xff]  }
  0x20   :  { %v97_v28 = vadd.f32 %v1604_v58, %v74_v18  ;;  %v98_v29 = vadd.f32 %v1604_v58, %v75_v19  ;;  %v1403_v35 = vcombine.low %v194_v16, %v198_v17  ;;  %v1396_v37 = vcombine.high %v186_v31, %v190_v32 }
  0x21   :  { %570 = vmatpush1.bf16.msra.mxu0 %v1365_v46  ;;  %683 = vmatpush1.bf16.msra.mxu1 %v1367_v48  ;;  %v1643_v27 = vpack.c.bf16 %v112_v15, %v111_v14  ;;  %v1439_v46 = vld [vmem:[%s2071_s0 + $0x18] sm:$0xff]   ;;  %v1393_v48 = vcombine.low %v185_v25, %v189_v30  ;;  %v1388_v51 = vcombine.high %v178_v44, %v182_v45  ;;  %v1423_v15 = vunpack.c.l.bf16 %v1440_v7 }
  0x22   :  { %571 = vmatprep.subr.bf16.mxu0 %v1358_v49  ;;  %684 = vmatprep.subr.bf16.mxu1 %v1360_v50  ;;  %v113_v40 = vmax.f32 %v97_v28, 0.0  ;;  %v114_v41 = vmax.f32 %v98_v29, 0.0  ;;  %v1395_v49 = vcombine.low %v186_v31, %v190_v32  ;;  %v1386_v50 = vcombine.high %v177_v38, %v181_v39 }
  0x23   :  { %v1419_v52 = vunpack.c.l.bf16 %v1439_v46  ;;  %v99_v54 = vadd.f32 %v1604_v58, %v76_v42  ;;  %v100_v55 = vadd.f32 %v1604_v58, %v77_v43  ;;  %v1420_v56 = vunpack.c.h.bf16 %v1439_v46 }
  0x24   :  { %v1677_v53 = vpack.c.bf16 %v114_v41, %v113_v40  ;;  %v1387_v63 = vcombine.low %v178_v44, %v182_v45  ;;  %v1424_v19 = vunpack.c.h.bf16 %v1440_v7  ;;  %v80_v31 = vmul.f32 %v1423_v15, %v1585_v47 }
  0x25   :  { %572 = vmatpush1.bf16.msra.mxu0 %v1357_v57  ;;  %685 = vmatpush1.bf16.msra.mxu1 %v1359_v60  ;;  %v169_v57 = vld [vmem:[%s2074_s3 + $0x110] sm:$0xff]  ;;  %v170_v60 = vld [vmem:[%s2074_s3 + $0x118] sm:$0xff]  ;;  %v78_v1 = vmul.f32 %v1419_v52, %v1585_v47  ;;  %v115_v3 = vmax.f32 %v99_v54, 0.0  ;;  %v116_v4 = vmax.f32 %v100_v55, 0.0  ;;  %v79_v5 = vmul.f32 %v1420_v56, %v1585_v47 }
  0x26   :  { %573 = vmatprep.subr.bf16.mxu0 %v1350_v61  ;;  %686 = vmatprep.subr.bf16.mxu1 %v1352_v62  ;;  %v174_v61 = vld [vmem:[%s2074_s3 + $0x138] sm:$0xff]  ;;  %v1385_v62 = vcombine.low %v177_v38, %v181_v39  ;;  %v1378_v2 = vcombine.high %v169_v57, %v173_v59  ;;  %v1377_v12 = vcombine.low %v169_v57, %v173_v59  ;;  %v1427_v40 = vunpack.c.l.bf16 %v1441_v33 }
  0x27   :  { %v1380_v6 = vcombine.high %v170_v60, %v174_v61  ;;  %v101_v13 = vadd.f32 %v1604_v58, %v78_v1  ;;  %v1379_v14 = vcombine.low %v170_v60, %v174_v61  ;;  %v1715_v17 = vpack.c.bf16 %v116_v4, %v115_v3  ;;  %v150_v38 = vld [vmem:[%s2074_s3 + $0x78] sm:$0xff] }
  0x28   :  { %v102_v18 = vadd.f32 %v1604_v58, %v79_v5  ;;  %v81_v32 = vmul.f32 %v1424_v19, %v1585_v47  ;;  %v1428_v41 = vunpack.c.h.bf16 %v1441_v33  ;;  %v103_v45 = vadd.f32 %v1604_v58, %v80_v31  ;;  %v142_v52 = vld [vmem:[%s2074_s3 + $0x38] sm:$0xff] }
  0x29   :  { %574 = vmatpush1.bf16.msra.mxu0 %v1349_v8  ;;  %687 = vmatpush1.bf16.msra.mxu1 %v1351_v9  ;;  %v161_v8 = vld [vmem:[%s2074_s3 + $0xd0] sm:$0xff]  ;;  %v117_v26 = vmax.f32 %v101_v13, 0.0  ;;  %v82_v55 = vmul.f32 %v1427_v40, %v1585_v47 }
  0x2a   :  { %575 = vmatprep.subr.bf16.mxu0 %v1342_v10  ;;  %688 = vmatprep.subr.bf16.mxu1 %v1344_v11  ;;  %v165_v9 = vld [vmem:[%s2074_s3 + $0xf0] sm:$0xff]  ;;  %v162_v10 = vld [vmem:[%s2074_s3 + $0xd8] sm:$0xff]  ;;  %v118_v30 = vmax.f32 %v102_v18, 0.0  ;;  %v104_v46 = vadd.f32 %v1604_v58, %v81_v32  ;;  %v119_v59 = vmax.f32 %v103_v45, 0.0  ;;  %v83_v61 = vmul.f32 %v1428_v41, %v1585_v47 }
  0x2b   :  { %v166_v11 = vld [vmem:[%s2074_s3 + $0xf8] sm:$0xff]  ;;  %v1370_v16 = vcombine.high %v161_v8, %v165_v9  ;;  %v1369_v25 = vcombine.low %v161_v8, %v165_v9  ;;  %v105_v5 = vadd.f32 %v1604_v58, %v82_v55 }
  0x2c   :  { %v1372_v20 = vcombine.high %v162_v10, %v166_v11  ;;  %v1371_v28 = vcombine.low %v162_v10, %v166_v11  ;;  %v1751_v44 = vpack.c.bf16 %v118_v30, %v117_v26  ;;  %v120_v60 = vmax.f32 %v104_v46, 0.0 }
  0x2d   :  { %576 = vmatpush1.bf16.msra.mxu0 %v1341_v21  ;;  %689 = vmatpush1.bf16.msra.mxu1 %v1343_v22  ;;  %v153_v21 = vld [vmem:[%s2074_s3 + $0x90] sm:$0xff]  ;;  %v121_v9 = vmax.f32 %v105_v5, 0.0 }
  0x2e   :  { %787 = vmatprep.subr.bf16.mxu0 %v1402_v23  ;;  %900 = vmatprep.subr.bf16.mxu1 %v1404_v24  ;;  %v157_v22 = vld [vmem:[%s2074_s3 + $0xb0] sm:$0xff]  ;;  %v154_v23 = vld [vmem:[%s2074_s3 + $0x98] sm:$0xff]  ;;  %v131_v4 = vpack.c.bf16 %v120_v60, %v119_v59 }
  0x2f   :  { %v158_v24 = vld [vmem:[%s2074_s3 + $0xb8] sm:$0xff]  ;;  %v1362_v29 = vcombine.high %v153_v21, %v157_v22  ;;  %v1361_v39 = vcombine.low %v153_v21, %v157_v22 }
  0x30   :  { %594 = vmatmul.mubr.bf16.vlgmr.msra.gmra.mxu0 %v1643_v27  ;;  %707 = vmatmul.mubr.bf16.vlgmr.msra.gmra.mxu1 %v1643_v27  ;;  %v1363_v42 = vcombine.low %v154_v23, %v158_v24 }
  0x31   :  { %788 = vmatpush1.bf16.msra.mxu0 %v1401_v34  ;;  %901 = vmatpush1.bf16.msra.mxu1 %v1403_v35  ;;  %v1364_v34 = vcombine.high %v154_v23, %v158_v24  ;;  %v145_v35 = vld [vmem:[%s2074_s3 + $0x50] sm:$0xff] }
  0x32   :  { %603 = vmatprep.mubr.bf16.mxu0 %v1470_v0  ;;  %716 = vmatprep.mubr.bf16.mxu1 %v1470_v0 }
  0x33   :  { %789 = vmatprep.subr.bf16.mxu0 %v1394_v36  ;;  %902 = vmatprep.subr.bf16.mxu1 %v1396_v37  ;;  %v149_v36 = vld [vmem:[%s2074_s3 + $0x70] sm:$0xff]  ;;  %v146_v37 = vld [vmem:[%s2074_s3 + $0x58] sm:$0xff] }
  0x34   :  { %v1354_v43 = vcombine.high %v145_v35, %v149_v36  ;;  %v1353_v54 = vcombine.low %v145_v35, %v149_v36  ;;  %v1355_v56 = vcombine.low %v146_v37, %v150_v38 }
  0x35   :  { %790 = vmatpush1.bf16.msra.mxu0 %v1393_v48  ;;  %903 = vmatpush1.bf16.msra.mxu1 %v1395_v49  ;;  %v1356_v48 = vcombine.high %v146_v37, %v150_v38  ;;  %v137_v49 = vld [vmem:[%s2074_s3 + $0x10] sm:$0xff] }
  0x36   :  { %791 = vmatprep.subr.bf16.mxu0 %v1386_v50  ;;  %904 = vmatprep.subr.bf16.mxu1 %v1388_v51  ;;  %v141_v50 = vld [vmem:[%s2074_s3 + $0x30] sm:$0xff]  ;;  %v138_v51 = vld [vmem:[%s2074_s3 + $0x18] sm:$0xff] }
  0x37   :  { %v1346_v57 = vcombine.high %v137_v49, %v141_v50  ;;  %v1345_v1 = vcombine.low %v137_v49, %v141_v50  ;;  %v1347_v3 = vcombine.low %v138_v51, %v142_v52 }
  0x38   :  { %604 = vmatmul.mubr.bf16.gmra.mxu0 %v1677_v53  ;;  %717 = vmatmul.mubr.bf16.gmra.mxu1 %v1677_v53 }
  0x39   :  { %613 = vmatprep.mubr.bf16.mxu0 %v1470_v0  ;;  %726 = vmatprep.mubr.bf16.mxu1 %v1470_v0 }
  0x3a   :  { %792 = vmatpush1.bf16.msra.mxu0 %v1385_v62  ;;  %905 = vmatpush1.bf16.msra.mxu1 %v1387_v63  ;;  %v1442_v62 = vld [vmem:[%s2071_s0 + $0x30] sm:$0xff]   ;;  %v1348_v63 = vcombine.high %v138_v51, %v142_v52 }
  0x3b   :  { %793 = vmatprep.subr.bf16.mxu0 %v1378_v2  ;;  %906 = vmatprep.subr.bf16.mxu1 %v1380_v6  ;;  %v1431_v2 = vunpack.c.l.bf16 %v1442_v62  ;;  %v106_v6 = vadd.f32 %v1604_v58, %v83_v61  ;;  %v1432_v7 = vunpack.c.h.bf16 %v1442_v62 }
  0x3d   :  { %v84_v8 = vmul.f32 %v1431_v2, %v1585_v47  ;;  %v122_v10 = vmax.f32 %v106_v6, 0.0  ;;  %v85_v11 = vmul.f32 %v1432_v7, %v1585_v47 }
  0x3e   :  { %794 = vmatpush1.bf16.msra.mxu0 %v1377_v12  ;;  %907 = vmatpush1.bf16.msra.mxu1 %v1379_v14  ;;  %v1443_v12 = vld [vmem:[%s2071_s0 + $0x38] sm:$0xff]  }
  0x3f   :  { %795 = vmatprep.subr.bf16.mxu0 %v1370_v16  ;;  %908 = vmatprep.subr.bf16.mxu1 %v1372_v20  ;;  %v107_v13 = vadd.f32 %v1604_v58, %v84_v8  ;;  %v132_v14 = vpack.c.bf16 %v122_v10, %v121_v9  ;;  %v108_v15 = vadd.f32 %v1604_v58, %v85_v11  ;;  %v1435_v16 = vunpack.c.l.bf16 %v1443_v12 }
  0x40   :  { %614 = vmatmul.mubr.bf16.gmra.mxu0 %v1715_v17  ;;  %727 = vmatmul.mubr.bf16.gmra.mxu1 %v1715_v17  ;;  %v1436_v18 = vunpack.c.h.bf16 %v1443_v12 }
  0x41   :  { %623 = vmatprep.mubr.bf16.mxu0 %v1470_v0  ;;  %736 = vmatprep.mubr.bf16.mxu1 %v1470_v0  ;;  %v123_v19 = vmax.f32 %v107_v13, 0.0  ;;  %v124_v20 = vmax.f32 %v108_v15, 0.0  ;;  %v86_v21 = vmul.f32 %v1435_v16, %v1585_v47 }
  0x42   :  { %796 = vmatpush1.bf16.msra.mxu0 %v1369_v25  ;;  %909 = vmatpush1.bf16.msra.mxu1 %v1371_v28  ;;  %v87_v22 = vmul.f32 %v1436_v18, %v1585_v47  ;;  %v201_v47 = vlaneseq }
  0x43   :  { %797 = vmatprep.subr.bf16.mxu0 %v1362_v29  ;;  %910 = vmatprep.subr.bf16.mxu1 %v1364_v34  ;;  %v133_v23 = vpack.c.bf16 %v124_v20, %v123_v19  ;;  %v109_v24 = vadd.f32 %v1604_v58, %v86_v21 }
  0x44   :  { %v110_v25 = vadd.f32 %v1604_v58, %v87_v22  ;;  %v1819_v58 = vshrl.u32 %v201_v47, 7 }
  0x45   :  { %v125_v26 = vmax.f32 %v109_v24, 0.0 }
  0x46   :  { %798 = vmatpush1.bf16.msra.mxu0 %v1361_v39  ;;  %911 = vmatpush1.bf16.msra.mxu1 %v1363_v42  ;;  %v126_v28 = vmax.f32 %v110_v25, 0.0  ;;  %v223_v32 = vsub.s32 5, %v1819_v58  ;;  %v231_v33 = vsub.s32 7, %v1819_v58  ;;  %v203_v60 = vsub.s32 0, %v1819_v58 }
  0x47   :  { %799 = vmatprep.subr.bf16.mxu0 %v1354_v43  ;;  %912 = vmatprep.subr.bf16.mxu1 %v1356_v48  ;;  %v211_v62 = vsub.s32 2, %v1819_v58 }
  0x48   :  { %624 = vmatmul.mubr.bf16.gmra.mxu0 %v1751_v44  ;;  %737 = vmatmul.mubr.bf16.gmra.mxu1 %v1751_v44  ;;  %v134_v29 = vpack.c.bf16 %v126_v28, %v125_v26 }
  0x49   :  { %633 = vmatprep.mubr.bf16.mxu0 %v1470_v0  ;;  %746 = vmatprep.mubr.bf16.mxu1 %v1470_v0 }
  0x4a   :  { %800 = vmatpush1.bf16.msra.mxu0 %v1353_v54  ;;  %913 = vmatpush1.bf16.msra.mxu1 %v1355_v56 }
  0x4b   :  { %801 = vmatprep.subr.bf16.mxu0 %v1346_v57  ;;  %914 = vmatprep.subr.bf16.mxu1 %v1348_v63 }
  0x4e   :  { %802 = vmatpush1.bf16.msra.mxu0 %v1345_v1  ;;  %915 = vmatpush1.bf16.msra.mxu1 %v1347_v3  ;;  %v207_v1 = vsub.s32 1, %v1819_v58  ;;  %v215_v3 = vsub.s32 3, %v1819_v58 }
  0x50   :  { %634 = vmatmul.mubr.bf16.gmra.mxu0 %v131_v4  ;;  %747 = vmatmul.mubr.bf16.gmra.mxu1 %v131_v4 }
  0x51   :  { %643 = vmatprep.mubr.bf16.mxu0 %v1470_v0  ;;  %756 = vmatprep.mubr.bf16.mxu1 %v1470_v0 }
  0x58   :  { %644 = vmatmul.mubr.bf16.gmra.mxu0 %v132_v14  ;;  %757 = vmatmul.mubr.bf16.gmra.mxu1 %v132_v14 }
  0x59   :  { %653 = vmatprep.mubr.bf16.mxu0 %v1470_v0  ;;  %766 = vmatprep.mubr.bf16.mxu1 %v1470_v0 }
  0x60   :  { %654 = vmatmul.mubr.bf16.gmra.mxu0 %v133_v23  ;;  %767 = vmatmul.mubr.bf16.gmra.mxu1 %v133_v23 }
  0x61   :  { %663 = vmatprep.mubr.bf16.mxu0 %v1470_v0  ;;  %776 = vmatprep.mubr.bf16.mxu1 %v1470_v0 }
  0x68   :  { %664 = vmatmul.mubr.bf16.gmra.mxu0 %v134_v29  ;;  %777 = vmatmul.mubr.bf16.gmra.mxu1 %v134_v29 }
  0x69   :  { %819 = vmatprep.mubr.bf16.mxu0 %v1470_v0  ;;  %932 = vmatprep.mubr.bf16.mxu1 %v1470_v0 }
  0x70   :  { %820 = vmatmul.mubr.bf16.vlgmr.msra.gmra.mxu0 %v1643_v27  ;;  %933 = vmatmul.mubr.bf16.vlgmr.msra.gmra.mxu1 %v1643_v27  ;;  %v219_v27 = vsub.s32 4, %v1819_v58 }
  0x71   :  { %829 = vmatprep.mubr.bf16.mxu0 %v1470_v0  ;;  %942 = vmatprep.mubr.bf16.mxu1 %v1470_v0 }
  0x78   :  { %830 = vmatmul.mubr.bf16.gmra.mxu0 %v1677_v53  ;;  %943 = vmatmul.mubr.bf16.gmra.mxu1 %v1677_v53  ;;  %v227_v53 = vsub.s32 6, %v1819_v58 }
  0x79   :  { %839 = vmatprep.mubr.bf16.mxu0 %v1470_v0  ;;  %952 = vmatprep.mubr.bf16.mxu1 %v1470_v0 }
  0x80   :  { %840 = vmatmul.mubr.bf16.gmra.mxu0 %v1715_v17  ;;  %953 = vmatmul.mubr.bf16.gmra.mxu1 %v1715_v17  ;;  %v199_v17 = vld [vmem:[#allocation2] sm:$0xff] }
  0x81   :  { %849 = vmatprep.mubr.bf16.mxu0 %v1470_v0  ;;  %962 = vmatprep.mubr.bf16.mxu1 %v1470_v0  ;;  %v1823_v30 = vrot.slane %v199_v17, %v219_v27  ;;  %v1825_v31 = vrot.slane %v199_v17, %v227_v53  ;;  %v1829_v34 = vrot.slane %v199_v17, %v223_v32 }
  0x82   :  { %v1837_v5 = vrot.slane %v199_v17, %v203_v60  ;;  %v1839_v7 = vrot.slane %v199_v17, %v211_v62  ;;  %v1841_v9 = vrot.slane %v199_v17, %v207_v1  ;;  %v1844_v12 = vrot.slane %v199_v17, %v215_v3 }
  0x88   :  { %850 = vmatmul.mubr.bf16.gmra.mxu0 %v1751_v44  ;;  %963 = vmatmul.mubr.bf16.gmra.mxu1 %v1751_v44 }
  0x89   :  { %859 = vmatprep.mubr.bf16.mxu0 %v1470_v0  ;;  %972 = vmatprep.mubr.bf16.mxu1 %v1470_v0 }
  0x90   :  { %860 = vmatmul.mubr.bf16.gmra.mxu0 %v131_v4  ;;  %973 = vmatmul.mubr.bf16.gmra.mxu1 %v131_v4 }
  0x91   :  { %869 = vmatprep.mubr.bf16.mxu0 %v1470_v0  ;;  %982 = vmatprep.mubr.bf16.mxu1 %v1470_v0 }
  0x98   :  { %870 = vmatmul.mubr.bf16.gmra.mxu0 %v132_v14  ;;  %983 = vmatmul.mubr.bf16.gmra.mxu1 %v132_v14 }
  0x99   :  { %879 = vmatprep.mubr.bf16.mxu0 %v1470_v0  ;;  %992 = vmatprep.mubr.bf16.mxu1 %v1470_v0 }
  0xa0   :  { %880 = vmatmul.mubr.bf16.gmra.mxu0 %v133_v23  ;;  %993 = vmatmul.mubr.bf16.gmra.mxu1 %v133_v23 }
  0xa1   :  { %889 = vmatprep.mubr.bf16.mxu0 %v1470_v0  ;;  %1002 = vmatprep.mubr.bf16.mxu1 %v1470_v0  ;;  %v1831_v0 = vrot.slane %v199_v17, %v231_v33 }
  0xa8   :  { %890 = vmatmul.mubr.bf16.gmra.mxu0 %v134_v29  ;;  %1003 = vmatmul.mubr.bf16.gmra.mxu1 %v134_v29 }
  0xf0   :  { %v595_v35 = vpop.f32.mrf.mxu0  ;;  %v708_v36 = vpop.f32.mrf.mxu1 }
  0xf1   :  { %v596_v15 = vadd.f32 %v595_v35, %v1837_v5  ;;  %v709_v20 = vadd.f32 %v708_v36, %v1839_v7 }
  0xf2   :  { %v597_v37 = vpop.f32.mrf.mxu0  ;;  %v710_v38 = vpop.f32.mrf.mxu1 }
  0xf3   :  { %v598_v24 = vadd.f32 %v597_v37, %v1841_v9  ;;  %v711_v47 = vadd.f32 %v710_v38, %v1844_v12 }
  0xf4   :  { %v599_v39 = vpop.f32.mrf.mxu0  ;;  %v712_v40 = vpop.f32.mrf.mxu1 }
  0xf5   :  { %v600_v10 = vadd.f32 %v599_v39, %v1837_v5  ;;  %v713_v13 = vadd.f32 %v712_v40, %v1839_v7 }
  0xf6   :  { %v601_v41 = vpop.f32.mrf.mxu0  ;;  %v714_v42 = vpop.f32.mrf.mxu1 }
  0xf7   :  { %v602_v16 = vadd.f32 %v601_v41, %v1841_v9  ;;  %v715_v21 = vadd.f32 %v714_v42, %v1844_v12  ;;  %v1013_v25 = vmax.f32 %v596_v15, %v600_v10  ;;  %v1039_v27 = vmax.f32 %v709_v20, %v713_v13 }
  0xf8   :  { %v605_v43 = vpop.f32.mrf.mxu0  ;;  %v718_v44 = vpop.f32.mrf.mxu1 }
  0xf9   :  { %v606_v18 = vadd.f32 %v605_v43, %v1837_v5  ;;  %v719_v22 = vadd.f32 %v718_v44, %v1839_v7  ;;  %v1026_v33 = vmax.f32 %v598_v24, %v602_v16  ;;  %v1052_v40 = vmax.f32 %v711_v47, %v715_v21 }
  0xfa   :  { %v607_v45 = vpop.f32.mrf.mxu0  ;;  %v720_v46 = vpop.f32.mrf.mxu1 }
  0xfb   :  { %v608_v26 = vadd.f32 %v607_v45, %v1841_v9  ;;  %v721_v53 = vadd.f32 %v720_v46, %v1844_v12  ;;  %v1014_v35 = vmax.f32 %v1013_v25, %v606_v18  ;;  %v1040_v41 = vmax.f32 %v1039_v27, %v719_v22 }
  0xfc   :  { %v609_v48 = vpop.f32.mrf.mxu0  ;;  %v722_v49 = vpop.f32.mrf.mxu1 }
  0xfd   :  { %v610_v28 = vadd.f32 %v609_v48, %v1837_v5  ;;  %v723_v17 = vadd.f32 %v722_v49, %v1839_v7  ;;  %v1027_v44 = vmax.f32 %v1026_v33, %v608_v26 }
  0xfe   :  { %v611_v50 = vpop.f32.mrf.mxu0  ;;  %v724_v51 = vpop.f32.mrf.mxu1 }
  0xff   :  { %v612_v36 = vadd.f32 %v611_v50, %v1841_v9  ;;  %v725_v42 = vadd.f32 %v724_v51, %v1844_v12  ;;  %v1015_v45 = vmax.f32 %v1014_v35, %v610_v28  ;;  %v1053_v50 = vmax.f32 %v1052_v40, %v721_v53 }
 0x100   :  { %v615_v52 = vpop.f32.mrf.mxu0  ;;  %v728_v54 = vpop.f32.mrf.mxu1  ;;  %v1041_v60 = vmax.f32 %v1040_v41, %v723_v17 }
 0x101   :  { %v616_v37 = vadd.f32 %v615_v52, %v1837_v5  ;;  %v729_v38 = vadd.f32 %v728_v54, %v1839_v7  ;;  %v1028_v3 = vmax.f32 %v1027_v44, %v612_v36  ;;  %v1054_v15 = vmax.f32 %v1053_v50, %v725_v42 }
 0x102   :  { %v617_v55 = vpop.f32.mrf.mxu0  ;;  %v730_v56 = vpop.f32.mrf.mxu1 }
 0x103   :  { %v618_v46 = vadd.f32 %v617_v55, %v1841_v9  ;;  %v731_v52 = vadd.f32 %v730_v56, %v1844_v12  ;;  %v1016_v51 = vmax.f32 %v1015_v45, %v616_v37  ;;  %v1042_v16 = vmax.f32 %v1041_v60, %v729_v38 }
 0x104   :  { %v619_v57 = vpop.f32.mrf.mxu0  ;;  %v732_v59 = vpop.f32.mrf.mxu1 }
 0x105   :  { %v620_v48 = vadd.f32 %v619_v57, %v1837_v5  ;;  %v733_v62 = vadd.f32 %v732_v59, %v1839_v7  ;;  %v1029_v20 = vmax.f32 %v1028_v3, %v618_v46  ;;  %v1055_v24 = vmax.f32 %v1054_v15, %v731_v52 }
 0x106   :  { %v621_v61 = vpop.f32.mrf.mxu0  ;;  %v734_v63 = vpop.f32.mrf.mxu1 }
 0x107   :  { %v622_v54 = vadd.f32 %v621_v61, %v1841_v9  ;;  %v735_v55 = vadd.f32 %v734_v63, %v1844_v12  ;;  %v1017_v21 = vmax.f32 %v1016_v51, %v620_v48  ;;  %v1043_v25 = vmax.f32 %v1042_v16, %v733_v62 }
 0x108   :  { %v625_v2 = vpop.f32.mrf.mxu0  ;;  %v738_v4 = vpop.f32.mrf.mxu1 }
 0x109   :  { %v626_v10 = vadd.f32 %v625_v2, %v1837_v5  ;;  %v739_v57 = vadd.f32 %v738_v4, %v1839_v7  ;;  %v1030_v28 = vmax.f32 %v1029_v20, %v622_v54  ;;  %v1056_v27 = vmax.f32 %v1055_v24, %v735_v55 }
 0x10a   :  { %v627_v6 = vpop.f32.mrf.mxu0  ;;  %v740_v8 = vpop.f32.mrf.mxu1 }
 0x10b   :  { %v628_v56 = vadd.f32 %v627_v6, %v1841_v9  ;;  %v741_v61 = vadd.f32 %v740_v8, %v1844_v12  ;;  %v1018_v47 = vmax.f32 %v1017_v21, %v626_v10  ;;  %v1044_v53 = vmax.f32 %v1043_v25, %v739_v57 }
 0x10c   :  { %v629_v11 = vpop.f32.mrf.mxu0  ;;  %v742_v14 = vpop.f32.mrf.mxu1 }
 0x10d   :  { %v630_v59 = vadd.f32 %v629_v11, %v1837_v5  ;;  %v743_v2 = vadd.f32 %v742_v14, %v1839_v7  ;;  %v1031_v33 = vmax.f32 %v1030_v28, %v628_v56  ;;  %v1057_v36 = vmax.f32 %v1056_v27, %v741_v61 }
 0x10e   :  { %v631_v19 = vpop.f32.mrf.mxu0  ;;  %v744_v23 = vpop.f32.mrf.mxu1 }
 0x10f   :  { %v632_v63 = vadd.f32 %v631_v19, %v1841_v9  ;;  %v745_v17 = vadd.f32 %v744_v23, %v1844_v12  ;;  %v1885_v11 = vmax.f32 %v1018_v47, %v630_v59  ;;  %v1887_v37 = vmax.f32 %v1044_v53, %v743_v2 }
 0x110   :  { %v1856_v29 = vpop.f32.mrf.mxu0  ;;  %v1861_v32 = vpop.f32.mrf.mxu1 }
 0x111   :  { %v1889_v14 = vmax.f32 %v1031_v33, %v632_v63  ;;  %v1891_v41 = vmax.f32 %v1057_v36, %v745_v17  ;;  %v1020_v38 = vrot.slane %v1885_v11, 4  ;;  %v636_v23 = vadd.f32 %v1856_v29, %v1837_v5 }
 0x112   :  { %v1865_v39 = vpop.f32.mrf.mxu0  ;;  %v1869_v43 = vpop.f32.mrf.mxu1  ;;  %v1046_v46 = vrot.slane %v1887_v37, 4  ;;  %v749_v48 = vadd.f32 %v1861_v32, %v1839_v7 }
 0x113   :  { %v638_v62 = vadd.f32 %v1865_v39, %v1841_v9  ;;  %v1059_v51 = vrot.slane %v1891_v41, 4  ;;  %v751_v15 = vadd.f32 %v1869_v43, %v1844_v12 }
 0x114   :  { %v639_v49 = vpop.f32.mrf.mxu0  ;;  %v752_v1 = vpop.f32.mrf.mxu1 }
 0x115   :  { %v640_v19 = vadd.f32 %v639_v49, %v1837_v5  ;;  %v753_v44 = vadd.f32 %v752_v1, %v1839_v7  ;;  %v1033_v49 = vrot.slane %v1889_v14, 4 }
 0x116   :  { %v641_v13 = vpop.f32.mrf.mxu0  ;;  %v754_v18 = vpop.f32.mrf.mxu1 }
 0x117   :  { %v642_v50 = vadd.f32 %v641_v13, %v1841_v9  ;;  %v755_v29 = vadd.f32 %v754_v18, %v1844_v12  ;;  %v1117_v54 = vmax.f32 %v636_v23, %v640_v19  ;;  %v1143_v16 = vmax.f32 %v749_v48, %v753_v44 }
 0x118   :  { %v645_v22 = vpop.f32.mrf.mxu0  ;;  %v758_v26 = vpop.f32.mrf.mxu1  ;;  %v1021_v48 = vmax.f32 %v1885_v11, %v1020_v38  ;;  %v1060_v11 = vmax.f32 %v1891_v41, %v1059_v51 }
 0x119   :  { %v646_v60 = vadd.f32 %v645_v22, %v1837_v5  ;;  %v759_v1 = vadd.f32 %v758_v26, %v1839_v7  ;;  %v1130_v18 = vmax.f32 %v638_v62, %v642_v50  ;;  %v1156_v22 = vmax.f32 %v751_v15, %v755_v29 }
 0x11a   :  { %v647_v4 = vpop.f32.mrf.mxu0  ;;  %v760_v6 = vpop.f32.mrf.mxu1  ;;  %v1047_v29 = vmax.f32 %v1887_v37, %v1046_v46 }
 0x11b   :  { %v648_v32 = vadd.f32 %v647_v4, %v1841_v9  ;;  %v761_v55 = vadd.f32 %v760_v6, %v1844_v12  ;;  %v1118_v20 = vmax.f32 %v1117_v54, %v646_v60  ;;  %v1144_v24 = vmax.f32 %v1143_v16, %v759_v1 }
 0x11c   :  { %v649_v35 = vpop.f32.mrf.mxu0  ;;  %v762_v8 = vpop.f32.mrf.mxu1 }
 0x11d   :  { %v650_v10 = vadd.f32 %v649_v35, %v1837_v5  ;;  %v763_v39 = vadd.f32 %v762_v8, %v1839_v7  ;;  %v1131_v2 = vmax.f32 %v1130_v18, %v648_v32  ;;  %v1157_v4 = vmax.f32 %v1156_v22, %v761_v55 }
 0x11e   :  { %v651_v40 = vpop.f32.mrf.mxu0  ;;  %v764_v42 = vpop.f32.mrf.mxu1 }
 0x11f   :  { %v652_v21 = vadd.f32 %v651_v40, %v1841_v9  ;;  %v765_v25 = vadd.f32 %v764_v42, %v1844_v12  ;;  %v1119_v26 = vmax.f32 %v1118_v20, %v650_v10  ;;  %v1145_v27 = vmax.f32 %v1144_v24, %v763_v39 }
 0x120   :  { %v655_v45 = vpop.f32.mrf.mxu0  ;;  %v768_v52 = vpop.f32.mrf.mxu1  ;;  %v1034_v10 = vmax.f32 %v1889_v14, %v1033_v49 }
 0x121   :  { %v656_v56 = vadd.f32 %v655_v45, %v1837_v5  ;;  %v769_v61 = vadd.f32 %v768_v52, %v1839_v7  ;;  %v1132_v33 = vmax.f32 %v1131_v2, %v652_v21  ;;  %v1158_v19 = vmax.f32 %v1157_v4, %v765_v25 }
 0x122   :  { %v657_v3 = vpop.f32.mrf.mxu0  ;;  %v770_v13 = vpop.f32.mrf.mxu1  ;;  %v1035_v22 = vrot.slane %v1034_v10, 2  ;;  %v1048_v25 = vrot.slane %v1047_v29, 2 }
 0x123   :  { %v658_v28 = vadd.f32 %v657_v3, %v1841_v9  ;;  %v771_v53 = vadd.f32 %v770_v13, %v1844_v12  ;;  %v1120_v35 = vmax.f32 %v1119_v26, %v656_v56  ;;  %v1146_v42 = vmax.f32 %v1145_v27, %v769_v61 }
 0x124   :  { %v659_v57 = vpop.f32.mrf.mxu0  ;;  %v772_v59 = vpop.f32.mrf.mxu1 }
 0x125   :  { %v660_v47 = vadd.f32 %v659_v57, %v1837_v5  ;;  %v773_v17 = vadd.f32 %v772_v59, %v1839_v7  ;;  %v1133_v50 = vmax.f32 %v1132_v33, %v658_v28  ;;  %v1159_v1 = vmax.f32 %v1158_v19, %v771_v53 }
 0x126   :  { %v661_v43 = vpop.f32.mrf.mxu0  ;;  %v774_v63 = vpop.f32.mrf.mxu1 }
 0x127   :  { %v662_v36 = vadd.f32 %v661_v43, %v1841_v9  ;;  %v775_v23 = vadd.f32 %v774_v63, %v1844_v12  ;;  %v1121_v60 = vmax.f32 %v1120_v35, %v660_v47  ;;  %v1147_v3 = vmax.f32 %v1146_v42, %v773_v17 }
 0x128   :  { %v665_v6 = vpop.f32.mrf.mxu0  ;;  %v778_v40 = vpop.f32.mrf.mxu1  ;;  %v1036_v17 = vmax.f32 %v1034_v10, %v1035_v22 }
 0x129   :  { %v666_v8 = vadd.f32 %v665_v6, %v1837_v5  ;;  %v779_v44 = vadd.f32 %v778_v40, %v1839_v7  ;;  %v1134_v13 = vmax.f32 %v1133_v50, %v662_v36  ;;  %v1160_v38 = vmax.f32 %v1159_v1, %v775_v23 }
 0x12a   :  { %v667_v45 = vpop.f32.mrf.mxu0  ;;  %v780_v62 = vpop.f32.mrf.mxu1  ;;  %v1049_v36 = vmax.f32 %v1047_v29, %v1048_v25 }
 0x12b   :  { %v668_v52 = vadd.f32 %v667_v45, %v1841_v9  ;;  %v781_v54 = vadd.f32 %v780_v62, %v1844_v12  ;;  %v1122_v15 = vmax.f32 %v1121_v60, %v666_v8  ;;  %v1148_v39 = vmax.f32 %v1147_v3, %v779_v44 }
 0x12c   :  { %v669_v32 = vpop.f32.mrf.mxu0  ;;  %v782_v55 = vpop.f32.mrf.mxu1  ;;  %v1050_v10 = vrot.slane %v1049_v36, 1 }
 0x12d   :  { %v670_v16 = vadd.f32 %v669_v32, %v1837_v5  ;;  %v783_v57 = vadd.f32 %v782_v55, %v1839_v7  ;;  %v1135_v37 = vmax.f32 %v1134_v13, %v668_v52  ;;  %v1161_v56 = vmax.f32 %v1160_v38, %v781_v54 }
 0x12e   :  { %v671_v18 = vpop.f32.mrf.mxu0  ;;  %v784_v21 = vpop.f32.mrf.mxu1  ;;  %v1022_v5 = vrot.slane %v1021_v48, 2  ;;  %v1061_v7 = vrot.slane %v1060_v11, 2 }
 0x12f   :  { %v1123_v46 = vmax.f32 %v1122_v15, %v670_v16  ;;  %v672_v20 = vadd.f32 %v671_v18, %v1841_v9  ;;  %v1149_v59 = vmax.f32 %v1148_v39, %v783_v57  ;;  %v785_v14 = vadd.f32 %v784_v21, %v1844_v12 }
 0x130   :  { %v1937_v49 = vpop.f32.mrf.mxu0  ;;  %v1939_v51 = vpop.f32.mrf.mxu1  ;;  %v1471_v12 = vmov 1983009808   ;;  %v1023_v53 = vmax.f32 %v1021_v48, %v1022_v5  ;;  %v1062_v8 = vmax.f32 %v1060_v11, %v1061_v7  ;;  %v1037_v48 = vrot.slane %v1036_v17, 1 }
 0x131   :  { %v1124_v24 = vrot.slane %v1123_v46, 4  ;;  %v1136_v41 = vmax.f32 %v1135_v37, %v672_v20  ;;  %v1150_v61 = vrot.slane %v1149_v59, 4  ;;  %v1162_v43 = vmax.f32 %v1161_v56, %v785_v14 }
 0x132   :  { %v1941_v2 = vpop.f32.mrf.mxu0  ;;  %v1943_v28 = vpop.f32.mrf.mxu1  ;;  %v1245_v63 = vunpack.c.l.s4 %v1471_v12  ;;  %v1024_v1 = vrot.slane %v1023_v53, 1  ;;  %v1063_v13 = vrot.slane %v1062_v8, 1  ;;  %v1051_v56 = vmax.f32 %v1049_v36, %v1050_v10 }
 0x133   :  { %v1125_v9 = vmax.f32 %v1123_v46, %v1124_v24  ;;  %v1137_v26 = vrot.slane %v1136_v41, 4  ;;  %v1151_v47 = vmax.f32 %v1149_v59, %v1150_v61  ;;  %v1163_v4 = vrot.slane %v1162_v43, 4 }
 0x134   :  { %v1945_v27 = vpop.f32.mrf.mxu0  ;;  %v1947_v35 = vpop.f32.mrf.mxu1  ;;  %v1246_v60 = vunpack.c.0.s8 %v1245_v63  ;;  %v1025_v37 = vmax.f32 %v1023_v53, %v1024_v1  ;;  %v1038_v46 = vmax.f32 %v1036_v17, %v1037_v48  ;;  %v1064_v59 = vmax.f32 %v1062_v8, %v1063_v13 }
 0x135   :  { %v1126_v6 = vrot.slane %v1125_v9, 2  ;;  %v1138_v33 = vmax.f32 %v1136_v41, %v1137_v26  ;;  %v1152_v40 = vrot.slane %v1151_v47, 2  ;;  %v1164_v19 = vmax.f32 %v1162_v43, %v1163_v4 }
 0x136   :  { %v827_v42 = vpop.f32.mrf.mxu0  ;;  %v1949_v45 = vpop.f32.mrf.mxu1  ;;  %v1952_v14 = vsub.s32 %v1246_v60, %v1819_v58  ;;  %v939_v60 = vadd.f32 %v1947_v35, %v1825_v31  ;;  %v822_v1 = vadd.f32 %v1937_v49, %v1823_v30  ;;  %v935_v10 = vadd.f32 %v1939_v51, %v1825_v31 }
 0x137   :  { %v1127_v23 = vmax.f32 %v1125_v9, %v1126_v6  ;;  %v1139_v44 = vrot.slane %v1138_v33, 2  ;;  %v1153_v50 = vmax.f32 %v1151_v47, %v1152_v40  ;;  %v1165_v52 = vrot.slane %v1164_v19, 2 }
 0x138   :  { %v831_v62 = vpop.f32.mrf.mxu0  ;;  %v944_v32 = vpop.f32.mrf.mxu1  ;;  %v828_v48 = vadd.f32 %v827_v42, %v1829_v34  ;;  %v941_v13 = vadd.f32 %v1949_v45, %v1831_v0  ;;  %v824_v35 = vadd.f32 %v1941_v2, %v1829_v34  ;;  %v1091_v51 = vmax.f32 %v935_v10, %v939_v60 }
 0x139   :  { %v1128_v3 = vrot.slane %v1127_v23, 1  ;;  %v1140_v54 = vmax.f32 %v1138_v33, %v1139_v44  ;;  %v1154_v29 = vrot.slane %v1153_v50, 1  ;;  %v1166_v15 = vmax.f32 %v1164_v19, %v1165_v52 }
 0x13a   :  { %v833_v16 = vpop.f32.mrf.mxu0  ;;  %v946_v38 = vpop.f32.mrf.mxu1  ;;  %v826_v44 = vadd.f32 %v1945_v27, %v1823_v30  ;;  %v945_v27 = vadd.f32 %v944_v32, %v1825_v31 }
 0x13b   :  { %v1129_v55 = vmax.f32 %v1127_v23, %v1128_v3  ;;  %v1141_v11 = vrot.slane %v1140_v54, 1  ;;  %v1155_v39 = vmax.f32 %v1153_v50, %v1154_v29  ;;  %v1167_v57 = vrot.slane %v1166_v15, 1 }
 0x13c   :  { %v835_v18 = vpop.f32.mrf.mxu0  ;;  %v948_v21 = vpop.f32.mrf.mxu1  ;;  %v832_v3 = vadd.f32 %v831_v62, %v1823_v30  ;;  %v834_v49 = vadd.f32 %v833_v16, %v1829_v34  ;;  %v937_v62 = vadd.f32 %v1943_v28, %v1831_v0 }
 0x13d   :  { %v1142_v20 = vmax.f32 %v1140_v54, %v1141_v11  ;;  %v1168_v5 = vmax.f32 %v1166_v15, %v1167_v57  ;;  %v1222_v24 = vsel %vm1221_vm0, %v1025_v37, %v1129_v55  ;;  %v1224_v7 = vsel %vm1221_vm0, %v1051_v56, %v1155_v39 }
 0x13e   :  { %v837_v22 = vpop.f32.mrf.mxu0  ;;  %v950_v25 = vpop.f32.mrf.mxu1  ;;  %v1065_v15 = vmax.f32 %v822_v1, %v826_v44  ;;  %v836_v42 = vadd.f32 %v835_v18, %v1823_v30  ;;  %v947_v11 = vadd.f32 %v946_v38, %v1831_v0  ;;  %v949_v45 = vadd.f32 %v948_v21, %v1825_v31 }
 0x13f   :  { %v1223_v41 = vsel %vm1221_vm0, %v1038_v46, %v1142_v20  ;;  %v1225_v43 = vsel %vm1221_vm0, %v1064_v59, %v1168_v5  ;;  %v1078_v39 = vmax.f32 %v824_v35, %v828_v48  ;;  %v838_v2 = vadd.f32 %v837_v22, %v1829_v34 }
 0x140   :  { %v1242_v61 = vcombine.low %v1222_v24, %v1223_v41  ;;  %v841_v9 = vpop.f32.mrf.mxu0  ;;  %v1243_v26 = vcombine.low %v1224_v7, %v1225_v43  ;;  %v954_v47 = vpop.f32.mrf.mxu1  ;;  %v1066_v57 = vmax.f32 %v1065_v15, %v832_v3  ;;  %v1104_v18 = vmax.f32 %v937_v62, %v941_v13 }
 0x141   :  { %v842_v16 = vadd.f32 %v841_v9, %v1823_v30  ;;  %v1092_v46 = vmax.f32 %v1091_v51, %v945_v27  ;;  %v951_v20 = vadd.f32 %v950_v25, %v1831_v0  ;;  %v955_v28 = vadd.f32 %v954_v47, %v1825_v31 }
 0x142   :  { %v1250_v12 = vrot.slane %v1242_v61, %v1952_v14  ;;  %v843_v63 = vpop.f32.mrf.mxu0  ;;  %v1257_v58 = vrot.slane %v1243_v26, %v1952_v14  ;;  %v956_v4 = vpop.f32.mrf.mxu1  ;;  %v1079_v38 = vmax.f32 %v1078_v39, %v834_v49  ;;  %v1067_v21 = vmax.f32 %v1066_v57, %v836_v42 }
 0x143   :  { %v844_v59 = vadd.f32 %v843_v63, %v1829_v34  ;;  %v1105_v22 = vmax.f32 %v1104_v18, %v947_v11  ;;  %v1093_v41 = vmax.f32 %v1092_v46, %v949_v45  ;;  %v957_v7 = vadd.f32 %v956_v4, %v1831_v0 }
 0x144   :  { %v845_v53 = vpop.f32.mrf.mxu0  ;;  %v1258_v17 = vcombine.low %v1250_v12, %v1257_v58  ;;  %v958_v6 = vpop.f32.mrf.mxu1  ;;  %v1080_v9 = vmax.f32 %v1079_v38, %v838_v2  ;;  %v1068_v25 = vmax.f32 %v1067_v21, %v842_v16 }
 0x145   :  { %v846_v5 = vadd.f32 %v845_v53, %v1823_v30  ;;  %v959_v61 = vadd.f32 %v958_v6, %v1825_v31  ;;  %v1106_v58 = vmax.f32 %v1105_v22, %v951_v20 }
 0x146   :  { %v847_v33 = vpop.f32.mrf.mxu0  ;;  %1278 = vst [vmem:[%s2076_s5] sm:$0xff] %v1258_v17  ;;  %v960_v36 = vpop.f32.mrf.mxu1  ;;  %v1094_v17 = vmax.f32 %v1093_v41, %v955_v28  ;;  %v1081_v60 = vmax.f32 %v1080_v9, %v844_v59 }
 0x147   :  { %v848_v26 = vadd.f32 %v847_v33, %v1829_v34  ;;  %v961_v63 = vadd.f32 %v960_v36, %v1831_v0  ;;  %v1069_v1 = vmax.f32 %v1068_v25, %v846_v5  ;;  %v1107_v3 = vmax.f32 %v1106_v58, %v957_v7 }
 0x148   :  { %v851_v8 = vpop.f32.mrf.mxu0  ;;  %v964_v40 = vpop.f32.mrf.mxu1  ;;  %v1095_v10 = vmax.f32 %v1094_v17, %v959_v61 }
 0x149   :  { %v852_v47 = vadd.f32 %v851_v8, %v1823_v30  ;;  %v965_v53 = vadd.f32 %v964_v40, %v1825_v31  ;;  %v1082_v27 = vmax.f32 %v1081_v60, %v848_v26  ;;  %v1108_v15 = vmax.f32 %v1107_v3, %v961_v63 }
 0x14a   :  { %v853_v19 = vpop.f32.mrf.mxu0  ;;  %v966_v23 = vpop.f32.mrf.mxu1 }
 0x14b   :  { %v854_v4 = vadd.f32 %v853_v19, %v1829_v34  ;;  %v967_v33 = vadd.f32 %v966_v23, %v1831_v0  ;;  %v1070_v35 = vmax.f32 %v1069_v1, %v852_v47  ;;  %v1096_v49 = vmax.f32 %v1095_v10, %v965_v53 }
 0x14c   :  { %v855_v50 = vpop.f32.mrf.mxu0  ;;  %v968_v52 = vpop.f32.mrf.mxu1 }
 0x14d   :  { %v856_v6 = vadd.f32 %v855_v50, %v1823_v30  ;;  %v969_v8 = vadd.f32 %v968_v52, %v1825_v31  ;;  %v1083_v62 = vmax.f32 %v1082_v27, %v854_v4  ;;  %v1109_v11 = vmax.f32 %v1108_v15, %v967_v33 }
 0x14e   :  { %v857_v54 = vpop.f32.mrf.mxu0  ;;  %v970_v29 = vpop.f32.mrf.mxu1 }
 0x14f   :  { %v858_v36 = vadd.f32 %v857_v54, %v1829_v34  ;;  %v971_v42 = vadd.f32 %v970_v29, %v1831_v0  ;;  %v2010_v50 = vmax.f32 %v1070_v35, %v856_v6  ;;  %v2012_v45 = vmax.f32 %v1096_v49, %v969_v8 }
 0x150   :  { %v1980_v55 = vpop.f32.mrf.mxu0  ;;  %v1986_v32 = vpop.f32.mrf.mxu1 }
 0x151   :  { %v2014_v52 = vmax.f32 %v1083_v62, %v858_v36  ;;  %v2016_v57 = vmax.f32 %v1109_v11, %v971_v42  ;;  %v1072_v16 = vrot.slane %v2010_v50, 4  ;;  %v862_v29 = vadd.f32 %v1980_v55, %v1823_v30 }
 0x152   :  { %v1990_v37 = vpop.f32.mrf.mxu0  ;;  %v1994_v56 = vpop.f32.mrf.mxu1  ;;  %v1098_v20 = vrot.slane %v2012_v45, 4  ;;  %v975_v28 = vadd.f32 %v1986_v32, %v1825_v31 }
 0x153   :  { %v1085_v5 = vrot.slane %v2014_v52, 4  ;;  %v1111_v7 = vrot.slane %v2016_v57, 4  ;;  %v977_v25 = vadd.f32 %v1994_v56, %v1831_v0 }
 0x154   :  { %v865_v24 = vpop.f32.mrf.mxu0  ;;  %v978_v43 = vpop.f32.mrf.mxu1 }
 0x155   :  { %v866_v54 = vadd.f32 %v865_v24, %v1823_v30  ;;  %v979_v18 = vadd.f32 %v978_v43, %v1825_v31  ;;  %v864_v24 = vadd.f32 %v1990_v37, %v1829_v34 }
 0x156   :  { %v867_v12 = vpop.f32.mrf.mxu0  ;;  %v980_v44 = vpop.f32.mrf.mxu1 }
 0x157   :  { %v868_v38 = vadd.f32 %v867_v12, %v1829_v34  ;;  %v981_v55 = vadd.f32 %v980_v44, %v1831_v0  ;;  %v1169_v61 = vmax.f32 %v862_v29, %v866_v54  ;;  %v1195_v26 = vmax.f32 %v975_v28, %v979_v18 }
 0x158   :  { %v871_v48 = vpop.f32.mrf.mxu0  ;;  %v984_v13 = vpop.f32.mrf.mxu1 }
 0x159   :  { %v872_v21 = vadd.f32 %v871_v48, %v1823_v30  ;;  %v985_v22 = vadd.f32 %v984_v13, %v1825_v31  ;;  %v1182_v58 = vmax.f32 %v864_v24, %v868_v38  ;;  %v1208_v60 = vmax.f32 %v977_v25, %v981_v55 }
 0x15a   :  { %v873_v40 = vpop.f32.mrf.mxu0  ;;  %v986_v19 = vpop.f32.mrf.mxu1  ;;  %v1099_v38 = vmax.f32 %v2012_v45, %v1098_v20 }
 0x15b   :  { %v874_v32 = vadd.f32 %v873_v40, %v1829_v34  ;;  %v987_v47 = vadd.f32 %v986_v19, %v1831_v0  ;;  %v1170_v17 = vmax.f32 %v1169_v61, %v872_v21  ;;  %v1196_v1 = vmax.f32 %v1195_v26, %v985_v22 }
 0x15c   :  { %v875_v51 = vpop.f32.mrf.mxu0  ;;  %v988_v23 = vpop.f32.mrf.mxu1  ;;  %v1086_v22 = vmax.f32 %v2014_v52, %v1085_v5 }
 0x15d   :  { %v876_v43 = vadd.f32 %v875_v51, %v1823_v30  ;;  %v989_v37 = vadd.f32 %v988_v23, %v1825_v31  ;;  %v1183_v48 = vmax.f32 %v1182_v58, %v874_v32  ;;  %v1209_v13 = vmax.f32 %v1208_v60, %v987_v47 }
 0x15e   :  { %v877_v39 = vpop.f32.mrf.mxu0  ;;  %v990_v2 = vpop.f32.mrf.mxu1  ;;  %v1100_v58 = vrot.slane %v1099_v38, 2 }
 0x15f   :  { %v878_v63 = vadd.f32 %v877_v39, %v1829_v34  ;;  %v991_v4 = vadd.f32 %v990_v2, %v1831_v0  ;;  %v1171_v3 = vmax.f32 %v1170_v17, %v876_v43  ;;  %v1197_v27 = vmax.f32 %v1196_v1, %v989_v37 }
 0x160   :  { %v881_v46 = vpop.f32.mrf.mxu0  ;;  %v994_v59 = vpop.f32.mrf.mxu1  ;;  %v1073_v2 = vmax.f32 %v2010_v50, %v1072_v16  ;;  %v1112_v50 = vmax.f32 %v2016_v57, %v1111_v7 }
 0x161   :  { %v882_v53 = vadd.f32 %v881_v46, %v1823_v30  ;;  %v995_v6 = vadd.f32 %v994_v59, %v1825_v31  ;;  %v1184_v15 = vmax.f32 %v1183_v48, %v878_v63  ;;  %v1210_v51 = vmax.f32 %v1209_v13, %v991_v4 }
 0x162   :  { %v883_v41 = vpop.f32.mrf.mxu0  ;;  %v996_v9 = vpop.f32.mrf.mxu1  ;;  %v1074_v45 = vrot.slane %v1073_v2, 2  ;;  %v1113_v57 = vrot.slane %v1112_v50, 2  ;;  %v1101_v4 = vmax.f32 %v1099_v38, %v1100_v58 }
 0x163   :  { %v884_v10 = vadd.f32 %v883_v41, %v1829_v34  ;;  %v997_v35 = vadd.f32 %v996_v9, %v1831_v0  ;;  %v1172_v49 = vmax.f32 %v1171_v3, %v882_v53  ;;  %v1198_v11 = vmax.f32 %v1197_v27, %v995_v6 }
 0x164   :  { %v885_v12 = vpop.f32.mrf.mxu0  ;;  %v998_v44 = vpop.f32.mrf.mxu1  ;;  %v1075_v60 = vmax.f32 %v1073_v2, %v1074_v45 }
 0x165   :  { %v886_v33 = vadd.f32 %v885_v12, %v1823_v30  ;;  %v999_v36 = vadd.f32 %v998_v44, %v1825_v31  ;;  %v1185_v29 = vmax.f32 %v1184_v15, %v884_v10  ;;  %v1211_v21 = vmax.f32 %v1210_v51, %v997_v35 }
 0x166   :  { %v887_v56 = vpop.f32.mrf.mxu0  ;;  %v1000_v8 = vpop.f32.mrf.mxu1  ;;  %v1114_v10 = vmax.f32 %v1112_v50, %v1113_v57  ;;  %v1076_v13 = vrot.slane %v1075_v60, 1  ;;  %v1102_v35 = vrot.slane %v1101_v4, 1 }
 0x167   :  { %v888_v42 = vadd.f32 %v887_v56, %v1829_v34  ;;  %v1001_v23 = vadd.f32 %v1000_v8, %v1831_v0  ;;  %v1173_v18 = vmax.f32 %v1172_v49, %v886_v33  ;;  %v1199_v59 = vmax.f32 %v1198_v11, %v999_v36 }
 0x168   :  { %v891_v40 = vpop.f32.mrf.mxu0  ;;  %v1004_v62 = vpop.f32.mrf.mxu1  ;;  %v1077_v11 = vmax.f32 %v1075_v60, %v1076_v13 }
 0x169   :  { %v892_v19 = vadd.f32 %v891_v40, %v1823_v30  ;;  %v1005_v39 = vadd.f32 %v1004_v62, %v1825_v31  ;;  %v1186_v41 = vmax.f32 %v1185_v29, %v888_v42  ;;  %v1212_v16 = vmax.f32 %v1211_v21, %v1001_v23 }
 0x16a   :  { %v893_v54 = vpop.f32.mrf.mxu0  ;;  %v1006_v28 = vpop.f32.mrf.mxu1 }
 0x16b   :  { %v894_v46 = vadd.f32 %v893_v54, %v1829_v34  ;;  %v1007_v24 = vadd.f32 %v1006_v28, %v1831_v0  ;;  %v1174_v61 = vmax.f32 %v1173_v18, %v892_v19  ;;  %v1200_v9 = vmax.f32 %v1199_v59, %v1005_v39 }
 0x16c   :  { %v895_v55 = vpop.f32.mrf.mxu0  ;;  %v1008_v43 = vpop.f32.mrf.mxu1  ;;  %v1115_v19 = vrot.slane %v1114_v10, 1  ;;  %v1103_v54 = vmax.f32 %v1101_v4, %v1102_v35 }
 0x16d   :  { %v896_v32 = vadd.f32 %v895_v55, %v1823_v30  ;;  %v1009_v25 = vadd.f32 %v1008_v43, %v1825_v31  ;;  %v1187_v20 = vmax.f32 %v1186_v41, %v894_v46  ;;  %v1213_v52 = vmax.f32 %v1212_v16, %v1007_v24 }
 0x16e   :  { %v897_v26 = vpop.f32.mrf.mxu0  ;;  %v1010_v12 = vpop.f32.mrf.mxu1  ;;  %v1087_v30 = vrot.slane %v1086_v22, 2  ;;  %v1116_v38 = vmax.f32 %v1114_v10, %v1115_v19 }
 0x16f   :  { %v1175_v47 = vmax.f32 %v1174_v61, %v896_v32  ;;  %v898_v37 = vadd.f32 %v897_v26, %v1829_v34  ;;  %v1201_v5 = vmax.f32 %v1200_v9, %v1009_v25  ;;  %v1011_v17 = vadd.f32 %v1010_v12, %v1831_v0 }
 0x170   :  { %v1088_v48 = vmax.f32 %v1086_v22, %v1087_v30 }
 0x171   :  { %v1176_v63 = vrot.slane %v1175_v47, 4  ;;  %v1188_v53 = vmax.f32 %v1187_v20, %v898_v37  ;;  %v1202_v7 = vrot.slane %v1201_v5, 4  ;;  %v1214_v44 = vmax.f32 %v1213_v52, %v1011_v17 }
 0x172   :  { %v1089_v15 = vrot.slane %v1088_v48, 1 }
 0x173   :  { %v1177_v31 = vmax.f32 %v1175_v47, %v1176_v63  ;;  %v1189_v1 = vrot.slane %v1188_v53, 4  ;;  %v1203_v6 = vmax.f32 %v1201_v5, %v1202_v7  ;;  %v1215_v56 = vrot.slane %v1214_v44, 4 }
 0x174   :  { %v1090_v18 = vmax.f32 %v1088_v48, %v1089_v15 }
 0x175   :  { %v1178_v34 = vrot.slane %v1177_v31, 2  ;;  %v1190_v3 = vmax.f32 %v1188_v53, %v1189_v1  ;;  %v1204_v33 = vrot.slane %v1203_v6, 2  ;;  %v1216_v8 = vmax.f32 %v1214_v44, %v1215_v56 }
 0x177   :  { %v1179_v0 = vmax.f32 %v1177_v31, %v1178_v34  ;;  %v1191_v27 = vrot.slane %v1190_v3, 2  ;;  %v1205_v36 = vmax.f32 %v1203_v6, %v1204_v33  ;;  %v1217_v40 = vrot.slane %v1216_v8, 2 }
 0x179   :  { %v1180_v49 = vrot.slane %v1179_v0, 1  ;;  %v1192_v42 = vmax.f32 %v1190_v3, %v1191_v27  ;;  %v1206_v62 = vrot.slane %v1205_v36, 1  ;;  %v1218_v51 = vmax.f32 %v1216_v8, %v1217_v40 }
 0x17b   :  { %v1181_v23 = vmax.f32 %v1179_v0, %v1180_v49  ;;  %v1193_v39 = vrot.slane %v1192_v42, 1  ;;  %v1207_v2 = vmax.f32 %v1205_v36, %v1206_v62  ;;  %v1219_v29 = vrot.slane %v1218_v51, 1 }
 0x17d   :  { %v1226_v46 = vsel %vm1221_vm0, %v1077_v11, %v1181_v23  ;;  %v1194_v28 = vmax.f32 %v1192_v42, %v1193_v39  ;;  %v1228_v21 = vsel %vm1221_vm0, %v1103_v54, %v1207_v2  ;;  %v1220_v59 = vmax.f32 %v1218_v51, %v1219_v29 }
 0x17f   :  { %v1227_v24 = vsel %vm1221_vm0, %v1090_v18, %v1194_v28  ;;  %v1229_v22 = vsel %vm1221_vm0, %v1116_v38, %v1220_v59 }
 0x180   :  { %v1259_v55 = vcombine.low %v1226_v46, %v1227_v24  ;;  %v1260_v41 = vcombine.low %v1228_v21, %v1229_v22 }
 0x182   :  { %v1267_v61 = vrot.slane %v1259_v55, %v1952_v14  ;;  %v1274_v32 = vrot.slane %v1260_v41, %v1952_v14 }
 0x184   :  { %v1275_v43 = vcombine.low %v1267_v61, %v1274_v32 }
 0x186   :  { %1279 = vst [vmem:[%s2076_s5 + $0x8] sm:$0xff] %v1275_v43 }
 0x187   :  { %1338 = vsyncpa [#allocation3], 1 }

// kernel: tnet_forward.7
= control target key start
LH: loop header
LB: loop body
LE: loop exit
PB: predicated region body
PF: predicated region fallthrough
CT: control target
= control target key end

     0   :  { %v3495_v36 = vmov 1983009808   ;;  %v35_v38 = vlaneseq  ;;  %s4639_s1 = inlined_call_operand.vmem [shape: bf16[1024,512], index: 1, kind: input, shape index: {}]   ;;  %s4640_s0 = inlined_call_operand.vmem [shape: f32[2,1024], index: 0, kind: input, shape index: {}]   ;;  %s4641_s3 = inlined_call_operand.vmem [shape: bf16[512,256], index: 3, kind: input, shape index: {}]   ;;  %s4642_s2 = inlined_call_operand.vmem [shape: f32[1,512], index: 2, kind: input, shape index: {}]   ;;  %s4643_s5 = inlined_call_operand.vmem [shape: bf16[256,128], index: 5, kind: input, shape index: {}]   ;;  %s4644_s4 = inlined_call_operand.vmem [shape: f32[1,256], index: 4, kind: input, shape index: {}]   ;;  %s4645_s6 = inlined_call_operand.vmem [shape: f32[1,128], index: 6, kind: input, shape index: {}]   ;;  %s4646_s7 = inlined_call_operand.vmem [shape: f32[2,128], index: 7, kind: output, shape index: {}]  }
   0x1   :  { %v2997_v0 = vld [vmem:[%s4639_s1 + $0xe4] ss:$16 sps:$4 sm:$0xff]   ;;  %v3001_v2 = vld [vmem:[%s4639_s1 + $0xe0] ss:$16 sps:$4 sm:$0xff]   ;;  %v33_v37 = vunpack.c.l.s4 %v3495_v36 }
   0x2   :  { %v2999_v1 = vld [vmem:[%s4639_s1 + $0x2e4] ss:$16 sps:$4 sm:$0xff]   ;;  %1639 = vmatprep.subr.bf16.mxu0 %v2997_v0  ;;  %v3002_v3 = vld [vmem:[%s4639_s1 + $0x2e0] ss:$16 sps:$4 sm:$0xff]   ;;  %v3653_v43 = vshrl.u32 %v35_v38, 7 }
   0x3   :  { %1680 = vmatprep.subr.bf16.mxu1 %v2999_v1  ;;  %v3003_v4 = vld [vmem:[%s4639_s1 + $0xc4] ss:$16 sps:$4 sm:$0xff]   ;;  %1640 = vmatpush1.bf16.msra.mxu0 %v3001_v2  ;;  %v3007_v6 = vld [vmem:[%s4639_s1 + $0xc0] ss:$16 sps:$4 sm:$0xff]   ;;  %v34_v42 = vunpack.c.0.s8 %v33_v37 }
   0x4   :  { %1681 = vmatpush1.bf16.msra.mxu1 %v3002_v3  ;;  %v3005_v5 = vld [vmem:[%s4639_s1 + $0x2c4] ss:$16 sps:$4 sm:$0xff]   ;;  %1641 = vmatprep.subr.bf16.mxu0 %v3003_v4  ;;  %v3008_v7 = vld [vmem:[%s4639_s1 + $0x2c0] ss:$16 sps:$4 sm:$0xff]   ;;  %v28_v4 = vld [vmem:[%s4640_s0 + $0x8] sm:$0xff] }
   0x5   :  { %1682 = vmatprep.subr.bf16.mxu1 %v3005_v5  ;;  %v3009_v8 = vld [vmem:[%s4639_s1 + $0xa4] ss:$16 sps:$4 sm:$0xff]   ;;  %v3013_v10 = vld [vmem:[%s4639_s1 + $0xa0] ss:$16 sps:$4 sm:$0xff]   ;;  %v37_v49 = vsub.s32 %v34_v42, %v3653_v43 }
   0x6   :  { %v3011_v9 = vld [vmem:[%s4639_s1 + $0x2a4] ss:$16 sps:$4 sm:$0xff]   ;;  %v3014_v11 = vld [vmem:[%s4639_s1 + $0x2a0] ss:$16 sps:$4 sm:$0xff]  }
   0x7   :  { %1642 = vmatpush1.bf16.msra.mxu0 %v3007_v6  ;;  %v3015_v12 = vld [vmem:[%s4639_s1 + $0x84] ss:$16 sps:$4 sm:$0xff]   ;;  %v3019_v14 = vld [vmem:[%s4639_s1 + $0x80] ss:$16 sps:$4 sm:$0xff]  }
   0x8   :  { %1683 = vmatpush1.bf16.msra.mxu1 %v3008_v7  ;;  %1643 = vmatprep.subr.bf16.mxu0 %v3009_v8  ;;  %v3017_v13 = vld [vmem:[%s4639_s1 + $0x284] ss:$16 sps:$4 sm:$0xff]   ;;  %v3020_v15 = vld [vmem:[%s4639_s1 + $0x280] ss:$16 sps:$4 sm:$0xff]  }
   0x9   :  { %1684 = vmatprep.subr.bf16.mxu1 %v3011_v9  ;;  %v3021_v16 = vld [vmem:[%s4639_s1 + $0x64] ss:$16 sps:$4 sm:$0xff]   ;;  %v3025_v18 = vld [vmem:[%s4639_s1 + $0x60] ss:$16 sps:$4 sm:$0xff]   ;;  %v48_v9 = vcombine.high %v28_v4, %v28_v4 }
   0xa   :  { %v3023_v17 = vld [vmem:[%s4639_s1 + $0x264] ss:$16 sps:$4 sm:$0xff]   ;;  %v3026_v19 = vld [vmem:[%s4639_s1 + $0x260] ss:$16 sps:$4 sm:$0xff]  }
   0xb   :  { %1644 = vmatpush1.bf16.msra.mxu0 %v3013_v10  ;;  %v3027_v20 = vld [vmem:[%s4639_s1 + $0x44] ss:$16 sps:$4 sm:$0xff]   ;;  %v3031_v22 = vld [vmem:[%s4639_s1 + $0x40] ss:$16 sps:$4 sm:$0xff]  }
   0xc   :  { %1685 = vmatpush1.bf16.msra.mxu1 %v3014_v11  ;;  %1645 = vmatprep.subr.bf16.mxu0 %v3015_v12  ;;  %v3029_v21 = vld [vmem:[%s4639_s1 + $0x244] ss:$16 sps:$4 sm:$0xff]   ;;  %v3032_v23 = vld [vmem:[%s4639_s1 + $0x240] ss:$16 sps:$4 sm:$0xff]  }
   0xd   :  { %1686 = vmatprep.subr.bf16.mxu1 %v3017_v13  ;;  %v3033_v24 = vld [vmem:[%s4639_s1 + $0x24] ss:$16 sps:$4 sm:$0xff]   ;;  %v3037_v26 = vld [vmem:[%s4639_s1 + $0x20] ss:$16 sps:$4 sm:$0xff]  }
   0xe   :  { %v3035_v25 = vld [vmem:[%s4639_s1 + $0x224] ss:$16 sps:$4 sm:$0xff]   ;;  %v3038_v27 = vld [vmem:[%s4639_s1 + $0x220] ss:$16 sps:$4 sm:$0xff]  }
   0xf   :  { %1646 = vmatpush1.bf16.msra.mxu0 %v3019_v14  ;;  %v3039_v28 = vld [vmem:[%s4639_s1 + $0x4] ss:$16 sps:$4 sm:$0xff]   ;;  %v3043_v30 = vld [vmem:[%s4639_s1] ss:$16 sps:$4 sm:$0xff]   ;;  %v3737_v14 = vrot.slane %v28_v4, %v37_v49 }
  0x10   :  { %1687 = vmatpush1.bf16.msra.mxu1 %v3020_v15  ;;  %1647 = vmatprep.subr.bf16.mxu0 %v3021_v16  ;;  %v3041_v29 = vld [vmem:[%s4639_s1 + $0x204] ss:$16 sps:$4 sm:$0xff]   ;;  %v3044_v31 = vld [vmem:[%s4639_s1 + $0x200] ss:$16 sps:$4 sm:$0xff]   ;;  %v3739_v15 = vrot.slane %v48_v9, %v37_v49 }
  0x11   :  { %1688 = vmatprep.subr.bf16.mxu1 %v3023_v17  ;;  %v3045_v32 = vld [vmem:[%s4639_s1 + $0x1e4] ss:$16 sps:$4 sm:$0xff]   ;;  %v3049_v34 = vld [vmem:[%s4639_s1 + $0x1e0] ss:$16 sps:$4 sm:$0xff]  }
  0x12   :  { %v3047_v33 = vld [vmem:[%s4639_s1 + $0x3e4] ss:$16 sps:$4 sm:$0xff]   ;;  %v3050_v35 = vld [vmem:[%s4639_s1 + $0x3e0] ss:$16 sps:$4 sm:$0xff]  }
  0x13   :  { %1648 = vmatpush1.bf16.msra.mxu0 %v3025_v18  ;;  %v3051_v39 = vld [vmem:[%s4639_s1 + $0x1c4] ss:$16 sps:$4 sm:$0xff]   ;;  %v3055_v41 = vld [vmem:[%s4639_s1 + $0x1c0] ss:$16 sps:$4 sm:$0xff]  }
  0x14   :  { %1689 = vmatpush1.bf16.msra.mxu1 %v3026_v19  ;;  %1649 = vmatprep.subr.bf16.mxu0 %v3027_v20  ;;  %v3053_v40 = vld [vmem:[%s4639_s1 + $0x3c4] ss:$16 sps:$4 sm:$0xff]   ;;  %v3056_v44 = vld [vmem:[%s4639_s1 + $0x3c0] ss:$16 sps:$4 sm:$0xff]   ;;  %v63_v20 = vcombine.high %v3737_v14, %v3737_v14 }
  0x15   :  { %1690 = vmatprep.subr.bf16.mxu1 %v3029_v21  ;;  %v3057_v45 = vld [vmem:[%s4639_s1 + $0x1a4] ss:$16 sps:$4 sm:$0xff]   ;;  %v3061_v47 = vld [vmem:[%s4639_s1 + $0x1a0] ss:$16 sps:$4 sm:$0xff]   ;;  %v64_v21 = vcombine.high %v3739_v15, %v3739_v15 }
  0x16   :  { %v3059_v46 = vld [vmem:[%s4639_s1 + $0x3a4] ss:$16 sps:$4 sm:$0xff]   ;;  %v3062_v48 = vld [vmem:[%s4639_s1 + $0x3a0] ss:$16 sps:$4 sm:$0xff]  }
  0x17   :  { %1650 = vmatpush1.bf16.msra.mxu0 %v3031_v22  ;;  %v3063_v50 = vld [vmem:[%s4639_s1 + $0x184] ss:$16 sps:$4 sm:$0xff]   ;;  %v3067_v55 = vld [vmem:[%s4639_s1 + $0x180] ss:$16 sps:$4 sm:$0xff]  }
  0x18   :  { %1691 = vmatpush1.bf16.msra.mxu1 %v3032_v23  ;;  %1651 = vmatprep.subr.bf16.mxu0 %v3033_v24  ;;  %v3065_v51 = vld [vmem:[%s4639_s1 + $0x384] ss:$16 sps:$4 sm:$0xff]   ;;  %v3068_v56 = vld [vmem:[%s4639_s1 + $0x380] ss:$16 sps:$4 sm:$0xff]  }
  0x19   :  { %1692 = vmatprep.subr.bf16.mxu1 %v3035_v25  ;;  %v27_v52 = vld [vmem:[%s4640_s0] sm:$0xff] }
  0x1a   :  { %v38_v53 = vrot.slane %v27_v52, %v37_v49  ;;  %v31_v54 = vcombine.high %v27_v52, %v27_v52  ;;  %v3069_v57 = vld [vmem:[%s4639_s1 + $0x164] ss:$16 sps:$4 sm:$0xff]   ;;  %v3073_v63 = vld [vmem:[%s4639_s1 + $0x160] ss:$16 sps:$4 sm:$0xff]  }
  0x1b   :  { %1652 = vmatpush1.bf16.msra.mxu0 %v3037_v26  ;;  %v3071_v58 = vld [vmem:[%s4639_s1 + $0x364] ss:$16 sps:$4 sm:$0xff]   ;;  %v3074_v0 = vld [vmem:[%s4639_s1 + $0x360] ss:$16 sps:$4 sm:$0xff]  }
  0x1c   :  { %1693 = vmatpush1.bf16.msra.mxu1 %v3038_v27  ;;  %1653 = vmatprep.subr.bf16.mxu0 %v3039_v28  ;;  %v46_v59 = vcombine.high %v38_v53, %v38_v53  ;;  %v45_v60 = vrot.slane %v31_v54, %v37_v49  ;;  %v3075_v1 = vld [vmem:[%s4639_s1 + $0x144] ss:$16 sps:$4 sm:$0xff]   ;;  %v3079_v5 = vld [vmem:[%s4639_s1 + $0x140] ss:$16 sps:$4 sm:$0xff]   ;;  %v3757_v22 = vpack.c.bf16 %v38_v53, %v38_v53 }
  0x1d   :  { %1694 = vmatprep.subr.bf16.mxu1 %v3041_v29  ;;  %v3077_v2 = vld [vmem:[%s4639_s1 + $0x344] ss:$16 sps:$4 sm:$0xff]   ;;  %v3080_v6 = vld [vmem:[%s4639_s1 + $0x340] ss:$16 sps:$4 sm:$0xff]   ;;  %v3773_v28 = vpack.c.bf16 %v63_v20, %v63_v20  ;;  %v3775_v29 = vpack.c.bf16 %v64_v21, %v64_v21 }
  0x1e   :  { %v3692_v61 = vpack.c.bf16 %v46_v59, %v46_v59  ;;  %v47_v62 = vcombine.high %v45_v60, %v45_v60  ;;  %v3081_v7 = vld [vmem:[%s4639_s1 + $0x124] ss:$16 sps:$4 sm:$0xff]   ;;  %v3085_v10 = vld [vmem:[%s4639_s1 + $0x120] ss:$16 sps:$4 sm:$0xff]   ;;  %v3759_v23 = vpack.c.bf16 %v45_v60, %v45_v60 }
  0x1f   :  { %1654 = vmatpush1.bf16.msra.mxu0 %v3043_v30  ;;  %v3083_v8 = vld [vmem:[%s4639_s1 + $0x324] ss:$16 sps:$4 sm:$0xff]   ;;  %v3086_v11 = vld [vmem:[%s4639_s1 + $0x320] ss:$16 sps:$4 sm:$0xff]  }
  0x20   :  { %1695 = vmatpush1.bf16.msra.mxu1 %v3044_v31  ;;  %1655 = vmatprep.subr.bf16.mxu0 %v3045_v32  ;;  %v3706_v3 = vpack.c.bf16 %v47_v62, %v47_v62  ;;  %v3087_v12 = vld [vmem:[%s4639_s1 + $0x104] ss:$16 sps:$4 sm:$0xff]   ;;  %v3091_v16 = vld [vmem:[%s4639_s1 + $0x100] ss:$16 sps:$4 sm:$0xff]  }
  0x21   :  { %1696 = vmatprep.subr.bf16.mxu1 %v3047_v33  ;;  %1671 = vmatprep.mubr.bf16.mxu0 %v3692_v61  ;;  %v3089_v13 = vld [vmem:[%s4639_s1 + $0x304] ss:$16 sps:$4 sm:$0xff]   ;;  %v3092_v17 = vld [vmem:[%s4639_s1 + $0x300] ss:$16 sps:$4 sm:$0xff]  }
  0x22   :  { %1712 = vmatprep.mubr.bf16.mxu1 %v3706_v3  ;;  %v3097_v18 = vld [vmem:[%s4639_s1 + $0x4e4] ss:$16 sps:$4 sm:$0xff]   ;;  %v3095_v24 = vld [vmem:[%s4639_s1 + $0x4e0] ss:$16 sps:$4 sm:$0xff]  }
  0x23   :  { %1656 = vmatpush2.bf16.msra.mxu0 %v3049_v34  ;;  %v3100_v19 = vld [vmem:[%s4639_s1 + $0x6e4] ss:$16 sps:$4 sm:$0xff]   ;;  %v3098_v25 = vld [vmem:[%s4639_s1 + $0x6e0] ss:$16 sps:$4 sm:$0xff]  }
  0x24   :  { %1697 = vmatpush2.bf16.msra.mxu1 %v3050_v35  ;;  %1657 = vmatprep.subr.bf16.mxu0 %v3051_v39  ;;  %v3103_v26 = vld [vmem:[%s4639_s1 + $0x4c4] ss:$16 sps:$4 sm:$0xff]   ;;  %v3101_v30 = vld [vmem:[%s4639_s1 + $0x4c0] ss:$16 sps:$4 sm:$0xff]  }
  0x25   :  { %1698 = vmatprep.subr.bf16.mxu1 %v3053_v40  ;;  %v3106_v27 = vld [vmem:[%s4639_s1 + $0x6c4] ss:$16 sps:$4 sm:$0xff]   ;;  %v3104_v31 = vld [vmem:[%s4639_s1 + $0x6c0] ss:$16 sps:$4 sm:$0xff]  }
  0x26   :  { %v3109_v32 = vld [vmem:[%s4639_s1 + $0x4a4] ss:$16 sps:$4 sm:$0xff]   ;;  %v3107_v34 = vld [vmem:[%s4639_s1 + $0x4a0] ss:$16 sps:$4 sm:$0xff]  }
  0x27   :  { %1658 = vmatpush2.bf16.msra.mxu0 %v3055_v41  ;;  %v3112_v33 = vld [vmem:[%s4639_s1 + $0x6a4] ss:$16 sps:$4 sm:$0xff]   ;;  %v3110_v35 = vld [vmem:[%s4639_s1 + $0x6a0] ss:$16 sps:$4 sm:$0xff]  }
  0x28   :  { %1699 = vmatpush2.bf16.msra.mxu1 %v3056_v44  ;;  %1659 = vmatprep.subr.bf16.mxu0 %v3057_v45  ;;  %v3115_v36 = vld [vmem:[%s4639_s1 + $0x484] ss:$16 sps:$4 sm:$0xff]   ;;  %v3113_v38 = vld [vmem:[%s4639_s1 + $0x480] ss:$16 sps:$4 sm:$0xff]  }
  0x29   :  { %1700 = vmatprep.subr.bf16.mxu1 %v3059_v46  ;;  %v3118_v37 = vld [vmem:[%s4639_s1 + $0x684] ss:$16 sps:$4 sm:$0xff]   ;;  %v3116_v39 = vld [vmem:[%s4639_s1 + $0x680] ss:$16 sps:$4 sm:$0xff]  }
  0x2a   :  { %v3121_v40 = vld [vmem:[%s4639_s1 + $0x464] ss:$16 sps:$4 sm:$0xff]   ;;  %v3119_v42 = vld [vmem:[%s4639_s1 + $0x460] ss:$16 sps:$4 sm:$0xff]  }
  0x2b   :  { %1660 = vmatpush2.bf16.msra.mxu0 %v3061_v47  ;;  %v3124_v41 = vld [vmem:[%s4639_s1 + $0x664] ss:$16 sps:$4 sm:$0xff]   ;;  %v3122_v44 = vld [vmem:[%s4639_s1 + $0x660] ss:$16 sps:$4 sm:$0xff]  }
  0x2c   :  { %1701 = vmatpush2.bf16.msra.mxu1 %v3062_v48  ;;  %1661 = vmatprep.subr.bf16.mxu0 %v3063_v50  ;;  %v3127_v45 = vld [vmem:[%s4639_s1 + $0x444] ss:$16 sps:$4 sm:$0xff]   ;;  %v3125_v47 = vld [vmem:[%s4639_s1 + $0x440] ss:$16 sps:$4 sm:$0xff]  }
  0x2d   :  { %1702 = vmatprep.subr.bf16.mxu1 %v3065_v51  ;;  %v3130_v46 = vld [vmem:[%s4639_s1 + $0x644] ss:$16 sps:$4 sm:$0xff]   ;;  %v3128_v48 = vld [vmem:[%s4639_s1 + $0x640] ss:$16 sps:$4 sm:$0xff]  }
  0x2e   :  { %v3133_v49 = vld [vmem:[%s4639_s1 + $0x424] ss:$16 sps:$4 sm:$0xff]   ;;  %v3131_v51 = vld [vmem:[%s4639_s1 + $0x420] ss:$16 sps:$4 sm:$0xff]  }
  0x2f   :  { %1662 = vmatpush2.bf16.msra.mxu0 %v3067_v55  ;;  %v3136_v50 = vld [vmem:[%s4639_s1 + $0x624] ss:$16 sps:$4 sm:$0xff]   ;;  %v3134_v52 = vld [vmem:[%s4639_s1 + $0x620] ss:$16 sps:$4 sm:$0xff]  }
  0x30   :  { %1703 = vmatpush2.bf16.msra.mxu1 %v3068_v56  ;;  %1663 = vmatprep.subr.bf16.mxu0 %v3069_v57  ;;  %v3139_v53 = vld [vmem:[%s4639_s1 + $0x404] ss:$16 sps:$4 sm:$0xff]   ;;  %v3137_v55 = vld [vmem:[%s4639_s1 + $0x400] ss:$16 sps:$4 sm:$0xff]  }
  0x31   :  { %1704 = vmatprep.subr.bf16.mxu1 %v3071_v58  ;;  %v3142_v54 = vld [vmem:[%s4639_s1 + $0x604] ss:$16 sps:$4 sm:$0xff]   ;;  %v3140_v56 = vld [vmem:[%s4639_s1 + $0x600] ss:$16 sps:$4 sm:$0xff]  }
  0x32   :  { %v3145_v57 = vld [vmem:[%s4639_s1 + $0x5e4] ss:$16 sps:$4 sm:$0xff]   ;;  %v3143_v59 = vld [vmem:[%s4639_s1 + $0x5e0] ss:$16 sps:$4 sm:$0xff]  }
  0x33   :  { %1664 = vmatpush2.bf16.msra.mxu0 %v3073_v63  ;;  %v3148_v58 = vld [vmem:[%s4639_s1 + $0x7e4] ss:$16 sps:$4 sm:$0xff]   ;;  %v3146_v60 = vld [vmem:[%s4639_s1 + $0x7e0] ss:$16 sps:$4 sm:$0xff]  }
  0x34   :  { %1705 = vmatpush2.bf16.msra.mxu1 %v3074_v0  ;;  %1665 = vmatprep.subr.bf16.mxu0 %v3075_v1  ;;  %v3151_v62 = vld [vmem:[%s4639_s1 + $0x5c4] ss:$16 sps:$4 sm:$0xff]   ;;  %v3149_v0 = vld [vmem:[%s4639_s1 + $0x5c0] ss:$16 sps:$4 sm:$0xff]  }
  0x35   :  { %1706 = vmatprep.subr.bf16.mxu1 %v3077_v2  ;;  %v3154_v63 = vld [vmem:[%s4639_s1 + $0x7c4] ss:$16 sps:$4 sm:$0xff]   ;;  %v3152_v1 = vld [vmem:[%s4639_s1 + $0x7c0] ss:$16 sps:$4 sm:$0xff]  }
  0x36   :  { %v3157_v2 = vld [vmem:[%s4639_s1 + $0x5a4] ss:$16 sps:$4 sm:$0xff]   ;;  %v3161_v9 = vld [vmem:[%s4639_s1 + $0x580] ss:$16 sps:$4 sm:$0xff]  }
  0x37   :  { %1666 = vmatpush2.bf16.msra.mxu0 %v3079_v5  ;;  %v3160_v4 = vld [vmem:[%s4639_s1 + $0x7a4] ss:$16 sps:$4 sm:$0xff]   ;;  %v3155_v5 = vld [vmem:[%s4639_s1 + $0x5a0] ss:$16 sps:$4 sm:$0xff]  }
  0x38   :  { %1707 = vmatpush2.bf16.msra.mxu1 %v3080_v6  ;;  %1667 = vmatprep.subr.bf16.mxu0 %v3081_v7  ;;  %v3158_v6 = vld [vmem:[%s4639_s1 + $0x7a0] ss:$16 sps:$4 sm:$0xff]   ;;  %v3163_v7 = vld [vmem:[%s4639_s1 + $0x584] ss:$16 sps:$4 sm:$0xff]  }
  0x39   :  { %1708 = vmatprep.subr.bf16.mxu1 %v3083_v8  ;;  %v3166_v8 = vld [vmem:[%s4639_s1 + $0x784] ss:$16 sps:$4 sm:$0xff]   ;;  %v3176_v20 = vld [vmem:[%s4639_s1 + $0x740] ss:$16 sps:$4 sm:$0xff]  }
  0x3a   :  { %v3181_v21 = vld [vmem:[%s4639_s1 + $0x524] ss:$16 sps:$4 sm:$0xff]  }
  0x3b   :  { %1668 = vmatpush2.bf16.msra.mxu0 %v3085_v10  ;;  %v3164_v10 = vld [vmem:[%s4639_s1 + $0x780] ss:$16 sps:$4 sm:$0xff]  }
  0x3c   :  { %1709 = vmatpush2.bf16.msra.mxu1 %v3086_v11  ;;  %1669 = vmatprep.subr.bf16.mxu0 %v3087_v12  ;;  %v3169_v11 = vld [vmem:[%s4639_s1 + $0x564] ss:$16 sps:$4 sm:$0xff]  }
  0x3d   :  { %1710 = vmatprep.subr.bf16.mxu1 %v3089_v13  ;;  %v3172_v12 = vld [vmem:[%s4639_s1 + $0x764] ss:$16 sps:$4 sm:$0xff]   ;;  %v3167_v13 = vld [vmem:[%s4639_s1 + $0x560] ss:$16 sps:$4 sm:$0xff]  }
  0x3f   :  { %1670 = vmatpush2.bf16.msra.mxu0 %v3091_v16  ;;  %v3170_v16 = vld [vmem:[%s4639_s1 + $0x760] ss:$16 sps:$4 sm:$0xff]  }
  0x40   :  { %1711 = vmatpush2.bf16.msra.mxu1 %v3092_v17  ;;  %1721 = vmatprep.subr.bf16.mxu0 %v3097_v18  ;;  %v3175_v17 = vld [vmem:[%s4639_s1 + $0x544] ss:$16 sps:$4 sm:$0xff]  }
  0x41   :  { %1762 = vmatprep.subr.bf16.mxu1 %v3100_v19  ;;  %v3178_v18 = vld [vmem:[%s4639_s1 + $0x744] ss:$16 sps:$4 sm:$0xff]   ;;  %v3173_v19 = vld [vmem:[%s4639_s1 + $0x540] ss:$16 sps:$4 sm:$0xff]  }
  0x42   :  { %1672 = vmatmul.mubr.bf16.vlgmr.msra.gmra.mxu0 %v3757_v22 }
  0x43   :  { %1713 = vmatmul.mubr.bf16.vlgmr.msra.gmra.mxu1 %v3759_v23  ;;  %1722 = vmatpush1.bf16.msra.mxu0 %v3095_v24  ;;  %v3184_v24 = vld [vmem:[%s4639_s1 + $0x724] ss:$16 sps:$4 sm:$0xff]  }
  0x44   :  { %1763 = vmatpush1.bf16.msra.mxu1 %v3098_v25  ;;  %1723 = vmatprep.subr.bf16.mxu0 %v3103_v26  ;;  %v3179_v25 = vld [vmem:[%s4639_s1 + $0x520] ss:$16 sps:$4 sm:$0xff]  }
  0x45   :  { %1764 = vmatprep.subr.bf16.mxu1 %v3106_v27  ;;  %1753 = vmatprep.mubr.bf16.mxu0 %v3773_v28  ;;  %v3182_v26 = vld [vmem:[%s4639_s1 + $0x720] ss:$16 sps:$4 sm:$0xff]   ;;  %v3187_v27 = vld [vmem:[%s4639_s1 + $0x504] ss:$16 sps:$4 sm:$0xff]  }
  0x46   :  { %1794 = vmatprep.mubr.bf16.mxu1 %v3775_v29 }
  0x47   :  { %1724 = vmatpush1.bf16.msra.mxu0 %v3101_v30  ;;  %v3190_v30 = vld [vmem:[%s4639_s1 + $0x704] ss:$16 sps:$4 sm:$0xff]  }
  0x48   :  { %1765 = vmatpush1.bf16.msra.mxu1 %v3104_v31  ;;  %1725 = vmatprep.subr.bf16.mxu0 %v3109_v32  ;;  %v3185_v31 = vld [vmem:[%s4639_s1 + $0x500] ss:$16 sps:$4 sm:$0xff]  }
  0x49   :  { %1766 = vmatprep.subr.bf16.mxu1 %v3112_v33  ;;  %v3188_v32 = vld [vmem:[%s4639_s1 + $0x700] ss:$16 sps:$4 sm:$0xff]   ;;  %v3193_v33 = vld [vmem:[%s4639_s1 + $0xec] ss:$16 sps:$4 sm:$0xff]  }
  0x4b   :  { %1726 = vmatpush1.bf16.msra.mxu0 %v3107_v34  ;;  %v3196_v34 = vld [vmem:[%s4639_s1 + $0x2ec] ss:$16 sps:$4 sm:$0xff]  }
  0x4c   :  { %1767 = vmatpush1.bf16.msra.mxu1 %v3110_v35  ;;  %1727 = vmatprep.subr.bf16.mxu0 %v3115_v36  ;;  %v3963_v35 = vpack.c.bf16 %v3737_v14, %v3737_v14  ;;  %v3967_v36 = vpack.c.bf16 %v3739_v15, %v3739_v15  ;;  %v3199_v14 = vld [vmem:[%s4639_s1 + $0xcc] ss:$16 sps:$4 sm:$0xff]  }
  0x4d   :  { %1768 = vmatprep.subr.bf16.mxu1 %v3118_v37  ;;  %v3191_v37 = vld [vmem:[%s4639_s1 + $0xe8] ss:$16 sps:$4 sm:$0xff]   ;;  %v3202_v15 = vld [vmem:[%s4639_s1 + $0x2cc] ss:$16 sps:$4 sm:$0xff]  }
  0x4f   :  { %1728 = vmatpush1.bf16.msra.mxu0 %v3113_v38  ;;  %v3194_v38 = vld [vmem:[%s4639_s1 + $0x2e8] ss:$16 sps:$4 sm:$0xff]  }
  0x50   :  { %1769 = vmatpush1.bf16.msra.mxu1 %v3116_v39  ;;  %1729 = vmatprep.subr.bf16.mxu0 %v3121_v40  ;;  %v3197_v39 = vld [vmem:[%s4639_s1 + $0xc8] ss:$16 sps:$4 sm:$0xff]  }
  0x51   :  { %1770 = vmatprep.subr.bf16.mxu1 %v3124_v41  ;;  %v3200_v40 = vld [vmem:[%s4639_s1 + $0x2c8] ss:$16 sps:$4 sm:$0xff]   ;;  %v3205_v41 = vld [vmem:[%s4639_s1 + $0xac] ss:$16 sps:$4 sm:$0xff]  }
  0x53   :  { %1730 = vmatpush1.bf16.msra.mxu0 %v3119_v42  ;;  %v3208_v42 = vld [vmem:[%s4639_s1 + $0x2ac] ss:$16 sps:$4 sm:$0xff]  }
  0x54   :  { %1771 = vmatpush1.bf16.msra.mxu1 %v3122_v44  ;;  %1731 = vmatprep.subr.bf16.mxu0 %v3127_v45  ;;  %v3203_v44 = vld [vmem:[%s4639_s1 + $0xa8] ss:$16 sps:$4 sm:$0xff]  }
  0x55   :  { %1772 = vmatprep.subr.bf16.mxu1 %v3130_v46  ;;  %v3206_v45 = vld [vmem:[%s4639_s1 + $0x2a8] ss:$16 sps:$4 sm:$0xff]   ;;  %v3211_v46 = vld [vmem:[%s4639_s1 + $0x8c] ss:$16 sps:$4 sm:$0xff]  }
  0x57   :  { %1732 = vmatpush1.bf16.msra.mxu0 %v3125_v47  ;;  %v3212_v47 = vld [vmem:[%s4639_s1 + $0x288] ss:$16 sps:$4 sm:$0xff]  }
  0x58   :  { %1773 = vmatpush1.bf16.msra.mxu1 %v3128_v48  ;;  %1733 = vmatprep.subr.bf16.mxu0 %v3133_v49  ;;  %v3217_v48 = vld [vmem:[%s4639_s1 + $0x6c] ss:$16 sps:$4 sm:$0xff]  }
  0x59   :  { %1774 = vmatprep.subr.bf16.mxu1 %v3136_v50  ;;  %v3220_v49 = vld [vmem:[%s4639_s1 + $0x26c] ss:$16 sps:$4 sm:$0xff]   ;;  %v3215_v50 = vld [vmem:[%s4639_s1 + $0x68] ss:$16 sps:$4 sm:$0xff]  }
  0x5b   :  { %1734 = vmatpush1.bf16.msra.mxu0 %v3131_v51  ;;  %v3218_v51 = vld [vmem:[%s4639_s1 + $0x268] ss:$16 sps:$4 sm:$0xff]  }
  0x5c   :  { %1775 = vmatpush1.bf16.msra.mxu1 %v3134_v52  ;;  %1735 = vmatprep.subr.bf16.mxu0 %v3139_v53  ;;  %v3223_v52 = vld [vmem:[%s4639_s1 + $0x4c] ss:$16 sps:$4 sm:$0xff]  }
  0x5d   :  { %1776 = vmatprep.subr.bf16.mxu1 %v3142_v54  ;;  %v3226_v53 = vld [vmem:[%s4639_s1 + $0x24c] ss:$16 sps:$4 sm:$0xff]   ;;  %v3221_v54 = vld [vmem:[%s4639_s1 + $0x48] ss:$16 sps:$4 sm:$0xff]  }
  0x5f   :  { %1736 = vmatpush1.bf16.msra.mxu0 %v3137_v55  ;;  %v3224_v55 = vld [vmem:[%s4639_s1 + $0x248] ss:$16 sps:$4 sm:$0xff]  }
  0x60   :  { %1777 = vmatpush1.bf16.msra.mxu1 %v3140_v56  ;;  %1737 = vmatprep.subr.bf16.mxu0 %v3145_v57  ;;  %v3229_v56 = vld [vmem:[%s4639_s1 + $0x2c] ss:$16 sps:$4 sm:$0xff]  }
  0x61   :  { %1778 = vmatprep.subr.bf16.mxu1 %v3148_v58  ;;  %v3232_v57 = vld [vmem:[%s4639_s1 + $0x22c] ss:$16 sps:$4 sm:$0xff]   ;;  %v3227_v58 = vld [vmem:[%s4639_s1 + $0x28] ss:$16 sps:$4 sm:$0xff]  }
  0x63   :  { %1738 = vmatpush2.bf16.msra.mxu0 %v3143_v59  ;;  %v3230_v59 = vld [vmem:[%s4639_s1 + $0x228] ss:$16 sps:$4 sm:$0xff]  }
  0x64   :  { %1779 = vmatpush2.bf16.msra.mxu1 %v3146_v60  ;;  %1739 = vmatprep.subr.bf16.mxu0 %v3151_v62  ;;  %v3235_v60 = vld [vmem:[%s4639_s1 + $0xc] ss:$16 sps:$4 sm:$0xff]  }
  0x65   :  { %1780 = vmatprep.subr.bf16.mxu1 %v3154_v63  ;;  %v3238_v62 = vld [vmem:[%s4639_s1 + $0x20c] ss:$16 sps:$4 sm:$0xff]   ;;  %v3233_v63 = vld [vmem:[%s4639_s1 + $0x8] ss:$16 sps:$4 sm:$0xff]  }
  0x67   :  { %1740 = vmatpush2.bf16.msra.mxu0 %v3149_v0  ;;  %v3236_v0 = vld [vmem:[%s4639_s1 + $0x208] ss:$16 sps:$4 sm:$0xff]  }
  0x68   :  { %1781 = vmatpush2.bf16.msra.mxu1 %v3152_v1  ;;  %1741 = vmatprep.subr.bf16.mxu0 %v3157_v2  ;;  %v3241_v1 = vld [vmem:[%s4639_s1 + $0x1ec] ss:$16 sps:$4 sm:$0xff]  }
  0x69   :  { %1782 = vmatprep.subr.bf16.mxu1 %v3160_v4  ;;  %v3244_v2 = vld [vmem:[%s4639_s1 + $0x3ec] ss:$16 sps:$4 sm:$0xff]   ;;  %v3239_v4 = vld [vmem:[%s4639_s1 + $0x1e8] ss:$16 sps:$4 sm:$0xff]  }
  0x6b   :  { %1742 = vmatpush2.bf16.msra.mxu0 %v3155_v5  ;;  %v3242_v5 = vld [vmem:[%s4639_s1 + $0x3e8] ss:$16 sps:$4 sm:$0xff]  }
  0x6c   :  { %1783 = vmatpush2.bf16.msra.mxu1 %v3158_v6  ;;  %1743 = vmatprep.subr.bf16.mxu0 %v3163_v7  ;;  %v3247_v6 = vld [vmem:[%s4639_s1 + $0x1cc] ss:$16 sps:$4 sm:$0xff]  }
  0x6d   :  { %1784 = vmatprep.subr.bf16.mxu1 %v3166_v8  ;;  %v3250_v7 = vld [vmem:[%s4639_s1 + $0x3cc] ss:$16 sps:$4 sm:$0xff]   ;;  %v3245_v8 = vld [vmem:[%s4639_s1 + $0x1c8] ss:$16 sps:$4 sm:$0xff]  }
  0x6f   :  { %1744 = vmatpush2.bf16.msra.mxu0 %v3161_v9  ;;  %v3248_v9 = vld [vmem:[%s4639_s1 + $0x3c8] ss:$16 sps:$4 sm:$0xff]  }
  0x70   :  { %1785 = vmatpush2.bf16.msra.mxu1 %v3164_v10  ;;  %1745 = vmatprep.subr.bf16.mxu0 %v3169_v11  ;;  %v3253_v10 = vld [vmem:[%s4639_s1 + $0x1ac] ss:$16 sps:$4 sm:$0xff]  }
  0x71   :  { %1786 = vmatprep.subr.bf16.mxu1 %v3172_v12  ;;  %v3256_v11 = vld [vmem:[%s4639_s1 + $0x3ac] ss:$16 sps:$4 sm:$0xff]   ;;  %v3251_v12 = vld [vmem:[%s4639_s1 + $0x1a8] ss:$16 sps:$4 sm:$0xff]  }
  0x73   :  { %1746 = vmatpush2.bf16.msra.mxu0 %v3167_v13  ;;  %v3254_v13 = vld [vmem:[%s4639_s1 + $0x3a8] ss:$16 sps:$4 sm:$0xff]  }
  0x74   :  { %1787 = vmatpush2.bf16.msra.mxu1 %v3170_v16  ;;  %1747 = vmatprep.subr.bf16.mxu0 %v3175_v17  ;;  %v3259_v16 = vld [vmem:[%s4639_s1 + $0x18c] ss:$16 sps:$4 sm:$0xff]  }
  0x75   :  { %1788 = vmatprep.subr.bf16.mxu1 %v3178_v18  ;;  %v3262_v17 = vld [vmem:[%s4639_s1 + $0x38c] ss:$16 sps:$4 sm:$0xff]   ;;  %v3257_v18 = vld [vmem:[%s4639_s1 + $0x188] ss:$16 sps:$4 sm:$0xff]  }
  0x77   :  { %1748 = vmatpush2.bf16.msra.mxu0 %v3173_v19  ;;  %v3260_v19 = vld [vmem:[%s4639_s1 + $0x388] ss:$16 sps:$4 sm:$0xff]  }
  0x78   :  { %1789 = vmatpush2.bf16.msra.mxu1 %v3176_v20  ;;  %1749 = vmatprep.subr.bf16.mxu0 %v3181_v21  ;;  %v3265_v20 = vld [vmem:[%s4639_s1 + $0x16c] ss:$16 sps:$4 sm:$0xff]  }
  0x79   :  { %1790 = vmatprep.subr.bf16.mxu1 %v3184_v24  ;;  %v3268_v21 = vld [vmem:[%s4639_s1 + $0x36c] ss:$16 sps:$4 sm:$0xff]   ;;  %v3263_v24 = vld [vmem:[%s4639_s1 + $0x168] ss:$16 sps:$4 sm:$0xff]  }
  0x7b   :  { %1750 = vmatpush2.bf16.msra.mxu0 %v3179_v25  ;;  %v3266_v25 = vld [vmem:[%s4639_s1 + $0x368] ss:$16 sps:$4 sm:$0xff]  }
  0x7c   :  { %1791 = vmatpush2.bf16.msra.mxu1 %v3182_v26  ;;  %1751 = vmatprep.subr.bf16.mxu0 %v3187_v27  ;;  %v3271_v26 = vld [vmem:[%s4639_s1 + $0x14c] ss:$16 sps:$4 sm:$0xff]  }
  0x7d   :  { %1792 = vmatprep.subr.bf16.mxu1 %v3190_v30  ;;  %v3274_v27 = vld [vmem:[%s4639_s1 + $0x34c] ss:$16 sps:$4 sm:$0xff]   ;;  %v3269_v30 = vld [vmem:[%s4639_s1 + $0x148] ss:$16 sps:$4 sm:$0xff]  }
  0x7f   :  { %1752 = vmatpush2.bf16.msra.mxu0 %v3185_v31  ;;  %v3272_v31 = vld [vmem:[%s4639_s1 + $0x348] ss:$16 sps:$4 sm:$0xff]  }
  0x80   :  { %1793 = vmatpush2.bf16.msra.mxu1 %v3188_v32  ;;  %1803 = vmatprep.subr.bf16.mxu0 %v3193_v33  ;;  %v3277_v32 = vld [vmem:[%s4639_s1 + $0x12c] ss:$16 sps:$4 sm:$0xff]  }
  0x81   :  { %1844 = vmatprep.subr.bf16.mxu1 %v3196_v34  ;;  %v3280_v33 = vld [vmem:[%s4639_s1 + $0x32c] ss:$16 sps:$4 sm:$0xff]   ;;  %v3275_v34 = vld [vmem:[%s4639_s1 + $0x128] ss:$16 sps:$4 sm:$0xff]  }
  0x82   :  { %1754 = vmatmul.mubr.bf16.vlgmr.msra.gmra.mxu0 %v3963_v35 }
  0x83   :  { %1795 = vmatmul.mubr.bf16.vlgmr.msra.gmra.mxu1 %v3967_v36  ;;  %1804 = vmatpush1.bf16.msra.mxu0 %v3191_v37  ;;  %v3278_v37 = vld [vmem:[%s4639_s1 + $0x328] ss:$16 sps:$4 sm:$0xff]  }
  0x84   :  { %1845 = vmatpush1.bf16.msra.mxu1 %v3194_v38  ;;  %1805 = vmatprep.subr.bf16.mxu0 %v3199_v14  ;;  %v3283_v38 = vld [vmem:[%s4639_s1 + $0x10c] ss:$16 sps:$4 sm:$0xff]  }
  0x85   :  { %1846 = vmatprep.subr.bf16.mxu1 %v3202_v15  ;;  %1835 = vmatprep.mubr.bf16.mxu0 %v3692_v61  ;;  %v3214_v61 = vld [vmem:[%s4639_s1 + $0x28c] ss:$16 sps:$4 sm:$0xff]   ;;  %v3281_v15 = vld [vmem:[%s4639_s1 + $0x108] ss:$16 sps:$4 sm:$0xff]  }
  0x86   :  { %1876 = vmatprep.mubr.bf16.mxu1 %v3706_v3  ;;  %v3209_v3 = vld [vmem:[%s4639_s1 + $0x88] ss:$16 sps:$4 sm:$0xff]   ;;  %v3286_v14 = vld [vmem:[%s4639_s1 + $0x30c] ss:$16 sps:$4 sm:$0xff]  }
  0x87   :  { %1806 = vmatpush1.bf16.msra.mxu0 %v3197_v39  ;;  %v3284_v39 = vld [vmem:[%s4639_s1 + $0x308] ss:$16 sps:$4 sm:$0xff]  }
  0x88   :  { %1847 = vmatpush1.bf16.msra.mxu1 %v3200_v40  ;;  %1807 = vmatprep.subr.bf16.mxu0 %v3205_v41  ;;  %v3289_v40 = vld [vmem:[%s4639_s1 + $0x4ec] ss:$16 sps:$4 sm:$0xff]  }
  0x89   :  { %1848 = vmatprep.subr.bf16.mxu1 %v3208_v42  ;;  %v3292_v41 = vld [vmem:[%s4639_s1 + $0x6ec] ss:$16 sps:$4 sm:$0xff]   ;;  %v3287_v42 = vld [vmem:[%s4639_s1 + $0x4e8] ss:$16 sps:$4 sm:$0xff]  }
  0x8b   :  { %1808 = vmatpush1.bf16.msra.mxu0 %v3203_v44  ;;  %v3290_v44 = vld [vmem:[%s4639_s1 + $0x6e8] ss:$16 sps:$4 sm:$0xff]  }
  0x8c   :  { %1849 = vmatpush1.bf16.msra.mxu1 %v3206_v45  ;;  %1809 = vmatprep.subr.bf16.mxu0 %v3211_v46  ;;  %v3295_v45 = vld [vmem:[%s4639_s1 + $0x4cc] ss:$16 sps:$4 sm:$0xff]  }
  0x8d   :  { %1850 = vmatprep.subr.bf16.mxu1 %v3214_v61  ;;  %v3298_v46 = vld [vmem:[%s4639_s1 + $0x6cc] ss:$16 sps:$4 sm:$0xff]   ;;  %v3293_v61 = vld [vmem:[%s4639_s1 + $0x4c8] ss:$16 sps:$4 sm:$0xff]  }
  0x8f   :  { %1810 = vmatpush1.bf16.msra.mxu0 %v3209_v3  ;;  %v3296_v3 = vld [vmem:[%s4639_s1 + $0x6c8] ss:$16 sps:$4 sm:$0xff]  }
  0x90   :  { %1851 = vmatpush1.bf16.msra.mxu1 %v3212_v47  ;;  %1811 = vmatprep.subr.bf16.mxu0 %v3217_v48  ;;  %v3301_v47 = vld [vmem:[%s4639_s1 + $0x4ac] ss:$16 sps:$4 sm:$0xff]  }
  0x91   :  { %1852 = vmatprep.subr.bf16.mxu1 %v3220_v49  ;;  %v3304_v48 = vld [vmem:[%s4639_s1 + $0x6ac] ss:$16 sps:$4 sm:$0xff]   ;;  %v3299_v49 = vld [vmem:[%s4639_s1 + $0x4a8] ss:$16 sps:$4 sm:$0xff]  }
  0x93   :  { %1812 = vmatpush1.bf16.msra.mxu0 %v3215_v50  ;;  %v3310_v50 = vld [vmem:[%s4639_s1 + $0x68c] ss:$16 sps:$4 sm:$0xff]  }
  0x94   :  { %1853 = vmatpush1.bf16.msra.mxu1 %v3218_v51  ;;  %1813 = vmatprep.subr.bf16.mxu0 %v3223_v52  ;;  %v3313_v51 = vld [vmem:[%s4639_s1 + $0x46c] ss:$16 sps:$4 sm:$0xff]  }
  0x95   :  { %1854 = vmatprep.subr.bf16.mxu1 %v3226_v53  ;;  %v3316_v52 = vld [vmem:[%s4639_s1 + $0x66c] ss:$16 sps:$4 sm:$0xff]   ;;  %v3311_v53 = vld [vmem:[%s4639_s1 + $0x468] ss:$16 sps:$4 sm:$0xff]  }
  0x97   :  { %1814 = vmatpush1.bf16.msra.mxu0 %v3221_v54  ;;  %v3314_v54 = vld [vmem:[%s4639_s1 + $0x668] ss:$16 sps:$4 sm:$0xff]  }
  0x98   :  { %1855 = vmatpush1.bf16.msra.mxu1 %v3224_v55  ;;  %1815 = vmatprep.subr.bf16.mxu0 %v3229_v56  ;;  %v3319_v55 = vld [vmem:[%s4639_s1 + $0x44c] ss:$16 sps:$4 sm:$0xff]  }
  0x99   :  { %1856 = vmatprep.subr.bf16.mxu1 %v3232_v57  ;;  %v3322_v56 = vld [vmem:[%s4639_s1 + $0x64c] ss:$16 sps:$4 sm:$0xff]   ;;  %v3317_v57 = vld [vmem:[%s4639_s1 + $0x448] ss:$16 sps:$4 sm:$0xff]  }
  0x9b   :  { %1816 = vmatpush1.bf16.msra.mxu0 %v3227_v58  ;;  %v3320_v58 = vld [vmem:[%s4639_s1 + $0x648] ss:$16 sps:$4 sm:$0xff]  }
  0x9c   :  { %1857 = vmatpush1.bf16.msra.mxu1 %v3230_v59  ;;  %1817 = vmatprep.subr.bf16.mxu0 %v3235_v60  ;;  %v3325_v59 = vld [vmem:[%s4639_s1 + $0x42c] ss:$16 sps:$4 sm:$0xff]  }
  0x9d   :  { %1858 = vmatprep.subr.bf16.mxu1 %v3238_v62  ;;  %v3328_v60 = vld [vmem:[%s4639_s1 + $0x62c] ss:$16 sps:$4 sm:$0xff]   ;;  %v3323_v62 = vld [vmem:[%s4639_s1 + $0x428] ss:$16 sps:$4 sm:$0xff]  }
  0x9f   :  { %1818 = vmatpush1.bf16.msra.mxu0 %v3233_v63  ;;  %v3326_v63 = vld [vmem:[%s4639_s1 + $0x628] ss:$16 sps:$4 sm:$0xff]  }
  0xa0   :  { %1859 = vmatpush1.bf16.msra.mxu1 %v3236_v0  ;;  %1819 = vmatprep.subr.bf16.mxu0 %v3241_v1  ;;  %v3331_v0 = vld [vmem:[%s4639_s1 + $0x40c] ss:$16 sps:$4 sm:$0xff]  }
  0xa1   :  { %1860 = vmatprep.subr.bf16.mxu1 %v3244_v2  ;;  %v3334_v1 = vld [vmem:[%s4639_s1 + $0x60c] ss:$16 sps:$4 sm:$0xff]   ;;  %v3329_v2 = vld [vmem:[%s4639_s1 + $0x408] ss:$16 sps:$4 sm:$0xff]  }
  0xa3   :  { %1820 = vmatpush2.bf16.msra.mxu0 %v3239_v4  ;;  %v3332_v4 = vld [vmem:[%s4639_s1 + $0x608] ss:$16 sps:$4 sm:$0xff]  }
  0xa4   :  { %1861 = vmatpush2.bf16.msra.mxu1 %v3242_v5  ;;  %1821 = vmatprep.subr.bf16.mxu0 %v3247_v6  ;;  %v3337_v5 = vld [vmem:[%s4639_s1 + $0x5ec] ss:$16 sps:$4 sm:$0xff]  }
  0xa5   :  { %1862 = vmatprep.subr.bf16.mxu1 %v3250_v7  ;;  %v3340_v6 = vld [vmem:[%s4639_s1 + $0x7ec] ss:$16 sps:$4 sm:$0xff]   ;;  %v3335_v7 = vld [vmem:[%s4639_s1 + $0x5e8] ss:$16 sps:$4 sm:$0xff]  }
  0xa7   :  { %1822 = vmatpush2.bf16.msra.mxu0 %v3245_v8  ;;  %v3338_v8 = vld [vmem:[%s4639_s1 + $0x7e8] ss:$16 sps:$4 sm:$0xff]  }
  0xa8   :  { %1863 = vmatpush2.bf16.msra.mxu1 %v3248_v9  ;;  %1823 = vmatprep.subr.bf16.mxu0 %v3253_v10  ;;  %v3343_v9 = vld [vmem:[%s4639_s1 + $0x5cc] ss:$16 sps:$4 sm:$0xff]  }
  0xa9   :  { %1864 = vmatprep.subr.bf16.mxu1 %v3256_v11  ;;  %v3346_v10 = vld [vmem:[%s4639_s1 + $0x7cc] ss:$16 sps:$4 sm:$0xff]   ;;  %v3341_v11 = vld [vmem:[%s4639_s1 + $0x5c8] ss:$16 sps:$4 sm:$0xff]  }
  0xab   :  { %1824 = vmatpush2.bf16.msra.mxu0 %v3251_v12  ;;  %v3344_v12 = vld [vmem:[%s4639_s1 + $0x7c8] ss:$16 sps:$4 sm:$0xff]  }
  0xac   :  { %1865 = vmatpush2.bf16.msra.mxu1 %v3254_v13  ;;  %1825 = vmatprep.subr.bf16.mxu0 %v3259_v16  ;;  %v3349_v13 = vld [vmem:[%s4639_s1 + $0x5ac] ss:$16 sps:$4 sm:$0xff]  }
  0xad   :  { %1866 = vmatprep.subr.bf16.mxu1 %v3262_v17  ;;  %v3352_v16 = vld [vmem:[%s4639_s1 + $0x7ac] ss:$16 sps:$4 sm:$0xff]   ;;  %v3347_v17 = vld [vmem:[%s4639_s1 + $0x5a8] ss:$16 sps:$4 sm:$0xff]  }
  0xaf   :  { %1826 = vmatpush2.bf16.msra.mxu0 %v3257_v18  ;;  %v3350_v18 = vld [vmem:[%s4639_s1 + $0x7a8] ss:$16 sps:$4 sm:$0xff]  }
  0xb0   :  { %1867 = vmatpush2.bf16.msra.mxu1 %v3260_v19  ;;  %1827 = vmatprep.subr.bf16.mxu0 %v3265_v20  ;;  %v3355_v19 = vld [vmem:[%s4639_s1 + $0x58c] ss:$16 sps:$4 sm:$0xff]  }
  0xb1   :  { %1868 = vmatprep.subr.bf16.mxu1 %v3268_v21  ;;  %v3358_v20 = vld [vmem:[%s4639_s1 + $0x78c] ss:$16 sps:$4 sm:$0xff]   ;;  %v3353_v21 = vld [vmem:[%s4639_s1 + $0x588] ss:$16 sps:$4 sm:$0xff]  }
  0xb3   :  { %1828 = vmatpush2.bf16.msra.mxu0 %v3263_v24  ;;  %v3356_v24 = vld [vmem:[%s4639_s1 + $0x788] ss:$16 sps:$4 sm:$0xff]  }
  0xb4   :  { %1869 = vmatpush2.bf16.msra.mxu1 %v3266_v25  ;;  %1829 = vmatprep.subr.bf16.mxu0 %v3271_v26  ;;  %v3361_v25 = vld [vmem:[%s4639_s1 + $0x56c] ss:$16 sps:$4 sm:$0xff]  }
  0xb5   :  { %1870 = vmatprep.subr.bf16.mxu1 %v3274_v27  ;;  %v3364_v26 = vld [vmem:[%s4639_s1 + $0x76c] ss:$16 sps:$4 sm:$0xff]   ;;  %v3359_v27 = vld [vmem:[%s4639_s1 + $0x568] ss:$16 sps:$4 sm:$0xff]  }
  0xb7   :  { %1830 = vmatpush2.bf16.msra.mxu0 %v3269_v30  ;;  %v3362_v30 = vld [vmem:[%s4639_s1 + $0x768] ss:$16 sps:$4 sm:$0xff]  }
  0xb8   :  { %1871 = vmatpush2.bf16.msra.mxu1 %v3272_v31  ;;  %1831 = vmatprep.subr.bf16.mxu0 %v3277_v32  ;;  %v3367_v31 = vld [vmem:[%s4639_s1 + $0x54c] ss:$16 sps:$4 sm:$0xff]  }
  0xb9   :  { %1872 = vmatprep.subr.bf16.mxu1 %v3280_v33  ;;  %v3370_v32 = vld [vmem:[%s4639_s1 + $0x74c] ss:$16 sps:$4 sm:$0xff]   ;;  %v3365_v33 = vld [vmem:[%s4639_s1 + $0x548] ss:$16 sps:$4 sm:$0xff]  }
  0xbb   :  { %1832 = vmatpush2.bf16.msra.mxu0 %v3275_v34  ;;  %v3368_v34 = vld [vmem:[%s4639_s1 + $0x748] ss:$16 sps:$4 sm:$0xff]  }
  0xbc   :  { %1873 = vmatpush2.bf16.msra.mxu1 %v3278_v37  ;;  %1833 = vmatprep.subr.bf16.mxu0 %v3283_v38  ;;  %v3373_v37 = vld [vmem:[%s4639_s1 + $0x52c] ss:$16 sps:$4 sm:$0xff]  }
  0xbd   :  { %1874 = vmatprep.subr.bf16.mxu1 %v3286_v14  ;;  %v3376_v38 = vld [vmem:[%s4639_s1 + $0x72c] ss:$16 sps:$4 sm:$0xff]   ;;  %v3371_v14 = vld [vmem:[%s4639_s1 + $0x528] ss:$16 sps:$4 sm:$0xff]  }
  0xbf   :  { %1834 = vmatpush2.bf16.msra.mxu0 %v3281_v15  ;;  %v3374_v15 = vld [vmem:[%s4639_s1 + $0x728] ss:$16 sps:$4 sm:$0xff]  }
  0xc0   :  { %1875 = vmatpush2.bf16.msra.mxu1 %v3284_v39  ;;  %1885 = vmatprep.subr.bf16.mxu0 %v3289_v40  ;;  %v3379_v39 = vld [vmem:[%s4639_s1 + $0x50c] ss:$16 sps:$4 sm:$0xff]  }
  0xc1   :  { %1926 = vmatprep.subr.bf16.mxu1 %v3292_v41  ;;  %v3382_v40 = vld [vmem:[%s4639_s1 + $0x70c] ss:$16 sps:$4 sm:$0xff]   ;;  %v3377_v41 = vld [vmem:[%s4639_s1 + $0x508] ss:$16 sps:$4 sm:$0xff]  }
  0xc2   :  { %1836 = vmatmul.mubr.bf16.vlgmr.msra.gmra.mxu0 %v3757_v22  ;;  %v3302_v22 = vld [vmem:[%s4639_s1 + $0x6a8] ss:$16 sps:$4 sm:$0xff]  }
  0xc3   :  { %1877 = vmatmul.mubr.bf16.vlgmr.msra.gmra.mxu1 %v3759_v23  ;;  %1886 = vmatpush1.bf16.msra.mxu0 %v3287_v42  ;;  %v3307_v23 = vld [vmem:[%s4639_s1 + $0x48c] ss:$16 sps:$4 sm:$0xff]   ;;  %v3380_v42 = vld [vmem:[%s4639_s1 + $0x708] ss:$16 sps:$4 sm:$0xff]  }
  0xc4   :  { %1927 = vmatpush1.bf16.msra.mxu1 %v3290_v44  ;;  %1887 = vmatprep.subr.bf16.mxu0 %v3295_v45  ;;  %v3385_v44 = vld [vmem:[%s4641_s3 + $0x74] ss:$8 sps:$4 sm:$0xff]   ;;  %v3383_v45 = vld [vmem:[%s4641_s3 + $0x70] ss:$8 sps:$4 sm:$0xff]  }
  0xc5   :  { %1928 = vmatprep.subr.bf16.mxu1 %v3298_v46  ;;  %1917 = vmatprep.mubr.bf16.mxu0 %v3773_v28  ;;  %v3305_v28 = vld [vmem:[%s4639_s1 + $0x488] ss:$16 sps:$4 sm:$0xff]   ;;  %v3388_v46 = vld [vmem:[%s4641_s3 + $0x64] ss:$8 sps:$4 sm:$0xff]  }
  0xc6   :  { %1958 = vmatprep.mubr.bf16.mxu1 %v3775_v29  ;;  %v3308_v29 = vld [vmem:[%s4639_s1 + $0x688] ss:$16 sps:$4 sm:$0xff]  }
  0xc7   :  { %1888 = vmatpush1.bf16.msra.mxu0 %v3293_v61 }
  0xc8   :  { %1929 = vmatpush1.bf16.msra.mxu1 %v3296_v3  ;;  %1889 = vmatprep.subr.bf16.mxu0 %v3301_v47  ;;  %v3386_v47 = vld [vmem:[%s4641_s3 + $0x60] ss:$8 sps:$4 sm:$0xff]  }
  0xc9   :  { %1930 = vmatprep.subr.bf16.mxu1 %v3304_v48 }
  0xcb   :  { %1890 = vmatpush1.bf16.msra.mxu0 %v3299_v49 }
  0xcc   :  { %1931 = vmatpush1.bf16.msra.mxu1 %v3302_v22  ;;  %1891 = vmatprep.subr.bf16.mxu0 %v3307_v23  ;;  %v3391_v22 = vld [vmem:[%s4641_s3 + $0x54] ss:$8 sps:$4 sm:$0xff]  }
  0xcd   :  { %1932 = vmatprep.subr.bf16.mxu1 %v3310_v50 }
  0xcf   :  { %1892 = vmatpush1.bf16.msra.mxu0 %v3305_v28 }
  0xd0   :  { %1933 = vmatpush1.bf16.msra.mxu1 %v3308_v29  ;;  %1893 = vmatprep.subr.bf16.mxu0 %v3313_v51  ;;  %v3394_v29 = vld [vmem:[%s4641_s3 + $0x44] ss:$8 sps:$4 sm:$0xff]   ;;  %v3431_v51 = vld [vmem:[%s4641_s3 + $0x170] ss:$8 sps:$4 sm:$0xff]  }
  0xd1   :  { %1934 = vmatprep.subr.bf16.mxu1 %v3316_v52  ;;  %v3433_v52 = vld [vmem:[%s4641_s3 + $0x174] ss:$8 sps:$4 sm:$0xff]  }
  0xd3   :  { %1894 = vmatpush1.bf16.msra.mxu0 %v3311_v53  ;;  %v3436_v53 = vld [vmem:[%s4641_s3 + $0x164] ss:$8 sps:$4 sm:$0xff]  }
  0xd4   :  { %1935 = vmatpush1.bf16.msra.mxu1 %v3314_v54  ;;  %1895 = vmatprep.subr.bf16.mxu0 %v3319_v55  ;;  %v3392_v54 = vld [vmem:[%s4641_s3 + $0x40] ss:$8 sps:$4 sm:$0xff]  }
  0xd5   :  { %1936 = vmatprep.subr.bf16.mxu1 %v3322_v56  ;;  %v3434_v55 = vld [vmem:[%s4641_s3 + $0x160] ss:$8 sps:$4 sm:$0xff]   ;;  %v3397_v56 = vld [vmem:[%s4641_s3 + $0x34] ss:$8 sps:$4 sm:$0xff]  }
  0xd7   :  { %1896 = vmatpush1.bf16.msra.mxu0 %v3317_v57  ;;  %v3439_v57 = vld [vmem:[%s4641_s3 + $0x154] ss:$8 sps:$4 sm:$0xff]  }
  0xd8   :  { %1937 = vmatpush1.bf16.msra.mxu1 %v3320_v58  ;;  %1897 = vmatprep.subr.bf16.mxu0 %v3325_v59  ;;  %v3395_v58 = vld [vmem:[%s4641_s3 + $0x30] ss:$8 sps:$4 sm:$0xff]  }
  0xd9   :  { %1938 = vmatprep.subr.bf16.mxu1 %v3328_v60  ;;  %v3437_v59 = vld [vmem:[%s4641_s3 + $0x150] ss:$8 sps:$4 sm:$0xff]   ;;  %v3400_v60 = vld [vmem:[%s4641_s3 + $0x24] ss:$8 sps:$4 sm:$0xff]  }
  0xdb   :  { %1898 = vmatpush1.bf16.msra.mxu0 %v3323_v62  ;;  %v3442_v62 = vld [vmem:[%s4641_s3 + $0x144] ss:$8 sps:$4 sm:$0xff]  }
  0xdc   :  { %1939 = vmatpush1.bf16.msra.mxu1 %v3326_v63  ;;  %1899 = vmatprep.subr.bf16.mxu0 %v3331_v0  ;;  %v3398_v63 = vld [vmem:[%s4641_s3 + $0x20] ss:$8 sps:$4 sm:$0xff]  }
  0xdd   :  { %1940 = vmatprep.subr.bf16.mxu1 %v3334_v1  ;;  %v3440_v0 = vld [vmem:[%s4641_s3 + $0x140] ss:$8 sps:$4 sm:$0xff]   ;;  %v3403_v1 = vld [vmem:[%s4641_s3 + $0x14] ss:$8 sps:$4 sm:$0xff]  }
  0xdf   :  { %1900 = vmatpush1.bf16.msra.mxu0 %v3329_v2  ;;  %v3445_v2 = vld [vmem:[%s4641_s3 + $0x134] ss:$8 sps:$4 sm:$0xff]  }
  0xe0   :  { %1941 = vmatpush1.bf16.msra.mxu1 %v3332_v4  ;;  %1901 = vmatprep.subr.bf16.mxu0 %v3337_v5  ;;  %v3401_v4 = vld [vmem:[%s4641_s3 + $0x10] ss:$8 sps:$4 sm:$0xff]  }
  0xe1   :  { %1942 = vmatprep.subr.bf16.mxu1 %v3340_v6  ;;  %v3443_v5 = vld [vmem:[%s4641_s3 + $0x130] ss:$8 sps:$4 sm:$0xff]   ;;  %v3406_v6 = vld [vmem:[%s4641_s3 + $0x4] ss:$8 sps:$4 sm:$0xff]  }
  0xe3   :  { %1902 = vmatpush2.bf16.msra.mxu0 %v3335_v7  ;;  %v3448_v7 = vld [vmem:[%s4641_s3 + $0x124] ss:$8 sps:$4 sm:$0xff]  }
  0xe4   :  { %1943 = vmatpush2.bf16.msra.mxu1 %v3338_v8  ;;  %1903 = vmatprep.subr.bf16.mxu0 %v3343_v9  ;;  %v3404_v8 = vld [vmem:[%s4641_s3] ss:$8 sps:$4 sm:$0xff]  }
  0xe5   :  { %1944 = vmatprep.subr.bf16.mxu1 %v3346_v10  ;;  %v3446_v9 = vld [vmem:[%s4641_s3 + $0x120] ss:$8 sps:$4 sm:$0xff]   ;;  %v3409_v10 = vld [vmem:[%s4641_s3 + $0xf4] ss:$8 sps:$4 sm:$0xff]  }
  0xe7   :  { %1904 = vmatpush2.bf16.msra.mxu0 %v3341_v11  ;;  %v3451_v11 = vld [vmem:[%s4641_s3 + $0x114] ss:$8 sps:$4 sm:$0xff]  }
  0xe8   :  { %1945 = vmatpush2.bf16.msra.mxu1 %v3344_v12  ;;  %1905 = vmatprep.subr.bf16.mxu0 %v3349_v13  ;;  %v3407_v12 = vld [vmem:[%s4641_s3 + $0xf0] ss:$8 sps:$4 sm:$0xff]  }
  0xe9   :  { %1946 = vmatprep.subr.bf16.mxu1 %v3352_v16  ;;  %v3449_v13 = vld [vmem:[%s4641_s3 + $0x110] ss:$8 sps:$4 sm:$0xff]   ;;  %v3412_v16 = vld [vmem:[%s4641_s3 + $0xe4] ss:$8 sps:$4 sm:$0xff]  }
  0xeb   :  { %1906 = vmatpush2.bf16.msra.mxu0 %v3347_v17  ;;  %v3454_v17 = vld [vmem:[%s4641_s3 + $0x104] ss:$8 sps:$4 sm:$0xff]  }
  0xec   :  { %1947 = vmatpush2.bf16.msra.mxu1 %v3350_v18  ;;  %1907 = vmatprep.subr.bf16.mxu0 %v3355_v19  ;;  %v3410_v18 = vld [vmem:[%s4641_s3 + $0xe0] ss:$8 sps:$4 sm:$0xff]  }
  0xed   :  { %1948 = vmatprep.subr.bf16.mxu1 %v3358_v20  ;;  %v3452_v19 = vld [vmem:[%s4641_s3 + $0x100] ss:$8 sps:$4 sm:$0xff]   ;;  %v3415_v20 = vld [vmem:[%s4641_s3 + $0xd4] ss:$8 sps:$4 sm:$0xff]  }
  0xef   :  { %1908 = vmatpush2.bf16.msra.mxu0 %v3353_v21  ;;  %v3457_v21 = vld [vmem:[%s4641_s3 + $0x1f4] ss:$8 sps:$4 sm:$0xff]  }
  0xf0   :  { %1949 = vmatpush2.bf16.msra.mxu1 %v3356_v24  ;;  %1909 = vmatprep.subr.bf16.mxu0 %v3361_v25  ;;  %v3413_v24 = vld [vmem:[%s4641_s3 + $0xd0] ss:$8 sps:$4 sm:$0xff]  }
  0xf1   :  { %1950 = vmatprep.subr.bf16.mxu1 %v3364_v26  ;;  %v3455_v25 = vld [vmem:[%s4641_s3 + $0x1f0] ss:$8 sps:$4 sm:$0xff]   ;;  %v3418_v26 = vld [vmem:[%s4641_s3 + $0xc4] ss:$8 sps:$4 sm:$0xff]  }
  0xf3   :  { %1910 = vmatpush2.bf16.msra.mxu0 %v3359_v27  ;;  %v3460_v27 = vld [vmem:[%s4641_s3 + $0x1e4] ss:$8 sps:$4 sm:$0xff]  }
  0xf4   :  { %1951 = vmatpush2.bf16.msra.mxu1 %v3362_v30  ;;  %1911 = vmatprep.subr.bf16.mxu0 %v3367_v31  ;;  %v3416_v30 = vld [vmem:[%s4641_s3 + $0xc0] ss:$8 sps:$4 sm:$0xff]  }
  0xf5   :  { %1952 = vmatprep.subr.bf16.mxu1 %v3370_v32  ;;  %v3458_v31 = vld [vmem:[%s4641_s3 + $0x1e0] ss:$8 sps:$4 sm:$0xff]   ;;  %v3421_v32 = vld [vmem:[%s4641_s3 + $0xb4] ss:$8 sps:$4 sm:$0xff]  }
  0xf7   :  { %1912 = vmatpush2.bf16.msra.mxu0 %v3365_v33  ;;  %v3463_v33 = vld [vmem:[%s4641_s3 + $0x1d4] ss:$8 sps:$4 sm:$0xff]  }
  0xf8   :  { %1953 = vmatpush2.bf16.msra.mxu1 %v3368_v34  ;;  %1913 = vmatprep.subr.bf16.mxu0 %v3373_v37  ;;  %v3419_v34 = vld [vmem:[%s4641_s3 + $0xb0] ss:$8 sps:$4 sm:$0xff]  }
  0xf9   :  { %1954 = vmatprep.subr.bf16.mxu1 %v3376_v38  ;;  %v3461_v37 = vld [vmem:[%s4641_s3 + $0x1d0] ss:$8 sps:$4 sm:$0xff]   ;;  %v3424_v38 = vld [vmem:[%s4641_s3 + $0xa4] ss:$8 sps:$4 sm:$0xff]  }
  0xfb   :  { %1914 = vmatpush2.bf16.msra.mxu0 %v3371_v14  ;;  %v3466_v14 = vld [vmem:[%s4641_s3 + $0x1c4] ss:$8 sps:$4 sm:$0xff]  }
  0xfc   :  { %1955 = vmatpush2.bf16.msra.mxu1 %v3374_v15  ;;  %1915 = vmatprep.subr.bf16.mxu0 %v3379_v39  ;;  %v3422_v15 = vld [vmem:[%s4641_s3 + $0xa0] ss:$8 sps:$4 sm:$0xff]  }
  0xfd   :  { %1956 = vmatprep.subr.bf16.mxu1 %v3382_v40  ;;  %v3464_v39 = vld [vmem:[%s4641_s3 + $0x1c0] ss:$8 sps:$4 sm:$0xff]   ;;  %v3427_v40 = vld [vmem:[%s4641_s3 + $0x94] ss:$8 sps:$4 sm:$0xff]  }
  0xff   :  { %1916 = vmatpush2.bf16.msra.mxu0 %v3377_v41  ;;  %v3469_v41 = vld [vmem:[%s4641_s3 + $0x1b4] ss:$8 sps:$4 sm:$0xff]  }
 0x100   :  { %1957 = vmatpush2.bf16.msra.mxu1 %v3380_v42  ;;  %2371 = vmatprep.subr.bf16.mxu0 %v3385_v44  ;;  %v341_v42 = vsub.s32 0, %v3653_v43  ;;  %v4531_v44 = vld [vmem:[%s4642_s2] sm:$0xf] }
 0x101   :  { %2412 = vmatprep.subr.bf16.mxu1 %v3433_v52  ;;  %v3470_v52 = vld [vmem:[%s4641_s3 + $0x1a0] ss:$8 sps:$4 sm:$0xff]  }
 0x102   :  { %v4364_v61 = vpop.f32.mrf.mxu0  ;;  %1918 = vmatmul.mubr.bf16.vlgmr.msra.gmra.mxu0 %v3963_v35  ;;  %v3389_v35 = vld [vmem:[%s4641_s3 + $0x50] ss:$8 sps:$4 sm:$0xff]  }
 0x103   :  { %v4366_v3 = vpop.f32.mrf.mxu1  ;;  %1959 = vmatmul.mubr.bf16.vlgmr.msra.gmra.mxu1 %v3967_v36  ;;  %2372 = vmatpush1.bf16.msra.mxu0 %v3383_v45  ;;  %v345_v45 = vsub.s32 1, %v3653_v43 }
 0x104   :  { %v4373_v48 = vpop.f32.mrf.mxu0  ;;  %2373 = vmatprep.subr.bf16.mxu0 %v3388_v46  ;;  %2413 = vmatpush1.bf16.msra.mxu1 %v3431_v51  ;;  %v3425_v46 = vld [vmem:[%s4641_s3 + $0x90] ss:$8 sps:$4 sm:$0xff]  }
 0x105   :  { %v4375_v49 = vpop.f32.mrf.mxu1  ;;  %2414 = vmatprep.subr.bf16.mxu1 %v3436_v53 }
 0x106   :  { %v1677_v23 = vpop.f32.mrf.mxu0 }
 0x107   :  { %v1718_v50 = vpop.f32.mrf.mxu1  ;;  %2374 = vmatpush1.bf16.msra.mxu0 %v3386_v47  ;;  %v3467_v47 = vld [vmem:[%s4641_s3 + $0x1b0] ss:$8 sps:$4 sm:$0xff]   ;;  %v342_v23 = vrot.slane %v4531_v44, %v341_v42 }
 0x108   :  { %v1678_v36 = vpop.f32.mrf.mxu0  ;;  %2375 = vmatprep.subr.bf16.mxu0 %v3391_v22  ;;  %2415 = vmatpush1.bf16.msra.mxu1 %v3434_v55  ;;  %v3430_v22 = vld [vmem:[%s4641_s3 + $0x84] ss:$8 sps:$4 sm:$0xff]   ;;  %v346_v50 = vrot.slane %v4531_v44, %v345_v45 }
 0x109   :  { %v1719_v28 = vpop.f32.mrf.mxu1  ;;  %2416 = vmatprep.subr.bf16.mxu1 %v3439_v57  ;;  %v1674_v36 = vadd.f32 %v4364_v61, %v342_v23  ;;  %v3475_v57 = vld [vmem:[%s4641_s3 + $0x194] ss:$8 sps:$4 sm:$0xff]  }
 0x10a   :  { %v1676_v28 = vadd.f32 %v4373_v48, %v346_v50 }
 0x10b   :  { %2376 = vmatpush1.bf16.msra.mxu0 %v3389_v35  ;;  %v3428_v35 = vld [vmem:[%s4641_s3 + $0x80] ss:$8 sps:$4 sm:$0xff]   ;;  %v1715_v51 = vadd.f32 %v4366_v3, %v1674_v36  ;;  %v3473_v3 = vld [vmem:[%s4641_s3 + $0x190] ss:$8 sps:$4 sm:$0xff]  }
 0x10c   :  { %2377 = vmatprep.subr.bf16.mxu0 %v3394_v29  ;;  %2417 = vmatpush1.bf16.msra.mxu1 %v3437_v59  ;;  %v3472_v29 = vld [vmem:[%s4641_s3 + $0x1a4] ss:$8 sps:$4 sm:$0xff]   ;;  %v1717_v55 = vadd.f32 %v4375_v49, %v1676_v28 }
 0x10d   :  { %2418 = vmatprep.subr.bf16.mxu1 %v3442_v62 }
 0x10f   :  { %2378 = vmatpush1.bf16.msra.mxu0 %v3392_v54 }
 0x110   :  { %2379 = vmatprep.subr.bf16.mxu0 %v3397_v56  ;;  %2419 = vmatpush1.bf16.msra.mxu1 %v3440_v0 }
 0x111   :  { %2420 = vmatprep.subr.bf16.mxu1 %v3445_v2  ;;  %v3478_v2 = vld [vmem:[%s4641_s3 + $0x184] ss:$8 sps:$4 sm:$0xff]  }
 0x113   :  { %2380 = vmatpush1.bf16.msra.mxu0 %v3395_v58 }
 0x114   :  { %2381 = vmatprep.subr.bf16.mxu0 %v3400_v60  ;;  %2421 = vmatpush1.bf16.msra.mxu1 %v3443_v5  ;;  %v3476_v5 = vld [vmem:[%s4641_s3 + $0x180] ss:$8 sps:$4 sm:$0xff]  }
 0x115   :  { %2422 = vmatprep.subr.bf16.mxu1 %v3448_v7 }
 0x117   :  { %2382 = vmatpush1.bf16.msra.mxu0 %v3398_v63 }
 0x118   :  { %2383 = vmatprep.subr.bf16.mxu0 %v3403_v1  ;;  %2423 = vmatpush1.bf16.msra.mxu1 %v3446_v9 }
 0x119   :  { %2424 = vmatprep.subr.bf16.mxu1 %v3451_v11 }
 0x11b   :  { %2384 = vmatpush1.bf16.msra.mxu0 %v3401_v4 }
 0x11c   :  { %2385 = vmatprep.subr.bf16.mxu0 %v3406_v6  ;;  %2425 = vmatpush1.bf16.msra.mxu1 %v3449_v13 }
 0x11d   :  { %2426 = vmatprep.subr.bf16.mxu1 %v3454_v17 }
 0x11f   :  { %2386 = vmatpush1.bf16.msra.mxu0 %v3404_v8 }
 0x120   :  { %2387 = vmatprep.subr.bf16.mxu0 %v3409_v10  ;;  %2427 = vmatpush1.bf16.msra.mxu1 %v3452_v19  ;;  %v3480_v19 = vld [vmem:[%s4643_s5 + $0x38] sm:$0xff]  }
 0x121   :  { %2428 = vmatprep.subr.bf16.mxu1 %v3457_v21  ;;  %v3482_v21 = vld [vmem:[%s4643_s5 + $0x30] sm:$0xff]  }
 0x123   :  { %2388 = vmatpush2.bf16.msra.mxu0 %v3407_v12 }
 0x124   :  { %2389 = vmatprep.subr.bf16.mxu0 %v3412_v16  ;;  %2429 = vmatpush2.bf16.msra.mxu1 %v3455_v25  ;;  %v3484_v25 = vld [vmem:[%s4643_s5 + $0x28] sm:$0xff]  }
 0x125   :  { %2430 = vmatprep.subr.bf16.mxu1 %v3460_v27  ;;  %v3486_v27 = vld [vmem:[%s4643_s5 + $0x20] sm:$0xff]  }
 0x127   :  { %2390 = vmatpush2.bf16.msra.mxu0 %v3410_v18  ;;  %v3479_v18 = vld [vmem:[%s4643_s5 + $0x78] sm:$0xff]  }
 0x128   :  { %2391 = vmatprep.subr.bf16.mxu0 %v3415_v20  ;;  %2431 = vmatpush2.bf16.msra.mxu1 %v3458_v31  ;;  %v3481_v20 = vld [vmem:[%s4643_s5 + $0x70] sm:$0xff]   ;;  %v3488_v31 = vld [vmem:[%s4643_s5 + $0x18] sm:$0xff]  }
 0x129   :  { %2432 = vmatprep.subr.bf16.mxu1 %v3463_v33  ;;  %v3490_v33 = vld [vmem:[%s4643_s5 + $0x10] sm:$0xff]  }
 0x12b   :  { %2392 = vmatpush2.bf16.msra.mxu0 %v3413_v24  ;;  %v3483_v24 = vld [vmem:[%s4643_s5 + $0x68] sm:$0xff]  }
 0x12c   :  { %2393 = vmatprep.subr.bf16.mxu0 %v3418_v26  ;;  %2433 = vmatpush2.bf16.msra.mxu1 %v3461_v37  ;;  %v3485_v26 = vld [vmem:[%s4643_s5 + $0x60] sm:$0xff]   ;;  %v353_v37 = vsub.s32 3, %v3653_v43 }
 0x12d   :  { %2434 = vmatprep.subr.bf16.mxu1 %v3466_v14 }
 0x12e   :  { %v354_v14 = vrot.slane %v4531_v44, %v353_v37 }
 0x12f   :  { %2394 = vmatpush2.bf16.msra.mxu0 %v3416_v30  ;;  %v3487_v30 = vld [vmem:[%s4643_s5 + $0x58] sm:$0xff]  }
 0x130   :  { %2395 = vmatprep.subr.bf16.mxu0 %v3421_v32  ;;  %2435 = vmatpush2.bf16.msra.mxu1 %v3464_v39  ;;  %v3489_v32 = vld [vmem:[%s4643_s5 + $0x50] sm:$0xff]  }
 0x131   :  { %2436 = vmatprep.subr.bf16.mxu1 %v3469_v41 }
 0x133   :  { %2396 = vmatpush2.bf16.msra.mxu0 %v3419_v34  ;;  %v349_v34 = vsub.s32 2, %v3653_v43  ;;  %v2957_v43 = vld [vmem:[%s4645_s6] ss:$0 sm:$0xff] }
 0x134   :  { %2397 = vmatprep.subr.bf16.mxu0 %v3424_v38  ;;  %2437 = vmatpush2.bf16.msra.mxu1 %v3467_v47 }
 0x135   :  { %2438 = vmatprep.subr.bf16.mxu1 %v3472_v29  ;;  %v350_v38 = vrot.slane %v4531_v44, %v349_v34 }
 0x137   :  { %2398 = vmatpush2.bf16.msra.mxu0 %v3422_v15 }
 0x138   :  { %2399 = vmatprep.subr.bf16.mxu0 %v3427_v40  ;;  %2439 = vmatpush2.bf16.msra.mxu1 %v3470_v52 }
 0x139   :  { %2440 = vmatprep.subr.bf16.mxu1 %v3475_v57  ;;  %v3492_v57 = vld [vmem:[%s4643_s5 + $0x8] sm:$0xff]  }
 0x13b   :  { %2400 = vmatpush2.bf16.msra.mxu0 %v3425_v46 }
 0x13c   :  { %2401 = vmatprep.subr.bf16.mxu0 %v3430_v22  ;;  %2441 = vmatpush2.bf16.msra.mxu1 %v3473_v3  ;;  %v3493_v3 = vld [vmem:[%s4643_s5 + $0x40] sm:$0xff]  }
 0x13d   :  { %2442 = vmatprep.subr.bf16.mxu1 %v3478_v2 }
 0x13f   :  { %2402 = vmatpush2.bf16.msra.mxu0 %v3428_v35 }
 0x140   :  { %2443 = vmatpush2.bf16.msra.mxu1 %v3476_v5  ;;  %2974 = vmatprep.subr.bf16.mxu0 %v3479_v18 }
 0x142   :  { %v1755_v53 = vpop.f32.mrf.mxu0 }
 0x143   :  { %v1796_v54 = vpop.f32.mrf.mxu1  ;;  %v1756_v56 = vadd.f32 %v1755_v53, %v1715_v51 }
 0x144   :  { %v1757_v61 = vpop.f32.mrf.mxu0 }
 0x145   :  { %v1798_v48 = vpop.f32.mrf.mxu1  ;;  %v1797_v58 = vadd.f32 %v1796_v54, %v1756_v56  ;;  %v1758_v59 = vadd.f32 %v1757_v61, %v1717_v55 }
 0x146   :  { %v1759_v60 = vpop.f32.mrf.mxu0 }
 0x147   :  { %v1800_v62 = vpop.f32.mrf.mxu1  ;;  %v1799_v63 = vadd.f32 %v1798_v48, %v1758_v59  ;;  %v1967_v49 = vmax.f32 %v1797_v58, 0.0  ;;  %v3491_v48 = vld [vmem:[%s4643_s5 + $0x48] sm:$0xff]   ;;  %v3494_v60 = vld [vmem:[%s4643_s5] sm:$0xff]  }
 0x148   :  { %v1760_v0 = vpop.f32.mrf.mxu0 }
 0x149   :  { %v1801_v1 = vpop.f32.mrf.mxu1  ;;  %v1968_v4 = vmax.f32 %v1799_v63, 0.0  ;;  %v1971_v7 = vpack.c.bf16 %v1967_v49, %v1967_v49  ;;  %v2039_v63 = vld [vmem:[%s4644_s4] sm:$0x3] }
 0x14a   :  { %v2044_v49 = vrot.slane %v2039_v63, %v341_v42  ;;  %v2048_v0 = vrot.slane %v2039_v63, %v345_v45 }
 0x14b   :  { %v1972_v6 = vpack.c.bf16 %v1968_v4, %v1968_v4 }
 0x14d   :  { %2403 = vmatprep.mubr.bf16.mxu0 %v1972_v6 }
 0x14e   :  { %2404 = vmatmul.mubr.bf16.vlgmr.msra.gmra.mxu0 %v1971_v7 }
 0x14f   :  { %2975 = vmatpush3.bf16.msra.mxu0 %v3480_v19 }
 0x150   :  { %2976 = vmatprep.subr.bf16.mxu0 %v3481_v20 }
 0x153   :  { %2977 = vmatpush3.bf16.msra.mxu0 %v3482_v21 }
 0x154   :  { %2978 = vmatprep.subr.bf16.mxu0 %v3483_v24 }
 0x157   :  { %2979 = vmatpush3.bf16.msra.mxu0 %v3484_v25 }
 0x158   :  { %2980 = vmatprep.subr.bf16.mxu0 %v3485_v26 }
 0x15b   :  { %2981 = vmatpush3.bf16.msra.mxu0 %v3486_v27 }
 0x15c   :  { %2982 = vmatprep.subr.bf16.mxu0 %v3487_v30 }
 0x15f   :  { %2983 = vmatpush3.bf16.msra.mxu0 %v3488_v31 }
 0x160   :  { %2984 = vmatprep.subr.bf16.mxu0 %v3489_v32 }
 0x163   :  { %2985 = vmatpush3.bf16.msra.mxu0 %v3490_v33 }
 0x164   :  { %2986 = vmatprep.subr.bf16.mxu0 %v3491_v48 }
 0x167   :  { %2987 = vmatpush3.bf16.msra.mxu0 %v3492_v57 }
 0x168   :  { %2988 = vmatprep.subr.bf16.mxu0 %v3493_v3 }
 0x16b   :  { %2989 = vmatpush3.bf16.msra.mxu0 %v3494_v60 }
 0x182   :  { %v1837_v8 = vpop.f32.mrf.mxu0 }
 0x183   :  { %v1878_v9 = vpop.f32.mrf.mxu1  ;;  %v1838_v15 = vadd.f32 %v1837_v8, %v350_v38 }
 0x184   :  { %v1839_v10 = vpop.f32.mrf.mxu0 }
 0x185   :  { %v1880_v11 = vpop.f32.mrf.mxu1  ;;  %v1840_v39 = vadd.f32 %v1839_v10, %v354_v14  ;;  %v1879_v40 = vadd.f32 %v1878_v9, %v1838_v15 }
 0x186   :  { %v1841_v12 = vpop.f32.mrf.mxu0 }
 0x187   :  { %v1882_v13 = vpop.f32.mrf.mxu1  ;;  %v1881_v47 = vadd.f32 %v1880_v11, %v1840_v39 }
 0x188   :  { %v1842_v16 = vpop.f32.mrf.mxu0 }
 0x189   :  { %v1883_v17 = vpop.f32.mrf.mxu1 }
 0x1c2   :  { %v1919_v41 = vpop.f32.mrf.mxu0 }
 0x1c3   :  { %v1960_v46 = vpop.f32.mrf.mxu1  ;;  %v1920_v22 = vadd.f32 %v1919_v41, %v1879_v40 }
 0x1c4   :  { %v1921_v23 = vpop.f32.mrf.mxu0 }
 0x1c5   :  { %v1962_v50 = vpop.f32.mrf.mxu1  ;;  %v1961_v35 = vadd.f32 %v1960_v46, %v1920_v22  ;;  %v1922_v36 = vadd.f32 %v1921_v23, %v1881_v47 }
 0x1c6   :  { %v1923_v28 = vpop.f32.mrf.mxu0 }
 0x1c7   :  { %v1964_v29 = vpop.f32.mrf.mxu1  ;;  %v1963_v51 = vadd.f32 %v1962_v50, %v1922_v36  ;;  %v1969_v52 = vmax.f32 %v1961_v35, 0.0 }
 0x1c8   :  { %v1924_v53 = vpop.f32.mrf.mxu0 }
 0x1c9   :  { %v1965_v54 = vpop.f32.mrf.mxu1  ;;  %v1970_v55 = vmax.f32 %v1963_v51, 0.0  ;;  %v1973_v44 = vpack.c.bf16 %v1969_v52, %v1969_v52 }
 0x1cb   :  { %v1974_v56 = vpack.c.bf16 %v1970_v55, %v1970_v55 }
 0x1cd   :  { %2444 = vmatprep.mubr.bf16.mxu1 %v1974_v56 }
 0x1ce   :  { %2445 = vmatmul.mubr.bf16.vlgmr.msra.gmra.mxu1 %v1973_v44 }
 0x20e   :  { %v2405_v61 = vpop.f32.mrf.mxu0 }
 0x20f   :  { %v2406_v1 = vadd.f32 %v2405_v61, %v2044_v49 }
 0x210   :  { %v2407_v58 = vpop.f32.mrf.mxu0 }
 0x211   :  { %v2408_v4 = vadd.f32 %v2407_v58, %v2048_v0 }
 0x212   :  { %v2409_v59 = vpop.f32.mrf.mxu0 }
 0x214   :  { %v2410_v62 = vpop.f32.mrf.mxu0 }
 0x28e   :  { %v2446_v2 = vpop.f32.mrf.mxu1 }
 0x28f   :  { %v2447_v5 = vadd.f32 %v2446_v2, %v2406_v1 }
 0x290   :  { %v2448_v6 = vpop.f32.mrf.mxu1 }
 0x291   :  { %v2449_v7 = vadd.f32 %v2448_v6, %v2408_v4  ;;  %v2453_v8 = vmax.f32 %v2447_v5, 0.0 }
 0x292   :  { %v2450_v9 = vpop.f32.mrf.mxu1 }
 0x293   :  { %v2454_v10 = vmax.f32 %v2449_v7, 0.0  ;;  %v2455_v13 = vpack.c.bf16 %v2453_v8, %v2453_v8 }
 0x294   :  { %v2451_v11 = vpop.f32.mrf.mxu1 }
 0x295   :  { %v2456_v12 = vpack.c.bf16 %v2454_v10, %v2454_v10 }
 0x297   :  { %2624 = vmatprep.mubr.bf16.mxu0 %v2456_v12 }
 0x298   :  { %2625 = vmatmul.mubr.bf16.vlgmr.msra.gmra.mxu0 %v2455_v13 }
 0x358   :  { %v2990_v16 = vpop.f32.mrf.mxu0 }
 0x35a   :  { %v2991_v42 = vpop.f32.mrf.mxu0 }
 0x35b   :  { %v2992_v45 = vadd.f32 %v2991_v42, %v2990_v16 }
 0x35c   :  { %v2993_v17 = vpop.f32.mrf.mxu0 }
 0x35d   :  { %v2627_v18 = vadd.f32 %v2992_v45, %v2957_v43 }
 0x35e   :  { %v2994_v19 = vpop.f32.mrf.mxu0 }
 0x35f   :  { %2632 = vst [vmem:[%s4646_s7] sm:$0x3] %v2627_v18 }

</bundles_post_ra>
